<compile_context>
chip_gen: v7x
topology: tpu7x:2x2x1
jax: 0.10.0
libtpu: 0.0.40
codegen_flags: <defaults>
</compile_context>

<pallas_src>
import math
from functools import partial

import jax
import jax.numpy as jnp
from jax.experimental import pallas as pl
from jax.experimental.pallas import tpu as pltpu

VMEM_SPEC = pl.BlockSpec(memory_space=pltpu.MemorySpace.VMEM)


# ----------------------------------------------------------------------------
# Fused 2-layer LSTM kernel (PyTorch gate order i, f, g, o).
# x_ref: (T*B, IN) time-major, bf16.  Weights pre-transposed: (IN|H, 4H) bf16.
# Biases: (1, 4H) f32 (b_ih + b_hh combined).  Output: final layer-2 h (B, H).
# ----------------------------------------------------------------------------
def _rnn_kernel(x_ref, wih0_ref, whh0_ref, b0_ref, wih1_ref, whh1_ref, b1_ref,
                o_ref, *, T):
    TB = x_ref.shape[0]
    B = TB // T
    H = whh0_ref.shape[0]

    # Hoisted layer-0 input projection over ALL timesteps (one matmul).
    gx = jnp.dot(x_ref[...], wih0_ref[...],
                 preferred_element_type=jnp.float32) + b0_ref[...]   # (T*B, 4H)

    h0 = jnp.zeros((B, H), jnp.float32)
    c0 = jnp.zeros((B, H), jnp.float32)
    h1 = jnp.zeros((B, H), jnp.float32)
    c1 = jnp.zeros((B, H), jnp.float32)

    def cell(gates, c_prev):                       # f32 elementwise math
        i = jax.nn.sigmoid(gates[:, 0:H])
        f = jax.nn.sigmoid(gates[:, H:2 * H])
        g = jnp.tanh(gates[:, 2 * H:3 * H])
        o = jax.nn.sigmoid(gates[:, 3 * H:4 * H])
        c_new = f * c_prev + i * g
        h_new = o * jnp.tanh(c_new)
        return h_new, c_new

    for t in range(T):                             # static, fully unrolled
        g0 = gx[t * B:(t + 1) * B, :] + jnp.dot(
            h0.astype(jnp.bfloat16), whh0_ref[...],
            preferred_element_type=jnp.float32)
        h0, c0 = cell(g0, c0)
        g1 = (jnp.dot(h0.astype(jnp.bfloat16), wih1_ref[...],
                      preferred_element_type=jnp.float32)
              + jnp.dot(h1.astype(jnp.bfloat16), whh1_ref[...],
                        preferred_element_type=jnp.float32)
              + b1_ref[...])
        h1, c1 = cell(g1, c1)

    o_ref[...] = h1


# ----------------------------------------------------------------------------
# conv1: im2col-patches @ W + b (+relu).  bf16 operands, f32 accumulate.
# ----------------------------------------------------------------------------
def _matmul_bias_kernel(x_ref, w_ref, b_ref, o_ref, *, relu):
    y = jnp.dot(x_ref[...], w_ref[...],
                preferred_element_type=jnp.float32) + b_ref[...]
    if relu:
        y = jnp.maximum(y, 0.0)
    o_ref[...] = y.astype(o_ref.dtype)


# ----------------------------------------------------------------------------
# conv2 matmul fused with 2x2 max-pool.  Patch rows are ordered
# (dy, dx, b, ph, pw) so the 4 pool candidates are 4 contiguous row blocks.
# ----------------------------------------------------------------------------
def _conv_pool_kernel(x_ref, w_ref, b_ref, o_ref):
    y = jnp.dot(x_ref[...], w_ref[...],
                preferred_element_type=jnp.float32) + b_ref[...]     # (4N, OC)
    n = o_ref.shape[0]
    p = jnp.maximum(jnp.maximum(y[0:n], y[n:2 * n]),
                    jnp.maximum(y[2 * n:3 * n], y[3 * n:4 * n]))
    o_ref[...] = p.astype(o_ref.dtype)


# ----------------------------------------------------------------------------
# Fused head: fc1+relu, fc2+log_softmax, rnn-out linear, conn1(+relu) on the
# (rnn, cnn) split weights (implicit concat), conn2+log_softmax.
# ----------------------------------------------------------------------------
def _head_kernel(flat_ref, h_ref, wfc1_ref, bfc1_ref, wfc2_ref, bfc2_ref,
                 wro_ref, bro_ref, wc1r_ref, wc1c_ref, bc1_ref,
                 wc2_ref, bc2_ref, o_ref):
    def log_softmax(z):
        m = jnp.max(z, axis=-1, keepdims=True)
        e = z - m
        return e - jnp.log(jnp.sum(jnp.exp(e), axis=-1, keepdims=True))

    f1 = jnp.dot(flat_ref[...], wfc1_ref[...],
                 preferred_element_type=jnp.float32) + bfc1_ref[...]
    f1 = jnp.maximum(f1, 0.0)                                         # (B, 408)

    cnn_out = log_softmax(
        jnp.dot(f1, wfc2_ref[...], preferred_element_type=jnp.float32)
        + bfc2_ref[...])                                              # (B, 25)

    rnn_out = jnp.dot(h_ref[...], wro_ref[...],
                      preferred_element_type=jnp.float32) + bro_ref[...]  # (B, 25)

    hz = (jnp.dot(rnn_out, wc1r_ref[...], preferred_element_type=jnp.float32)
          + jnp.dot(cnn_out, wc1c_ref[...], preferred_element_type=jnp.float32)
          + bc1_ref[...])
    hz = jnp.maximum(hz, 0.0)

    out = log_softmax(
        jnp.dot(hz, wc2_ref[...], preferred_element_type=jnp.float32)
        + bc2_ref[...])
    o_ref[...] = out


# ----------------------------------------------------------------------------
# XLA glue: im2col gathers (no post-gather transposes).
# ----------------------------------------------------------------------------
def _extract_patches_nhwc(x_nhwc, KH, KW, stride, padding):
    """x: (B, H, W, C) -> patches (B*OH*OW, KH*KW*C); rows (b,oh,ow), cols (kh,kw,c)."""
    B, H, W, C = x_nhwc.shape
    xp = jnp.pad(x_nhwc, ((0, 0), (padding, padding), (padding, padding), (0, 0)))
    OH = (H + 2 * padding - KH) // stride + 1
    OW = (W + 2 * padding - KW) // stride + 1
    r = (jnp.arange(OH) * stride)[:, None, None, None] \
        + jnp.arange(KH)[None, None, :, None]                     # (OH,1,KH,1)
    c = (jnp.arange(OW) * stride)[None, :, None, None] \
        + jnp.arange(KW)[None, None, None, :]                     # (1,OW,1,KW)
    patches = xp[:, r, c, :]                                       # (B,OH,OW,KH,KW,C)
    return patches.reshape(B * OH * OW, KH * KW * C), OH, OW


def _extract_patches_pool_order(x_nhwc, KH, KW, padding):
    """Stride-1 conv + later 2x2 pool: rows ordered (dy, dx, b, ph, pw), cols (kh,kw,c)."""
    B, H, W, C = x_nhwc.shape
    xp = jnp.pad(x_nhwc, ((0, 0), (padding, padding), (padding, padding), (0, 0)))
    OH = H + 2 * padding - KH + 1
    OW = W + 2 * padding - KW + 1
    PH, PW = OH // 2, OW // 2
    b_idx = jnp.arange(B).reshape(1, 1, B, 1, 1, 1, 1)
    r_idx = (jnp.arange(2).reshape(2, 1, 1, 1, 1, 1, 1)
             + 2 * jnp.arange(PH).reshape(1, 1, 1, PH, 1, 1, 1)
             + jnp.arange(KH).reshape(1, 1, 1, 1, 1, KH, 1))
    c_idx = (jnp.arange(2).reshape(1, 2, 1, 1, 1, 1, 1)
             + 2 * jnp.arange(PW).reshape(1, 1, 1, 1, PW, 1, 1)
             + jnp.arange(KW).reshape(1, 1, 1, 1, 1, 1, KW))
    patches = xp[b_idx, r_idx, c_idx, :]            # (2,2,B,PH,PW,KH,KW,C)
    return patches.reshape(4 * B * PH * PW, KH * KW * C), PH, PW


# ----------------------------------------------------------------------------
# Parameter init (PyTorch layouts) + one-time preparation for the kernels.
# ----------------------------------------------------------------------------
def init_params(key, in_channels, input_size, num_classes):
    keys = iter(jax.random.split(key, 24))
    H = 128

    def u(shape, fan):
        bound = 1.0 / math.sqrt(fan)
        return jax.random.uniform(next(keys), shape, jnp.float32, -bound, bound)

    p = {}
    p["conv1_w"] = u((48, in_channels, 15, 15), in_channels * 15 * 15)
    p["conv1_b"] = u((48,), in_channels * 15 * 15)
    p["conv2_w"] = u((96, 48, 5, 5), 48 * 5 * 5)
    p["conv2_b"] = u((96,), 48 * 5 * 5)
    p["fc1_w"] = u((408, 3456), 3456)
    p["fc1_b"] = u((408,), 3456)
    p["fc2_w"] = u((25, 408), 408)
    p["fc2_b"] = u((25,), 408)
    p["lstm0"] = (u((4 * H, input_size), H), u((4 * H, H), H),
                  u((4 * H,), H), u((4 * H,), H))
    p["lstm1"] = (u((4 * H, H), H), u((4 * H, H), H),
                  u((4 * H,), H), u((4 * H,), H))
    p["rnn_out_w"] = u((25, H), H)
    p["rnn_out_b"] = u((25,), H)
    p["conn1_w"] = u((num_classes * 2, 50), 50)
    p["conn1_b"] = u((num_classes * 2,), 50)
    p["conn2_w"] = u((num_classes, num_classes * 2), num_classes * 2)
    p["conn2_b"] = u((num_classes,), num_classes * 2)
    return p


def prepare_params(p):
    """One-time layout conversion: transposes, column permutations, bf16 casts."""
    q = {}
    # conv weights: (OC, C, KH, KW) -> (KH*KW*C, OC) matching patch column order.
    q["conv1_w"] = jnp.transpose(p["conv1_w"], (2, 3, 1, 0)) \
        .reshape(-1, p["conv1_w"].shape[0]).astype(jnp.bfloat16)
    q["conv1_b"] = p["conv1_b"].reshape(1, -1)
    q["conv2_w"] = jnp.transpose(p["conv2_w"], (2, 3, 1, 0)) \
        .reshape(-1, p["conv2_w"].shape[0]).astype(jnp.bfloat16)
    q["conv2_b"] = p["conv2_b"].reshape(1, -1)
    # fc1: torch flatten order is (c, ph, pw); our pooled flatten is (ph, pw, c).
    OC, PH, PW = 96, 6, 6
    w1 = p["fc1_w"].reshape(-1, OC, PH, PW).transpose(0, 2, 3, 1).reshape(-1, OC * PH * PW)
    q["fc1_w"] = w1.T.astype(jnp.bfloat16)                      # (3456, 408)
    q["fc1_b"] = p["fc1_b"].reshape(1, -1)
    q["fc2_w"] = p["fc2_w"].T                                   # (408, 25) f32
    q["fc2_b"] = p["fc2_b"].reshape(1, -1)
    # LSTM: pre-transposed bf16 weights, combined f32 bias.
    for layer in (0, 1):
        w_ih, w_hh, b_ih, b_hh = p[f"lstm{layer}"]
        q[f"lstm{layer}_wih"] = w_ih.T.astype(jnp.bfloat16)     # (IN|H, 4H)
        q[f"lstm{layer}_whh"] = w_hh.T.astype(jnp.bfloat16)     # (H, 4H)
        q[f"lstm{layer}_b"] = (b_ih + b_hh).reshape(1, -1)
    q["rnn_out_w"] = p["rnn_out_w"].T                           # (128, 25)
    q["rnn_out_b"] = p["rnn_out_b"].reshape(1, -1)
    # conn1 split along the concat boundary (rnn cols 0:25, cnn cols 25:50).
    q["conn1_w_rnn"] = p["conn1_w"][:, :25].T                   # (25, 2*nc)
    q["conn1_w_cnn"] = p["conn1_w"][:, 25:].T
    q["conn1_b"] = p["conn1_b"].reshape(1, -1)
    q["conn2_w"] = p["conn2_w"].T                               # (2*nc, nc)
    q["conn2_b"] = p["conn2_b"].reshape(1, -1)
    return q


# ----------------------------------------------------------------------------
# ZipperNN forward (4 pallas_calls).
# ----------------------------------------------------------------------------
def zipper_forward(params, x, y):
    B, T, IN = x.shape
    H = 128

    # --- RNN branch (one fused kernel) ---
    x2d = jnp.transpose(x, (1, 0, 2)).reshape(T * B, IN).astype(jnp.bfloat16)
    h_last = pl.pallas_call(
        partial(_rnn_kernel, T=T),
        out_shape=jax.ShapeDtypeStruct((B, H), jnp.float32),
        in_specs=[VMEM_SPEC] * 7,
        out_specs=VMEM_SPEC,
    )(x2d, params["lstm0_wih"], params["lstm0_whh"], params["lstm0_b"],
      params["lstm1_wih"], params["lstm1_whh"], params["lstm1_b"])

    # --- CNN branch ---
    y_nhwc = jnp.transpose(y, (0, 2, 3, 1)).astype(jnp.bfloat16)
    p1, OH1, OW1 = _extract_patches_nhwc(y_nhwc, 15, 15, stride=3, padding=2)
    c1 = pl.pallas_call(
        partial(_matmul_bias_kernel, relu=True),
        out_shape=jax.ShapeDtypeStruct((p1.shape[0], 48), jnp.bfloat16),
        in_specs=[VMEM_SPEC] * 3,
        out_specs=VMEM_SPEC,
    )(p1, params["conv1_w"], params["conv1_b"])
    c1 = c1.reshape(B, OH1, OW1, 48)                       # NHWC, cheap reshape

    p2, PH, PW = _extract_patches_pool_order(c1, 5, 5, padding=2)
    n_pool = B * PH * PW
    pooled = pl.pallas_call(
        _conv_pool_kernel,
        out_shape=jax.ShapeDtypeStruct((n_pool, 96), jnp.bfloat16),
        in_specs=[VMEM_SPEC] * 3,
        out_specs=VMEM_SPEC,
    )(p2, params["conv2_w"], params["conv2_b"])
    flat = pooled.reshape(B, PH * PW * 96)                 # (B, 3456), (ph,pw,c) order
    # dropout1 / dropout2 = identity (eval semantics)

    # --- fused head ---
    num_classes = params["conn2_w"].shape[1]
    out = pl.pallas_call(
        _head_kernel,
        out_shape=jax.ShapeDtypeStruct((B, num_classes), jnp.float32),
        in_specs=[VMEM_SPEC] * 13,
        out_specs=VMEM_SPEC,
    )(flat, h_last,
      params["fc1_w"], params["fc1_b"], params["fc2_w"], params["fc2_b"],
      params["rnn_out_w"], params["rnn_out_b"],
      params["conn1_w_rnn"], params["conn1_w_cnn"], params["conn1_b"],
      params["conn2_w"], params["conn2_b"])
    return out


if __name__ == "__main__":
    B, T, INPUT_SIZE = 2, 8, 16
    IN_CH, IMG = 3, 44      # 44x44 -> conv1 12x12 -> conv2 12x12 -> pool 6x6 -> 96*36 = 3456
    NUM_CLASSES = 10

    key = jax.random.PRNGKey(0)
    kp, kx, ky = jax.random.split(key, 3)
    raw_params = init_params(kp, IN_CH, INPUT_SIZE, NUM_CLASSES)
    params = prepare_params(raw_params)      # one-time layout prep (no per-forward transposes)

    x = jax.random.normal(kx, (B, T, INPUT_SIZE), jnp.float32)
    y = jax.random.normal(ky, (B, IN_CH, IMG, IMG), jnp.float32)

    out = jax.jit(zipper_forward)(params, x, y)
    out = jax.block_until_ready(out)
    assert out.shape == (B, NUM_CLASSES), out.shape
    assert bool(jnp.all(jnp.isfinite(out)))
    print("KERNEL_OK")
</pallas_src>

<mosaic_0001>
module attributes {stable_mosaic.version = 11 : i64} {
  func.func @_matmul_bias_kernel(%arg0: memref<288x675xbf16, #tpu.memory_space<vmem>>, %arg1: memref<675x48xbf16, #tpu.memory_space<vmem>>, %arg2: memref<1x48xf32, #tpu.memory_space<vmem>>, %arg3: memref<288x48xbf16, #tpu.memory_space<vmem>>) attributes {dimension_semantics = [], scalar_prefetch = 0 : i64, scratch_operands = 0 : i64, tpu.core_type = #tpu.core_type<tc>} {
    %c0 = arith.constant 0 : index
    %c0_0 = arith.constant 0 : index
    %0 = vector.load %arg0[%c0, %c0_0] : memref<288x675xbf16, #tpu.memory_space<vmem>>, vector<288x675xbf16>
    %c0_1 = arith.constant 0 : index
    %c0_2 = arith.constant 0 : index
    %1 = vector.load %arg1[%c0_1, %c0_2] : memref<675x48xbf16, #tpu.memory_space<vmem>>, vector<675x48xbf16>
    %cst = arith.constant dense<0.000000e+00> : vector<288x48xf32>
    %2 = tpu.matmul %0, %1, %cst {dimension_numbers = #tpu.dot_dimension_numbers<[1], [0], [0], [1], [0, 0, 1, 1], [], []>} : vector<288x675xbf16>, vector<675x48xbf16>, vector<288x48xf32> -> vector<288x48xf32>
    %c0_3 = arith.constant 0 : index
    %c0_4 = arith.constant 0 : index
    %3 = vector.load %arg2[%c0_3, %c0_4] : memref<1x48xf32, #tpu.memory_space<vmem>>, vector<1x48xf32>
    %4 = vector.broadcast %3 : vector<1x48xf32> to vector<288x48xf32>
    %5 = arith.addf %2, %4 : vector<288x48xf32>
    %cst_5 = arith.constant 0.000000e+00 : f32
    %6 = vector.broadcast %cst_5 : f32 to vector<288x48xf32>
    %7 = arith.maximumf %5, %6 : vector<288x48xf32>
    %8 = arith.truncf %7 : vector<288x48xf32> to vector<288x48xbf16>
    %c0_6 = arith.constant 0 : index
    %c0_7 = arith.constant 0 : index
    %9 = vector.load %arg3[%c0_6, %c0_7] : memref<288x48xbf16, #tpu.memory_space<vmem>>, vector<288x48xbf16>
    tpu.vector_store %arg3[%c0_6, %c0_7], %8 {strides = array<i32>} : memref<288x48xbf16, #tpu.memory_space<vmem>>, vector<288x48xbf16>,
    return
  }
}

module attributes {stable_mosaic.version = 11 : i64} {
  func.func @_conv_pool_kernel(%arg0: memref<288x1200xbf16, #tpu.memory_space<vmem>>, %arg1: memref<1200x96xbf16, #tpu.memory_space<vmem>>, %arg2: memref<1x96xf32, #tpu.memory_space<vmem>>, %arg3: memref<72x96xbf16, #tpu.memory_space<vmem>>) attributes {dimension_semantics = [], scalar_prefetch = 0 : i64, scratch_operands = 0 : i64, tpu.core_type = #tpu.core_type<tc>} {
    %c0 = arith.constant 0 : index
    %c0_0 = arith.constant 0 : index
    %0 = vector.load %arg0[%c0, %c0_0] : memref<288x1200xbf16, #tpu.memory_space<vmem>>, vector<288x1200xbf16>
    %c0_1 = arith.constant 0 : index
    %c0_2 = arith.constant 0 : index
    %1 = vector.load %arg1[%c0_1, %c0_2] : memref<1200x96xbf16, #tpu.memory_space<vmem>>, vector<1200x96xbf16>
    %cst = arith.constant dense<0.000000e+00> : vector<288x96xf32>
    %2 = tpu.matmul %0, %1, %cst {dimension_numbers = #tpu.dot_dimension_numbers<[1], [0], [0], [1], [0, 0, 1, 1], [], []>} : vector<288x1200xbf16>, vector<1200x96xbf16>, vector<288x96xf32> -> vector<288x96xf32>
    %c0_3 = arith.constant 0 : index
    %c0_4 = arith.constant 0 : index
    %3 = vector.load %arg2[%c0_3, %c0_4] : memref<1x96xf32, #tpu.memory_space<vmem>>, vector<1x96xf32>
    %4 = vector.broadcast %3 : vector<1x96xf32> to vector<288x96xf32>
    %5 = arith.addf %2, %4 : vector<288x96xf32>
    %6 = vector.extract_strided_slice %5 {offsets = [0, 0], sizes = [72, 96], strides = [1, 1]} : vector<288x96xf32> to vector<72x96xf32>
    %7 = vector.extract_strided_slice %5 {offsets = [72, 0], sizes = [72, 96], strides = [1, 1]} : vector<288x96xf32> to vector<72x96xf32>
    %8 = arith.maximumf %6, %7 : vector<72x96xf32>
    %9 = vector.extract_strided_slice %5 {offsets = [144, 0], sizes = [72, 96], strides = [1, 1]} : vector<288x96xf32> to vector<72x96xf32>
    %10 = vector.extract_strided_slice %5 {offsets = [216, 0], sizes = [72, 96], strides = [1, 1]} : vector<288x96xf32> to vector<72x96xf32>
    %11 = arith.maximumf %9, %10 : vector<72x96xf32>
    %12 = arith.maximumf %8, %11 : vector<72x96xf32>
    %13 = arith.truncf %12 : vector<72x96xf32> to vector<72x96xbf16>
    %c0_5 = arith.constant 0 : index
    %c0_6 = arith.constant 0 : index
    %14 = vector.load %arg3[%c0_5, %c0_6] : memref<72x96xbf16, #tpu.memory_space<vmem>>, vector<72x96xbf16>
    tpu.vector_store %arg3[%c0_5, %c0_6], %13 {strides = array<i32>} : memref<72x96xbf16, #tpu.memory_space<vmem>>, vector<72x96xbf16>,
    return
  }
}

module attributes {stable_mosaic.version = 11 : i64} {
  func.func @_rnn_kernel(%arg0: memref<16x16xbf16, #tpu.memory_space<vmem>>, %arg1: memref<16x512xbf16, #tpu.memory_space<vmem>>, %arg2: memref<128x512xbf16, #tpu.memory_space<vmem>>, %arg3: memref<1x512xf32, #tpu.memory_space<vmem>>, %arg4: memref<128x512xbf16, #tpu.memory_space<vmem>>, %arg5: memref<128x512xbf16, #tpu.memory_space<vmem>>, %arg6: memref<1x512xf32, #tpu.memory_space<vmem>>, %arg7: memref<2x128xf32, #tpu.memory_space<vmem>>) attributes {dimension_semantics = [], scalar_prefetch = 0 : i64, scratch_operands = 0 : i64, tpu.core_type = #tpu.core_type<tc>} {
    %c0 = arith.constant 0 : index
    %c0_0 = arith.constant 0 : index
    %0 = vector.load %arg0[%c0, %c0_0] : memref<16x16xbf16, #tpu.memory_space<vmem>>, vector<16x16xbf16>
    %c0_1 = arith.constant 0 : index
    %c0_2 = arith.constant 0 : index
    %1 = vector.load %arg1[%c0_1, %c0_2] : memref<16x512xbf16, #tpu.memory_space<vmem>>, vector<16x512xbf16>
    %cst = arith.constant dense<0.000000e+00> : vector<16x512xf32>
    %2 = tpu.matmul %0, %1, %cst {dimension_numbers = #tpu.dot_dimension_numbers<[1], [0], [0], [1], [0, 0, 1, 1], [], []>} : vector<16x16xbf16>, vector<16x512xbf16>, vector<16x512xf32> -> vector<16x512xf32>
    %c0_3 = arith.constant 0 : index
    %c0_4 = arith.constant 0 : index
    %3 = vector.load %arg3[%c0_3, %c0_4] : memref<1x512xf32, #tpu.memory_space<vmem>>, vector<1x512xf32>
    %4 = vector.broadcast %3 : vector<1x512xf32> to vector<16x512xf32>
    %5 = arith.addf %2, %4 : vector<16x512xf32>
    %cst_5 = arith.constant 0.000000e+00 : f32
    %6 = vector.broadcast %cst_5 : f32 to vector<2x128xf32>
    %cst_6 = arith.constant 0.000000e+00 : f32
    %7 = vector.broadcast %cst_6 : f32 to vector<2x128xf32>
    %cst_7 = arith.constant 0.000000e+00 : f32
    %8 = vector.broadcast %cst_7 : f32 to vector<2x128xf32>
    %cst_8 = arith.constant 0.000000e+00 : f32
    %9 = vector.broadcast %cst_8 : f32 to vector<2x128xf32>
    %10 = vector.extract_strided_slice %5 {offsets = [0, 0], sizes = [2, 512], strides = [1, 1]} : vector<16x512xf32> to vector<2x512xf32>
    %11 = arith.truncf %6 : vector<2x128xf32> to vector<2x128xbf16>
    %c0_9 = arith.constant 0 : index
    %c0_10 = arith.constant 0 : index
    %12 = vector.load %arg2[%c0_9, %c0_10] : memref<128x512xbf16, #tpu.memory_space<vmem>>, vector<128x512xbf16>
    %cst_11 = arith.constant dense<0.000000e+00> : vector<2x512xf32>
    %13 = tpu.matmul %11, %12, %cst_11 {dimension_numbers = #tpu.dot_dimension_numbers<[1], [0], [0], [1], [0, 0, 1, 1], [], []>} : vector<2x128xbf16>, vector<128x512xbf16>, vector<2x512xf32> -> vector<2x512xf32>
    %14 = arith.addf %10, %13 : vector<2x512xf32>
    %15 = vector.extract_strided_slice %14 {offsets = [0, 0], sizes = [2, 128], strides = [1, 1]} : vector<2x512xf32> to vector<2x128xf32>
    %16 = arith.negf %15 : vector<2x128xf32>
    %17 = math.exp %16 : vector<2x128xf32>
    %cst_12 = arith.constant 1.000000e+00 : f32
    %18 = vector.broadcast %cst_12 : f32 to vector<2x128xf32>
    %19 = arith.addf %18, %17 : vector<2x128xf32>
    %20 = arith.divf %18, %19 : vector<2x128xf32>
    %21 = vector.extract_strided_slice %14 {offsets = [0, 128], sizes = [2, 128], strides = [1, 1]} : vector<2x512xf32> to vector<2x128xf32>
    %22 = arith.negf %21 : vector<2x128xf32>
    %23 = math.exp %22 : vector<2x128xf32>
    %cst_13 = arith.constant 1.000000e+00 : f32
    %24 = vector.broadcast %cst_13 : f32 to vector<2x128xf32>
    %25 = arith.addf %24, %23 : vector<2x128xf32>
    %26 = arith.divf %24, %25 : vector<2x128xf32>
    %27 = vector.extract_strided_slice %14 {offsets = [0, 256], sizes = [2, 128], strides = [1, 1]} : vector<2x512xf32> to vector<2x128xf32>
    %28 = math.tanh %27 : vector<2x128xf32>
    %29 = vector.extract_strided_slice %14 {offsets = [0, 384], sizes = [2, 128], strides = [1, 1]} : vector<2x512xf32> to vector<2x128xf32>
    %30 = arith.negf %29 : vector<2x128xf32>
    %31 = math.exp %30 : vector<2x128xf32>
    %cst_14 = arith.constant 1.000000e+00 : f32
    %32 = vector.broadcast %cst_14 : f32 to vector<2x128xf32>
    %33 = arith.addf %32, %31 : vector<2x128xf32>
    %34 = arith.divf %32, %33 : vector<2x128xf32>
    %35 = arith.mulf %26, %7 : vector<2x128xf32>
    %36 = arith.mulf %20, %28 : vector<2x128xf32>
    %37 = arith.addf %35, %36 : vector<2x128xf32>
    %38 = math.tanh %37 : vector<2x128xf32>
    %39 = arith.mulf %34, %38 : vector<2x128xf32>
    %40 = arith.truncf %39 : vector<2x128xf32> to vector<2x128xbf16>
    %c0_15 = arith.constant 0 : index
    %c0_16 = arith.constant 0 : index
    %41 = vector.load %arg4[%c0_15, %c0_16] : memref<128x512xbf16, #tpu.memory_space<vmem>>, vector<128x512xbf16>
    %cst_17 = arith.constant dense<0.000000e+00> : vector<2x512xf32>
    %42 = tpu.matmul %40, %41, %cst_17 {dimension_numbers = #tpu.dot_dimension_numbers<[1], [0], [0], [1], [0, 0, 1, 1], [], []>} : vector<2x128xbf16>, vector<128x512xbf16>, vector<2x512xf32> -> vector<2x512xf32>
    %43 = arith.truncf %8 : vector<2x128xf32> to vector<2x128xbf16>
    %c0_18 = arith.constant 0 : index
    %c0_19 = arith.constant 0 : index
    %44 = vector.load %arg5[%c0_18, %c0_19] : memref<128x512xbf16, #tpu.memory_space<vmem>>, vector<128x512xbf16>
    %cst_20 = arith.constant dense<0.000000e+00> : vector<2x512xf32>
    %45 = tpu.matmul %43, %44, %cst_20 {dimension_numbers = #tpu.dot_dimension_numbers<[1], [0], [0], [1], [0, 0, 1, 1], [], []>} : vector<2x128xbf16>, vector<128x512xbf16>, vector<2x512xf32> -> vector<2x512xf32>
    %46 = arith.addf %42, %45 : vector<2x512xf32>
    %c0_21 = arith.constant 0 : index
    %c0_22 = arith.constant 0 : index
    %47 = vector.load %arg6[%c0_21, %c0_22] : memref<1x512xf32, #tpu.memory_space<vmem>>, vector<1x512xf32>
    %48 = vector.broadcast %47 : vector<1x512xf32> to vector<2x512xf32>
    %49 = arith.addf %46, %48 : vector<2x512xf32>
    %50 = vector.extract_strided_slice %49 {offsets = [0, 0], sizes = [2, 128], strides = [1, 1]} : vector<2x512xf32> to vector<2x128xf32>
    %51 = arith.negf %50 : vector<2x128xf32>
    %52 = math.exp %51 : vector<2x128xf32>
    %cst_23 = arith.constant 1.000000e+00 : f32
    %53 = vector.broadcast %cst_23 : f32 to vector<2x128xf32>
    %54 = arith.addf %53, %52 : vector<2x128xf32>
    %55 = arith.divf %53, %54 : vector<2x128xf32>
    %56 = vector.extract_strided_slice %49 {offsets = [0, 128], sizes = [2, 128], strides = [1, 1]} : vector<2x512xf32> to vector<2x128xf32>
    %57 = arith.negf %56 : vector<2x128xf32>
    %58 = math.exp %57 : vector<2x128xf32>
    %cst_24 = arith.constant 1.000000e+00 : f32
    %59 = vector.broadcast %cst_24 : f32 to vector<2x128xf32>
    %60 = arith.addf %59, %58 : vector<2x128xf32>
    %61 = arith.divf %59, %60 : vector<2x128xf32>
    %62 = vector.extract_strided_slice %49 {offsets = [0, 256], sizes = [2, 128], strides = [1, 1]} : vector<2x512xf32> to vector<2x128xf32>
    %63 = math.tanh %62 : vector<2x128xf32>
    %64 = vector.extract_strided_slice %49 {offsets = [0, 384], sizes = [2, 128], strides = [1, 1]} : vector<2x512xf32> to vector<2x128xf32>
    %65 = arith.negf %64 : vector<2x128xf32>
    %66 = math.exp %65 : vector<2x128xf32>
    %cst_25 = arith.constant 1.000000e+00 : f32
    %67 = vector.broadcast %cst_25 : f32 to vector<2x128xf32>
    %68 = arith.addf %67, %66 : vector<2x128xf32>
    %69 = arith.divf %67, %68 : vector<2x128xf32>
    %70 = arith.mulf %61, %9 : vector<2x128xf32>
    %71 = arith.mulf %55, %63 : vector<2x128xf32>
    %72 = arith.addf %70, %71 : vector<2x128xf32>
    %73 = math.tanh %72 : vector<2x128xf32>
    %74 = arith.mulf %69, %73 : vector<2x128xf32>
    %75 = vector.extract_strided_slice %5 {offsets = [2, 0], sizes = [2, 512], strides = [1, 1]} : vector<16x512xf32> to vector<2x512xf32>
    %76 = arith.truncf %39 : vector<2x128xf32> to vector<2x128xbf16>
    %c0_26 = arith.constant 0 : index
    %c0_27 = arith.constant 0 : index
    %77 = vector.load %arg2[%c0_26, %c0_27] : memref<128x512xbf16, #tpu.memory_space<vmem>>, vector<128x512xbf16>
    %cst_28 = arith.constant dense<0.000000e+00> : vector<2x512xf32>
    %78 = tpu.matmul %76, %77, %cst_28 {dimension_numbers = #tpu.dot_dimension_numbers<[1], [0], [0], [1], [0, 0, 1, 1], [], []>} : vector<2x128xbf16>, vector<128x512xbf16>, vector<2x512xf32> -> vector<2x512xf32>
    %79 = arith.addf %75, %78 : vector<2x512xf32>
    %80 = vector.extract_strided_slice %79 {offsets = [0, 0], sizes = [2, 128], strides = [1, 1]} : vector<2x512xf32> to vector<2x128xf32>
    %81 = arith.negf %80 : vector<2x128xf32>
    %82 = math.exp %81 : vector<2x128xf32>
    %cst_29 = arith.constant 1.000000e+00 : f32
    %83 = vector.broadcast %cst_29 : f32 to vector<2x128xf32>
    %84 = arith.addf %83, %82 : vector<2x128xf32>
    %85 = arith.divf %83, %84 : vector<2x128xf32>
    %86 = vector.extract_strided_slice %79 {offsets = [0, 128], sizes = [2, 128], strides = [1, 1]} : vector<2x512xf32> to vector<2x128xf32>
    %87 = arith.negf %86 : vector<2x128xf32>
    %88 = math.exp %87 : vector<2x128xf32>
    %cst_30 = arith.constant 1.000000e+00 : f32
    %89 = vector.broadcast %cst_30 : f32 to vector<2x128xf32>
    %90 = arith.addf %89, %88 : vector<2x128xf32>
    %91 = arith.divf %89, %90 : vector<2x128xf32>
    %92 = vector.extract_strided_slice %79 {offsets = [0, 256], sizes = [2, 128], strides = [1, 1]} : vector<2x512xf32> to vector<2x128xf32>
    %93 = math.tanh %92 : vector<2x128xf32>
    %94 = vector.extract_strided_slice %79 {offsets = [0, 384], sizes = [2, 128], strides = [1, 1]} : vector<2x512xf32> to vector<2x128xf32>
    %95 = arith.negf %94 : vector<2x128xf32>
    %96 = math.exp %95 : vector<2x128xf32>
    %cst_31 = arith.constant 1.000000e+00 : f32
    %97 = vector.broadcast %cst_31 : f32 to vector<2x128xf32>
    %98 = arith.addf %97, %96 : vector<2x128xf32>
    %99 = arith.divf %97, %98 : vector<2x128xf32>
    %100 = arith.mulf %91, %37 : vector<2x128xf32>
    %101 = arith.mulf %85, %93 : vector<2x128xf32>
    %102 = arith.addf %100, %101 : vector<2x128xf32>
    %103 = math.tanh %102 : vector<2x128xf32>
    %104 = arith.mulf %99, %103 : vector<2x128xf32>
    %105 = arith.truncf %104 : vector<2x128xf32> to vector<2x128xbf16>
    %c0_32 = arith.constant 0 : index
    %c0_33 = arith.constant 0 : index
    %106 = vector.load %arg4[%c0_32, %c0_33] : memref<128x512xbf16, #tpu.memory_space<vmem>>, vector<128x512xbf16>
    %cst_34 = arith.constant dense<0.000000e+00> : vector<2x512xf32>
    %107 = tpu.matmul %105, %106, %cst_34 {dimension_numbers = #tpu.dot_dimension_numbers<[1], [0], [0], [1], [0, 0, 1, 1], [], []>} : vector<2x128xbf16>, vector<128x512xbf16>, vector<2x512xf32> -> vector<2x512xf32>
    %108 = arith.truncf %74 : vector<2x128xf32> to vector<2x128xbf16>
    %c0_35 = arith.constant 0 : index
    %c0_36 = arith.constant 0 : index
    %109 = vector.load %arg5[%c0_35, %c0_36] : memref<128x512xbf16, #tpu.memory_space<vmem>>, vector<128x512xbf16>
    %cst_37 = arith.constant dense<0.000000e+00> : vector<2x512xf32>
    %110 = tpu.matmul %108, %109, %cst_37 {dimension_numbers = #tpu.dot_dimension_numbers<[1], [0], [0], [1], [0, 0, 1, 1], [], []>} : vector<2x128xbf16>, vector<128x512xbf16>, vector<2x512xf32> -> vector<2x512xf32>
    %111 = arith.addf %107, %110 : vector<2x512xf32>
    %c0_38 = arith.constant 0 : index
    %c0_39 = arith.constant 0 : index
    %112 = vector.load %arg6[%c0_38, %c0_39] : memref<1x512xf32, #tpu.memory_space<vmem>>, vector<1x512xf32>
    %113 = vector.broadcast %112 : vector<1x512xf32> to vector<2x512xf32>
    %114 = arith.addf %111, %113 : vector<2x512xf32>
    %115 = vector.extract_strided_slice %114 {offsets = [0, 0], sizes = [2, 128], strides = [1, 1]} : vector<2x512xf32> to vector<2x128xf32>
    %116 = arith.negf %115 : vector<2x128xf32>
    %117 = math.exp %116 : vector<2x128xf32>
    %cst_40 = arith.constant 1.000000e+00 : f32
    %118 = vector.broadcast %cst_40 : f32 to vector<2x128xf32>
    %119 = arith.addf %118, %117 : vector<2x128xf32>
    %120 = arith.divf %118, %119 : vector<2x128xf32>
    %121 = vector.extract_strided_slice %114 {offsets = [0, 128], sizes = [2, 128], strides = [1, 1]} : vector<2x512xf32> to vector<2x128xf32>
    %122 = arith.negf %121 : vector<2x128xf32>
    %123 = math.exp %122 : vector<2x128xf32>
    %cst_41 = arith.constant 1.000000e+00 : f32
    %124 = vector.broadcast %cst_41 : f32 to vector<2x128xf32>
    %125 = arith.addf %124, %123 : vector<2x128xf32>
    %126 = arith.divf %124, %125 : vector<2x128xf32>
    %127 = vector.extract_strided_slice %114 {offsets = [0, 256], sizes = [2, 128], strides = [1, 1]} : vector<2x512xf32> to vector<2x128xf32>
    %128 = math.tanh %127 : vector<2x128xf32>
    %129 = vector.extract_strided_slice %114 {offsets = [0, 384], sizes = [2, 128], strides = [1, 1]} : vector<2x512xf32> to vector<2x128xf32>
    %130 = arith.negf %129 : vector<2x128xf32>
    %131 = math.exp %130 : vector<2x128xf32>
    %cst_42 = arith.constant 1.000000e+00 : f32
    %132 = vector.broadcast %cst_42 : f32 to vector<2x128xf32>
    %133 = arith.addf %132, %131 : vector<2x128xf32>
    %134 = arith.divf %132, %133 : vector<2x128xf32>
    %135 = arith.mulf %126, %72 : vector<2x128xf32>
    %136 = arith.mulf %120, %128 : vector<2x128xf32>
    %137 = arith.addf %135, %136 : vector<2x128xf32>
    %138 = math.tanh %137 : vector<2x128xf32>
    %139 = arith.mulf %134, %138 : vector<2x128xf32>
    %140 = vector.extract_strided_slice %5 {offsets = [4, 0], sizes = [2, 512], strides = [1, 1]} : vector<16x512xf32> to vector<2x512xf32>
    %141 = arith.truncf %104 : vector<2x128xf32> to vector<2x128xbf16>
    %c0_43 = arith.constant 0 : index
    %c0_44 = arith.constant 0 : index
    %142 = vector.load %arg2[%c0_43, %c0_44] : memref<128x512xbf16, #tpu.memory_space<vmem>>, vector<128x512xbf16>
    %cst_45 = arith.constant dense<0.000000e+00> : vector<2x512xf32>
    %143 = tpu.matmul %141, %142, %cst_45 {dimension_numbers = #tpu.dot_dimension_numbers<[1], [0], [0], [1], [0, 0, 1, 1], [], []>} : vector<2x128xbf16>, vector<128x512xbf16>, vector<2x512xf32> -> vector<2x512xf32>
    %144 = arith.addf %140, %143 : vector<2x512xf32>
    %145 = vector.extract_strided_slice %144 {offsets = [0, 0], sizes = [2, 128], strides = [1, 1]} : vector<2x512xf32> to vector<2x128xf32>
    %146 = arith.negf %145 : vector<2x128xf32>
    %147 = math.exp %146 : vector<2x128xf32>
    %cst_46 = arith.constant 1.000000e+00 : f32
    %148 = vector.broadcast %cst_46 : f32 to vector<2x128xf32>
    %149 = arith.addf %148, %147 : vector<2x128xf32>
    %150 = arith.divf %148, %149 : vector<2x128xf32>
    %151 = vector.extract_strided_slice %144 {offsets = [0, 128], sizes = [2, 128], strides = [1, 1]} : vector<2x512xf32> to vector<2x128xf32>
    %152 = arith.negf %151 : vector<2x128xf32>
    %153 = math.exp %152 : vector<2x128xf32>
    %cst_47 = arith.constant 1.000000e+00 : f32
    %154 = vector.broadcast %cst_47 : f32 to vector<2x128xf32>
    %155 = arith.addf %154, %153 : vector<2x128xf32>
    %156 = arith.divf %154, %155 : vector<2x128xf32>
    %157 = vector.extract_strided_slice %144 {offsets = [0, 256], sizes = [2, 128], strides = [1, 1]} : vector<2x512xf32> to vector<2x128xf32>
    %158 = math.tanh %157 : vector<2x128xf32>
    %159 = vector.extract_strided_slice %144 {offsets = [0, 384], sizes = [2, 128], strides = [1, 1]} : vector<2x512xf32> to vector<2x128xf32>
    %160 = arith.negf %159 : vector<2x128xf32>
    %161 = math.exp %160 : vector<2x128xf32>
    %cst_48 = arith.constant 1.000000e+00 : f32
    %162 = vector.broadcast %cst_48 : f32 to vector<2x128xf32>
    %163 = arith.addf %162, %161 : vector<2x128xf32>
    %164 = arith.divf %162, %163 : vector<2x128xf32>
    %165 = arith.mulf %156, %102 : vector<2x128xf32>
    %166 = arith.mulf %150, %158 : vector<2x128xf32>
    %167 = arith.addf %165, %166 : vector<2x128xf32>
    %168 = math.tanh %167 : vector<2x128xf32>
    %169 = arith.mulf %164, %168 : vector<2x128xf32>
    %170 = arith.truncf %169 : vector<2x128xf32> to vector<2x128xbf16>
    %c0_49 = arith.constant 0 : index
    %c0_50 = arith.constant 0 : index
    %171 = vector.load %arg4[%c0_49, %c0_50] : memref<128x512xbf16, #tpu.memory_space<vmem>>, vector<128x512xbf16>
    %cst_51 = arith.constant dense<0.000000e+00> : vector<2x512xf32>
    %172 = tpu.matmul %170, %171, %cst_51 {dimension_numbers = #tpu.dot_dimension_numbers<[1], [0], [0], [1], [0, 0, 1, 1], [], []>} : vector<2x128xbf16>, vector<128x512xbf16>, vector<2x512xf32> -> vector<2x512xf32>
    %173 = arith.truncf %139 : vector<2x128xf32> to vector<2x128xbf16>
    %c0_52 = arith.constant 0 : index
    %c0_53 = arith.constant 0 : index
    %174 = vector.load %arg5[%c0_52, %c0_53] : memref<128x512xbf16, #tpu.memory_space<vmem>>, vector<128x512xbf16>
    %cst_54 = arith.constant dense<0.000000e+00> : vector<2x512xf32>
    %175 = tpu.matmul %173, %174, %cst_54 {dimension_numbers = #tpu.dot_dimension_numbers<[1], [0], [0], [1], [0, 0, 1, 1], [], []>} : vector<2x128xbf16>, vector<128x512xbf16>, vector<2x512xf32> -> vector<2x512xf32>
    %176 = arith.addf %172, %175 : vector<2x512xf32>
    %c0_55 = arith.constant 0 : index
    %c0_56 = arith.constant 0 : index
    %177 = vector.load %arg6[%c0_55, %c0_56] : memref<1x512xf32, #tpu.memory_space<vmem>>, vector<1x512xf32>
    %178 = vector.broadcast %177 : vector<1x512xf32> to vector<2x512xf32>
    %179 = arith.addf %176, %178 : vector<2x512xf32>
    %180 = vector.extract_strided_slice %179 {offsets = [0, 0], sizes = [2, 128], strides = [1, 1]} : vector<2x512xf32> to vector<2x128xf32>
    %181 = arith.negf %180 : vector<2x128xf32>
    %182 = math.exp %181 : vector<2x128xf32>
    %cst_57 = arith.constant 1.000000e+00 : f32
    %183 = vector.broadcast %cst_57 : f32 to vector<2x128xf32>
    %184 = arith.addf %183, %182 : vector<2x128xf32>
    %185 = arith.divf %183, %184 : vector<2x128xf32>
    %186 = vector.extract_strided_slice %179 {offsets = [0, 128], sizes = [2, 128], strides = [1, 1]} : vector<2x512xf32> to vector<2x128xf32>
    %187 = arith.negf %186 : vector<2x128xf32>
    %188 = math.exp %187 : vector<2x128xf32>
    %cst_58 = arith.constant 1.000000e+00 : f32
    %189 = vector.broadcast %cst_58 : f32 to vector<2x128xf32>
    %190 = arith.addf %189, %188 : vector<2x128xf32>
    %191 = arith.divf %189, %190 : vector<2x128xf32>
    %192 = vector.extract_strided_slice %179 {offsets = [0, 256], sizes = [2, 128], strides = [1, 1]} : vector<2x512xf32> to vector<2x128xf32>
    %193 = math.tanh %192 : vector<2x128xf32>
    %194 = vector.extract_strided_slice %179 {offsets = [0, 384], sizes = [2, 128], strides = [1, 1]} : vector<2x512xf32> to vector<2x128xf32>
    %195 = arith.negf %194 : vector<2x128xf32>
    %196 = math.exp %195 : vector<2x128xf32>
    %cst_59 = arith.constant 1.000000e+00 : f32
    %197 = vector.broadcast %cst_59 : f32 to vector<2x128xf32>
    %198 = arith.addf %197, %196 : vector<2x128xf32>
    %199 = arith.divf %197, %198 : vector<2x128xf32>
    %200 = arith.mulf %191, %137 : vector<2x128xf32>
    %201 = arith.mulf %185, %193 : vector<2x128xf32>
    %202 = arith.addf %200, %201 : vector<2x128xf32>
    %203 = math.tanh %202 : vector<2x128xf32>
    %204 = arith.mulf %199, %203 : vector<2x128xf32>
    %205 = vector.extract_strided_slice %5 {offsets = [6, 0], sizes = [2, 512], strides = [1, 1]} : vector<16x512xf32> to vector<2x512xf32>
    %206 = arith.truncf %169 : vector<2x128xf32> to vector<2x128xbf16>
    %c0_60 = arith.constant 0 : index
    %c0_61 = arith.constant 0 : index
    %207 = vector.load %arg2[%c0_60, %c0_61] : memref<128x512xbf16, #tpu.memory_space<vmem>>, vector<128x512xbf16>
    %cst_62 = arith.constant dense<0.000000e+00> : vector<2x512xf32>
    %208 = tpu.matmul %206, %207, %cst_62 {dimension_numbers = #tpu.dot_dimension_numbers<[1], [0], [0], [1], [0, 0, 1, 1], [], []>} : vector<2x128xbf16>, vector<128x512xbf16>, vector<2x512xf32> -> vector<2x512xf32>
    %209 = arith.addf %205, %208 : vector<2x512xf32>
    %210 = vector.extract_strided_slice %209 {offsets = [0, 0], sizes = [2, 128], strides = [1, 1]} : vector<2x512xf32> to vector<2x128xf32>
    %211 = arith.negf %210 : vector<2x128xf32>
    %212 = math.exp %211 : vector<2x128xf32>
    %cst_63 = arith.constant 1.000000e+00 : f32
    %213 = vector.broadcast %cst_63 : f32 to vector<2x128xf32>
    %214 = arith.addf %213, %212 : vector<2x128xf32>
    %215 = arith.divf %213, %214 : vector<2x128xf32>
    %216 = vector.extract_strided_slice %209 {offsets = [0, 128], sizes = [2, 128], strides = [1, 1]} : vector<2x512xf32> to vector<2x128xf32>
    %217 = arith.negf %216 : vector<2x128xf32>
    %218 = math.exp %217 : vector<2x128xf32>
    %cst_64 = arith.constant 1.000000e+00 : f32
    %219 = vector.broadcast %cst_64 : f32 to vector<2x128xf32>
    %220 = arith.addf %219, %218 : vector<2x128xf32>
    %221 = arith.divf %219, %220 : vector<2x128xf32>
    %222 = vector.extract_strided_slice %209 {offsets = [0, 256], sizes = [2, 128], strides = [1, 1]} : vector<2x512xf32> to vector<2x128xf32>
    %223 = math.tanh %222 : vector<2x128xf32>
    %224 = vector.extract_strided_slice %209 {offsets = [0, 384], sizes = [2, 128], strides = [1, 1]} : vector<2x512xf32> to vector<2x128xf32>
    %225 = arith.negf %224 : vector<2x128xf32>
    %226 = math.exp %225 : vector<2x128xf32>
    %cst_65 = arith.constant 1.000000e+00 : f32
    %227 = vector.broadcast %cst_65 : f32 to vector<2x128xf32>
    %228 = arith.addf %227, %226 : vector<2x128xf32>
    %229 = arith.divf %227, %228 : vector<2x128xf32>
    %230 = arith.mulf %221, %167 : vector<2x128xf32>
    %231 = arith.mulf %215, %223 : vector<2x128xf32>
    %232 = arith.addf %230, %231 : vector<2x128xf32>
    %233 = math.tanh %232 : vector<2x128xf32>
    %234 = arith.mulf %229, %233 : vector<2x128xf32>
    %235 = arith.truncf %234 : vector<2x128xf32> to vector<2x128xbf16>
    %c0_66 = arith.constant 0 : index
    %c0_67 = arith.constant 0 : index
    %236 = vector.load %arg4[%c0_66, %c0_67] : memref<128x512xbf16, #tpu.memory_space<vmem>>, vector<128x512xbf16>
    %cst_68 = arith.constant dense<0.000000e+00> : vector<2x512xf32>
    %237 = tpu.matmul %235, %236, %cst_68 {dimension_numbers = #tpu.dot_dimension_numbers<[1], [0], [0], [1], [0, 0, 1, 1], [], []>} : vector<2x128xbf16>, vector<128x512xbf16>, vector<2x512xf32> -> vector<2x512xf32>
    %238 = arith.truncf %204 : vector<2x128xf32> to vector<2x128xbf16>
    %c0_69 = arith.constant 0 : index
    %c0_70 = arith.constant 0 : index
    %239 = vector.load %arg5[%c0_69, %c0_70] : memref<128x512xbf16, #tpu.memory_space<vmem>>, vector<128x512xbf16>
    %cst_71 = arith.constant dense<0.000000e+00> : vector<2x512xf32>
    %240 = tpu.matmul %238, %239, %cst_71 {dimension_numbers = #tpu.dot_dimension_numbers<[1], [0], [0], [1], [0, 0, 1, 1], [], []>} : vector<2x128xbf16>, vector<128x512xbf16>, vector<2x512xf32> -> vector<2x512xf32>
    %241 = arith.addf %237, %240 : vector<2x512xf32>
    %c0_72 = arith.constant 0 : index
    %c0_73 = arith.constant 0 : index
    %242 = vector.load %arg6[%c0_72, %c0_73] : memref<1x512xf32, #tpu.memory_space<vmem>>, vector<1x512xf32>
    %243 = vector.broadcast %242 : vector<1x512xf32> to vector<2x512xf32>
    %244 = arith.addf %241, %243 : vector<2x512xf32>
    %245 = vector.extract_strided_slice %244 {offsets = [0, 0], sizes = [2, 128], strides = [1, 1]} : vector<2x512xf32> to vector<2x128xf32>
    %246 = arith.negf %245 : vector<2x128xf32>
    %247 = math.exp %246 : vector<2x128xf32>
    %cst_74 = arith.constant 1.000000e+00 : f32
    %248 = vector.broadcast %cst_74 : f32 to vector<2x128xf32>
    %249 = arith.addf %248, %247 : vector<2x128xf32>
    %250 = arith.divf %248, %249 : vector<2x128xf32>
    %251 = vector.extract_strided_slice %244 {offsets = [0, 128], sizes = [2, 128], strides = [1, 1]} : vector<2x512xf32> to vector<2x128xf32>
    %252 = arith.negf %251 : vector<2x128xf32>
    %253 = math.exp %252 : vector<2x128xf32>
    %cst_75 = arith.constant 1.000000e+00 : f32
    %254 = vector.broadcast %cst_75 : f32 to vector<2x128xf32>
    %255 = arith.addf %254, %253 : vector<2x128xf32>
    %256 = arith.divf %254, %255 : vector<2x128xf32>
    %257 = vector.extract_strided_slice %244 {offsets = [0, 256], sizes = [2, 128], strides = [1, 1]} : vector<2x512xf32> to vector<2x128xf32>
    %258 = math.tanh %257 : vector<2x128xf32>
    %259 = vector.extract_strided_slice %244 {offsets = [0, 384], sizes = [2, 128], strides = [1, 1]} : vector<2x512xf32> to vector<2x128xf32>
    %260 = arith.negf %259 : vector<2x128xf32>
    %261 = math.exp %260 : vector<2x128xf32>
    %cst_76 = arith.constant 1.000000e+00 : f32
    %262 = vector.broadcast %cst_76 : f32 to vector<2x128xf32>
    %263 = arith.addf %262, %261 : vector<2x128xf32>
    %264 = arith.divf %262, %263 : vector<2x128xf32>
    %265 = arith.mulf %256, %202 : vector<2x128xf32>
    %266 = arith.mulf %250, %258 : vector<2x128xf32>
    %267 = arith.addf %265, %266 : vector<2x128xf32>
    %268 = math.tanh %267 : vector<2x128xf32>
    %269 = arith.mulf %264, %268 : vector<2x128xf32>
    %270 = vector.extract_strided_slice %5 {offsets = [8, 0], sizes = [2, 512], strides = [1, 1]} : vector<16x512xf32> to vector<2x512xf32>
    %271 = arith.truncf %234 : vector<2x128xf32> to vector<2x128xbf16>
    %c0_77 = arith.constant 0 : index
    %c0_78 = arith.constant 0 : index
    %272 = vector.load %arg2[%c0_77, %c0_78] : memref<128x512xbf16, #tpu.memory_space<vmem>>, vector<128x512xbf16>
    %cst_79 = arith.constant dense<0.000000e+00> : vector<2x512xf32>
    %273 = tpu.matmul %271, %272, %cst_79 {dimension_numbers = #tpu.dot_dimension_numbers<[1], [0], [0], [1], [0, 0, 1, 1], [], []>} : vector<2x128xbf16>, vector<128x512xbf16>, vector<2x512xf32> -> vector<2x512xf32>
    %274 = arith.addf %270, %273 : vector<2x512xf32>
    %275 = vector.extract_strided_slice %274 {offsets = [0, 0], sizes = [2, 128], strides = [1, 1]} : vector<2x512xf32> to vector<2x128xf32>
    %276 = arith.negf %275 : vector<2x128xf32>
    %277 = math.exp %276 : vector<2x128xf32>
    %cst_80 = arith.constant 1.000000e+00 : f32
    %278 = vector.broadcast %cst_80 : f32 to vector<2x128xf32>
    %279 = arith.addf %278, %277 : vector<2x128xf32>
    %280 = arith.divf %278, %279 : vector<2x128xf32>
    %281 = vector.extract_strided_slice %274 {offsets = [0, 128], sizes = [2, 128], strides = [1, 1]} : vector<2x512xf32> to vector<2x128xf32>
    %282 = arith.negf %281 : vector<2x128xf32>
    %283 = math.exp %282 : vector<2x128xf32>
    %cst_81 = arith.constant 1.000000e+00 : f32
    %284 = vector.broadcast %cst_81 : f32 to vector<2x128xf32>
    %285 = arith.addf %284, %283 : vector<2x128xf32>
    %286 = arith.divf %284, %285 : vector<2x128xf32>
    %287 = vector.extract_strided_slice %274 {offsets = [0, 256], sizes = [2, 128], strides = [1, 1]} : vector<2x512xf32> to vector<2x128xf32>
    %288 = math.tanh %287 : vector<2x128xf32>
    %289 = vector.extract_strided_slice %274 {offsets = [0, 384], sizes = [2, 128], strides = [1, 1]} : vector<2x512xf32> to vector<2x128xf32>
    %290 = arith.negf %289 : vector<2x128xf32>
    %291 = math.exp %290 : vector<2x128xf32>
    %cst_82 = arith.constant 1.000000e+00 : f32
    %292 = vector.broadcast %cst_82 : f32 to vector<2x128xf32>
    %293 = arith.addf %292, %291 : vector<2x128xf32>
    %294 = arith.divf %292, %293 : vector<2x128xf32>
    %295 = arith.mulf %286, %232 : vector<2x128xf32>
    %296 = arith.mulf %280, %288 : vector<2x128xf32>
    %297 = arith.addf %295, %296 : vector<2x128xf32>
    %298 = math.tanh %297 : vector<2x128xf32>
    %299 = arith.mulf %294, %298 : vector<2x128xf32>
    %300 = arith.truncf %299 : vector<2x128xf32> to vector<2x128xbf16>
    %c0_83 = arith.constant 0 : index
    %c0_84 = arith.constant 0 : index
    %301 = vector.load %arg4[%c0_83, %c0_84] : memref<128x512xbf16, #tpu.memory_space<vmem>>, vector<128x512xbf16>
    %cst_85 = arith.constant dense<0.000000e+00> : vector<2x512xf32>
    %302 = tpu.matmul %300, %301, %cst_85 {dimension_numbers = #tpu.dot_dimension_numbers<[1], [0], [0], [1], [0, 0, 1, 1], [], []>} : vector<2x128xbf16>, vector<128x512xbf16>, vector<2x512xf32> -> vector<2x512xf32>
    %303 = arith.truncf %269 : vector<2x128xf32> to vector<2x128xbf16>
    %c0_86 = arith.constant 0 : index
    %c0_87 = arith.constant 0 : index
    %304 = vector.load %arg5[%c0_86, %c0_87] : memref<128x512xbf16, #tpu.memory_space<vmem>>, vector<128x512xbf16>
    %cst_88 = arith.constant dense<0.000000e+00> : vector<2x512xf32>
    %305 = tpu.matmul %303, %304, %cst_88 {dimension_numbers = #tpu.dot_dimension_numbers<[1], [0], [0], [1], [0, 0, 1, 1], [], []>} : vector<2x128xbf16>, vector<128x512xbf16>, vector<2x512xf32> -> vector<2x512xf32>
    %306 = arith.addf %302, %305 : vector<2x512xf32>
    %c0_89 = arith.constant 0 : index
    %c0_90 = arith.constant 0 : index
    %307 = vector.load %arg6[%c0_89, %c0_90] : memref<1x512xf32, #tpu.memory_space<vmem>>, vector<1x512xf32>
    %308 = vector.broadcast %307 : vector<1x512xf32> to vector<2x512xf32>
    %309 = arith.addf %306, %308 : vector<2x512xf32>
    %310 = vector.extract_strided_slice %309 {offsets = [0, 0], sizes = [2, 128], strides = [1, 1]} : vector<2x512xf32> to vector<2x128xf32>
    %311 = arith.negf %310 : vector<2x128xf32>
    %312 = math.exp %311 : vector<2x128xf32>
    %cst_91 = arith.constant 1.000000e+00 : f32
    %313 = vector.broadcast %cst_91 : f32 to vector<2x128xf32>
    %314 = arith.addf %313, %312 : vector<2x128xf32>
    %315 = arith.divf %313, %314 : vector<2x128xf32>
    %316 = vector.extract_strided_slice %309 {offsets = [0, 128], sizes = [2, 128], strides = [1, 1]} : vector<2x512xf32> to vector<2x128xf32>
    %317 = arith.negf %316 : vector<2x128xf32>
    %318 = math.exp %317 : vector<2x128xf32>
    %cst_92 = arith.constant 1.000000e+00 : f32
    %319 = vector.broadcast %cst_92 : f32 to vector<2x128xf32>
    %320 = arith.addf %319, %318 : vector<2x128xf32>
    %321 = arith.divf %319, %320 : vector<2x128xf32>
    %322 = vector.extract_strided_slice %309 {offsets = [0, 256], sizes = [2, 128], strides = [1, 1]} : vector<2x512xf32> to vector<2x128xf32>
    %323 = math.tanh %322 : vector<2x128xf32>
    %324 = vector.extract_strided_slice %309 {offsets = [0, 384], sizes = [2, 128], strides = [1, 1]} : vector<2x512xf32> to vector<2x128xf32>
    %325 = arith.negf %324 : vector<2x128xf32>
    %326 = math.exp %325 : vector<2x128xf32>
    %cst_93 = arith.constant 1.000000e+00 : f32
    %327 = vector.broadcast %cst_93 : f32 to vector<2x128xf32>
    %328 = arith.addf %327, %326 : vector<2x128xf32>
    %329 = arith.divf %327, %328 : vector<2x128xf32>
    %330 = arith.mulf %321, %267 : vector<2x128xf32>
    %331 = arith.mulf %315, %323 : vector<2x128xf32>
    %332 = arith.addf %330, %331 : vector<2x128xf32>
    %333 = math.tanh %332 : vector<2x128xf32>
    %334 = arith.mulf %329, %333 : vector<2x128xf32>
    %335 = vector.extract_strided_slice %5 {offsets = [10, 0], sizes = [2, 512], strides = [1, 1]} : vector<16x512xf32> to vector<2x512xf32>
    %336 = arith.truncf %299 : vector<2x128xf32> to vector<2x128xbf16>
    %c0_94 = arith.constant 0 : index
    %c0_95 = arith.constant 0 : index
    %337 = vector.load %arg2[%c0_94, %c0_95] : memref<128x512xbf16, #tpu.memory_space<vmem>>, vector<128x512xbf16>
    %cst_96 = arith.constant dense<0.000000e+00> : vector<2x512xf32>
    %338 = tpu.matmul %336, %337, %cst_96 {dimension_numbers = #tpu.dot_dimension_numbers<[1], [0], [0], [1], [0, 0, 1, 1], [], []>} : vector<2x128xbf16>, vector<128x512xbf16>, vector<2x512xf32> -> vector<2x512xf32>
    %339 = arith.addf %335, %338 : vector<2x512xf32>
    %340 = vector.extract_strided_slice %339 {offsets = [0, 0], sizes = [2, 128], strides = [1, 1]} : vector<2x512xf32> to vector<2x128xf32>
    %341 = arith.negf %340 : vector<2x128xf32>
    %342 = math.exp %341 : vector<2x128xf32>
    %cst_97 = arith.constant 1.000000e+00 : f32
    %343 = vector.broadcast %cst_97 : f32 to vector<2x128xf32>
    %344 = arith.addf %343, %342 : vector<2x128xf32>
    %345 = arith.divf %343, %344 : vector<2x128xf32>
    %346 = vector.extract_strided_slice %339 {offsets = [0, 128], sizes = [2, 128], strides = [1, 1]} : vector<2x512xf32> to vector<2x128xf32>
    %347 = arith.negf %346 : vector<2x128xf32>
    %348 = math.exp %347 : vector<2x128xf32>
    %cst_98 = arith.constant 1.000000e+00 : f32
    %349 = vector.broadcast %cst_98 : f32 to vector<2x128xf32>
    %350 = arith.addf %349, %348 : vector<2x128xf32>
    %351 = arith.divf %349, %350 : vector<2x128xf32>
    %352 = vector.extract_strided_slice %339 {offsets = [0, 256], sizes = [2, 128], strides = [1, 1]} : vector<2x512xf32> to vector<2x128xf32>
    %353 = math.tanh %352 : vector<2x128xf32>
    %354 = vector.extract_strided_slice %339 {offsets = [0, 384], sizes = [2, 128], strides = [1, 1]} : vector<2x512xf32> to vector<2x128xf32>
    %355 = arith.negf %354 : vector<2x128xf32>
    %356 = math.exp %355 : vector<2x128xf32>
    %cst_99 = arith.constant 1.000000e+00 : f32
    %357 = vector.broadcast %cst_99 : f32 to vector<2x128xf32>
    %358 = arith.addf %357, %356 : vector<2x128xf32>
    %359 = arith.divf %357, %358 : vector<2x128xf32>
    %360 = arith.mulf %351, %297 : vector<2x128xf32>
    %361 = arith.mulf %345, %353 : vector<2x128xf32>
    %362 = arith.addf %360, %361 : vector<2x128xf32>
    %363 = math.tanh %362 : vector<2x128xf32>
    %364 = arith.mulf %359, %363 : vector<2x128xf32>
    %365 = arith.truncf %364 : vector<2x128xf32> to vector<2x128xbf16>
    %c0_100 = arith.constant 0 : index
    %c0_101 = arith.constant 0 : index
    %366 = vector.load %arg4[%c0_100, %c0_101] : memref<128x512xbf16, #tpu.memory_space<vmem>>, vector<128x512xbf16>
    %cst_102 = arith.constant dense<0.000000e+00> : vector<2x512xf32>
    %367 = tpu.matmul %365, %366, %cst_102 {dimension_numbers = #tpu.dot_dimension_numbers<[1], [0], [0], [1], [0, 0, 1, 1], [], []>} : vector<2x128xbf16>, vector<128x512xbf16>, vector<2x512xf32> -> vector<2x512xf32>
    %368 = arith.truncf %334 : vector<2x128xf32> to vector<2x128xbf16>
    %c0_103 = arith.constant 0 : index
    %c0_104 = arith.constant 0 : index
    %369 = vector.load %arg5[%c0_103, %c0_104] : memref<128x512xbf16, #tpu.memory_space<vmem>>, vector<128x512xbf16>
    %cst_105 = arith.constant dense<0.000000e+00> : vector<2x512xf32>
    %370 = tpu.matmul %368, %369, %cst_105 {dimension_numbers = #tpu.dot_dimension_numbers<[1], [0], [0], [1], [0, 0, 1, 1], [], []>} : vector<2x128xbf16>, vector<128x512xbf16>, vector<2x512xf32> -> vector<2x512xf32>
    %371 = arith.addf %367, %370 : vector<2x512xf32>
    %c0_106 = arith.constant 0 : index
    %c0_107 = arith.constant 0 : index
    %372 = vector.load %arg6[%c0_106, %c0_107] : memref<1x512xf32, #tpu.memory_space<vmem>>, vector<1x512xf32>
    %373 = vector.broadcast %372 : vector<1x512xf32> to vector<2x512xf32>
    %374 = arith.addf %371, %373 : vector<2x512xf32>
    %375 = vector.extract_strided_slice %374 {offsets = [0, 0], sizes = [2, 128], strides = [1, 1]} : vector<2x512xf32> to vector<2x128xf32>
    %376 = arith.negf %375 : vector<2x128xf32>
    %377 = math.exp %376 : vector<2x128xf32>
    %cst_108 = arith.constant 1.000000e+00 : f32
    %378 = vector.broadcast %cst_108 : f32 to vector<2x128xf32>
    %379 = arith.addf %378, %377 : vector<2x128xf32>
    %380 = arith.divf %378, %379 : vector<2x128xf32>
    %381 = vector.extract_strided_slice %374 {offsets = [0, 128], sizes = [2, 128], strides = [1, 1]} : vector<2x512xf32> to vector<2x128xf32>
    %382 = arith.negf %381 : vector<2x128xf32>
    %383 = math.exp %382 : vector<2x128xf32>
    %cst_109 = arith.constant 1.000000e+00 : f32
    %384 = vector.broadcast %cst_109 : f32 to vector<2x128xf32>
    %385 = arith.addf %384, %383 : vector<2x128xf32>
    %386 = arith.divf %384, %385 : vector<2x128xf32>
    %387 = vector.extract_strided_slice %374 {offsets = [0, 256], sizes = [2, 128], strides = [1, 1]} : vector<2x512xf32> to vector<2x128xf32>
    %388 = math.tanh %387 : vector<2x128xf32>
    %389 = vector.extract_strided_slice %374 {offsets = [0, 384], sizes = [2, 128], strides = [1, 1]} : vector<2x512xf32> to vector<2x128xf32>
    %390 = arith.negf %389 : vector<2x128xf32>
    %391 = math.exp %390 : vector<2x128xf32>
    %cst_110 = arith.constant 1.000000e+00 : f32
    %392 = vector.broadcast %cst_110 : f32 to vector<2x128xf32>
    %393 = arith.addf %392, %391 : vector<2x128xf32>
    %394 = arith.divf %392, %393 : vector<2x128xf32>
    %395 = arith.mulf %386, %332 : vector<2x128xf32>
    %396 = arith.mulf %380, %388 : vector<2x128xf32>
    %397 = arith.addf %395, %396 : vector<2x128xf32>
    %398 = math.tanh %397 : vector<2x128xf32>
    %399 = arith.mulf %394, %398 : vector<2x128xf32>
    %400 = vector.extract_strided_slice %5 {offsets = [12, 0], sizes = [2, 512], strides = [1, 1]} : vector<16x512xf32> to vector<2x512xf32>
    %401 = arith.truncf %364 : vector<2x128xf32> to vector<2x128xbf16>
    %c0_111 = arith.constant 0 : index
    %c0_112 = arith.constant 0 : index
    %402 = vector.load %arg2[%c0_111, %c0_112] : memref<128x512xbf16, #tpu.memory_space<vmem>>, vector<128x512xbf16>
    %cst_113 = arith.constant dense<0.000000e+00> : vector<2x512xf32>
    %403 = tpu.matmul %401, %402, %cst_113 {dimension_numbers = #tpu.dot_dimension_numbers<[1], [0], [0], [1], [0, 0, 1, 1], [], []>} : vector<2x128xbf16>, vector<128x512xbf16>, vector<2x512xf32> -> vector<2x512xf32>
    %404 = arith.addf %400, %403 : vector<2x512xf32>
    %405 = vector.extract_strided_slice %404 {offsets = [0, 0], sizes = [2, 128], strides = [1, 1]} : vector<2x512xf32> to vector<2x128xf32>
    %406 = arith.negf %405 : vector<2x128xf32>
    %407 = math.exp %406 : vector<2x128xf32>
    %cst_114 = arith.constant 1.000000e+00 : f32
    %408 = vector.broadcast %cst_114 : f32 to vector<2x128xf32>
    %409 = arith.addf %408, %407 : vector<2x128xf32>
    %410 = arith.divf %408, %409 : vector<2x128xf32>
    %411 = vector.extract_strided_slice %404 {offsets = [0, 128], sizes = [2, 128], strides = [1, 1]} : vector<2x512xf32> to vector<2x128xf32>
    %412 = arith.negf %411 : vector<2x128xf32>
    %413 = math.exp %412 : vector<2x128xf32>
    %cst_115 = arith.constant 1.000000e+00 : f32
    %414 = vector.broadcast %cst_115 : f32 to vector<2x128xf32>
    %415 = arith.addf %414, %413 : vector<2x128xf32>
    %416 = arith.divf %414, %415 : vector<2x128xf32>
    %417 = vector.extract_strided_slice %404 {offsets = [0, 256], sizes = [2, 128], strides = [1, 1]} : vector<2x512xf32> to vector<2x128xf32>
    %418 = math.tanh %417 : vector<2x128xf32>
    %419 = vector.extract_strided_slice %404 {offsets = [0, 384], sizes = [2, 128], strides = [1, 1]} : vector<2x512xf32> to vector<2x128xf32>
    %420 = arith.negf %419 : vector<2x128xf32>
    %421 = math.exp %420 : vector<2x128xf32>
    %cst_116 = arith.constant 1.000000e+00 : f32
    %422 = vector.broadcast %cst_116 : f32 to vector<2x128xf32>
    %423 = arith.addf %422, %421 : vector<2x128xf32>
    %424 = arith.divf %422, %423 : vector<2x128xf32>
    %425 = arith.mulf %416, %362 : vector<2x128xf32>
    %426 = arith.mulf %410, %418 : vector<2x128xf32>
    %427 = arith.addf %425, %426 : vector<2x128xf32>
    %428 = math.tanh %427 : vector<2x128xf32>
    %429 = arith.mulf %424, %428 : vector<2x128xf32>
    %430 = arith.truncf %429 : vector<2x128xf32> to vector<2x128xbf16>
    %c0_117 = arith.constant 0 : index
    %c0_118 = arith.constant 0 : index
    %431 = vector.load %arg4[%c0_117, %c0_118] : memref<128x512xbf16, #tpu.memory_space<vmem>>, vector<128x512xbf16>
    %cst_119 = arith.constant dense<0.000000e+00> : vector<2x512xf32>
    %432 = tpu.matmul %430, %431, %cst_119 {dimension_numbers = #tpu.dot_dimension_numbers<[1], [0], [0], [1], [0, 0, 1, 1], [], []>} : vector<2x128xbf16>, vector<128x512xbf16>, vector<2x512xf32> -> vector<2x512xf32>
    %433 = arith.truncf %399 : vector<2x128xf32> to vector<2x128xbf16>
    %c0_120 = arith.constant 0 : index
    %c0_121 = arith.constant 0 : index
    %434 = vector.load %arg5[%c0_120, %c0_121] : memref<128x512xbf16, #tpu.memory_space<vmem>>, vector<128x512xbf16>
    %cst_122 = arith.constant dense<0.000000e+00> : vector<2x512xf32>
    %435 = tpu.matmul %433, %434, %cst_122 {dimension_numbers = #tpu.dot_dimension_numbers<[1], [0], [0], [1], [0, 0, 1, 1], [], []>} : vector<2x128xbf16>, vector<128x512xbf16>, vector<2x512xf32> -> vector<2x512xf32>
    %436 = arith.addf %432, %435 : vector<2x512xf32>
    %c0_123 = arith.constant 0 : index
    %c0_124 = arith.constant 0 : index
    %437 = vector.load %arg6[%c0_123, %c0_124] : memref<1x512xf32, #tpu.memory_space<vmem>>, vector<1x512xf32>
    %438 = vector.broadcast %437 : vector<1x512xf32> to vector<2x512xf32>
    %439 = arith.addf %436, %438 : vector<2x512xf32>
    %440 = vector.extract_strided_slice %439 {offsets = [0, 0], sizes = [2, 128], strides = [1, 1]} : vector<2x512xf32> to vector<2x128xf32>
    %441 = arith.negf %440 : vector<2x128xf32>
    %442 = math.exp %441 : vector<2x128xf32>
    %cst_125 = arith.constant 1.000000e+00 : f32
    %443 = vector.broadcast %cst_125 : f32 to vector<2x128xf32>
    %444 = arith.addf %443, %442 : vector<2x128xf32>
    %445 = arith.divf %443, %444 : vector<2x128xf32>
    %446 = vector.extract_strided_slice %439 {offsets = [0, 128], sizes = [2, 128], strides = [1, 1]} : vector<2x512xf32> to vector<2x128xf32>
    %447 = arith.negf %446 : vector<2x128xf32>
    %448 = math.exp %447 : vector<2x128xf32>
    %cst_126 = arith.constant 1.000000e+00 : f32
    %449 = vector.broadcast %cst_126 : f32 to vector<2x128xf32>
    %450 = arith.addf %449, %448 : vector<2x128xf32>
    %451 = arith.divf %449, %450 : vector<2x128xf32>
    %452 = vector.extract_strided_slice %439 {offsets = [0, 256], sizes = [2, 128], strides = [1, 1]} : vector<2x512xf32> to vector<2x128xf32>
    %453 = math.tanh %452 : vector<2x128xf32>
    %454 = vector.extract_strided_slice %439 {offsets = [0, 384], sizes = [2, 128], strides = [1, 1]} : vector<2x512xf32> to vector<2x128xf32>
    %455 = arith.negf %454 : vector<2x128xf32>
    %456 = math.exp %455 : vector<2x128xf32>
    %cst_127 = arith.constant 1.000000e+00 : f32
    %457 = vector.broadcast %cst_127 : f32 to vector<2x128xf32>
    %458 = arith.addf %457, %456 : vector<2x128xf32>
    %459 = arith.divf %457, %458 : vector<2x128xf32>
    %460 = arith.mulf %451, %397 : vector<2x128xf32>
    %461 = arith.mulf %445, %453 : vector<2x128xf32>
    %462 = arith.addf %460, %461 : vector<2x128xf32>
    %463 = math.tanh %462 : vector<2x128xf32>
    %464 = arith.mulf %459, %463 : vector<2x128xf32>
    %465 = vector.extract_strided_slice %5 {offsets = [14, 0], sizes = [2, 512], strides = [1, 1]} : vector<16x512xf32> to vector<2x512xf32>
    %466 = arith.truncf %429 : vector<2x128xf32> to vector<2x128xbf16>
    %c0_128 = arith.constant 0 : index
    %c0_129 = arith.constant 0 : index
    %467 = vector.load %arg2[%c0_128, %c0_129] : memref<128x512xbf16, #tpu.memory_space<vmem>>, vector<128x512xbf16>
    %cst_130 = arith.constant dense<0.000000e+00> : vector<2x512xf32>
    %468 = tpu.matmul %466, %467, %cst_130 {dimension_numbers = #tpu.dot_dimension_numbers<[1], [0], [0], [1], [0, 0, 1, 1], [], []>} : vector<2x128xbf16>, vector<128x512xbf16>, vector<2x512xf32> -> vector<2x512xf32>
    %469 = arith.addf %465, %468 : vector<2x512xf32>
    %470 = vector.extract_strided_slice %469 {offsets = [0, 0], sizes = [2, 128], strides = [1, 1]} : vector<2x512xf32> to vector<2x128xf32>
    %471 = arith.negf %470 : vector<2x128xf32>
    %472 = math.exp %471 : vector<2x128xf32>
    %cst_131 = arith.constant 1.000000e+00 : f32
    %473 = vector.broadcast %cst_131 : f32 to vector<2x128xf32>
    %474 = arith.addf %473, %472 : vector<2x128xf32>
    %475 = arith.divf %473, %474 : vector<2x128xf32>
    %476 = vector.extract_strided_slice %469 {offsets = [0, 128], sizes = [2, 128], strides = [1, 1]} : vector<2x512xf32> to vector<2x128xf32>
    %477 = arith.negf %476 : vector<2x128xf32>
    %478 = math.exp %477 : vector<2x128xf32>
    %cst_132 = arith.constant 1.000000e+00 : f32
    %479 = vector.broadcast %cst_132 : f32 to vector<2x128xf32>
    %480 = arith.addf %479, %478 : vector<2x128xf32>
    %481 = arith.divf %479, %480 : vector<2x128xf32>
    %482 = vector.extract_strided_slice %469 {offsets = [0, 256], sizes = [2, 128], strides = [1, 1]} : vector<2x512xf32> to vector<2x128xf32>
    %483 = math.tanh %482 : vector<2x128xf32>
    %484 = vector.extract_strided_slice %469 {offsets = [0, 384], sizes = [2, 128], strides = [1, 1]} : vector<2x512xf32> to vector<2x128xf32>
    %485 = arith.negf %484 : vector<2x128xf32>
    %486 = math.exp %485 : vector<2x128xf32>
    %cst_133 = arith.constant 1.000000e+00 : f32
    %487 = vector.broadcast %cst_133 : f32 to vector<2x128xf32>
    %488 = arith.addf %487, %486 : vector<2x128xf32>
    %489 = arith.divf %487, %488 : vector<2x128xf32>
    %490 = arith.mulf %481, %427 : vector<2x128xf32>
    %491 = arith.mulf %475, %483 : vector<2x128xf32>
    %492 = arith.addf %490, %491 : vector<2x128xf32>
    %493 = math.tanh %492 : vector<2x128xf32>
    %494 = arith.mulf %489, %493 : vector<2x128xf32>
    %495 = arith.truncf %494 : vector<2x128xf32> to vector<2x128xbf16>
    %c0_134 = arith.constant 0 : index
    %c0_135 = arith.constant 0 : index
    %496 = vector.load %arg4[%c0_134, %c0_135] : memref<128x512xbf16, #tpu.memory_space<vmem>>, vector<128x512xbf16>
    %cst_136 = arith.constant dense<0.000000e+00> : vector<2x512xf32>
    %497 = tpu.matmul %495, %496, %cst_136 {dimension_numbers = #tpu.dot_dimension_numbers<[1], [0], [0], [1], [0, 0, 1, 1], [], []>} : vector<2x128xbf16>, vector<128x512xbf16>, vector<2x512xf32> -> vector<2x512xf32>
    %498 = arith.truncf %464 : vector<2x128xf32> to vector<2x128xbf16>
    %c0_137 = arith.constant 0 : index
    %c0_138 = arith.constant 0 : index
    %499 = vector.load %arg5[%c0_137, %c0_138] : memref<128x512xbf16, #tpu.memory_space<vmem>>, vector<128x512xbf16>
    %cst_139 = arith.constant dense<0.000000e+00> : vector<2x512xf32>
    %500 = tpu.matmul %498, %499, %cst_139 {dimension_numbers = #tpu.dot_dimension_numbers<[1], [0], [0], [1], [0, 0, 1, 1], [], []>} : vector<2x128xbf16>, vector<128x512xbf16>, vector<2x512xf32> -> vector<2x512xf32>
    %501 = arith.addf %497, %500 : vector<2x512xf32>
    %c0_140 = arith.constant 0 : index
    %c0_141 = arith.constant 0 : index
    %502 = vector.load %arg6[%c0_140, %c0_141] : memref<1x512xf32, #tpu.memory_space<vmem>>, vector<1x512xf32>
    %503 = vector.broadcast %502 : vector<1x512xf32> to vector<2x512xf32>
    %504 = arith.addf %501, %503 : vector<2x512xf32>
    %505 = vector.extract_strided_slice %504 {offsets = [0, 0], sizes = [2, 128], strides = [1, 1]} : vector<2x512xf32> to vector<2x128xf32>
    %506 = arith.negf %505 : vector<2x128xf32>
    %507 = math.exp %506 : vector<2x128xf32>
    %cst_142 = arith.constant 1.000000e+00 : f32
    %508 = vector.broadcast %cst_142 : f32 to vector<2x128xf32>
    %509 = arith.addf %508, %507 : vector<2x128xf32>
    %510 = arith.divf %508, %509 : vector<2x128xf32>
    %511 = vector.extract_strided_slice %504 {offsets = [0, 128], sizes = [2, 128], strides = [1, 1]} : vector<2x512xf32> to vector<2x128xf32>
    %512 = arith.negf %511 : vector<2x128xf32>
    %513 = math.exp %512 : vector<2x128xf32>
    %cst_143 = arith.constant 1.000000e+00 : f32
    %514 = vector.broadcast %cst_143 : f32 to vector<2x128xf32>
    %515 = arith.addf %514, %513 : vector<2x128xf32>
    %516 = arith.divf %514, %515 : vector<2x128xf32>
    %517 = vector.extract_strided_slice %504 {offsets = [0, 256], sizes = [2, 128], strides = [1, 1]} : vector<2x512xf32> to vector<2x128xf32>
    %518 = math.tanh %517 : vector<2x128xf32>
    %519 = vector.extract_strided_slice %504 {offsets = [0, 384], sizes = [2, 128], strides = [1, 1]} : vector<2x512xf32> to vector<2x128xf32>
    %520 = arith.negf %519 : vector<2x128xf32>
    %521 = math.exp %520 : vector<2x128xf32>
    %cst_144 = arith.constant 1.000000e+00 : f32
    %522 = vector.broadcast %cst_144 : f32 to vector<2x128xf32>
    %523 = arith.addf %522, %521 : vector<2x128xf32>
    %524 = arith.divf %522, %523 : vector<2x128xf32>
    %525 = arith.mulf %516, %462 : vector<2x128xf32>
    %526 = arith.mulf %510, %518 : vector<2x128xf32>
    %527 = arith.addf %525, %526 : vector<2x128xf32>
    %528 = math.tanh %527 : vector<2x128xf32>
    %529 = arith.mulf %524, %528 : vector<2x128xf32>
    %c0_145 = arith.constant 0 : index
    %c0_146 = arith.constant 0 : index
    %530 = vector.load %arg7[%c0_145, %c0_146] : memref<2x128xf32, #tpu.memory_space<vmem>>, vector<2x128xf32>
    tpu.vector_store %arg7[%c0_145, %c0_146], %529 {strides = array<i32>} : memref<2x128xf32, #tpu.memory_space<vmem>>, vector<2x128xf32>,
    return
  }
}

module attributes {stable_mosaic.version = 11 : i64} {
  func.func @_head_kernel(%arg0: memref<2x3456xbf16, #tpu.memory_space<vmem>>, %arg1: memref<2x128xf32, #tpu.memory_space<vmem>>, %arg2: memref<3456x408xbf16, #tpu.memory_space<vmem>>, %arg3: memref<1x408xf32, #tpu.memory_space<vmem>>, %arg4: memref<408x25xf32, #tpu.memory_space<vmem>>, %arg5: memref<1x25xf32, #tpu.memory_space<vmem>>, %arg6: memref<128x25xf32, #tpu.memory_space<vmem>>, %arg7: memref<1x25xf32, #tpu.memory_space<vmem>>, %arg8: memref<25x20xf32, #tpu.memory_space<vmem>>, %arg9: memref<25x20xf32, #tpu.memory_space<vmem>>, %arg10: memref<1x20xf32, #tpu.memory_space<vmem>>, %arg11: memref<20x10xf32, #tpu.memory_space<vmem>>, %arg12: memref<1x10xf32, #tpu.memory_space<vmem>>, %arg13: memref<2x10xf32, #tpu.memory_space<vmem>>) attributes {dimension_semantics = [], scalar_prefetch = 0 : i64, scratch_operands = 0 : i64, tpu.core_type = #tpu.core_type<tc>} {
    %c0 = arith.constant 0 : index
    %c0_0 = arith.constant 0 : index
    %0 = vector.load %arg0[%c0, %c0_0] : memref<2x3456xbf16, #tpu.memory_space<vmem>>, vector<2x3456xbf16>
    %c0_1 = arith.constant 0 : index
    %c0_2 = arith.constant 0 : index
    %1 = vector.load %arg2[%c0_1, %c0_2] : memref<3456x408xbf16, #tpu.memory_space<vmem>>, vector<3456x408xbf16>
    %cst = arith.constant dense<0.000000e+00> : vector<2x408xf32>
    %2 = tpu.matmul %0, %1, %cst {dimension_numbers = #tpu.dot_dimension_numbers<[1], [0], [0], [1], [0, 0, 1, 1], [], []>} : vector<2x3456xbf16>, vector<3456x408xbf16>, vector<2x408xf32> -> vector<2x408xf32>
    %c0_3 = arith.constant 0 : index
    %c0_4 = arith.constant 0 : index
    %3 = vector.load %arg3[%c0_3, %c0_4] : memref<1x408xf32, #tpu.memory_space<vmem>>, vector<1x408xf32>
    %4 = vector.broadcast %3 : vector<1x408xf32> to vector<2x408xf32>
    %5 = arith.addf %2, %4 : vector<2x408xf32>
    %cst_5 = arith.constant 0.000000e+00 : f32
    %6 = vector.broadcast %cst_5 : f32 to vector<2x408xf32>
    %7 = arith.maximumf %5, %6 : vector<2x408xf32>
    %c0_6 = arith.constant 0 : index
    %c0_7 = arith.constant 0 : index
    %8 = vector.load %arg4[%c0_6, %c0_7] : memref<408x25xf32, #tpu.memory_space<vmem>>, vector<408x25xf32>
    %cst_8 = arith.constant dense<0.000000e+00> : vector<2x25xf32>
    %9 = tpu.matmul %7, %8, %cst_8 {dimension_numbers = #tpu.dot_dimension_numbers<[1], [0], [0], [1], [0, 0, 1, 1], [], []>} : vector<2x408xf32>, vector<408x25xf32>, vector<2x25xf32> -> vector<2x25xf32>
    %c0_9 = arith.constant 0 : index
    %c0_10 = arith.constant 0 : index
    %10 = vector.load %arg5[%c0_9, %c0_10] : memref<1x25xf32, #tpu.memory_space<vmem>>, vector<1x25xf32>
    %11 = vector.broadcast %10 : vector<1x25xf32> to vector<2x25xf32>
    %12 = arith.addf %9, %11 : vector<2x25xf32>
    %cst_11 = arith.constant dense<0xFF800000> : vector<2xf32>
    %13 = vector.multi_reduction <maximumf>, %12, %cst_11 [1] : vector<2x25xf32> to vector<2xf32>
    %14 = vector.shape_cast %13 : vector<2xf32> to vector<2x1xf32>
    %15 = vector.broadcast %14 : vector<2x1xf32> to vector<2x25xf32>
    %16 = arith.subf %12, %15 : vector<2x25xf32>
    %17 = math.exp %16 : vector<2x25xf32>
    %cst_12 = arith.constant dense<0.000000e+00> : vector<2xf32>
    %18 = vector.multi_reduction <add>, %17, %cst_12 [1] : vector<2x25xf32> to vector<2xf32>
    %19 = vector.shape_cast %18 : vector<2xf32> to vector<2x1xf32>
    %20 = math.log %19 : vector<2x1xf32>
    %21 = vector.broadcast %20 : vector<2x1xf32> to vector<2x25xf32>
    %22 = arith.subf %16, %21 : vector<2x25xf32>
    %c0_13 = arith.constant 0 : index
    %c0_14 = arith.constant 0 : index
    %23 = vector.load %arg1[%c0_13, %c0_14] : memref<2x128xf32, #tpu.memory_space<vmem>>, vector<2x128xf32>
    %c0_15 = arith.constant 0 : index
    %c0_16 = arith.constant 0 : index
    %24 = vector.load %arg6[%c0_15, %c0_16] : memref<128x25xf32, #tpu.memory_space<vmem>>, vector<128x25xf32>
    %cst_17 = arith.constant dense<0.000000e+00> : vector<2x25xf32>
    %25 = tpu.matmul %23, %24, %cst_17 {dimension_numbers = #tpu.dot_dimension_numbers<[1], [0], [0], [1], [0, 0, 1, 1], [], []>} : vector<2x128xf32>, vector<128x25xf32>, vector<2x25xf32> -> vector<2x25xf32>
    %c0_18 = arith.constant 0 : index
    %c0_19 = arith.constant 0 : index
    %26 = vector.load %arg7[%c0_18, %c0_19] : memref<1x25xf32, #tpu.memory_space<vmem>>, vector<1x25xf32>
    %27 = vector.broadcast %26 : vector<1x25xf32> to vector<2x25xf32>
    %28 = arith.addf %25, %27 : vector<2x25xf32>
    %c0_20 = arith.constant 0 : index
    %c0_21 = arith.constant 0 : index
    %29 = vector.load %arg8[%c0_20, %c0_21] : memref<25x20xf32, #tpu.memory_space<vmem>>, vector<25x20xf32>
    %cst_22 = arith.constant dense<0.000000e+00> : vector<2x20xf32>
    %30 = tpu.matmul %28, %29, %cst_22 {dimension_numbers = #tpu.dot_dimension_numbers<[1], [0], [0], [1], [0, 0, 1, 1], [], []>} : vector<2x25xf32>, vector<25x20xf32>, vector<2x20xf32> -> vector<2x20xf32>
    %c0_23 = arith.constant 0 : index
    %c0_24 = arith.constant 0 : index
    %31 = vector.load %arg9[%c0_23, %c0_24] : memref<25x20xf32, #tpu.memory_space<vmem>>, vector<25x20xf32>
    %cst_25 = arith.constant dense<0.000000e+00> : vector<2x20xf32>
    %32 = tpu.matmul %22, %31, %cst_25 {dimension_numbers = #tpu.dot_dimension_numbers<[1], [0], [0], [1], [0, 0, 1, 1], [], []>} : vector<2x25xf32>, vector<25x20xf32>, vector<2x20xf32> -> vector<2x20xf32>
    %33 = arith.addf %30, %32 : vector<2x20xf32>
    %c0_26 = arith.constant 0 : index
    %c0_27 = arith.constant 0 : index
    %34 = vector.load %arg10[%c0_26, %c0_27] : memref<1x20xf32, #tpu.memory_space<vmem>>, vector<1x20xf32>
    %35 = vector.broadcast %34 : vector<1x20xf32> to vector<2x20xf32>
    %36 = arith.addf %33, %35 : vector<2x20xf32>
    %cst_28 = arith.constant 0.000000e+00 : f32
    %37 = vector.broadcast %cst_28 : f32 to vector<2x20xf32>
    %38 = arith.maximumf %36, %37 : vector<2x20xf32>
    %c0_29 = arith.constant 0 : index
    %c0_30 = arith.constant 0 : index
    %39 = vector.load %arg11[%c0_29, %c0_30] : memref<20x10xf32, #tpu.memory_space<vmem>>, vector<20x10xf32>
    %cst_31 = arith.constant dense<0.000000e+00> : vector<2x10xf32>
    %40 = tpu.matmul %38, %39, %cst_31 {dimension_numbers = #tpu.dot_dimension_numbers<[1], [0], [0], [1], [0, 0, 1, 1], [], []>} : vector<2x20xf32>, vector<20x10xf32>, vector<2x10xf32> -> vector<2x10xf32>
    %c0_32 = arith.constant 0 : index
    %c0_33 = arith.constant 0 : index
    %41 = vector.load %arg12[%c0_32, %c0_33] : memref<1x10xf32, #tpu.memory_space<vmem>>, vector<1x10xf32>
    %42 = vector.broadcast %41 : vector<1x10xf32> to vector<2x10xf32>
    %43 = arith.addf %40, %42 : vector<2x10xf32>
    %cst_34 = arith.constant dense<0xFF800000> : vector<2xf32>
    %44 = vector.multi_reduction <maximumf>, %43, %cst_34 [1] : vector<2x10xf32> to vector<2xf32>
    %45 = vector.shape_cast %44 : vector<2xf32> to vector<2x1xf32>
    %46 = vector.broadcast %45 : vector<2x1xf32> to vector<2x10xf32>
    %47 = arith.subf %43, %46 : vector<2x10xf32>
    %48 = math.exp %47 : vector<2x10xf32>
    %cst_35 = arith.constant dense<0.000000e+00> : vector<2xf32>
    %49 = vector.multi_reduction <add>, %48, %cst_35 [1] : vector<2x10xf32> to vector<2xf32>
    %50 = vector.shape_cast %49 : vector<2xf32> to vector<2x1xf32>
    %51 = math.log %50 : vector<2x1xf32>
    %52 = vector.broadcast %51 : vector<2x1xf32> to vector<2x10xf32>
    %53 = arith.subf %47, %52 : vector<2x10xf32>
    %c0_36 = arith.constant 0 : index
    %c0_37 = arith.constant 0 : index
    %54 = vector.load %arg13[%c0_36, %c0_37] : memref<2x10xf32, #tpu.memory_space<vmem>>, vector<2x10xf32>
    tpu.vector_store %arg13[%c0_36, %c0_37], %53 {strides = array<i32>} : memref<2x10xf32, #tpu.memory_space<vmem>>, vector<2x10xf32>,
    return
  }
}

</mosaic_0001>

<bundles_post_ra>
// kernel: zipper_forward.5
= control target key start
LH: loop header
LB: loop body
LE: loop exit
PB: predicated region body
PF: predicated region fallthrough
CT: control target
= control target key end

     0   :  { %v2431_v0 = vmov 0   ;;  %vm1047_vm0 = vcmask 1040384   ;;  %vm1048_vm1 = vcmask 1041408   ;;  %vm992_vm2 = vcmask 285696   ;;  %s3268_s1 = inlined_call_operand.vmem [shape: bf16[675,48], index: 1, kind: input, shape index: {}]   ;;  %s3269_s0 = inlined_call_operand.vmem [shape: bf16[288,675], index: 0, kind: input, shape index: {}]   ;;  %s3270_s2 = inlined_call_operand.vmem [shape: f32[1,48], index: 2, kind: input, shape index: {}]   ;;  %s3271_s3 = inlined_call_operand.vmem [shape: bf16[288,48], index: 3, kind: output, shape index: {}]  }
   0x1   :  { %1054 = vmatprep.subr.bf16.mxu1 %v2431_v0  ;;  %1231 = vmatprep.subr.bf16.mxu0 %v2431_v0  ;;  %v2226_v1 = vld [vmem:[%s3268_s1] sm:$0xff]   ;;  %v2228_v3 = vld [vmem:[%s3268_s1 + $0x8] sm:$0xff]   ;;  %v2230_v5 = vld [vmem:[%s3268_s1 + $0x10] sm:$0xff]   ;;  %vm1765_vm3 = vcmask 388096  }
   0x2   :  { %v2461_v2 = vld [vmem:[%s3268_s1 + $0x80] sm:$0xff]   ;;  %1055 = vmatpush1.bf16.msra.mxu1 %v2226_v1  ;;  %v2471_v4 = vld [vmem:[%s3268_s1 + $0x88] sm:$0xff]   ;;  %v2482_v6 = vld [vmem:[%s3268_s1 + $0x90] sm:$0xff]   ;;  %v2432_v1 = vmov 65535  }
   0x3   :  { %1232 = vmatpush1.bf16.msra.mxu0 %v2461_v2  ;;  %1056 = vmatprep.subr.bf16.mxu1 %v2431_v0  ;;  %v2232_v7 = vld [vmem:[%s3268_s1 + $0x18] sm:$0xff]   ;;  %v2234_v9 = vld [vmem:[%s3268_s1 + $0x20] sm:$0xff]   ;;  %v2236_v11 = vld [vmem:[%s3268_s1 + $0x28] sm:$0xff]  }
   0x4   :  { %1233 = vmatprep.subr.bf16.mxu0 %v2431_v0  ;;  %v2493_v8 = vld [vmem:[%s3268_s1 + $0x98] sm:$0xff]   ;;  %v2504_v10 = vld [vmem:[%s3268_s1 + $0xa0] sm:$0xff]   ;;  %v2515_v12 = vld [vmem:[%s3268_s1 + $0xa8] sm:$0xff]  }
   0x5   :  { %v2238_v13 = vld [vmem:[%s3268_s1 + $0x30] sm:$0xff]   ;;  %v2240_v15 = vld [vmem:[%s3268_s1 + $0x38] sm:$0xff]   ;;  %v2242_v17 = vld [vmem:[%s3268_s1 + $0x40] sm:$0xff]  }
   0x6   :  { %1057 = vmatpush1.bf16.msra.mxu1 %v2228_v3  ;;  %v2526_v14 = vld [vmem:[%s3268_s1 + $0xb0] sm:$0xff]   ;;  %v2537_v16 = vld [vmem:[%s3268_s1 + $0xb8] sm:$0xff]   ;;  %v2548_v18 = vld [vmem:[%s3268_s1 + $0xc0] sm:$0xff]  }
   0x7   :  { %1234 = vmatpush1.bf16.msra.mxu0 %v2471_v4  ;;  %1058 = vmatprep.subr.bf16.mxu1 %v2431_v0  ;;  %v2260_v19 = vld [vmem:[%s3269_s0 + $0x4] ss:$24 sps:$4 sm:$0xff]   ;;  %v2244_v20 = vld [vmem:[%s3268_s1 + $0x48] sm:$0xff]   ;;  %v2246_v23 = vld [vmem:[%s3268_s1 + $0x50] sm:$0xff]  }
   0x8   :  { %1235 = vmatprep.subr.bf16.mxu0 %v2431_v0  ;;  %v2263_v21 = vld [vmem:[%s3269_s0 + $0xc] ss:$24 sps:$4 sm:$0xff]   ;;  %1086 = vmatprep.mubr.bf16.mxu1 %v2260_v19  ;;  %v2576_v24 = vld [vmem:[%s3268_s1 + $0xd0] sm:$0xff]   ;;  %v2248_v25 = vld [vmem:[%s3268_s1 + $0x58] sm:$0xff]  }
   0x9   :  { %v2565_v22 = vld [vmem:[%s3268_s1 + $0xc8] sm:$0xff]   ;;  %1263 = vmatprep.mubr.bf16.mxu0 %v2263_v21  ;;  %v2587_v26 = vld [vmem:[%s3268_s1 + $0xd8] sm:$0xff]   ;;  %v2250_v27 = vld [vmem:[%s3268_s1 + $0x60] sm:$0xff]  }
   0xa   :  { %1059 = vmatpush1.bf16.msra.mxu1 %v2230_v5  ;;  %v2598_v28 = vld [vmem:[%s3268_s1 + $0xe0] sm:$0xff]   ;;  %v2252_v29 = vld [vmem:[%s3268_s1 + $0x68] sm:$0xff]   ;;  %v2254_v31 = vld [vmem:[%s3268_s1 + $0x70] sm:$0xff]  }
   0xb   :  { %1236 = vmatpush1.bf16.msra.mxu0 %v2482_v6  ;;  %1060 = vmatprep.subr.bf16.mxu1 %v2431_v0  ;;  %v2609_v30 = vld [vmem:[%s3268_s1 + $0xe8] sm:$0xff]   ;;  %v2620_v32 = vld [vmem:[%s3268_s1 + $0xf0] sm:$0xff]   ;;  %v2256_v33 = vld [vmem:[%s3268_s1 + $0x78] sm:$0xff]  }
   0xc   :  { %1237 = vmatprep.subr.bf16.mxu0 %v2431_v0  ;;  %v2631_v34 = vld [vmem:[%s3268_s1 + $0xf8] sm:$0xff]   ;;  %v2261_v36 = vld [vmem:[%s3269_s0 + $0x8] ss:$24 sps:$4 sm:$0xff]   ;;  %v2265_v38 = vld [vmem:[%s3269_s0 + $0x34] ss:$24 sps:$4 sm:$0xff]  }
   0xd   :  { %v2258_v35 = vld [vmem:[%s3269_s0] ss:$24 sps:$4 sm:$0xff]   ;;  %v2267_v39 = vld [vmem:[%s3269_s0 + $0x3c] ss:$24 sps:$4 sm:$0xff]   ;;  %v2271_v40 = vld [vmem:[%s3268_s1 + $0x108] sm:$0xff]  }
   0xe   :  { %1061 = vmatpush1.bf16.msra.mxu1 %v2232_v7  ;;  %v2264_v37 = vld [vmem:[%s3268_s1 + $0x100] sm:$0xff]   ;;  %v2269_v41 = vld [vmem:[%s3269_s0 + $0x30] ss:$24 sps:$4 sm:$0xff]   ;;  %v2283_v46 = vld [vmem:[%s3268_s1 + $0x118] sm:$0xff]  }
   0xf   :  { %1238 = vmatpush1.bf16.msra.mxu0 %v2493_v8  ;;  %1062 = vmatprep.subr.bf16.mxu1 %v2431_v0  ;;  %v2270_v42 = vld [vmem:[%s3269_s0 + $0x38] ss:$24 sps:$4 sm:$0xff]   ;;  %v2272_v43 = vld [vmem:[%s3269_s0 + $0x64] ss:$24 sps:$4 sm:$0xff]   ;;  %v2277_v48 = vld [vmem:[%s3269_s0 + $0x68] ss:$24 sps:$4 sm:$0xff]  }
  0x10   :  { %1239 = vmatprep.subr.bf16.mxu0 %v2431_v0  ;;  %v2274_v44 = vld [vmem:[%s3269_s0 + $0x6c] ss:$24 sps:$4 sm:$0xff]   ;;  %v2278_v45 = vld [vmem:[%s3268_s1 + $0x110] sm:$0xff]   ;;  %v2276_v47 = vld [vmem:[%s3269_s0 + $0x60] ss:$24 sps:$4 sm:$0xff]  }
  0x11   :  { %v2279_v49 = vld [vmem:[%s3269_s0 + $0x94] ss:$24 sps:$4 sm:$0xff]   ;;  %v2286_v51 = vld [vmem:[%s3268_s1 + $0x120] sm:$0xff]   ;;  %v2284_v53 = vld [vmem:[%s3269_s0 + $0x90] ss:$24 sps:$4 sm:$0xff]  }
  0x12   :  { %1063 = vmatpush1.bf16.msra.mxu1 %v2234_v9  ;;  %v2281_v50 = vld [vmem:[%s3269_s0 + $0x9c] ss:$24 sps:$4 sm:$0xff]   ;;  %v2293_v52 = vld [vmem:[%s3268_s1 + $0x128] sm:$0xff]   ;;  %v2285_v54 = vld [vmem:[%s3269_s0 + $0x98] ss:$24 sps:$4 sm:$0xff]  }
  0x13   :  { %1240 = vmatpush1.bf16.msra.mxu0 %v2504_v10  ;;  %1064 = vmatprep.subr.bf16.mxu1 %v2431_v0  ;;  %v2287_v55 = vld [vmem:[%s3269_s0 + $0xc4] ss:$24 sps:$4 sm:$0xff]   ;;  %v2300_v57 = vld [vmem:[%s3268_s1 + $0x130] sm:$0xff]   ;;  %v2291_v59 = vld [vmem:[%s3269_s0 + $0xc0] ss:$24 sps:$4 sm:$0xff]  }
  0x14   :  { %1241 = vmatprep.subr.bf16.mxu0 %v2431_v0  ;;  %v2289_v56 = vld [vmem:[%s3269_s0 + $0xcc] ss:$24 sps:$4 sm:$0xff]   ;;  %v2307_v58 = vld [vmem:[%s3268_s1 + $0x138] sm:$0xff]   ;;  %v2292_v60 = vld [vmem:[%s3269_s0 + $0xc8] ss:$24 sps:$4 sm:$0xff]  }
  0x15   :  { %v2294_v61 = vld [vmem:[%s3269_s0 + $0xf4] ss:$24 sps:$4 sm:$0xff]   ;;  %v2314_v63 = vld [vmem:[%s3268_s1 + $0x140] sm:$0xff]   ;;  %v2322_v5 = vld [vmem:[%s3268_s1 + $0x150] ss:$0 sps:$4 sm:$0x33]  }
  0x16   :  { %1065 = vmatpush1.bf16.msra.mxu1 %v2236_v11  ;;  %v2296_v62 = vld [vmem:[%s3269_s0 + $0xfc] ss:$24 sps:$4 sm:$0xff]   ;;  %v2315_v3 = vld [vmem:[%s3268_s1 + $0x148] sm:$0xff]   ;;  %v2305_v11 = vld [vmem:[%s3269_s0 + $0x120] ss:$24 sps:$4 sm:$0xff]  }
  0x17   :  { %1242 = vmatpush1.bf16.msra.mxu0 %v2515_v12  ;;  %1066 = vmatprep.subr.bf16.mxu1 %v2431_v0  ;;  %v2301_v7 = vld [vmem:[%s3269_s0 + $0x124] ss:$24 sps:$4 sm:$0xff]   ;;  %v2320_v19 = vld [vmem:[%s3269_s0 + $0x180] ss:$24 sps:$4 sm:$0xff]   ;;  %v2323_v21 = vld [vmem:[%s3269_s0 + $0x1b4] ss:$24 sps:$4 sm:$0xff]  }
  0x18   :  { %1243 = vmatprep.subr.bf16.mxu0 %v2431_v0  ;;  %v2303_v9 = vld [vmem:[%s3269_s0 + $0x12c] ss:$24 sps:$4 sm:$0xff]  }
  0x1a   :  { %1067 = vmatpush1.bf16.msra.mxu1 %v2238_v13  ;;  %v2308_v13 = vld [vmem:[%s3269_s0 + $0x154] ss:$24 sps:$4 sm:$0xff]  }
  0x1b   :  { %1244 = vmatpush1.bf16.msra.mxu0 %v2526_v14  ;;  %1068 = vmatprep.subr.bf16.mxu1 %v2431_v0 }
  0x1c   :  { %1245 = vmatprep.subr.bf16.mxu0 %v2431_v0 }
  0x1e   :  { %1069 = vmatpush1.bf16.msra.mxu1 %v2240_v15  ;;  %v2312_v15 = vld [vmem:[%s3269_s0 + $0x150] ss:$24 sps:$4 sm:$0xff]  }
  0x1f   :  { %1246 = vmatpush1.bf16.msra.mxu0 %v2537_v16  ;;  %1070 = vmatprep.subr.bf16.mxu1 %v2431_v0 }
  0x20   :  { %1247 = vmatprep.subr.bf16.mxu0 %v2431_v0 }
  0x22   :  { %1071 = vmatpush1.bf16.msra.mxu1 %v2242_v17  ;;  %v2316_v17 = vld [vmem:[%s3269_s0 + $0x184] ss:$24 sps:$4 sm:$0xff]  }
  0x23   :  { %1248 = vmatpush1.bf16.msra.mxu0 %v2548_v18  ;;  %1072 = vmatprep.subr.bf16.mxu1 %v2431_v0 }
  0x24   :  { %1249 = vmatprep.subr.bf16.mxu0 %v2431_v0 }
  0x26   :  { %1073 = vmatpush1.bf16.msra.mxu1 %v2244_v20  ;;  %v2321_v20 = vld [vmem:[%s3269_s0 + $0x188] ss:$24 sps:$4 sm:$0xff]  }
  0x27   :  { %1250 = vmatpush1.bf16.msra.mxu0 %v2565_v22  ;;  %1074 = vmatprep.subr.bf16.mxu1 %v2431_v0 }
  0x28   :  { %1251 = vmatprep.subr.bf16.mxu0 %v2431_v0 }
  0x2a   :  { %1075 = vmatpush1.bf16.msra.mxu1 %v2246_v23  ;;  %v2325_v23 = vld [vmem:[%s3269_s0 + $0x10] ss:$24 sps:$4 sm:$0xff]  }
  0x2b   :  { %1252 = vmatpush1.bf16.msra.mxu0 %v2576_v24  ;;  %1076 = vmatprep.subr.bf16.mxu1 %v2431_v0 }
  0x2c   :  { %1253 = vmatprep.subr.bf16.mxu0 %v2431_v0 }
  0x2e   :  { %1077 = vmatpush1.bf16.msra.mxu1 %v2248_v25  ;;  %v2331_v25 = vld [vmem:[%s3269_s0 + $0x44] ss:$24 sps:$4 sm:$0xff]  }
  0x2f   :  { %1254 = vmatpush1.bf16.msra.mxu0 %v2587_v26  ;;  %1078 = vmatprep.subr.bf16.mxu1 %v2431_v0 }
  0x30   :  { %1255 = vmatprep.subr.bf16.mxu0 %v2431_v0 }
  0x32   :  { %1079 = vmatpush1.bf16.msra.mxu1 %v2250_v27  ;;  %v2334_v27 = vld [vmem:[%s3269_s0 + $0x40] ss:$24 sps:$4 sm:$0xff]  }
  0x33   :  { %1256 = vmatpush1.bf16.msra.mxu0 %v2598_v28  ;;  %1080 = vmatprep.subr.bf16.mxu1 %v2431_v0 }
  0x34   :  { %1257 = vmatprep.subr.bf16.mxu0 %v2431_v0 }
  0x36   :  { %1081 = vmatpush1.bf16.msra.mxu1 %v2252_v29  ;;  %v2337_v29 = vld [vmem:[%s3269_s0 + $0x74] ss:$24 sps:$4 sm:$0xff]  }
  0x37   :  { %1258 = vmatpush1.bf16.msra.mxu0 %v2609_v30  ;;  %1082 = vmatprep.subr.bf16.mxu1 %v2431_v0 }
  0x38   :  { %1259 = vmatprep.subr.bf16.mxu0 %v2431_v0 }
  0x3a   :  { %1083 = vmatpush1.bf16.msra.mxu1 %v2254_v31  ;;  %v2340_v31 = vld [vmem:[%s3269_s0 + $0x70] ss:$24 sps:$4 sm:$0xff]  }
  0x3b   :  { %1260 = vmatpush1.bf16.msra.mxu0 %v2620_v32  ;;  %1084 = vmatprep.subr.bf16.mxu1 %v2431_v0 }
  0x3c   :  { %1261 = vmatprep.subr.bf16.mxu0 %v2431_v0 }
  0x3e   :  { %1085 = vmatpush1.bf16.msra.mxu1 %v2256_v33  ;;  %v2343_v33 = vld [vmem:[%s3269_s0 + $0xa4] ss:$24 sps:$4 sm:$0xff]  }
  0x3f   :  { %1262 = vmatpush1.bf16.msra.mxu0 %v2631_v34  ;;  %2048 = vmatprep.subr.bf16.mxu1 %v2431_v0 }
  0x40   :  { %1408 = vmatprep.subr.bf16.mxu0 %v2431_v0 }
  0x41   :  { %1087 = vmatmul.mubr.bf16.vlgmr.msra.gmra.mrb[0].mxu1 %v2258_v35  ;;  %v2346_v35 = vld [vmem:[%s3269_s0 + $0xa0] ss:$24 sps:$4 sm:$0xff]  }
  0x42   :  { %1264 = vmatmul.mubr.bf16.vlgmr.msra.gmra.mrb[0].mxu0 %v2261_v36  ;;  %2064 = vmatpush1.bf16.msra.mxu1 %v2461_v2  ;;  %v1049_v2 = vsel %vm1047_vm0, 4294967295, %v2432_v1  ;;  %v2347_v36 = vld [vmem:[%s3269_s0 + $0x274] ss:$24 sps:$4 sm:$0xff]  }
  0x43   :  { %1409 = vmatpush1.bf16.msra.mxu0 %v2264_v37  ;;  %1094 = vmatprep.mubr.bf16.mxu1 %v2265_v38  ;;  %v2349_v37 = vld [vmem:[%s3269_s0 + $0xd4] ss:$24 sps:$4 sm:$0xff]   ;;  %v2351_v38 = vld [vmem:[%s3269_s0 + $0x270] ss:$24 sps:$4 sm:$0xff]  }
  0x44   :  { %1271 = vmatprep.mubr.bf16.mxu0 %v2267_v39  ;;  %2049 = vmatprep.subr.bf16.mxu1 %v2431_v0  ;;  %v2352_v39 = vld [vmem:[%s3269_s0 + $0xd0] ss:$24 sps:$4 sm:$0xff]   ;;  %v2389_v1 = vld [vmem:[%s3269_s0 + $0x21c] ss:$24 sps:$4 sm:$0xff]  }
  0x45   :  { %1410 = vmatprep.subr.bf16.mxu0 %v2431_v0 }
  0x46   :  { %2065 = vmatpush1.bf16.msra.mxu1 %v2471_v4  ;;  %v2298_v4 = vld [vmem:[%s3269_s0 + $0xf0] ss:$24 sps:$4 sm:$0xff]  }
  0x47   :  { %1411 = vmatpush1.bf16.msra.mxu0 %v2271_v40  ;;  %2050 = vmatprep.subr.bf16.mxu1 %v2431_v0  ;;  %v2353_v40 = vld [vmem:[%s3269_s0 + $0x2a4] ss:$24 sps:$4 sm:$0xff]  }
  0x48   :  { %1412 = vmatprep.subr.bf16.mxu0 %v2431_v0 }
  0x49   :  { %1095 = vmatmul.mubr.bf16.gmra.mrb[4].mxu1 %v2269_v41  ;;  %v2355_v41 = vld [vmem:[%s3269_s0 + $0x104] ss:$24 sps:$4 sm:$0xff]  }
  0x4a   :  { %1272 = vmatmul.mubr.bf16.gmra.mrb[4].mxu0 %v2270_v42  ;;  %1102 = vmatprep.mubr.bf16.mxu1 %v2272_v43  ;;  %v2357_v42 = vld [vmem:[%s3269_s0 + $0x2a0] ss:$24 sps:$4 sm:$0xff]  }
  0x4b   :  { %1279 = vmatprep.mubr.bf16.mxu0 %v2274_v44  ;;  %1413 = vmatpush1.bf16.msra.mxu0 %v2278_v45  ;;  %v2358_v43 = vld [vmem:[%s3269_s0 + $0x100] ss:$24 sps:$4 sm:$0xff]   ;;  %v2359_v44 = vld [vmem:[%s3269_s0 + $0x2d4] ss:$24 sps:$4 sm:$0xff]  }
  0x4c   :  { %2066 = vmatpush1.bf16.msra.mxu1 %v2482_v6  ;;  %1414 = vmatprep.subr.bf16.mxu0 %v2431_v0  ;;  %v2299_v6 = vld [vmem:[%s3269_s0 + $0xf8] ss:$24 sps:$4 sm:$0xff]   ;;  %v2361_v45 = vld [vmem:[%s3269_s0 + $0x134] ss:$24 sps:$4 sm:$0xff]  }
  0x4d   :  { %2051 = vmatprep.subr.bf16.mxu1 %v2431_v0 }
  0x4f   :  { %1415 = vmatpush1.bf16.msra.mxu0 %v2283_v46  ;;  %v2363_v46 = vld [vmem:[%s3269_s0 + $0x2d0] ss:$24 sps:$4 sm:$0xff]  }
  0x50   :  { %2067 = vmatpush1.bf16.msra.mxu1 %v2493_v8  ;;  %1416 = vmatprep.subr.bf16.mxu0 %v2431_v0  ;;  %v1050_v8 = vsel %vm1048_vm1, %v1049_v2, 0  ;;  %v2391_v2 = vld [vmem:[%s3269_s0 + $0x224] ss:$24 sps:$4 sm:$0xff]  }
  0x51   :  { %1103 = vmatmul.mubr.bf16.gmra.mrb[8].mxu1 %v2276_v47  ;;  %2052 = vmatprep.subr.bf16.mxu1 %v2431_v0  ;;  %v2364_v47 = vld [vmem:[%s3269_s0 + $0x130] ss:$24 sps:$4 sm:$0xff]  }
  0x52   :  { %1280 = vmatmul.mubr.bf16.gmra.mrb[8].mxu0 %v2277_v48  ;;  %1110 = vmatprep.mubr.bf16.mxu1 %v2279_v49  ;;  %v2365_v48 = vld [vmem:[%s3269_s0 + $0x304] ss:$24 sps:$4 sm:$0xff]  }
  0x53   :  { %1287 = vmatprep.mubr.bf16.mxu0 %v2281_v50  ;;  %1417 = vmatpush1.bf16.msra.mxu0 %v2286_v51  ;;  %v2367_v49 = vld [vmem:[%s3269_s0 + $0x164] ss:$24 sps:$4 sm:$0xff]   ;;  %v2369_v50 = vld [vmem:[%s3269_s0 + $0x300] ss:$24 sps:$4 sm:$0xff]  }
  0x54   :  { %1418 = vmatprep.subr.bf16.mxu0 %v2431_v0  ;;  %2068 = vmatpush1.bf16.msra.mxu1 %v2504_v10  ;;  %v1052_v10 = vand.u32 %v2322_v5, %v1050_v8  ;;  %v2370_v51 = vld [vmem:[%s3269_s0 + $0x160] ss:$24 sps:$4 sm:$0xff]   ;;  %v2395_v5 = vld [vmem:[%s3269_s0 + $0x24c] ss:$24 sps:$4 sm:$0xff]   ;;  %v2400_v8 = vld [vmem:[%s3269_s0 + $0x250] ss:$24 sps:$4 sm:$0xff]  }
  0x55   :  { %2053 = vmatprep.subr.bf16.mxu1 %v2431_v0 }
  0x57   :  { %1419 = vmatpush1.bf16.msra.mxu0 %v2293_v52  ;;  %v2371_v52 = vld [vmem:[%s3269_s0 + $0x334] ss:$24 sps:$4 sm:$0xff]  }
  0x58   :  { %1420 = vmatprep.subr.bf16.mxu0 %v2431_v0  ;;  %2069 = vmatpush1.bf16.msra.mxu1 %v2515_v12  ;;  %v2306_v12 = vld [vmem:[%s3269_s0 + $0x128] ss:$24 sps:$4 sm:$0xff]  }
  0x59   :  { %1111 = vmatmul.mubr.bf16.gmra.mrb[12].mxu1 %v2284_v53  ;;  %2054 = vmatprep.subr.bf16.mxu1 %v2431_v0  ;;  %v2373_v53 = vld [vmem:[%s3269_s0 + $0x194] ss:$24 sps:$4 sm:$0xff]  }
  0x5a   :  { %1288 = vmatmul.mubr.bf16.gmra.mrb[12].mxu0 %v2285_v54  ;;  %1118 = vmatprep.mubr.bf16.mxu1 %v2287_v55  ;;  %v2375_v54 = vld [vmem:[%s3269_s0 + $0x330] ss:$24 sps:$4 sm:$0xff]  }
  0x5b   :  { %1295 = vmatprep.mubr.bf16.mxu0 %v2289_v56  ;;  %1421 = vmatpush1.bf16.msra.mxu0 %v2300_v57  ;;  %v2376_v55 = vld [vmem:[%s3269_s0 + $0x190] ss:$24 sps:$4 sm:$0xff]   ;;  %v2379_v56 = vld [vmem:[%s3269_s0 + $0x1bc] ss:$24 sps:$4 sm:$0xff]  }
  0x5c   :  { %1422 = vmatprep.subr.bf16.mxu0 %v2431_v0  ;;  %2070 = vmatpush1.bf16.msra.mxu1 %v2526_v14  ;;  %v2310_v14 = vld [vmem:[%s3269_s0 + $0x15c] ss:$24 sps:$4 sm:$0xff]  }
  0x5d   :  { %2055 = vmatprep.subr.bf16.mxu1 %v2431_v0  ;;  %v2380_v57 = vld [vmem:[%s3269_s0 + $0x1c4] ss:$24 sps:$4 sm:$0xff]  }
  0x5f   :  { %1423 = vmatpush1.bf16.msra.mxu0 %v2307_v58  ;;  %v2377_v58 = vld [vmem:[%s3269_s0 + $0x1b8] ss:$24 sps:$4 sm:$0xff]  }
  0x60   :  { %1424 = vmatprep.subr.bf16.mxu0 %v2431_v0  ;;  %2071 = vmatpush1.bf16.msra.mxu1 %v2537_v16  ;;  %v2313_v16 = vld [vmem:[%s3269_s0 + $0x158] ss:$24 sps:$4 sm:$0xff]  }
  0x61   :  { %1119 = vmatmul.mubr.bf16.gmra.mrb[16].mxu1 %v2291_v59  ;;  %2056 = vmatprep.subr.bf16.mxu1 %v2431_v0  ;;  %v2382_v59 = vld [vmem:[%s3269_s0 + $0x1c0] ss:$24 sps:$4 sm:$0xff]  }
  0x62   :  { %1296 = vmatmul.mubr.bf16.gmra.mrb[16].mxu0 %v2292_v60  ;;  %1126 = vmatprep.mubr.bf16.mxu1 %v2294_v61  ;;  %v2383_v60 = vld [vmem:[%s3269_s0 + $0x1ec] ss:$24 sps:$4 sm:$0xff]  }
  0x63   :  { %1303 = vmatprep.mubr.bf16.mxu0 %v2296_v62  ;;  %1425 = vmatpush1.bf16.msra.mxu0 %v2314_v63  ;;  %v2385_v61 = vld [vmem:[%s3269_s0 + $0x1f4] ss:$24 sps:$4 sm:$0xff]   ;;  %v2387_v62 = vld [vmem:[%s3269_s0 + $0x1e8] ss:$24 sps:$4 sm:$0xff]  }
  0x64   :  { %1426 = vmatprep.subr.bf16.mxu0 %v2431_v0  ;;  %2072 = vmatpush1.bf16.msra.mxu1 %v2548_v18  ;;  %v2318_v18 = vld [vmem:[%s3269_s0 + $0x18c] ss:$24 sps:$4 sm:$0xff]   ;;  %v2388_v63 = vld [vmem:[%s3269_s0 + $0x1f0] ss:$24 sps:$4 sm:$0xff]  }
  0x65   :  { %2057 = vmatprep.subr.bf16.mxu1 %v2431_v0 }
  0x67   :  { %1427 = vmatpush1.bf16.msra.mxu0 %v2315_v3  ;;  %v2393_v3 = vld [vmem:[%s3269_s0 + $0x218] ss:$24 sps:$4 sm:$0xff]  }
  0x68   :  { %1428 = vmatprep.subr.bf16.mxu0 %v2431_v0  ;;  %2073 = vmatpush1.bf16.msra.mxu1 %v2565_v22  ;;  %v2327_v22 = vld [vmem:[%s3269_s0 + $0x14] ss:$24 sps:$4 sm:$0xff]  }
  0x69   :  { %1127 = vmatmul.mubr.bf16.gmra.mrb[20].mxu1 %v2298_v4  ;;  %2058 = vmatprep.subr.bf16.mxu1 %v2431_v0  ;;  %v2394_v4 = vld [vmem:[%s3269_s0 + $0x220] ss:$24 sps:$4 sm:$0xff]  }
  0x6a   :  { %1304 = vmatmul.mubr.bf16.gmra.mrb[20].mxu0 %v2299_v6  ;;  %1134 = vmatprep.mubr.bf16.mxu1 %v2301_v7  ;;  %v2397_v6 = vld [vmem:[%s3269_s0 + $0x254] ss:$24 sps:$4 sm:$0xff]   ;;  %v2399_v7 = vld [vmem:[%s3269_s0 + $0x248] ss:$24 sps:$4 sm:$0xff]  }
  0x6b   :  { %1311 = vmatprep.mubr.bf16.mxu0 %v2303_v9  ;;  %1429 = vmatpush1.bf16.msra.mxu0 %v1052_v10  ;;  %v2401_v9 = vld [vmem:[%s3269_s0 + $0x27c] ss:$24 sps:$4 sm:$0xff]  }
  0x6c   :  { %2074 = vmatpush1.bf16.msra.mxu1 %v2576_v24  ;;  %v2329_v24 = vld [vmem:[%s3269_s0 + $0x1e4] ss:$24 sps:$4 sm:$0xff]  }
  0x6d   :  { %2059 = vmatprep.subr.bf16.mxu1 %v2431_v0  ;;  %v2403_v10 = vld [vmem:[%s3269_s0 + $0x284] ss:$24 sps:$4 sm:$0xff]  }
  0x70   :  { %2075 = vmatpush1.bf16.msra.mxu1 %v2587_v26  ;;  %v2333_v26 = vld [vmem:[%s3269_s0 + $0x1e0] ss:$24 sps:$4 sm:$0xff]  }
  0x71   :  { %1135 = vmatmul.mubr.bf16.gmra.mrb[24].mxu1 %v2305_v11  ;;  %2060 = vmatprep.subr.bf16.mxu1 %v2431_v0  ;;  %v2405_v11 = vld [vmem:[%s3269_s0 + $0x278] ss:$24 sps:$4 sm:$0xff]  }
  0x72   :  { %1312 = vmatmul.mubr.bf16.gmra.mrb[24].mxu0 %v2306_v12  ;;  %1142 = vmatprep.mubr.bf16.mxu1 %v2308_v13  ;;  %v2406_v12 = vld [vmem:[%s3269_s0 + $0x280] ss:$24 sps:$4 sm:$0xff]   ;;  %v2407_v13 = vld [vmem:[%s3269_s0 + $0x2ac] ss:$24 sps:$4 sm:$0xff]  }
  0x73   :  { %1319 = vmatprep.mubr.bf16.mxu0 %v2310_v14  ;;  %v2409_v14 = vld [vmem:[%s3269_s0 + $0x2b4] ss:$24 sps:$4 sm:$0xff]  }
  0x74   :  { %2076 = vmatpush1.bf16.msra.mxu1 %v2598_v28  ;;  %v2335_v28 = vld [vmem:[%s3269_s0 + $0x214] ss:$24 sps:$4 sm:$0xff]  }
  0x75   :  { %2061 = vmatprep.subr.bf16.mxu1 %v2431_v0 }
  0x78   :  { %2077 = vmatpush1.bf16.msra.mxu1 %v2609_v30  ;;  %v2339_v30 = vld [vmem:[%s3269_s0 + $0x210] ss:$24 sps:$4 sm:$0xff]  }
  0x79   :  { %1143 = vmatmul.mubr.bf16.gmra.mrb[28].mxu1 %v2312_v15  ;;  %2062 = vmatprep.subr.bf16.mxu1 %v2431_v0  ;;  %v2411_v15 = vld [vmem:[%s3269_s0 + $0x2a8] ss:$24 sps:$4 sm:$0xff]  }
  0x7a   :  { %1320 = vmatmul.mubr.bf16.gmra.mrb[28].mxu0 %v2313_v16  ;;  %1150 = vmatprep.mubr.bf16.mxu1 %v2316_v17  ;;  %v2412_v16 = vld [vmem:[%s3269_s0 + $0x2b0] ss:$24 sps:$4 sm:$0xff]   ;;  %v2413_v17 = vld [vmem:[%s3269_s0 + $0x2dc] ss:$24 sps:$4 sm:$0xff]  }
  0x7b   :  { %1327 = vmatprep.mubr.bf16.mxu0 %v2318_v18  ;;  %v2415_v18 = vld [vmem:[%s3269_s0 + $0x2e4] ss:$24 sps:$4 sm:$0xff]  }
  0x7c   :  { %2078 = vmatpush1.bf16.msra.mxu1 %v2620_v32  ;;  %v2341_v32 = vld [vmem:[%s3269_s0 + $0x244] ss:$24 sps:$4 sm:$0xff]  }
  0x7d   :  { %2063 = vmatprep.subr.bf16.mxu1 %v2431_v0  ;;  %v2328_v0 = vld [vmem:[%s3269_s0 + $0x1b0] ss:$24 sps:$4 sm:$0xff]  }
  0x80   :  { %2079 = vmatpush1.bf16.msra.mxu1 %v2631_v34  ;;  %v2345_v34 = vld [vmem:[%s3269_s0 + $0x240] ss:$24 sps:$4 sm:$0xff]  }
  0x81   :  { %1151 = vmatmul.mubr.bf16.gmra.mrb[32].mxu1 %v2320_v19  ;;  %v2417_v19 = vld [vmem:[%s3269_s0 + $0x2d8] ss:$24 sps:$4 sm:$0xff]  }
  0x82   :  { %1328 = vmatmul.mubr.bf16.gmra.mrb[32].mxu0 %v2321_v20  ;;  %1158 = vmatprep.mubr.bf16.mxu1 %v2323_v21  ;;  %v2418_v20 = vld [vmem:[%s3269_s0 + $0x2e0] ss:$24 sps:$4 sm:$0xff]   ;;  %v2419_v21 = vld [vmem:[%s3269_s0 + $0x30c] ss:$24 sps:$4 sm:$0xff]  }
  0x83   :  { %1958 = vmatprep.mubr.msk.bf16.mxu0 %vm992_vm2, %v2327_v22  ;;  %v2421_v22 = vld [vmem:[%s3269_s0 + $0x314] ss:$24 sps:$4 sm:$0xff]  }
  0x89   :  { %1159 = vmatmul.mubr.bf16.gmra.mrb[36].mxu1 %v2328_v0  ;;  %v2423_v0 = vld [vmem:[%s3269_s0 + $0x308] ss:$24 sps:$4 sm:$0xff]  }
  0x8a   :  { %1441 = vmatmul.mubr.bf16.vlgmr.msra.gmra.mrb[0].mxu0 %v2325_v23  ;;  %1166 = vmatprep.mubr.bf16.mxu1 %v2329_v24  ;;  %v2424_v23 = vld [vmem:[%s3269_s0 + $0x310] ss:$24 sps:$4 sm:$0xff]   ;;  %v2425_v24 = vld [vmem:[%s3269_s0 + $0x33c] ss:$24 sps:$4 sm:$0xff]  }
  0x8b   :  { %1959 = vmatprep.mubr.msk.bf16.mxu0 %vm992_vm2, %v2331_v25  ;;  %v2427_v25 = vld [vmem:[%s3269_s0 + $0x344] ss:$24 sps:$4 sm:$0xff]  }
  0x91   :  { %1167 = vmatmul.mubr.bf16.gmra.mrb[40].mxu1 %v2333_v26  ;;  %v2429_v26 = vld [vmem:[%s3269_s0 + $0x338] ss:$24 sps:$4 sm:$0xff]  }
  0x92   :  { %1449 = vmatmul.mubr.bf16.gmra.mrb[4].mxu0 %v2334_v27  ;;  %1174 = vmatprep.mubr.bf16.mxu1 %v2335_v28  ;;  %v2430_v27 = vld [vmem:[%s3269_s0 + $0x340] ss:$24 sps:$4 sm:$0xff]  }
  0x93   :  { %1960 = vmatprep.mubr.msk.bf16.mxu0 %vm992_vm2, %v2337_v29 }
  0x99   :  { %1175 = vmatmul.mubr.bf16.gmra.mrb[44].mxu1 %v2339_v30 }
  0x9a   :  { %1457 = vmatmul.mubr.bf16.gmra.mrb[8].mxu0 %v2340_v31  ;;  %1182 = vmatprep.mubr.bf16.mxu1 %v2341_v32 }
  0x9b   :  { %1961 = vmatprep.mubr.msk.bf16.mxu0 %vm992_vm2, %v2343_v33 }
  0xa1   :  { %1183 = vmatmul.mubr.bf16.gmra.mrb[48].mxu1 %v2345_v34 }
  0xa2   :  { %1465 = vmatmul.mubr.bf16.gmra.mrb[12].mxu0 %v2346_v35  ;;  %1190 = vmatprep.mubr.bf16.mxu1 %v2347_v36 }
  0xa3   :  { %1962 = vmatprep.mubr.msk.bf16.mxu0 %vm992_vm2, %v2349_v37 }
  0xa9   :  { %1191 = vmatmul.mubr.bf16.gmra.mrb[52].mxu1 %v2351_v38 }
  0xaa   :  { %1473 = vmatmul.mubr.bf16.gmra.mrb[16].mxu0 %v2352_v39  ;;  %1198 = vmatprep.mubr.bf16.mxu1 %v2353_v40 }
  0xab   :  { %1963 = vmatprep.mubr.msk.bf16.mxu0 %vm992_vm2, %v2355_v41 }
  0xb1   :  { %1199 = vmatmul.mubr.bf16.gmra.mrb[56].mxu1 %v2357_v42 }
  0xb2   :  { %1481 = vmatmul.mubr.bf16.gmra.mrb[20].mxu0 %v2358_v43  ;;  %1206 = vmatprep.mubr.bf16.mxu1 %v2359_v44 }
  0xb3   :  { %1964 = vmatprep.mubr.msk.bf16.mxu0 %vm992_vm2, %v2361_v45 }
  0xb9   :  { %1207 = vmatmul.mubr.bf16.gmra.mrb[60].mxu1 %v2363_v46 }
  0xba   :  { %1489 = vmatmul.mubr.bf16.gmra.mrb[24].mxu0 %v2364_v47  ;;  %1214 = vmatprep.mubr.bf16.mxu1 %v2365_v48 }
  0xbb   :  { %1965 = vmatprep.mubr.msk.bf16.mxu0 %vm992_vm2, %v2367_v49 }
  0xc1   :  { %1215 = vmatmul.mubr.bf16.gmra.mrb[64].mxu1 %v2369_v50 }
  0xc2   :  { %1497 = vmatmul.mubr.bf16.gmra.mrb[28].mxu0 %v2370_v51  ;;  %1222 = vmatprep.mubr.bf16.mxu1 %v2371_v52 }
  0xc3   :  { %1966 = vmatprep.mubr.msk.bf16.mxu0 %vm992_vm2, %v2373_v53 }
  0xc9   :  { %1223 = vmatmul.mubr.bf16.gmra.mrb[68].mxu1 %v2375_v54 }
  0xca   :  { %1505 = vmatmul.mubr.bf16.gmra.mrb[32].mxu0 %v2376_v55  ;;  %1335 = vmatprep.mubr.bf16.mxu1 %v2379_v56 }
  0xcb   :  { %1967 = vmatprep.mubr.msk.bf16.mxu0 %vm992_vm2, %v2380_v57 }
  0xd1   :  { %1336 = vmatmul.mubr.bf16.vlgmr.msra.gmra.mrb[36].mxu1 %v2377_v58 }
  0xd2   :  { %1513 = vmatmul.mubr.bf16.gmra.mrb[36].mxu0 %v2382_v59  ;;  %1343 = vmatprep.mubr.bf16.mxu1 %v2383_v60 }
  0xd3   :  { %1968 = vmatprep.mubr.msk.bf16.mxu0 %vm992_vm2, %v2385_v61 }
  0xd9   :  { %1344 = vmatmul.mubr.bf16.gmra.mrb[40].mxu1 %v2387_v62 }
  0xda   :  { %1521 = vmatmul.mubr.bf16.gmra.mrb[40].mxu0 %v2388_v63  ;;  %1351 = vmatprep.mubr.bf16.mxu1 %v2389_v1  ;;  %v3074_v1 = vld [vmem:[%s3270_s2] ss:$0 sm:$0xff] }
  0xdb   :  { %1969 = vmatprep.mubr.msk.bf16.mxu0 %vm992_vm2, %v2391_v2 }
  0xe1   :  { %1352 = vmatmul.mubr.bf16.gmra.mrb[44].mxu1 %v2393_v3 }
  0xe2   :  { %1529 = vmatmul.mubr.bf16.gmra.mrb[44].mxu0 %v2394_v4  ;;  %1359 = vmatprep.mubr.bf16.mxu1 %v2395_v5 }
  0xe3   :  { %1970 = vmatprep.mubr.msk.bf16.mxu0 %vm992_vm2, %v2397_v6 }
  0xe9   :  { %1360 = vmatmul.mubr.bf16.gmra.mrb[48].mxu1 %v2399_v7 }
  0xea   :  { %1537 = vmatmul.mubr.bf16.gmra.mrb[48].mxu0 %v2400_v8  ;;  %1367 = vmatprep.mubr.bf16.mxu1 %v2401_v9 }
  0xeb   :  { %1971 = vmatprep.mubr.msk.bf16.mxu0 %vm992_vm2, %v2403_v10 }
  0xf1   :  { %1368 = vmatmul.mubr.bf16.gmra.mrb[52].mxu1 %v2405_v11 }
  0xf2   :  { %1545 = vmatmul.mubr.bf16.gmra.mrb[52].mxu0 %v2406_v12  ;;  %1375 = vmatprep.mubr.bf16.mxu1 %v2407_v13 }
  0xf3   :  { %1972 = vmatprep.mubr.msk.bf16.mxu0 %vm992_vm2, %v2409_v14 }
  0xf9   :  { %1376 = vmatmul.mubr.bf16.gmra.mrb[56].mxu1 %v2411_v15 }
  0xfa   :  { %1553 = vmatmul.mubr.bf16.gmra.mrb[56].mxu0 %v2412_v16  ;;  %1383 = vmatprep.mubr.bf16.mxu1 %v2413_v17 }
  0xfb   :  { %1973 = vmatprep.mubr.msk.bf16.mxu0 %vm992_vm2, %v2415_v18 }
 0x101   :  { %1384 = vmatmul.mubr.bf16.gmra.mrb[60].mxu1 %v2417_v19 }
 0x102   :  { %1561 = vmatmul.mubr.bf16.gmra.mrb[60].mxu0 %v2418_v20  ;;  %1391 = vmatprep.mubr.bf16.mxu1 %v2419_v21 }
 0x103   :  { %1974 = vmatprep.mubr.msk.bf16.mxu0 %vm992_vm2, %v2421_v22 }
 0x109   :  { %1392 = vmatmul.mubr.bf16.gmra.mrb[64].mxu1 %v2423_v0 }
 0x10a   :  { %1569 = vmatmul.mubr.bf16.gmra.mrb[64].mxu0 %v2424_v23  ;;  %1399 = vmatprep.mubr.bf16.mxu1 %v2425_v24 }
 0x10b   :  { %1975 = vmatprep.mubr.msk.bf16.mxu0 %vm992_vm2, %v2427_v25 }
 0x111   :  { %1400 = vmatmul.mubr.bf16.gmra.mrb[68].mxu1 %v2429_v26 }
 0x112   :  { %1577 = vmatmul.mubr.bf16.gmra.mrb[68].mxu0 %v2430_v27 }
 0x114   :  { %v1088_v28 = vpop.f32.mrb[0].mxu1 }
 0x115   :  { %v1090_v29 = vpop.f32.mrb[1].mxu1  ;;  %v1089_v2 = vadd.f32 %v3074_v1, %v1088_v28 }
 0x116   :  { %v1091_v30 = vpop.f32.mrb[2].mxu1 }
 0x117   :  { %v1093_v31 = vpop.f32.mrb[3].mxu1  ;;  %v1092_v4 = vadd.f32 %v3074_v1, %v1091_v30 }
 0x11c   :  { %v1096_v32 = vpop.f32.mrb[4].mxu1 }
 0x11d   :  { %v1098_v33 = vpop.f32.mrb[5].mxu1  ;;  %v1097_v13 = vadd.f32 %v3074_v1, %v1096_v32 }
 0x11e   :  { %v1099_v34 = vpop.f32.mrb[6].mxu1 }
 0x11f   :  { %v1101_v35 = vpop.f32.mrb[7].mxu1  ;;  %v1100_v16 = vadd.f32 %v3074_v1, %v1099_v34 }
 0x124   :  { %v1104_v36 = vpop.f32.mrb[8].mxu1 }
 0x125   :  { %v1106_v37 = vpop.f32.mrb[9].mxu1  ;;  %v1105_v24 = vadd.f32 %v3074_v1, %v1104_v36 }
 0x126   :  { %v1107_v38 = vpop.f32.mrb[10].mxu1 }
 0x127   :  { %v1109_v39 = vpop.f32.mrb[11].mxu1  ;;  %v1108_v27 = vadd.f32 %v3074_v1, %v1107_v38 }
 0x12c   :  { %v3047_v40 = vpop.f32.mrb[12].mxu1 }
 0x12d   :  { %v1114_v41 = vpop.f32.mrb[13].mxu1  ;;  %v1113_v36 = vadd.f32 %v3074_v1, %v3047_v40 }
 0x12e   :  { %v3049_v42 = vpop.f32.mrb[14].mxu1 }
 0x12f   :  { %v1117_v43 = vpop.f32.mrb[15].mxu1  ;;  %v1116_v39 = vadd.f32 %v3074_v1, %v3049_v42 }
 0x134   :  { %v3051_v44 = vpop.f32.mrb[16].mxu1 }
 0x135   :  { %v1122_v45 = vpop.f32.mrb[17].mxu1 }
 0x136   :  { %v3053_v46 = vpop.f32.mrb[18].mxu1 }
 0x137   :  { %v1125_v47 = vpop.f32.mrb[19].mxu1 }
 0x13c   :  { %v3055_v48 = vpop.f32.mrb[20].mxu1 }
 0x13d   :  { %v1130_v49 = vpop.f32.mrb[21].mxu1 }
 0x13e   :  { %v3057_v50 = vpop.f32.mrb[22].mxu1 }
 0x13f   :  { %v1133_v51 = vpop.f32.mrb[23].mxu1 }
 0x144   :  { %v3059_v52 = vpop.f32.mrb[24].mxu1 }
 0x145   :  { %v1138_v53 = vpop.f32.mrb[25].mxu1 }
 0x146   :  { %v3061_v54 = vpop.f32.mrb[26].mxu1 }
 0x147   :  { %v1141_v55 = vpop.f32.mrb[27].mxu1 }
 0x148   :  { %v1121_v55 = vadd.f32 %v3074_v1, %v3051_v44 }
 0x14c   :  { %v3063_v56 = vpop.f32.mrb[28].mxu1 }
 0x14d   :  { %v1146_v57 = vpop.f32.mrb[29].mxu1 }
 0x14e   :  { %v3065_v58 = vpop.f32.mrb[30].mxu1 }
 0x14f   :  { %v1149_v59 = vpop.f32.mrb[31].mxu1 }
 0x150   :  { %v1124_v59 = vadd.f32 %v3074_v1, %v3053_v46 }
 0x154   :  { %v3067_v60 = vpop.f32.mrb[32].mxu1 }
 0x155   :  { %v1154_v61 = vpop.f32.mrb[33].mxu1 }
 0x156   :  { %v3069_v62 = vpop.f32.mrb[34].mxu1 }
 0x157   :  { %v1157_v63 = vpop.f32.mrb[35].mxu1 }
 0x15d   :  { %v1442_v3 = vpop.f32.mrb[0].mxu0 }
 0x15e   :  { %v2081_v5 = vadd.f32 %v1442_v3, %v1089_v2  ;;  %v1444_v6 = vpop.f32.mrb[1].mxu0 }
 0x15f   :  { %v1445_v7 = vpop.f32.mrb[2].mxu0 }
 0x160   :  { %v1585_v8 = vmax.f32 %v2081_v5, 0.0  ;;  %v2083_v9 = vadd.f32 %v1445_v7, %v1092_v4  ;;  %v1447_v10 = vpop.f32.mrb[3].mxu0  ;;  %v1129_v7 = vadd.f32 %v3074_v1, %v3055_v48 }
 0x162   :  { %v2012_v11 = vpack.c.bf16 %v1585_v8, %v1585_v8  ;;  %v1586_v12 = vmax.f32 %v2083_v9, 0.0  ;;  %v1132_v9 = vadd.f32 %v3074_v1, %v3057_v50 }
 0x164   :  { %1766 = vst.msk [vmem:[%s3271_s3] sm:$0xf] %vm1765_vm3, %v2012_v11  ;;  %v2013_v14 = vpack.c.bf16 %v1586_v12, %v1586_v12 }
 0x165   :  { %v1450_v15 = vpop.f32.mrb[4].mxu0 }
 0x166   :  { %1767 = vst.msk [vmem:[%s3271_s3 + $0x4] sm:$0xf] %vm1765_vm3, %v2013_v14  ;;  %v2085_v17 = vadd.f32 %v1450_v15, %v1097_v13  ;;  %v1452_v18 = vpop.f32.mrb[5].mxu0 }
 0x167   :  { %v1453_v19 = vpop.f32.mrb[6].mxu0 }
 0x168   :  { %v1587_v20 = vmax.f32 %v2085_v17, 0.0  ;;  %v2087_v21 = vadd.f32 %v1453_v19, %v1100_v16  ;;  %v1455_v22 = vpop.f32.mrb[7].mxu0  ;;  %v1137_v17 = vadd.f32 %v3074_v1, %v3059_v52  ;;  %v1140_v19 = vadd.f32 %v3074_v1, %v3061_v54 }
 0x16a   :  { %v2014_v0 = vpack.c.bf16 %v1587_v20, %v1587_v20  ;;  %v1588_v23 = vmax.f32 %v2087_v21, 0.0 }
 0x16c   :  { %1768 = vst.msk [vmem:[%s3271_s3 + $0x8] sm:$0xf] %vm1765_vm3, %v2014_v0  ;;  %v2015_v25 = vpack.c.bf16 %v1588_v23, %v1588_v23 }
 0x16d   :  { %v1458_v26 = vpop.f32.mrb[8].mxu0 }
 0x16e   :  { %1769 = vst.msk [vmem:[%s3271_s3 + $0xc] sm:$0xf] %vm1765_vm3, %v2015_v25  ;;  %v2089_v28 = vadd.f32 %v1458_v26, %v1105_v24  ;;  %v1460_v29 = vpop.f32.mrb[9].mxu0  ;;  %v1145_v26 = vadd.f32 %v3074_v1, %v3063_v56 }
 0x16f   :  { %v1461_v30 = vpop.f32.mrb[10].mxu0 }
 0x170   :  { %v1589_v31 = vmax.f32 %v2089_v28, 0.0  ;;  %v2091_v32 = vadd.f32 %v1461_v30, %v1108_v27  ;;  %v1463_v33 = vpop.f32.mrb[11].mxu0  ;;  %v1148_v28 = vadd.f32 %v3074_v1, %v3065_v58 }
 0x172   :  { %v2016_v34 = vpack.c.bf16 %v1589_v31, %v1589_v31  ;;  %v1590_v35 = vmax.f32 %v2091_v32, 0.0 }
 0x174   :  { %1770 = vst.msk [vmem:[%s3271_s3 + $0x10] sm:$0xf] %vm1765_vm3, %v2016_v34  ;;  %v2017_v37 = vpack.c.bf16 %v1590_v35, %v1590_v35 }
 0x175   :  { %v1466_v38 = vpop.f32.mrb[12].mxu0 }
 0x176   :  { %1771 = vst.msk [vmem:[%s3271_s3 + $0x14] sm:$0xf] %vm1765_vm3, %v2017_v37  ;;  %v2093_v41 = vadd.f32 %v1466_v38, %v1113_v36  ;;  %v1468_v43 = vpop.f32.mrb[13].mxu0  ;;  %v1153_v36 = vadd.f32 %v3074_v1, %v3067_v60  ;;  %v1156_v38 = vadd.f32 %v3074_v1, %v3069_v62 }
 0x177   :  { %v1469_v45 = vpop.f32.mrb[14].mxu0 }
 0x178   :  { %v1591_v47 = vmax.f32 %v2093_v41, 0.0  ;;  %v2095_v40 = vadd.f32 %v1469_v45, %v1116_v39  ;;  %v1471_v49 = vpop.f32.mrb[15].mxu0 }
 0x17a   :  { %v2018_v51 = vpack.c.bf16 %v1591_v47, %v1591_v47  ;;  %v1592_v53 = vmax.f32 %v2095_v40, 0.0 }
 0x17c   :  { %1772 = vst.msk [vmem:[%s3271_s3 + $0x18] sm:$0xf] %vm1765_vm3, %v2018_v51  ;;  %v2019_v42 = vpack.c.bf16 %v1592_v53, %v1592_v53 }
 0x17d   :  { %v1474_v57 = vpop.f32.mrb[16].mxu0 }
 0x17e   :  { %1773 = vst.msk [vmem:[%s3271_s3 + $0x1c] sm:$0xf] %vm1765_vm3, %v2019_v42  ;;  %v2097_v61 = vadd.f32 %v1474_v57, %v1121_v55  ;;  %v1476_v63 = vpop.f32.mrb[17].mxu0 }
 0x17f   :  { %v1477_v2 = vpop.f32.mrb[18].mxu0 }
 0x180   :  { %v1593_v3 = vmax.f32 %v2097_v61, 0.0  ;;  %v2099_v44 = vadd.f32 %v1477_v2, %v1124_v59  ;;  %v1479_v4 = vpop.f32.mrb[19].mxu0 }
 0x182   :  { %v2020_v5 = vpack.c.bf16 %v1593_v3, %v1593_v3  ;;  %v1594_v6 = vmax.f32 %v2099_v44, 0.0 }
 0x184   :  { %1774 = vst.msk [vmem:[%s3271_s3 + $0x20] sm:$0xf] %vm1765_vm3, %v2020_v5  ;;  %v2021_v46 = vpack.c.bf16 %v1594_v6, %v1594_v6 }
 0x185   :  { %v1482_v8 = vpop.f32.mrb[20].mxu0 }
 0x186   :  { %1775 = vst.msk [vmem:[%s3271_s3 + $0x24] sm:$0xf] %vm1765_vm3, %v2021_v46  ;;  %v2101_v10 = vadd.f32 %v1482_v8, %v1129_v7  ;;  %v1484_v11 = vpop.f32.mrb[21].mxu0 }
 0x187   :  { %v1485_v12 = vpop.f32.mrb[22].mxu0 }
 0x188   :  { %v1595_v13 = vmax.f32 %v2101_v10, 0.0  ;;  %v2103_v48 = vadd.f32 %v1485_v12, %v1132_v9  ;;  %v1487_v14 = vpop.f32.mrb[23].mxu0 }
 0x18a   :  { %v2022_v15 = vpack.c.bf16 %v1595_v13, %v1595_v13  ;;  %v1596_v16 = vmax.f32 %v2103_v48, 0.0 }
 0x18c   :  { %1776 = vst.msk [vmem:[%s3271_s3 + $0x28] sm:$0xf] %vm1765_vm3, %v2022_v15  ;;  %v2023_v50 = vpack.c.bf16 %v1596_v16, %v1596_v16 }
 0x18d   :  { %v1490_v18 = vpop.f32.mrb[24].mxu0 }
 0x18e   :  { %1777 = vst.msk [vmem:[%s3271_s3 + $0x2c] sm:$0xf] %vm1765_vm3, %v2023_v50  ;;  %v2105_v20 = vadd.f32 %v1490_v18, %v1137_v17  ;;  %v1492_v21 = vpop.f32.mrb[25].mxu0 }
 0x18f   :  { %v1493_v22 = vpop.f32.mrb[26].mxu0 }
 0x190   :  { %v1597_v0 = vmax.f32 %v2105_v20, 0.0  ;;  %v2107_v52 = vadd.f32 %v1493_v22, %v1140_v19  ;;  %v1495_v23 = vpop.f32.mrb[27].mxu0 }
 0x192   :  { %v2024_v24 = vpack.c.bf16 %v1597_v0, %v1597_v0  ;;  %v1598_v25 = vmax.f32 %v2107_v52, 0.0 }
 0x194   :  { %1778 = vst.msk [vmem:[%s3271_s3 + $0x30] sm:$0xf] %vm1765_vm3, %v2024_v24  ;;  %v2025_v54 = vpack.c.bf16 %v1598_v25, %v1598_v25 }
 0x195   :  { %v1498_v27 = vpop.f32.mrb[28].mxu0 }
 0x196   :  { %1779 = vst.msk [vmem:[%s3271_s3 + $0x34] sm:$0xf] %vm1765_vm3, %v2025_v54  ;;  %v2109_v29 = vadd.f32 %v1498_v27, %v1145_v26  ;;  %v1500_v30 = vpop.f32.mrb[29].mxu0 }
 0x197   :  { %v1501_v31 = vpop.f32.mrb[30].mxu0 }
 0x198   :  { %v1599_v32 = vmax.f32 %v2109_v29, 0.0  ;;  %v2111_v56 = vadd.f32 %v1501_v31, %v1148_v28  ;;  %v1503_v33 = vpop.f32.mrb[31].mxu0 }
 0x19a   :  { %v2026_v34 = vpack.c.bf16 %v1599_v32, %v1599_v32  ;;  %v1600_v35 = vmax.f32 %v2111_v56, 0.0 }
 0x19c   :  { %1780 = vst.msk [vmem:[%s3271_s3 + $0x38] sm:$0xf] %vm1765_vm3, %v2026_v34  ;;  %v2027_v58 = vpack.c.bf16 %v1600_v35, %v1600_v35 }
 0x19d   :  { %v1506_v37 = vpop.f32.mrb[32].mxu0 }
 0x19e   :  { %1781 = vst.msk [vmem:[%s3271_s3 + $0x3c] sm:$0xf] %vm1765_vm3, %v2027_v58  ;;  %v2113_v39 = vadd.f32 %v1506_v37, %v1153_v36  ;;  %v1508_v41 = vpop.f32.mrb[33].mxu0 }
 0x19f   :  { %v1509_v43 = vpop.f32.mrb[34].mxu0 }
 0x1a0   :  { %v1601_v45 = vmax.f32 %v2113_v39, 0.0  ;;  %v2115_v60 = vadd.f32 %v1509_v43, %v1156_v38  ;;  %v1511_v47 = vpop.f32.mrb[35].mxu0 }
 0x1a2   :  { %v2028_v40 = vpack.c.bf16 %v1601_v45, %v1601_v45  ;;  %v1602_v49 = vmax.f32 %v2115_v60, 0.0 }
 0x1a4   :  { %1782 = vst.msk [vmem:[%s3271_s3 + $0x40] sm:$0xf] %vm1765_vm3, %v2028_v40  ;;  %v2029_v51 = vpack.c.bf16 %v1602_v49, %v1602_v49  ;;  %v1337_v62 = vpop.f32.mrb[36].mxu1 }
 0x1a5   :  { %v2116_v53 = vadd.f32 %v3074_v1, %v1337_v62  ;;  %v1514_v55 = vpop.f32.mrb[36].mxu0  ;;  %v1339_v42 = vpop.f32.mrb[37].mxu1 }
 0x1a6   :  { %1783 = vst.msk [vmem:[%s3271_s3 + $0x44] sm:$0xf] %vm1765_vm3, %v2029_v51  ;;  %v1516_v57 = vpop.f32.mrb[37].mxu0  ;;  %v1340_v59 = vpop.f32.mrb[38].mxu1 }
 0x1a7   :  { %v2117_v61 = vadd.f32 %v2116_v53, %v1514_v55  ;;  %v2118_v63 = vadd.f32 %v3074_v1, %v1340_v59  ;;  %v1517_v2 = vpop.f32.mrb[38].mxu0  ;;  %v1342_v3 = vpop.f32.mrb[39].mxu1 }
 0x1a8   :  { %v1519_v44 = vpop.f32.mrb[39].mxu0 }
 0x1a9   :  { %v1603_v4 = vmax.f32 %v2117_v61, 0.0  ;;  %v2119_v5 = vadd.f32 %v2118_v63, %v1517_v2 }
 0x1ab   :  { %v2030_v6 = vpack.c.bf16 %v1603_v4, %v1603_v4  ;;  %v1604_v7 = vmax.f32 %v2119_v5, 0.0 }
 0x1ac   :  { %v1345_v46 = vpop.f32.mrb[40].mxu1 }
 0x1ad   :  { %1784 = vst.msk [vmem:[%s3271_s3 + $0x48] sm:$0xf] %vm1765_vm3, %v2030_v6  ;;  %v2031_v8 = vpack.c.bf16 %v1604_v7, %v1604_v7  ;;  %v2120_v9 = vadd.f32 %v3074_v1, %v1345_v46  ;;  %v1522_v10 = vpop.f32.mrb[40].mxu0  ;;  %v1347_v11 = vpop.f32.mrb[41].mxu1 }
 0x1ae   :  { %v1524_v12 = vpop.f32.mrb[41].mxu0  ;;  %v1348_v13 = vpop.f32.mrb[42].mxu1 }
 0x1af   :  { %1785 = vst.msk [vmem:[%s3271_s3 + $0x4c] sm:$0xf] %vm1765_vm3, %v2031_v8  ;;  %v2121_v48 = vadd.f32 %v2120_v9, %v1522_v10  ;;  %v2122_v14 = vadd.f32 %v3074_v1, %v1348_v13  ;;  %v1525_v15 = vpop.f32.mrb[42].mxu0  ;;  %v1350_v16 = vpop.f32.mrb[43].mxu1 }
 0x1b0   :  { %v1527_v17 = vpop.f32.mrb[43].mxu0 }
 0x1b1   :  { %v1605_v50 = vmax.f32 %v2121_v48, 0.0  ;;  %v2123_v18 = vadd.f32 %v2122_v14, %v1525_v15 }
 0x1b3   :  { %v2032_v19 = vpack.c.bf16 %v1605_v50, %v1605_v50  ;;  %v1606_v20 = vmax.f32 %v2123_v18, 0.0 }
 0x1b4   :  { %v1353_v21 = vpop.f32.mrb[44].mxu1 }
 0x1b5   :  { %1786 = vst.msk [vmem:[%s3271_s3 + $0x50] sm:$0xf] %vm1765_vm3, %v2032_v19  ;;  %v2033_v22 = vpack.c.bf16 %v1606_v20, %v1606_v20  ;;  %v2124_v0 = vadd.f32 %v3074_v1, %v1353_v21  ;;  %v1530_v52 = vpop.f32.mrb[44].mxu0  ;;  %v1355_v23 = vpop.f32.mrb[45].mxu1 }
 0x1b6   :  { %v1532_v24 = vpop.f32.mrb[45].mxu0  ;;  %v1356_v25 = vpop.f32.mrb[46].mxu1 }
 0x1b7   :  { %1787 = vst.msk [vmem:[%s3271_s3 + $0x54] sm:$0xf] %vm1765_vm3, %v2033_v22  ;;  %v2125_v26 = vadd.f32 %v2124_v0, %v1530_v52  ;;  %v2126_v54 = vadd.f32 %v3074_v1, %v1356_v25  ;;  %v1533_v27 = vpop.f32.mrb[46].mxu0  ;;  %v1358_v28 = vpop.f32.mrb[47].mxu1 }
 0x1b8   :  { %v1535_v29 = vpop.f32.mrb[47].mxu0 }
 0x1b9   :  { %v1607_v30 = vmax.f32 %v2125_v26, 0.0  ;;  %v2127_v31 = vadd.f32 %v2126_v54, %v1533_v27 }
 0x1bb   :  { %v2034_v32 = vpack.c.bf16 %v1607_v30, %v1607_v30  ;;  %v1608_v56 = vmax.f32 %v2127_v31, 0.0 }
 0x1bc   :  { %v1361_v33 = vpop.f32.mrb[48].mxu1 }
 0x1bd   :  { %1788 = vst.msk [vmem:[%s3271_s3 + $0x58] sm:$0xf] %vm1765_vm3, %v2034_v32  ;;  %v2035_v34 = vpack.c.bf16 %v1608_v56, %v1608_v56  ;;  %v2128_v35 = vadd.f32 %v3074_v1, %v1361_v33  ;;  %v1538_v36 = vpop.f32.mrb[48].mxu0  ;;  %v1363_v58 = vpop.f32.mrb[49].mxu1 }
 0x1be   :  { %v1540_v37 = vpop.f32.mrb[49].mxu0  ;;  %v1364_v38 = vpop.f32.mrb[50].mxu1 }
 0x1bf   :  { %1789 = vst.msk [vmem:[%s3271_s3 + $0x5c] sm:$0xf] %vm1765_vm3, %v2035_v34  ;;  %v2129_v39 = vadd.f32 %v2128_v35, %v1538_v36  ;;  %v2130_v41 = vadd.f32 %v3074_v1, %v1364_v38  ;;  %v1541_v43 = vpop.f32.mrb[50].mxu0  ;;  %v1366_v45 = vpop.f32.mrb[51].mxu1 }
 0x1c0   :  { %v1543_v60 = vpop.f32.mrb[51].mxu0 }
 0x1c1   :  { %v1609_v47 = vmax.f32 %v2129_v39, 0.0  ;;  %v2131_v40 = vadd.f32 %v2130_v41, %v1541_v43 }
 0x1c3   :  { %v2036_v49 = vpack.c.bf16 %v1609_v47, %v1609_v47  ;;  %v1610_v51 = vmax.f32 %v2131_v40, 0.0 }
 0x1c4   :  { %v1369_v62 = vpop.f32.mrb[52].mxu1 }
 0x1c5   :  { %1790 = vst.msk [vmem:[%s3271_s3 + $0x60] sm:$0xf] %vm1765_vm3, %v2036_v49  ;;  %v2037_v53 = vpack.c.bf16 %v1610_v51, %v1610_v51  ;;  %v2132_v55 = vadd.f32 %v3074_v1, %v1369_v62  ;;  %v1546_v42 = vpop.f32.mrb[52].mxu0  ;;  %v1371_v57 = vpop.f32.mrb[53].mxu1 }
 0x1c6   :  { %v1548_v59 = vpop.f32.mrb[53].mxu0  ;;  %v1372_v61 = vpop.f32.mrb[54].mxu1 }
 0x1c7   :  { %1791 = vst.msk [vmem:[%s3271_s3 + $0x64] sm:$0xf] %vm1765_vm3, %v2037_v53  ;;  %v2133_v63 = vadd.f32 %v2132_v55, %v1546_v42  ;;  %v2134_v2 = vadd.f32 %v3074_v1, %v1372_v61  ;;  %v1549_v3 = vpop.f32.mrb[54].mxu0  ;;  %v1374_v44 = vpop.f32.mrb[55].mxu1 }
 0x1c8   :  { %v1551_v4 = vpop.f32.mrb[55].mxu0 }
 0x1c9   :  { %v1611_v5 = vmax.f32 %v2133_v63, 0.0  ;;  %v2135_v6 = vadd.f32 %v2134_v2, %v1549_v3 }
 0x1cb   :  { %v2038_v7 = vpack.c.bf16 %v1611_v5, %v1611_v5  ;;  %v1612_v46 = vmax.f32 %v2135_v6, 0.0 }
 0x1cc   :  { %v1377_v8 = vpop.f32.mrb[56].mxu1 }
 0x1cd   :  { %1792 = vst.msk [vmem:[%s3271_s3 + $0x68] sm:$0xf] %vm1765_vm3, %v2038_v7  ;;  %v2039_v9 = vpack.c.bf16 %v1612_v46, %v1612_v46  ;;  %v2136_v10 = vadd.f32 %v3074_v1, %v1377_v8  ;;  %v1554_v11 = vpop.f32.mrb[56].mxu0  ;;  %v1379_v12 = vpop.f32.mrb[57].mxu1 }
 0x1ce   :  { %v1556_v13 = vpop.f32.mrb[57].mxu0  ;;  %v1380_v48 = vpop.f32.mrb[58].mxu1 }
 0x1cf   :  { %1793 = vst.msk [vmem:[%s3271_s3 + $0x6c] sm:$0xf] %vm1765_vm3, %v2039_v9  ;;  %v2137_v14 = vadd.f32 %v2136_v10, %v1554_v11  ;;  %v2138_v15 = vadd.f32 %v3074_v1, %v1380_v48  ;;  %v1557_v16 = vpop.f32.mrb[58].mxu0  ;;  %v1382_v17 = vpop.f32.mrb[59].mxu1 }
 0x1d0   :  { %v1559_v50 = vpop.f32.mrb[59].mxu0 }
 0x1d1   :  { %v1613_v18 = vmax.f32 %v2137_v14, 0.0  ;;  %v2139_v19 = vadd.f32 %v2138_v15, %v1557_v16 }
 0x1d3   :  { %v2040_v20 = vpack.c.bf16 %v1613_v18, %v1613_v18  ;;  %v1614_v21 = vmax.f32 %v2139_v19, 0.0 }
 0x1d4   :  { %v1385_v22 = vpop.f32.mrb[60].mxu1 }
 0x1d5   :  { %1794 = vst.msk [vmem:[%s3271_s3 + $0x70] sm:$0xf] %vm1765_vm3, %v2040_v20  ;;  %v2041_v0 = vpack.c.bf16 %v1614_v21, %v1614_v21  ;;  %v2140_v52 = vadd.f32 %v3074_v1, %v1385_v22  ;;  %v1562_v23 = vpop.f32.mrb[60].mxu0  ;;  %v1387_v24 = vpop.f32.mrb[61].mxu1 }
 0x1d6   :  { %v1564_v25 = vpop.f32.mrb[61].mxu0  ;;  %v1388_v26 = vpop.f32.mrb[62].mxu1 }
 0x1d7   :  { %1795 = vst.msk [vmem:[%s3271_s3 + $0x74] sm:$0xf] %vm1765_vm3, %v2041_v0  ;;  %v2141_v54 = vadd.f32 %v2140_v52, %v1562_v23  ;;  %v2142_v27 = vadd.f32 %v3074_v1, %v1388_v26  ;;  %v1565_v28 = vpop.f32.mrb[62].mxu0  ;;  %v1390_v29 = vpop.f32.mrb[63].mxu1 }
 0x1d8   :  { %v1567_v30 = vpop.f32.mrb[63].mxu0 }
 0x1d9   :  { %v1615_v31 = vmax.f32 %v2141_v54, 0.0  ;;  %v2143_v32 = vadd.f32 %v2142_v27, %v1565_v28 }
 0x1db   :  { %v2042_v56 = vpack.c.bf16 %v1615_v31, %v1615_v31  ;;  %v1616_v33 = vmax.f32 %v2143_v32, 0.0 }
 0x1dc   :  { %v1393_v34 = vpop.f32.mrb[64].mxu1 }
 0x1dd   :  { %1796 = vst.msk [vmem:[%s3271_s3 + $0x78] sm:$0xf] %vm1765_vm3, %v2042_v56  ;;  %v2043_v35 = vpack.c.bf16 %v1616_v33, %v1616_v33  ;;  %v2144_v36 = vadd.f32 %v3074_v1, %v1393_v34  ;;  %v1570_v58 = vpop.f32.mrb[64].mxu0  ;;  %v1395_v37 = vpop.f32.mrb[65].mxu1 }
 0x1de   :  { %v1572_v38 = vpop.f32.mrb[65].mxu0  ;;  %v1396_v39 = vpop.f32.mrb[66].mxu1 }
 0x1df   :  { %1797 = vst.msk [vmem:[%s3271_s3 + $0x7c] sm:$0xf] %vm1765_vm3, %v2043_v35  ;;  %v2145_v41 = vadd.f32 %v2144_v36, %v1570_v58  ;;  %v2146_v43 = vadd.f32 %v3074_v1, %v1396_v39  ;;  %v1573_v45 = vpop.f32.mrb[66].mxu0  ;;  %v1398_v60 = vpop.f32.mrb[67].mxu1 }
 0x1e0   :  { %v1575_v47 = vpop.f32.mrb[67].mxu0 }
 0x1e1   :  { %v1617_v40 = vmax.f32 %v2145_v41, 0.0  ;;  %v2147_v49 = vadd.f32 %v2146_v43, %v1573_v45 }
 0x1e3   :  { %v2044_v51 = vpack.c.bf16 %v1617_v40, %v1617_v40  ;;  %v1618_v62 = vmax.f32 %v2147_v49, 0.0 }
 0x1e4   :  { %v1401_v53 = vpop.f32.mrb[68].mxu1 }
 0x1e5   :  { %1798 = vst.msk [vmem:[%s3271_s3 + $0x80] sm:$0xf] %vm1765_vm3, %v2044_v51  ;;  %v2045_v55 = vpack.c.bf16 %v1618_v62, %v1618_v62  ;;  %v2148_v42 = vadd.f32 %v3074_v1, %v1401_v53  ;;  %v1578_v57 = vpop.f32.mrb[68].mxu0  ;;  %v1403_v59 = vpop.f32.mrb[69].mxu1 }
 0x1e6   :  { %v1580_v61 = vpop.f32.mrb[69].mxu0  ;;  %v1404_v63 = vpop.f32.mrb[70].mxu1 }
 0x1e7   :  { %1799 = vst.msk [vmem:[%s3271_s3 + $0x84] sm:$0xf] %vm1765_vm3, %v2045_v55  ;;  %v2149_v2 = vadd.f32 %v2148_v42, %v1578_v57  ;;  %v2150_v3 = vadd.f32 %v3074_v1, %v1404_v63  ;;  %v1581_v44 = vpop.f32.mrb[70].mxu0  ;;  %v1406_v4 = vpop.f32.mrb[71].mxu1 }
 0x1e8   :  { %v1583_v5 = vpop.f32.mrb[71].mxu0 }
 0x1e9   :  { %v1619_v6 = vmax.f32 %v2149_v2, 0.0  ;;  %v2151_v7 = vadd.f32 %v2150_v3, %v1581_v44 }
 0x1eb   :  { %v2046_v46 = vpack.c.bf16 %v1619_v6, %v1619_v6  ;;  %v1620_v8 = vmax.f32 %v2151_v7, 0.0 }
 0x1ed   :  { %1800 = vst.msk [vmem:[%s3271_s3 + $0x88] sm:$0xf] %vm1765_vm3, %v2046_v46  ;;  %v2047_v9 = vpack.c.bf16 %v1620_v8, %v1620_v8 }
 0x1ef   :  { %1801 = vst.msk [vmem:[%s3271_s3 + $0x8c] sm:$0xf] %vm1765_vm3, %v2047_v9 }

// kernel: zipper_forward.6
= control target key start
LH: loop header
LB: loop body
LE: loop exit
PB: predicated region body
PF: predicated region fallthrough
CT: control target
= control target key end

     0   :  { %v3676_v0 = vmov 0   ;;  %vm1684_vm0 = vcmask 392192   ;;  %vm2688_vm1 = vcmask 781312   ;;  %s4819_s1 = inlined_call_operand.vmem [shape: bf16[1200,96], index: 1, kind: input, shape index: {}]   ;;  %s4820_s0 = inlined_call_operand.vmem [shape: bf16[288,1200], index: 0, kind: input, shape index: {}]   ;;  %s4821_s2 = inlined_call_operand.vmem [shape: f32[1,96], index: 2, kind: input, shape index: {}]   ;;  %s4822_s3 = inlined_call_operand.vmem [shape: bf16[72,96], index: 3, kind: output, shape index: {}]  }
   0x1   :  { %1739 = vmatprep.subr.bf16.mxu1 %v3676_v0  ;;  %2093 = vmatprep.subr.bf16.mxu0 %v3676_v0  ;;  %v3315_v1 = vld [vmem:[%s4819_s1] sm:$0xff]   ;;  %v3317_v3 = vld [vmem:[%s4819_s1 + $0x8] sm:$0xff]   ;;  %v3319_v5 = vld [vmem:[%s4819_s1 + $0x10] sm:$0xff]  }
   0x2   :  { %v3316_v2 = vld [vmem:[%s4819_s1 + $0x100] sm:$0xff]   ;;  %1740 = vmatpush1.bf16.msra.mxu1 %v3315_v1  ;;  %v3318_v4 = vld [vmem:[%s4819_s1 + $0x108] sm:$0xff]   ;;  %v3320_v6 = vld [vmem:[%s4819_s1 + $0x110] sm:$0xff]  }
   0x3   :  { %2094 = vmatpush1.bf16.msra.mxu0 %v3316_v2  ;;  %1741 = vmatprep.subr.bf16.mxu1 %v3676_v0  ;;  %v3321_v7 = vld [vmem:[%s4819_s1 + $0x18] sm:$0xff]   ;;  %v3323_v9 = vld [vmem:[%s4819_s1 + $0x20] sm:$0xff]   ;;  %v3325_v11 = vld [vmem:[%s4819_s1 + $0x28] sm:$0xff]  }
   0x4   :  { %2095 = vmatprep.subr.bf16.mxu0 %v3676_v0  ;;  %v3322_v8 = vld [vmem:[%s4819_s1 + $0x118] sm:$0xff]   ;;  %v3324_v10 = vld [vmem:[%s4819_s1 + $0x120] sm:$0xff]   ;;  %v3326_v12 = vld [vmem:[%s4819_s1 + $0x128] sm:$0xff]  }
   0x5   :  { %v3327_v13 = vld [vmem:[%s4819_s1 + $0x30] sm:$0xff]   ;;  %v3329_v15 = vld [vmem:[%s4819_s1 + $0x38] sm:$0xff]   ;;  %v3331_v17 = vld [vmem:[%s4819_s1 + $0x40] sm:$0xff]  }
   0x6   :  { %1742 = vmatpush1.bf16.msra.mxu1 %v3317_v3  ;;  %v3328_v14 = vld [vmem:[%s4819_s1 + $0x130] sm:$0xff]   ;;  %v3330_v16 = vld [vmem:[%s4819_s1 + $0x138] sm:$0xff]   ;;  %v3332_v18 = vld [vmem:[%s4819_s1 + $0x140] sm:$0xff]  }
   0x7   :  { %2096 = vmatpush1.bf16.msra.mxu0 %v3318_v4  ;;  %1743 = vmatprep.subr.bf16.mxu1 %v3676_v0  ;;  %v3349_v19 = vld [vmem:[%s4820_s0 + $0x4] ss:$40 sps:$4 sm:$0xff]   ;;  %v3352_v21 = vld [vmem:[%s4820_s0 + $0x14] ss:$40 sps:$4 sm:$0xff]   ;;  %v3347_v35 = vld [vmem:[%s4820_s0] ss:$40 sps:$4 sm:$0xff]  }
   0x8   :  { %2097 = vmatprep.subr.bf16.mxu0 %v3676_v0  ;;  %v3333_v20 = vld [vmem:[%s4819_s1 + $0x48] sm:$0xff]   ;;  %1771 = vmatprep.mubr.bf16.mxu1 %v3349_v19  ;;  %v3335_v23 = vld [vmem:[%s4819_s1 + $0x50] sm:$0xff]   ;;  %v3337_v25 = vld [vmem:[%s4819_s1 + $0x58] sm:$0xff]  }
   0x9   :  { %v3334_v22 = vld [vmem:[%s4819_s1 + $0x148] sm:$0xff]   ;;  %2125 = vmatprep.mubr.bf16.mxu0 %v3352_v21  ;;  %v3336_v24 = vld [vmem:[%s4819_s1 + $0x150] sm:$0xff]   ;;  %v3338_v26 = vld [vmem:[%s4819_s1 + $0x158] sm:$0xff]  }
   0xa   :  { %1744 = vmatpush1.bf16.msra.mxu1 %v3319_v5  ;;  %v3339_v27 = vld [vmem:[%s4819_s1 + $0x60] sm:$0xff]   ;;  %v3341_v29 = vld [vmem:[%s4819_s1 + $0x68] sm:$0xff]   ;;  %v3343_v31 = vld [vmem:[%s4819_s1 + $0x70] sm:$0xff]  }
   0xb   :  { %2098 = vmatpush1.bf16.msra.mxu0 %v3320_v6  ;;  %1745 = vmatprep.subr.bf16.mxu1 %v3676_v0  ;;  %v3340_v28 = vld [vmem:[%s4819_s1 + $0x160] sm:$0xff]   ;;  %v3342_v30 = vld [vmem:[%s4819_s1 + $0x168] sm:$0xff]   ;;  %v3344_v32 = vld [vmem:[%s4819_s1 + $0x170] sm:$0xff]  }
   0xc   :  { %2099 = vmatprep.subr.bf16.mxu0 %v3676_v0  ;;  %v3345_v33 = vld [vmem:[%s4819_s1 + $0x78] sm:$0xff]   ;;  %v3353_v37 = vld [vmem:[%s4819_s1 + $0x80] sm:$0xff]   ;;  %v3362_v41 = vld [vmem:[%s4819_s1 + $0x88] sm:$0xff]  }
   0xd   :  { %v3346_v34 = vld [vmem:[%s4819_s1 + $0x178] sm:$0xff]   ;;  %v3354_v38 = vld [vmem:[%s4819_s1 + $0x180] sm:$0xff]   ;;  %v3361_v42 = vld [vmem:[%s4819_s1 + $0x188] sm:$0xff]  }
   0xe   :  { %1746 = vmatpush1.bf16.msra.mxu1 %v3321_v7  ;;  %v3350_v36 = vld [vmem:[%s4820_s0 + $0x10] ss:$40 sps:$4 sm:$0xff]   ;;  %v3355_v39 = vld [vmem:[%s4820_s0 + $0x54] ss:$40 sps:$4 sm:$0xff]   ;;  %v3357_v40 = vld [vmem:[%s4820_s0 + $0x64] ss:$40 sps:$4 sm:$0xff]  }
   0xf   :  { %2100 = vmatpush1.bf16.msra.mxu0 %v3322_v8  ;;  %1747 = vmatprep.subr.bf16.mxu1 %v3676_v0  ;;  %v3359_v43 = vld [vmem:[%s4820_s0 + $0x50] ss:$40 sps:$4 sm:$0xff]   ;;  %v3360_v44 = vld [vmem:[%s4820_s0 + $0x60] ss:$40 sps:$4 sm:$0xff]   ;;  %v3364_v45 = vld [vmem:[%s4820_s0 + $0xa4] ss:$40 sps:$4 sm:$0xff]  }
  0x10   :  { %2101 = vmatprep.subr.bf16.mxu0 %v3676_v0  ;;  %v3363_v46 = vld [vmem:[%s4819_s1 + $0x190] sm:$0xff]   ;;  %v3370_v49 = vld [vmem:[%s4819_s1 + $0x198] sm:$0xff]   ;;  %v3368_v50 = vld [vmem:[%s4820_s0 + $0xa0] ss:$40 sps:$4 sm:$0xff]  }
  0x11   :  { %v3366_v47 = vld [vmem:[%s4820_s0 + $0xb4] ss:$40 sps:$4 sm:$0xff]   ;;  %v3369_v52 = vld [vmem:[%s4820_s0 + $0xb0] ss:$40 sps:$4 sm:$0xff]   ;;  %v3372_v53 = vld [vmem:[%s4819_s1 + $0x1a0] sm:$0xff]  }
  0x12   :  { %1748 = vmatpush1.bf16.msra.mxu1 %v3323_v9  ;;  %v3371_v48 = vld [vmem:[%s4819_s1 + $0x90] sm:$0xff]   ;;  %v3380_v51 = vld [vmem:[%s4819_s1 + $0x98] sm:$0xff]   ;;  %v3375_v55 = vld [vmem:[%s4820_s0 + $0x104] ss:$40 sps:$4 sm:$0xff]  }
  0x13   :  { %2102 = vmatpush1.bf16.msra.mxu0 %v3324_v10  ;;  %1749 = vmatprep.subr.bf16.mxu1 %v3676_v0  ;;  %v3373_v54 = vld [vmem:[%s4820_s0 + $0xf4] ss:$40 sps:$4 sm:$0xff]   ;;  %v3389_v56 = vld [vmem:[%s4819_s1 + $0xa0] sm:$0xff]   ;;  %v3377_v57 = vld [vmem:[%s4820_s0 + $0xf0] ss:$40 sps:$4 sm:$0xff]  }
  0x14   :  { %2103 = vmatprep.subr.bf16.mxu0 %v3676_v0  ;;  %v3379_v58 = vld [vmem:[%s4819_s1 + $0x1a8] sm:$0xff]   ;;  %v3381_v61 = vld [vmem:[%s4819_s1 + $0x1b0] sm:$0xff]   ;;  %v3388_v3 = vld [vmem:[%s4819_s1 + $0x1b8] sm:$0xff]  }
  0x15   :  { %v3398_v59 = vld [vmem:[%s4819_s1 + $0xa8] sm:$0xff]   ;;  %v3384_v63 = vld [vmem:[%s4820_s0 + $0x154] ss:$40 sps:$4 sm:$0xff]   ;;  %v3387_v5 = vld [vmem:[%s4820_s0 + $0x150] ss:$40 sps:$4 sm:$0xff]  }
  0x16   :  { %1750 = vmatpush1.bf16.msra.mxu1 %v3325_v11  ;;  %v3378_v60 = vld [vmem:[%s4820_s0 + $0x100] ss:$40 sps:$4 sm:$0xff]   ;;  %v3382_v62 = vld [vmem:[%s4820_s0 + $0x144] ss:$40 sps:$4 sm:$0xff]   ;;  %v3409_v1 = vld [vmem:[%s4819_s1 + $0xb0] sm:$0xff]  }
  0x17   :  { %2104 = vmatpush1.bf16.msra.mxu0 %v3326_v12  ;;  %1751 = vmatprep.subr.bf16.mxu1 %v3676_v0  ;;  %v3386_v2 = vld [vmem:[%s4820_s0 + $0x140] ss:$40 sps:$4 sm:$0xff]   ;;  %v3421_v4 = vld [vmem:[%s4819_s1 + $0xb8] sm:$0xff]   ;;  %v3392_v7 = vld [vmem:[%s4820_s0 + $0x1a4] ss:$40 sps:$4 sm:$0xff]  }
  0x18   :  { %2105 = vmatprep.subr.bf16.mxu0 %v3676_v0  ;;  %v3390_v6 = vld [vmem:[%s4820_s0 + $0x194] ss:$40 sps:$4 sm:$0xff]   ;;  %v3394_v8 = vld [vmem:[%s4819_s1 + $0x1c0] sm:$0xff]   ;;  %v3395_v10 = vld [vmem:[%s4820_s0 + $0x190] ss:$40 sps:$4 sm:$0xff]  }
  0x19   :  { %v3431_v9 = vld [vmem:[%s4819_s1 + $0xc0] sm:$0xff]   ;;  %v3397_v11 = vld [vmem:[%s4819_s1 + $0x1c8] sm:$0xff]   ;;  %v3404_v21 = vld [vmem:[%s4820_s0 + $0x1f0] ss:$40 sps:$4 sm:$0xff]  }
  0x1a   :  { %1752 = vmatpush1.bf16.msra.mxu1 %v3327_v13  ;;  %v3439_v12 = vld [vmem:[%s4819_s1 + $0xc8] sm:$0xff]  }
  0x1b   :  { %2106 = vmatpush1.bf16.msra.mxu0 %v3328_v14  ;;  %1753 = vmatprep.subr.bf16.mxu1 %v3676_v0  ;;  %v3396_v13 = vld [vmem:[%s4820_s0 + $0x1a0] ss:$40 sps:$4 sm:$0xff]   ;;  %v3399_v14 = vld [vmem:[%s4820_s0 + $0x1e4] ss:$40 sps:$4 sm:$0xff]  }
  0x1c   :  { %2107 = vmatprep.subr.bf16.mxu0 %v3676_v0  ;;  %v3403_v19 = vld [vmem:[%s4820_s0 + $0x1e0] ss:$40 sps:$4 sm:$0xff]  }
  0x1e   :  { %1754 = vmatpush1.bf16.msra.mxu1 %v3329_v15  ;;  %v3401_v15 = vld [vmem:[%s4820_s0 + $0x1f4] ss:$40 sps:$4 sm:$0xff]  }
  0x1f   :  { %2108 = vmatpush1.bf16.msra.mxu0 %v3330_v16  ;;  %1755 = vmatprep.subr.bf16.mxu1 %v3676_v0  ;;  %v3405_v16 = vld [vmem:[%s4819_s1 + $0x1d0] sm:$0xff]  }
  0x20   :  { %2109 = vmatprep.subr.bf16.mxu0 %v3676_v0 }
  0x22   :  { %1756 = vmatpush1.bf16.msra.mxu1 %v3331_v17  ;;  %v3447_v17 = vld [vmem:[%s4819_s1 + $0xd0] sm:$0xff]  }
  0x23   :  { %2110 = vmatpush1.bf16.msra.mxu0 %v3332_v18  ;;  %1757 = vmatprep.subr.bf16.mxu1 %v3676_v0  ;;  %v3406_v18 = vld [vmem:[%s4819_s1 + $0x1d8] sm:$0xff]  }
  0x24   :  { %2111 = vmatprep.subr.bf16.mxu0 %v3676_v0 }
  0x26   :  { %1758 = vmatpush1.bf16.msra.mxu1 %v3333_v20  ;;  %v3454_v20 = vld [vmem:[%s4819_s1 + $0xd8] sm:$0xff]  }
  0x27   :  { %2112 = vmatpush1.bf16.msra.mxu0 %v3334_v22  ;;  %1759 = vmatprep.subr.bf16.mxu1 %v3676_v0  ;;  %v3407_v22 = vld [vmem:[%s4820_s0 + $0x234] ss:$40 sps:$4 sm:$0xff]  }
  0x28   :  { %2113 = vmatprep.subr.bf16.mxu0 %v3676_v0 }
  0x2a   :  { %1760 = vmatpush1.bf16.msra.mxu1 %v3335_v23  ;;  %v3410_v23 = vld [vmem:[%s4820_s0 + $0x244] ss:$40 sps:$4 sm:$0xff]  }
  0x2b   :  { %2114 = vmatpush1.bf16.msra.mxu0 %v3336_v24  ;;  %1761 = vmatprep.subr.bf16.mxu1 %v3676_v0  ;;  %v3414_v24 = vld [vmem:[%s4819_s1 + $0x1e0] sm:$0xff]  }
  0x2c   :  { %2115 = vmatprep.subr.bf16.mxu0 %v3676_v0 }
  0x2e   :  { %1762 = vmatpush1.bf16.msra.mxu1 %v3337_v25  ;;  %v3462_v25 = vld [vmem:[%s4819_s1 + $0xe0] sm:$0xff]  }
  0x2f   :  { %2116 = vmatpush1.bf16.msra.mxu0 %v3338_v26  ;;  %1763 = vmatprep.subr.bf16.mxu1 %v3676_v0  ;;  %v3412_v26 = vld [vmem:[%s4820_s0 + $0x230] ss:$40 sps:$4 sm:$0xff]  }
  0x30   :  { %2117 = vmatprep.subr.bf16.mxu0 %v3676_v0 }
  0x32   :  { %1764 = vmatpush1.bf16.msra.mxu1 %v3339_v27  ;;  %v3415_v27 = vld [vmem:[%s4819_s1 + $0x1e8] sm:$0xff]  }
  0x33   :  { %2118 = vmatpush1.bf16.msra.mxu0 %v3340_v28  ;;  %1765 = vmatprep.subr.bf16.mxu1 %v3676_v0  ;;  %v3413_v28 = vld [vmem:[%s4820_s0 + $0x240] ss:$40 sps:$4 sm:$0xff]  }
  0x34   :  { %2119 = vmatprep.subr.bf16.mxu0 %v3676_v0 }
  0x36   :  { %1766 = vmatpush1.bf16.msra.mxu1 %v3341_v29  ;;  %v3470_v29 = vld [vmem:[%s4819_s1 + $0xe8] sm:$0xff]  }
  0x37   :  { %2120 = vmatpush1.bf16.msra.mxu0 %v3342_v30  ;;  %1767 = vmatprep.subr.bf16.mxu1 %v3676_v0  ;;  %v3416_v30 = vld [vmem:[%s4820_s0 + $0x284] ss:$40 sps:$4 sm:$0xff]  }
  0x38   :  { %2121 = vmatprep.subr.bf16.mxu0 %v3676_v0 }
  0x3a   :  { %1768 = vmatpush1.bf16.msra.mxu1 %v3343_v31  ;;  %v3418_v31 = vld [vmem:[%s4820_s0 + $0x294] ss:$40 sps:$4 sm:$0xff]  }
  0x3b   :  { %2122 = vmatpush1.bf16.msra.mxu0 %v3344_v32  ;;  %1769 = vmatprep.subr.bf16.mxu1 %v3676_v0  ;;  %v3423_v32 = vld [vmem:[%s4819_s1 + $0x1f0] sm:$0xff]  }
  0x3c   :  { %2123 = vmatprep.subr.bf16.mxu0 %v3676_v0 }
  0x3e   :  { %1770 = vmatpush1.bf16.msra.mxu1 %v3345_v33  ;;  %v3479_v33 = vld [vmem:[%s4819_s1 + $0xf0] sm:$0xff]  }
  0x3f   :  { %2124 = vmatpush1.bf16.msra.mxu0 %v3346_v34  ;;  %1916 = vmatprep.subr.bf16.mxu1 %v3676_v0  ;;  %v3424_v34 = vld [vmem:[%s4819_s1 + $0x1f8] sm:$0xff]  }
  0x40   :  { %2270 = vmatprep.subr.bf16.mxu0 %v3676_v0 }
  0x41   :  { %1772 = vmatmul.mubr.bf16.vlgmr.msra.gmra.mrb[0].mxu1 %v3347_v35  ;;  %v3490_v35 = vld [vmem:[%s4819_s1 + $0xf8] sm:$0xff]  }
  0x42   :  { %2126 = vmatmul.mubr.bf16.vlgmr.msra.gmra.mrb[0].mxu0 %v3350_v36  ;;  %1917 = vmatpush1.bf16.msra.mxu1 %v3353_v37  ;;  %v3420_v36 = vld [vmem:[%s4820_s0 + $0x280] ss:$40 sps:$4 sm:$0xff]   ;;  %v3422_v37 = vld [vmem:[%s4820_s0 + $0x290] ss:$40 sps:$4 sm:$0xff]  }
  0x43   :  { %2271 = vmatpush1.bf16.msra.mxu0 %v3354_v38  ;;  %1779 = vmatprep.mubr.bf16.mxu1 %v3355_v39  ;;  %v3425_v38 = vld [vmem:[%s4820_s0 + $0x2d4] ss:$40 sps:$4 sm:$0xff]  }
  0x44   :  { %2133 = vmatprep.mubr.bf16.mxu0 %v3357_v40  ;;  %2272 = vmatprep.subr.bf16.mxu0 %v3676_v0  ;;  %v3429_v39 = vld [vmem:[%s4820_s0 + $0x1c] ss:$40 sps:$4 sm:$0xff]   ;;  %v3427_v40 = vld [vmem:[%s4820_s0 + $0x18] ss:$40 sps:$4 sm:$0xff]  }
  0x45   :  { %1918 = vmatprep.subr.bf16.mxu1 %v3676_v0 }
  0x46   :  { %1919 = vmatpush1.bf16.msra.mxu1 %v3362_v41  ;;  %v3430_v41 = vld [vmem:[%s4820_s0 + $0x2d0] ss:$40 sps:$4 sm:$0xff]  }
  0x47   :  { %2273 = vmatpush1.bf16.msra.mxu0 %v3361_v42  ;;  %1920 = vmatprep.subr.bf16.mxu1 %v3676_v0  ;;  %v3432_v42 = vld [vmem:[%s4819_s1 + $0x200] sm:$0xff]  }
  0x48   :  { %2274 = vmatprep.subr.bf16.mxu0 %v3676_v0 }
  0x49   :  { %1780 = vmatmul.mubr.bf16.gmra.mrb[4].mxu1 %v3359_v43  ;;  %v3433_v43 = vld [vmem:[%s4820_s0 + $0x324] ss:$40 sps:$4 sm:$0xff]  }
  0x4a   :  { %2134 = vmatmul.mubr.bf16.gmra.mrb[4].mxu0 %v3360_v44  ;;  %1787 = vmatprep.mubr.bf16.mxu1 %v3364_v45  ;;  %v3435_v44 = vld [vmem:[%s4820_s0 + $0x6c] ss:$40 sps:$4 sm:$0xff]  }
  0x4b   :  { %2275 = vmatpush1.bf16.msra.mxu0 %v3363_v46  ;;  %2141 = vmatprep.mubr.bf16.mxu0 %v3366_v47  ;;  %v3446_v45 = vld [vmem:[%s4819_s1 + $0x208] sm:$0xff]  }
  0x4c   :  { %2276 = vmatprep.subr.bf16.mxu0 %v3676_v0  ;;  %1921 = vmatpush1.bf16.msra.mxu1 %v3371_v48  ;;  %v3437_v46 = vld [vmem:[%s4820_s0 + $0x320] ss:$40 sps:$4 sm:$0xff]   ;;  %v3440_v48 = vld [vmem:[%s4820_s0 + $0x374] ss:$40 sps:$4 sm:$0xff]  }
  0x4d   :  { %1922 = vmatprep.subr.bf16.mxu1 %v3676_v0  ;;  %v3438_v47 = vld [vmem:[%s4820_s0 + $0x68] ss:$40 sps:$4 sm:$0xff]  }
  0x4f   :  { %2277 = vmatpush1.bf16.msra.mxu0 %v3370_v49  ;;  %v3442_v49 = vld [vmem:[%s4820_s0 + $0xbc] ss:$40 sps:$4 sm:$0xff]  }
  0x50   :  { %2278 = vmatprep.subr.bf16.mxu0 %v3676_v0  ;;  %1923 = vmatpush1.bf16.msra.mxu1 %v3380_v51  ;;  %v3444_v51 = vld [vmem:[%s4820_s0 + $0x370] ss:$40 sps:$4 sm:$0xff]  }
  0x51   :  { %1788 = vmatmul.mubr.bf16.gmra.mrb[8].mxu1 %v3368_v50  ;;  %1924 = vmatprep.subr.bf16.mxu1 %v3676_v0  ;;  %v3455_v50 = vld [vmem:[%s4819_s1 + $0x210] sm:$0xff]  }
  0x52   :  { %2142 = vmatmul.mubr.bf16.gmra.mrb[8].mxu0 %v3369_v52  ;;  %1795 = vmatprep.mubr.bf16.mxu1 %v3373_v54  ;;  %v3469_v52 = vld [vmem:[%s4819_s1 + $0x218] sm:$0xff]   ;;  %v3448_v54 = vld [vmem:[%s4820_s0 + $0x3c4] ss:$40 sps:$4 sm:$0xff]  }
  0x53   :  { %2279 = vmatpush1.bf16.msra.mxu0 %v3372_v53  ;;  %2149 = vmatprep.mubr.bf16.mxu0 %v3375_v55  ;;  %v3445_v53 = vld [vmem:[%s4820_s0 + $0xb8] ss:$40 sps:$4 sm:$0xff]   ;;  %v3450_v55 = vld [vmem:[%s4820_s0 + $0x10c] ss:$40 sps:$4 sm:$0xff]  }
  0x54   :  { %2280 = vmatprep.subr.bf16.mxu0 %v3676_v0  ;;  %1925 = vmatpush1.bf16.msra.mxu1 %v3389_v56  ;;  %v3484_v56 = vld [vmem:[%s4819_s1 + $0x220] sm:$0xff]  }
  0x55   :  { %1926 = vmatprep.subr.bf16.mxu1 %v3676_v0 }
  0x57   :  { %2281 = vmatpush1.bf16.msra.mxu0 %v3379_v58  ;;  %v3492_v58 = vld [vmem:[%s4819_s1 + $0x228] sm:$0xff]  }
  0x58   :  { %2282 = vmatprep.subr.bf16.mxu0 %v3676_v0  ;;  %1927 = vmatpush1.bf16.msra.mxu1 %v3398_v59  ;;  %v3453_v59 = vld [vmem:[%s4820_s0 + $0x108] ss:$40 sps:$4 sm:$0xff]  }
  0x59   :  { %1796 = vmatmul.mubr.bf16.gmra.mrb[12].mxu1 %v3377_v57  ;;  %1928 = vmatprep.subr.bf16.mxu1 %v3676_v0  ;;  %v3452_v57 = vld [vmem:[%s4820_s0 + $0x3c0] ss:$40 sps:$4 sm:$0xff]  }
  0x5a   :  { %2150 = vmatmul.mubr.bf16.gmra.mrb[12].mxu0 %v3378_v60  ;;  %1803 = vmatprep.mubr.bf16.mxu1 %v3382_v62  ;;  %v3456_v60 = vld [vmem:[%s4820_s0 + $0x414] ss:$40 sps:$4 sm:$0xff]  }
  0x5b   :  { %2283 = vmatpush1.bf16.msra.mxu0 %v3381_v61  ;;  %2157 = vmatprep.mubr.bf16.mxu0 %v3384_v63  ;;  %v3458_v61 = vld [vmem:[%s4820_s0 + $0x15c] ss:$40 sps:$4 sm:$0xff]   ;;  %v3505_v62 = vld [vmem:[%s4819_s1 + $0x230] sm:$0xff]  }
  0x5c   :  { %2284 = vmatprep.subr.bf16.mxu0 %v3676_v0  ;;  %1929 = vmatpush1.bf16.msra.mxu1 %v3409_v1  ;;  %v3460_v63 = vld [vmem:[%s4820_s0 + $0x410] ss:$40 sps:$4 sm:$0xff]  }
  0x5d   :  { %1930 = vmatprep.subr.bf16.mxu1 %v3676_v0  ;;  %v3516_v1 = vld [vmem:[%s4819_s1 + $0x238] sm:$0xff]  }
  0x5f   :  { %2285 = vmatpush1.bf16.msra.mxu0 %v3388_v3  ;;  %v3463_v3 = vld [vmem:[%s4820_s0 + $0x464] ss:$40 sps:$4 sm:$0xff]  }
  0x60   :  { %2286 = vmatprep.subr.bf16.mxu0 %v3676_v0  ;;  %1931 = vmatpush1.bf16.msra.mxu1 %v3421_v4  ;;  %v3465_v4 = vld [vmem:[%s4820_s0 + $0x1ac] ss:$40 sps:$4 sm:$0xff]  }
  0x61   :  { %1804 = vmatmul.mubr.bf16.gmra.mrb[16].mxu1 %v3386_v2  ;;  %1932 = vmatprep.subr.bf16.mxu1 %v3676_v0  ;;  %v3461_v2 = vld [vmem:[%s4820_s0 + $0x158] ss:$40 sps:$4 sm:$0xff]  }
  0x62   :  { %2158 = vmatmul.mubr.bf16.gmra.mrb[16].mxu0 %v3387_v5  ;;  %1811 = vmatprep.mubr.bf16.mxu1 %v3390_v6  ;;  %v3525_v5 = vld [vmem:[%s4819_s1 + $0x240] sm:$0xff]  }
  0x63   :  { %2165 = vmatprep.mubr.bf16.mxu0 %v3392_v7  ;;  %2287 = vmatpush1.bf16.msra.mxu0 %v3394_v8  ;;  %v3467_v6 = vld [vmem:[%s4820_s0 + $0x460] ss:$40 sps:$4 sm:$0xff]  }
  0x64   :  { %2288 = vmatprep.subr.bf16.mxu0 %v3676_v0  ;;  %1933 = vmatpush1.bf16.msra.mxu1 %v3431_v9  ;;  %v3538_v7 = vld [vmem:[%s4819_s1 + $0x248] sm:$0xff]   ;;  %v3471_v9 = vld [vmem:[%s4820_s0 + $0x4b4] ss:$40 sps:$4 sm:$0xff]  }
  0x65   :  { %1934 = vmatprep.subr.bf16.mxu1 %v3676_v0  ;;  %v3468_v8 = vld [vmem:[%s4820_s0 + $0x1a8] ss:$40 sps:$4 sm:$0xff]  }
  0x67   :  { %2289 = vmatpush1.bf16.msra.mxu0 %v3397_v11  ;;  %v3545_v11 = vld [vmem:[%s4819_s1 + $0x250] sm:$0xff]  }
  0x68   :  { %2290 = vmatprep.subr.bf16.mxu0 %v3676_v0  ;;  %1935 = vmatpush1.bf16.msra.mxu1 %v3439_v12  ;;  %v3475_v12 = vld [vmem:[%s4820_s0 + $0x4b0] ss:$40 sps:$4 sm:$0xff]  }
  0x69   :  { %1812 = vmatmul.mubr.bf16.gmra.mrb[20].mxu1 %v3395_v10  ;;  %1936 = vmatprep.subr.bf16.mxu1 %v3676_v0  ;;  %v3473_v10 = vld [vmem:[%s4820_s0 + $0x1fc] ss:$40 sps:$4 sm:$0xff]  }
  0x6a   :  { %2166 = vmatmul.mubr.bf16.gmra.mrb[20].mxu0 %v3396_v13  ;;  %1819 = vmatprep.mubr.bf16.mxu1 %v3399_v14  ;;  %v3476_v13 = vld [vmem:[%s4820_s0 + $0x1f8] ss:$40 sps:$4 sm:$0xff]   ;;  %v3477_v14 = vld [vmem:[%s4820_s0 + $0x504] ss:$40 sps:$4 sm:$0xff]  }
  0x6b   :  { %2173 = vmatprep.mubr.bf16.mxu0 %v3401_v15  ;;  %2291 = vmatpush1.bf16.msra.mxu0 %v3405_v16  ;;  %v3480_v15 = vld [vmem:[%s4820_s0 + $0x24c] ss:$40 sps:$4 sm:$0xff]   ;;  %v3482_v16 = vld [vmem:[%s4820_s0 + $0x500] ss:$40 sps:$4 sm:$0xff]  }
  0x6c   :  { %2292 = vmatprep.subr.bf16.mxu0 %v3676_v0  ;;  %1937 = vmatpush1.bf16.msra.mxu1 %v3447_v17  ;;  %v3483_v17 = vld [vmem:[%s4820_s0 + $0x248] ss:$40 sps:$4 sm:$0xff]  }
  0x6d   :  { %1938 = vmatprep.subr.bf16.mxu1 %v3676_v0 }
  0x6f   :  { %2293 = vmatpush1.bf16.msra.mxu0 %v3406_v18  ;;  %v3485_v18 = vld [vmem:[%s4820_s0 + $0x554] ss:$40 sps:$4 sm:$0xff]  }
  0x70   :  { %2294 = vmatprep.subr.bf16.mxu0 %v3676_v0  ;;  %1939 = vmatpush1.bf16.msra.mxu1 %v3454_v20  ;;  %v3489_v20 = vld [vmem:[%s4820_s0 + $0x550] ss:$40 sps:$4 sm:$0xff]  }
  0x71   :  { %1820 = vmatmul.mubr.bf16.gmra.mrb[24].mxu1 %v3403_v19  ;;  %1940 = vmatprep.subr.bf16.mxu1 %v3676_v0  ;;  %v3487_v19 = vld [vmem:[%s4820_s0 + $0x29c] ss:$40 sps:$4 sm:$0xff]  }
  0x72   :  { %2174 = vmatmul.mubr.bf16.gmra.mrb[24].mxu0 %v3404_v21  ;;  %1827 = vmatprep.mubr.bf16.mxu1 %v3407_v22  ;;  %v3491_v21 = vld [vmem:[%s4820_s0 + $0x298] ss:$40 sps:$4 sm:$0xff]   ;;  %v3495_v22 = vld [vmem:[%s4820_s0 + $0xc] ss:$40 sps:$4 sm:$0xff]  }
  0x73   :  { %2181 = vmatprep.mubr.bf16.mxu0 %v3410_v23  ;;  %2295 = vmatpush1.bf16.msra.mxu0 %v3414_v24  ;;  %v3496_v23 = vld [vmem:[%s4820_s0 + $0x2ec] ss:$40 sps:$4 sm:$0xff]   ;;  %v3493_v24 = vld [vmem:[%s4820_s0 + $0x8] ss:$40 sps:$4 sm:$0xff]  }
  0x74   :  { %2296 = vmatprep.subr.bf16.mxu0 %v3676_v0  ;;  %1941 = vmatpush1.bf16.msra.mxu1 %v3462_v25  ;;  %v3498_v25 = vld [vmem:[%s4820_s0 + $0x2e8] ss:$40 sps:$4 sm:$0xff]  }
  0x75   :  { %1942 = vmatprep.subr.bf16.mxu1 %v3676_v0 }
  0x77   :  { %2297 = vmatpush1.bf16.msra.mxu0 %v3415_v27  ;;  %v3501_v27 = vld [vmem:[%s4820_s0 + $0x33c] ss:$40 sps:$4 sm:$0xff]  }
  0x78   :  { %2298 = vmatprep.subr.bf16.mxu0 %v3676_v0  ;;  %1943 = vmatpush1.bf16.msra.mxu1 %v3470_v29  ;;  %v3503_v29 = vld [vmem:[%s4820_s0 + $0x58] ss:$40 sps:$4 sm:$0xff]  }
  0x79   :  { %1828 = vmatmul.mubr.bf16.gmra.mrb[28].mxu1 %v3412_v26  ;;  %1944 = vmatprep.subr.bf16.mxu1 %v3676_v0  ;;  %v3499_v26 = vld [vmem:[%s4820_s0 + $0x5c] ss:$40 sps:$4 sm:$0xff]  }
  0x7a   :  { %2182 = vmatmul.mubr.bf16.gmra.mrb[28].mxu0 %v3413_v28  ;;  %1835 = vmatprep.mubr.bf16.mxu1 %v3416_v30  ;;  %v3660_v28 = vld [vmem:[%s4819_s1 + $0x100] sm:$0xff]  }
  0x7b   :  { %2189 = vmatprep.mubr.bf16.mxu0 %v3418_v31  ;;  %2299 = vmatpush1.bf16.msra.mxu0 %v3423_v32  ;;  %v3504_v30 = vld [vmem:[%s4820_s0 + $0x338] ss:$40 sps:$4 sm:$0xff]   ;;  %v3661_v31 = vld [vmem:[%s4819_s1 + $0x108] sm:$0xff]  }
  0x7c   :  { %2300 = vmatprep.subr.bf16.mxu0 %v3676_v0  ;;  %1945 = vmatpush1.bf16.msra.mxu1 %v3479_v33  ;;  %v3506_v32 = vld [vmem:[%s4820_s0 + $0xac] ss:$40 sps:$4 sm:$0xff]  }
  0x7d   :  { %1946 = vmatprep.subr.bf16.mxu1 %v3676_v0  ;;  %v3508_v33 = vld [vmem:[%s4820_s0 + $0x38c] ss:$40 sps:$4 sm:$0xff]  }
  0x7f   :  { %2301 = vmatpush1.bf16.msra.mxu0 %v3424_v34  ;;  %v3662_v34 = vld [vmem:[%s4819_s1 + $0x110] sm:$0xff]  }
  0x80   :  { %2447 = vmatprep.subr.bf16.mxu0 %v3676_v0  ;;  %1947 = vmatpush1.bf16.msra.mxu1 %v3490_v35  ;;  %v3510_v35 = vld [vmem:[%s4820_s0 + $0xa8] ss:$40 sps:$4 sm:$0xff]  }
  0x81   :  { %1836 = vmatmul.mubr.bf16.gmra.mrb[32].mxu1 %v3420_v36  ;;  %2994 = vmatprep.subr.bf16.mxu1 %v3676_v0  ;;  %v3511_v36 = vld [vmem:[%s4820_s0 + $0x388] ss:$40 sps:$4 sm:$0xff]  }
  0x82   :  { %2190 = vmatmul.mubr.bf16.gmra.mrb[32].mxu0 %v3422_v37  ;;  %1843 = vmatprep.mubr.bf16.mxu1 %v3425_v38  ;;  %v3512_v37 = vld [vmem:[%s4820_s0 + $0xfc] ss:$40 sps:$4 sm:$0xff]  }
  0x83   :  { %2302 = vmatprep.mubr.bf16.mxu0 %v3429_v39  ;;  %v3514_v38 = vld [vmem:[%s4820_s0 + $0x3dc] ss:$40 sps:$4 sm:$0xff]  }
  0x84   :  { %v3663_v39 = vld [vmem:[%s4819_s1 + $0x118] sm:$0xff]  }
  0x89   :  { %1844 = vmatmul.mubr.bf16.gmra.mrb[36].mxu1 %v3430_v41  ;;  %v3517_v41 = vld [vmem:[%s4820_s0 + $0xf8] ss:$40 sps:$4 sm:$0xff]  }
  0x8a   :  { %2303 = vmatmul.mubr.bf16.vlgmr.msra.gmra.mrb[0].mxu0 %v3427_v40  ;;  %1851 = vmatprep.mubr.bf16.mxu1 %v3433_v43  ;;  %v3664_v40 = vld [vmem:[%s4819_s1 + $0x120] sm:$0xff]   ;;  %v3519_v43 = vld [vmem:[%s4820_s0 + $0x14c] ss:$40 sps:$4 sm:$0xff]  }
  0x8b   :  { %2448 = vmatpush1.bf16.msra.mxu0 %v3432_v42  ;;  %2310 = vmatprep.mubr.bf16.mxu0 %v3435_v44  ;;  %v3518_v42 = vld [vmem:[%s4820_s0 + $0x3d8] ss:$40 sps:$4 sm:$0xff]   ;;  %v3521_v44 = vld [vmem:[%s4820_s0 + $0x42c] ss:$40 sps:$4 sm:$0xff]  }
  0x8c   :  { %2449 = vmatprep.subr.bf16.mxu0 %v3676_v0 }
  0x8f   :  { %2450 = vmatpush1.bf16.msra.mxu0 %v3446_v45  ;;  %v3665_v45 = vld [vmem:[%s4819_s1 + $0x128] sm:$0xff]  }
  0x90   :  { %2451 = vmatprep.subr.bf16.mxu0 %v3676_v0 }
  0x91   :  { %1852 = vmatmul.mubr.bf16.gmra.mrb[40].mxu1 %v3437_v46  ;;  %v3666_v46 = vld [vmem:[%s4819_s1 + $0x130] sm:$0xff]  }
  0x92   :  { %2311 = vmatmul.mubr.bf16.gmra.mrb[4].mxu0 %v3438_v47  ;;  %1859 = vmatprep.mubr.bf16.mxu1 %v3440_v48  ;;  %v3523_v47 = vld [vmem:[%s4820_s0 + $0x148] ss:$40 sps:$4 sm:$0xff]  }
  0x93   :  { %2318 = vmatprep.mubr.bf16.mxu0 %v3442_v49  ;;  %2452 = vmatpush1.bf16.msra.mxu0 %v3455_v50  ;;  %v3524_v48 = vld [vmem:[%s4820_s0 + $0x428] ss:$40 sps:$4 sm:$0xff]   ;;  %v3526_v49 = vld [vmem:[%s4820_s0 + $0x19c] ss:$40 sps:$4 sm:$0xff]  }
  0x94   :  { %2453 = vmatprep.subr.bf16.mxu0 %v3676_v0  ;;  %v3528_v50 = vld [vmem:[%s4820_s0 + $0x47c] ss:$40 sps:$4 sm:$0xff]  }
  0x97   :  { %2454 = vmatpush1.bf16.msra.mxu0 %v3469_v52  ;;  %v3668_v52 = vld [vmem:[%s4819_s1 + $0x140] sm:$0xff]  }
  0x98   :  { %2455 = vmatprep.subr.bf16.mxu0 %v3676_v0 }
  0x99   :  { %1860 = vmatmul.mubr.bf16.gmra.mrb[44].mxu1 %v3444_v51  ;;  %v3667_v51 = vld [vmem:[%s4819_s1 + $0x138] sm:$0xff]  }
  0x9a   :  { %2319 = vmatmul.mubr.bf16.gmra.mrb[8].mxu0 %v3445_v53  ;;  %1867 = vmatprep.mubr.bf16.mxu1 %v3448_v54  ;;  %v3530_v53 = vld [vmem:[%s4820_s0 + $0x198] ss:$40 sps:$4 sm:$0xff]  }
  0x9b   :  { %2326 = vmatprep.mubr.bf16.mxu0 %v3450_v55  ;;  %2456 = vmatpush1.bf16.msra.mxu0 %v3484_v56  ;;  %v3531_v54 = vld [vmem:[%s4820_s0 + $0x478] ss:$40 sps:$4 sm:$0xff]   ;;  %v3532_v55 = vld [vmem:[%s4820_s0 + $0x1ec] ss:$40 sps:$4 sm:$0xff]  }
  0x9c   :  { %2457 = vmatprep.subr.bf16.mxu0 %v3676_v0  ;;  %v3534_v56 = vld [vmem:[%s4820_s0 + $0x4cc] ss:$40 sps:$4 sm:$0xff]  }
  0x9f   :  { %2458 = vmatpush1.bf16.msra.mxu0 %v3492_v58  ;;  %v3670_v58 = vld [vmem:[%s4819_s1 + $0x150] sm:$0xff]  }
  0xa0   :  { %2459 = vmatprep.subr.bf16.mxu0 %v3676_v0 }
  0xa1   :  { %1868 = vmatmul.mubr.bf16.gmra.mrb[48].mxu1 %v3452_v57  ;;  %v3669_v57 = vld [vmem:[%s4819_s1 + $0x148] sm:$0xff]  }
  0xa2   :  { %2327 = vmatmul.mubr.bf16.gmra.mrb[12].mxu0 %v3453_v59  ;;  %1875 = vmatprep.mubr.bf16.mxu1 %v3456_v60  ;;  %v3536_v59 = vld [vmem:[%s4820_s0 + $0x1e8] ss:$40 sps:$4 sm:$0xff]  }
  0xa3   :  { %2334 = vmatprep.mubr.bf16.mxu0 %v3458_v61  ;;  %2460 = vmatpush1.bf16.msra.mxu0 %v3505_v62  ;;  %v3537_v60 = vld [vmem:[%s4820_s0 + $0x4c8] ss:$40 sps:$4 sm:$0xff]   ;;  %v3539_v61 = vld [vmem:[%s4820_s0 + $0x23c] ss:$40 sps:$4 sm:$0xff]  }
  0xa4   :  { %2461 = vmatprep.subr.bf16.mxu0 %v3676_v0  ;;  %v3541_v62 = vld [vmem:[%s4820_s0 + $0x51c] ss:$40 sps:$4 sm:$0xff]  }
  0xa7   :  { %2462 = vmatpush1.bf16.msra.mxu0 %v3516_v1  ;;  %v3672_v1 = vld [vmem:[%s4819_s1 + $0x160] sm:$0xff]  }
  0xa8   :  { %2463 = vmatprep.subr.bf16.mxu0 %v3676_v0 }
  0xa9   :  { %1876 = vmatmul.mubr.bf16.gmra.mrb[52].mxu1 %v3460_v63  ;;  %v3671_v63 = vld [vmem:[%s4819_s1 + $0x158] sm:$0xff]  }
  0xaa   :  { %2335 = vmatmul.mubr.bf16.gmra.mrb[16].mxu0 %v3461_v2  ;;  %1883 = vmatprep.mubr.bf16.mxu1 %v3463_v3  ;;  %v3543_v2 = vld [vmem:[%s4820_s0 + $0x238] ss:$40 sps:$4 sm:$0xff]  }
  0xab   :  { %2342 = vmatprep.mubr.bf16.mxu0 %v3465_v4  ;;  %2464 = vmatpush1.bf16.msra.mxu0 %v3525_v5  ;;  %v3544_v3 = vld [vmem:[%s4820_s0 + $0x518] ss:$40 sps:$4 sm:$0xff]   ;;  %v3546_v4 = vld [vmem:[%s4820_s0 + $0x28c] ss:$40 sps:$4 sm:$0xff]  }
  0xac   :  { %2465 = vmatprep.subr.bf16.mxu0 %v3676_v0  ;;  %v3548_v5 = vld [vmem:[%s4820_s0 + $0x56c] ss:$40 sps:$4 sm:$0xff]  }
  0xaf   :  { %2466 = vmatpush1.bf16.msra.mxu0 %v3538_v7  ;;  %v3674_v7 = vld [vmem:[%s4819_s1 + $0x170] sm:$0xff]  }
  0xb0   :  { %2467 = vmatprep.subr.bf16.mxu0 %v3676_v0 }
  0xb1   :  { %1884 = vmatmul.mubr.bf16.gmra.mrb[56].mxu1 %v3467_v6  ;;  %v3673_v6 = vld [vmem:[%s4819_s1 + $0x168] sm:$0xff]  }
  0xb2   :  { %2343 = vmatmul.mubr.bf16.gmra.mrb[20].mxu0 %v3468_v8  ;;  %1891 = vmatprep.mubr.bf16.mxu1 %v3471_v9  ;;  %v3550_v8 = vld [vmem:[%s4820_s0 + $0x288] ss:$40 sps:$4 sm:$0xff]  }
  0xb3   :  { %2350 = vmatprep.mubr.bf16.mxu0 %v3473_v10  ;;  %2468 = vmatpush1.bf16.msra.mxu0 %v3545_v11  ;;  %v3551_v9 = vld [vmem:[%s4820_s0 + $0x568] ss:$40 sps:$4 sm:$0xff]   ;;  %v3552_v10 = vld [vmem:[%s4820_s0 + $0x2dc] ss:$40 sps:$4 sm:$0xff]  }
  0xb4   :  { %v3556_v11 = vld [vmem:[%s4820_s0 + $0x24] ss:$40 sps:$4 sm:$0xff]  }
  0xb9   :  { %1892 = vmatmul.mubr.bf16.gmra.mrb[60].mxu1 %v3475_v12  ;;  %v3557_v12 = vld [vmem:[%s4820_s0 + $0x2d8] ss:$40 sps:$4 sm:$0xff]  }
  0xba   :  { %2351 = vmatmul.mubr.bf16.gmra.mrb[24].mxu0 %v3476_v13  ;;  %1899 = vmatprep.mubr.bf16.mxu1 %v3477_v14  ;;  %v3554_v13 = vld [vmem:[%s4820_s0 + $0x20] ss:$40 sps:$4 sm:$0xff]   ;;  %v3558_v14 = vld [vmem:[%s4820_s0 + $0x32c] ss:$40 sps:$4 sm:$0xff]  }
  0xbb   :  { %2358 = vmatprep.mubr.bf16.mxu0 %v3480_v15  ;;  %v3560_v15 = vld [vmem:[%s4820_s0 + $0x74] ss:$40 sps:$4 sm:$0xff]  }
  0xc1   :  { %1900 = vmatmul.mubr.bf16.gmra.mrb[64].mxu1 %v3482_v16  ;;  %v3562_v16 = vld [vmem:[%s4820_s0 + $0x328] ss:$40 sps:$4 sm:$0xff]  }
  0xc2   :  { %2359 = vmatmul.mubr.bf16.gmra.mrb[28].mxu0 %v3483_v17  ;;  %1907 = vmatprep.mubr.bf16.mxu1 %v3485_v18  ;;  %v3563_v17 = vld [vmem:[%s4820_s0 + $0x70] ss:$40 sps:$4 sm:$0xff]   ;;  %v3564_v18 = vld [vmem:[%s4820_s0 + $0x37c] ss:$40 sps:$4 sm:$0xff]  }
  0xc3   :  { %2366 = vmatprep.mubr.bf16.mxu0 %v3487_v19  ;;  %v3566_v19 = vld [vmem:[%s4820_s0 + $0xc4] ss:$40 sps:$4 sm:$0xff]  }
  0xc9   :  { %1908 = vmatmul.mubr.bf16.gmra.mrb[68].mxu1 %v3489_v20  ;;  %v3568_v20 = vld [vmem:[%s4820_s0 + $0x378] ss:$40 sps:$4 sm:$0xff]  }
  0xca   :  { %2367 = vmatmul.mubr.bf16.gmra.mrb[32].mxu0 %v3491_v21  ;;  %1948 = vmatprep.mubr.bf16.mxu1 %v3495_v22  ;;  %v3569_v21 = vld [vmem:[%s4820_s0 + $0xc0] ss:$40 sps:$4 sm:$0xff]   ;;  %v3570_v22 = vld [vmem:[%s4820_s0 + $0x3cc] ss:$40 sps:$4 sm:$0xff]  }
  0xcb   :  { %2374 = vmatprep.mubr.bf16.mxu0 %v3496_v23  ;;  %v3572_v23 = vld [vmem:[%s4820_s0 + $0x114] ss:$40 sps:$4 sm:$0xff]  }
  0xd1   :  { %1949 = vmatmul.mubr.bf16.vlgmr.msra.gmra.mrb[0].mxu1 %v3493_v24  ;;  %v3574_v24 = vld [vmem:[%s4820_s0 + $0x3c8] ss:$40 sps:$4 sm:$0xff]  }
  0xd2   :  { %2375 = vmatmul.mubr.bf16.gmra.mrb[36].mxu0 %v3498_v25  ;;  %3010 = vmatpush1.bf16.msra.mxu1 %v3660_v28  ;;  %v3575_v25 = vld [vmem:[%s4820_s0 + $0x110] ss:$40 sps:$4 sm:$0xff]  }
  0xd3   :  { %1956 = vmatprep.mubr.bf16.mxu1 %v3499_v26  ;;  %2382 = vmatprep.mubr.bf16.mxu0 %v3501_v27  ;;  %v3576_v26 = vld [vmem:[%s4820_s0 + $0x41c] ss:$40 sps:$4 sm:$0xff]   ;;  %v3580_v28 = vld [vmem:[%s4820_s0 + $0x418] ss:$40 sps:$4 sm:$0xff]  }
  0xd4   :  { %2995 = vmatprep.subr.bf16.mxu1 %v3676_v0  ;;  %v3578_v27 = vld [vmem:[%s4820_s0 + $0x164] ss:$40 sps:$4 sm:$0xff]  }
  0xd6   :  { %3011 = vmatpush1.bf16.msra.mxu1 %v3661_v31  ;;  %v3584_v31 = vld [vmem:[%s4820_s0 + $0x1b4] ss:$40 sps:$4 sm:$0xff]  }
  0xd7   :  { %2996 = vmatprep.subr.bf16.mxu1 %v3676_v0 }
  0xd9   :  { %1957 = vmatmul.mubr.bf16.gmra.mrb[4].mxu1 %v3503_v29  ;;  %v3581_v29 = vld [vmem:[%s4820_s0 + $0x160] ss:$40 sps:$4 sm:$0xff]  }
  0xda   :  { %2383 = vmatmul.mubr.bf16.gmra.mrb[40].mxu0 %v3504_v30  ;;  %1964 = vmatprep.mubr.bf16.mxu1 %v3506_v32  ;;  %v3582_v30 = vld [vmem:[%s4820_s0 + $0x46c] ss:$40 sps:$4 sm:$0xff]   ;;  %v3586_v32 = vld [vmem:[%s4820_s0 + $0x468] ss:$40 sps:$4 sm:$0xff]  }
  0xdb   :  { %2390 = vmatprep.mubr.bf16.mxu0 %v3508_v33  ;;  %3012 = vmatpush1.bf16.msra.mxu1 %v3662_v34  ;;  %v3587_v33 = vld [vmem:[%s4820_s0 + $0x1b0] ss:$40 sps:$4 sm:$0xff]   ;;  %v3588_v34 = vld [vmem:[%s4820_s0 + $0x4bc] ss:$40 sps:$4 sm:$0xff]  }
  0xdc   :  { %2997 = vmatprep.subr.bf16.mxu1 %v3676_v0 }
  0xdf   :  { %3013 = vmatpush1.bf16.msra.mxu1 %v3663_v39  ;;  %v3596_v39 = vld [vmem:[%s4820_s0 + $0x254] ss:$40 sps:$4 sm:$0xff]  }
  0xe0   :  { %2998 = vmatprep.subr.bf16.mxu1 %v3676_v0 }
  0xe1   :  { %1965 = vmatmul.mubr.bf16.gmra.mrb[8].mxu1 %v3510_v35  ;;  %v3590_v35 = vld [vmem:[%s4820_s0 + $0x204] ss:$40 sps:$4 sm:$0xff]  }
  0xe2   :  { %2391 = vmatmul.mubr.bf16.gmra.mrb[44].mxu0 %v3511_v36  ;;  %1972 = vmatprep.mubr.bf16.mxu1 %v3512_v37  ;;  %v3592_v36 = vld [vmem:[%s4820_s0 + $0x4b8] ss:$40 sps:$4 sm:$0xff]  }
  0xe3   :  { %2398 = vmatprep.mubr.bf16.mxu0 %v3514_v38  ;;  %3014 = vmatpush1.bf16.msra.mxu1 %v3664_v40  ;;  %v3593_v37 = vld [vmem:[%s4820_s0 + $0x200] ss:$40 sps:$4 sm:$0xff]   ;;  %v3594_v38 = vld [vmem:[%s4820_s0 + $0x50c] ss:$40 sps:$4 sm:$0xff]  }
  0xe4   :  { %2999 = vmatprep.subr.bf16.mxu1 %v3676_v0  ;;  %v3598_v40 = vld [vmem:[%s4820_s0 + $0x508] ss:$40 sps:$4 sm:$0xff]  }
  0xe7   :  { %3015 = vmatpush1.bf16.msra.mxu1 %v3665_v45  ;;  %v3605_v45 = vld [vmem:[%s4820_s0 + $0x2a0] ss:$40 sps:$4 sm:$0xff]  }
  0xe8   :  { %3000 = vmatprep.subr.bf16.mxu1 %v3676_v0 }
  0xe9   :  { %1973 = vmatmul.mubr.bf16.gmra.mrb[12].mxu1 %v3517_v41  ;;  %v3599_v41 = vld [vmem:[%s4820_s0 + $0x250] ss:$40 sps:$4 sm:$0xff]  }
  0xea   :  { %2399 = vmatmul.mubr.bf16.gmra.mrb[48].mxu0 %v3518_v42  ;;  %1980 = vmatprep.mubr.bf16.mxu1 %v3519_v43  ;;  %v3600_v42 = vld [vmem:[%s4820_s0 + $0x55c] ss:$40 sps:$4 sm:$0xff]  }
  0xeb   :  { %2406 = vmatprep.mubr.bf16.mxu0 %v3521_v44  ;;  %3016 = vmatpush1.bf16.msra.mxu1 %v3666_v46  ;;  %v3602_v43 = vld [vmem:[%s4820_s0 + $0x2a4] ss:$40 sps:$4 sm:$0xff]   ;;  %v3604_v44 = vld [vmem:[%s4820_s0 + $0x558] ss:$40 sps:$4 sm:$0xff]  }
  0xec   :  { %3001 = vmatprep.subr.bf16.mxu1 %v3676_v0  ;;  %v3608_v46 = vld [vmem:[%s4820_s0 + $0x2e4] ss:$40 sps:$4 sm:$0xff]  }
  0xef   :  { %3017 = vmatpush1.bf16.msra.mxu1 %v3667_v51  ;;  %v3614_v51 = vld [vmem:[%s4820_s0 + $0x344] ss:$40 sps:$4 sm:$0xff]  }
  0xf0   :  { %3002 = vmatprep.subr.bf16.mxu1 %v3676_v0 }
  0xf1   :  { %1981 = vmatmul.mubr.bf16.gmra.mrb[16].mxu1 %v3523_v47  ;;  %v3609_v47 = vld [vmem:[%s4820_s0 + $0x2f4] ss:$40 sps:$4 sm:$0xff]  }
  0xf2   :  { %2407 = vmatmul.mubr.bf16.gmra.mrb[52].mxu0 %v3524_v48  ;;  %1988 = vmatprep.mubr.bf16.mxu1 %v3526_v49  ;;  %v3606_v48 = vld [vmem:[%s4820_s0 + $0x2e0] ss:$40 sps:$4 sm:$0xff]   ;;  %v3611_v49 = vld [vmem:[%s4820_s0 + $0x2f0] ss:$40 sps:$4 sm:$0xff]  }
  0xf3   :  { %2414 = vmatprep.mubr.bf16.mxu0 %v3528_v50  ;;  %3018 = vmatpush1.bf16.msra.mxu1 %v3668_v52  ;;  %v3612_v50 = vld [vmem:[%s4820_s0 + $0x334] ss:$40 sps:$4 sm:$0xff]   ;;  %v3616_v52 = vld [vmem:[%s4820_s0 + $0x330] ss:$40 sps:$4 sm:$0xff]  }
  0xf4   :  { %3003 = vmatprep.subr.bf16.mxu1 %v3676_v0 }
  0xf7   :  { %3019 = vmatpush1.bf16.msra.mxu1 %v3669_v57  ;;  %v3623_v57 = vld [vmem:[%s4820_s0 + $0x390] ss:$40 sps:$4 sm:$0xff]  }
  0xf8   :  { %3004 = vmatprep.subr.bf16.mxu1 %v3676_v0 }
  0xf9   :  { %1989 = vmatmul.mubr.bf16.gmra.mrb[20].mxu1 %v3530_v53  ;;  %v3617_v53 = vld [vmem:[%s4820_s0 + $0x340] ss:$40 sps:$4 sm:$0xff]  }
  0xfa   :  { %2415 = vmatmul.mubr.bf16.gmra.mrb[56].mxu0 %v3531_v54  ;;  %1996 = vmatprep.mubr.bf16.mxu1 %v3532_v55  ;;  %v3618_v54 = vld [vmem:[%s4820_s0 + $0x384] ss:$40 sps:$4 sm:$0xff]   ;;  %v3620_v55 = vld [vmem:[%s4820_s0 + $0x394] ss:$40 sps:$4 sm:$0xff]  }
  0xfb   :  { %2422 = vmatprep.mubr.bf16.mxu0 %v3534_v56  ;;  %3020 = vmatpush1.bf16.msra.mxu1 %v3670_v58  ;;  %v3622_v56 = vld [vmem:[%s4820_s0 + $0x380] ss:$40 sps:$4 sm:$0xff]   ;;  %v3624_v58 = vld [vmem:[%s4820_s0 + $0x3d4] ss:$40 sps:$4 sm:$0xff]  }
  0xfc   :  { %3005 = vmatprep.subr.bf16.mxu1 %v3676_v0 }
  0xff   :  { %3021 = vmatpush1.bf16.msra.mxu1 %v3671_v63  ;;  %v3632_v63 = vld [vmem:[%s4820_s0 + $0x434] ss:$40 sps:$4 sm:$0xff]  }
 0x100   :  { %3006 = vmatprep.subr.bf16.mxu1 %v3676_v0 }
 0x101   :  { %1997 = vmatmul.mubr.bf16.gmra.mrb[24].mxu1 %v3536_v59  ;;  %v3626_v59 = vld [vmem:[%s4820_s0 + $0x3e4] ss:$40 sps:$4 sm:$0xff]  }
 0x102   :  { %2423 = vmatmul.mubr.bf16.gmra.mrb[60].mxu0 %v3537_v60  ;;  %2004 = vmatprep.mubr.bf16.mxu1 %v3539_v61  ;;  %v3628_v60 = vld [vmem:[%s4820_s0 + $0x3d0] ss:$40 sps:$4 sm:$0xff]   ;;  %v3629_v61 = vld [vmem:[%s4820_s0 + $0x3e0] ss:$40 sps:$4 sm:$0xff]  }
 0x103   :  { %2430 = vmatprep.mubr.bf16.mxu0 %v3541_v62  ;;  %3022 = vmatpush1.bf16.msra.mxu1 %v3672_v1  ;;  %v3630_v62 = vld [vmem:[%s4820_s0 + $0x424] ss:$40 sps:$4 sm:$0xff]   ;;  %v3634_v1 = vld [vmem:[%s4820_s0 + $0x420] ss:$40 sps:$4 sm:$0xff]  }
 0x104   :  { %3007 = vmatprep.subr.bf16.mxu1 %v3676_v0 }
 0x107   :  { %3023 = vmatpush1.bf16.msra.mxu1 %v3673_v6  ;;  %v3641_v6 = vld [vmem:[%s4820_s0 + $0x480] ss:$40 sps:$4 sm:$0xff]  }
 0x108   :  { %3008 = vmatprep.subr.bf16.mxu1 %v3676_v0 }
 0x109   :  { %2005 = vmatmul.mubr.bf16.gmra.mrb[28].mxu1 %v3543_v2  ;;  %v3635_v2 = vld [vmem:[%s4820_s0 + $0x430] ss:$40 sps:$4 sm:$0xff]  }
 0x10a   :  { %2431 = vmatmul.mubr.bf16.gmra.mrb[64].mxu0 %v3544_v3  ;;  %2012 = vmatprep.mubr.bf16.mxu1 %v3546_v4  ;;  %v3636_v3 = vld [vmem:[%s4820_s0 + $0x474] ss:$40 sps:$4 sm:$0xff]   ;;  %v3638_v4 = vld [vmem:[%s4820_s0 + $0x484] ss:$40 sps:$4 sm:$0xff]  }
 0x10b   :  { %2438 = vmatprep.mubr.bf16.mxu0 %v3548_v5  ;;  %3024 = vmatpush1.bf16.msra.mxu1 %v3674_v7  ;;  %v3640_v5 = vld [vmem:[%s4820_s0 + $0x470] ss:$40 sps:$4 sm:$0xff]   ;;  %v3642_v7 = vld [vmem:[%s4820_s0 + $0x4c4] ss:$40 sps:$4 sm:$0xff]  }
 0x10c   :  { %3009 = vmatprep.subr.bf16.mxu1 %v3676_v0  ;;  %v3675_v0 = vld [vmem:[%s4819_s1 + $0x178] sm:$0xff]  }
 0x10f   :  { %3025 = vmatpush1.bf16.msra.mxu1 %v3675_v0  ;;  %v3650_v0 = vld [vmem:[%s4820_s0 + $0x524] ss:$40 sps:$4 sm:$0xff]  }
 0x111   :  { %2013 = vmatmul.mubr.bf16.gmra.mrb[32].mxu1 %v3550_v8  ;;  %v3644_v8 = vld [vmem:[%s4820_s0 + $0x4d4] ss:$40 sps:$4 sm:$0xff]  }
 0x112   :  { %2439 = vmatmul.mubr.bf16.gmra.mrb[68].mxu0 %v3551_v9  ;;  %2020 = vmatprep.mubr.bf16.mxu1 %v3552_v10  ;;  %v3646_v9 = vld [vmem:[%s4820_s0 + $0x4c0] ss:$40 sps:$4 sm:$0xff]   ;;  %v3647_v10 = vld [vmem:[%s4820_s0 + $0x4d0] ss:$40 sps:$4 sm:$0xff]  }
 0x113   :  { %2958 = vmatprep.mubr.msk.bf16.mxu0 %vm1684_vm0, %v3556_v11  ;;  %v3648_v11 = vld [vmem:[%s4820_s0 + $0x514] ss:$40 sps:$4 sm:$0xff]  }
 0x119   :  { %2021 = vmatmul.mubr.bf16.gmra.mrb[36].mxu1 %v3557_v12  ;;  %v3652_v12 = vld [vmem:[%s4820_s0 + $0x510] ss:$40 sps:$4 sm:$0xff]  }
 0x11a   :  { %2480 = vmatmul.mubr.bf16.vlgmr.msra.gmra.mrb[0].mxu0 %v3554_v13  ;;  %2028 = vmatprep.mubr.bf16.mxu1 %v3558_v14  ;;  %v3653_v13 = vld [vmem:[%s4820_s0 + $0x520] ss:$40 sps:$4 sm:$0xff]   ;;  %v3654_v14 = vld [vmem:[%s4820_s0 + $0x564] ss:$40 sps:$4 sm:$0xff]  }
 0x11b   :  { %2959 = vmatprep.mubr.msk.bf16.mxu0 %vm1684_vm0, %v3560_v15  ;;  %v3656_v15 = vld [vmem:[%s4820_s0 + $0x574] ss:$40 sps:$4 sm:$0xff]  }
 0x121   :  { %2029 = vmatmul.mubr.bf16.gmra.mrb[40].mxu1 %v3562_v16  ;;  %v3658_v16 = vld [vmem:[%s4820_s0 + $0x560] ss:$40 sps:$4 sm:$0xff]  }
 0x122   :  { %2488 = vmatmul.mubr.bf16.gmra.mrb[4].mxu0 %v3563_v17  ;;  %2036 = vmatprep.mubr.bf16.mxu1 %v3564_v18  ;;  %v3659_v17 = vld [vmem:[%s4820_s0 + $0x570] ss:$40 sps:$4 sm:$0xff]  }
 0x123   :  { %2960 = vmatprep.mubr.msk.bf16.mxu0 %vm1684_vm0, %v3566_v19 }
 0x129   :  { %2037 = vmatmul.mubr.bf16.gmra.mrb[44].mxu1 %v3568_v20 }
 0x12a   :  { %2496 = vmatmul.mubr.bf16.gmra.mrb[8].mxu0 %v3569_v21  ;;  %2044 = vmatprep.mubr.bf16.mxu1 %v3570_v22 }
 0x12b   :  { %2961 = vmatprep.mubr.msk.bf16.mxu0 %vm1684_vm0, %v3572_v23 }
 0x131   :  { %2045 = vmatmul.mubr.bf16.gmra.mrb[48].mxu1 %v3574_v24 }
 0x132   :  { %2504 = vmatmul.mubr.bf16.gmra.mrb[12].mxu0 %v3575_v25  ;;  %2052 = vmatprep.mubr.bf16.mxu1 %v3576_v26 }
 0x133   :  { %2962 = vmatprep.mubr.msk.bf16.mxu0 %vm1684_vm0, %v3578_v27 }
 0x139   :  { %2053 = vmatmul.mubr.bf16.gmra.mrb[52].mxu1 %v3580_v28 }
 0x13a   :  { %2512 = vmatmul.mubr.bf16.gmra.mrb[16].mxu0 %v3581_v29  ;;  %2060 = vmatprep.mubr.bf16.mxu1 %v3582_v30 }
 0x13b   :  { %2963 = vmatprep.mubr.msk.bf16.mxu0 %vm1684_vm0, %v3584_v31 }
 0x141   :  { %2061 = vmatmul.mubr.bf16.gmra.mrb[56].mxu1 %v3586_v32 }
 0x142   :  { %2520 = vmatmul.mubr.bf16.gmra.mrb[20].mxu0 %v3587_v33  ;;  %2068 = vmatprep.mubr.bf16.mxu1 %v3588_v34 }
 0x143   :  { %2964 = vmatprep.mubr.msk.bf16.mxu0 %vm1684_vm0, %v3590_v35 }
 0x149   :  { %2069 = vmatmul.mubr.bf16.gmra.mrb[60].mxu1 %v3592_v36 }
 0x14a   :  { %2528 = vmatmul.mubr.bf16.gmra.mrb[24].mxu0 %v3593_v37  ;;  %2076 = vmatprep.mubr.bf16.mxu1 %v3594_v38 }
 0x14b   :  { %2965 = vmatprep.mubr.msk.bf16.mxu0 %vm1684_vm0, %v3596_v39 }
 0x151   :  { %2077 = vmatmul.mubr.bf16.gmra.mrb[64].mxu1 %v3598_v40 }
 0x152   :  { %2536 = vmatmul.mubr.bf16.gmra.mrb[28].mxu0 %v3599_v41  ;;  %2084 = vmatprep.mubr.bf16.mxu1 %v3600_v42 }
 0x153   :  { %2966 = vmatprep.mubr.msk.bf16.mxu0 %vm1684_vm0, %v3602_v43 }
 0x159   :  { %2085 = vmatmul.mubr.bf16.gmra.mrb[68].mxu1 %v3604_v44 }
 0x15a   :  { %2544 = vmatmul.mubr.bf16.gmra.mrb[32].mxu0 %v3605_v45  ;;  %2197 = vmatprep.mubr.bf16.mxu1 %v3608_v46 }
 0x15b   :  { %2967 = vmatprep.mubr.msk.bf16.mxu0 %vm1684_vm0, %v3609_v47 }
 0x161   :  { %2198 = vmatmul.mubr.bf16.vlgmr.msra.gmra.mrb[36].mxu1 %v3606_v48 }
 0x162   :  { %2552 = vmatmul.mubr.bf16.gmra.mrb[36].mxu0 %v3611_v49  ;;  %2205 = vmatprep.mubr.bf16.mxu1 %v3612_v50 }
 0x163   :  { %2968 = vmatprep.mubr.msk.bf16.mxu0 %vm1684_vm0, %v3614_v51 }
 0x169   :  { %2206 = vmatmul.mubr.bf16.gmra.mrb[40].mxu1 %v3616_v52 }
 0x16a   :  { %2560 = vmatmul.mubr.bf16.gmra.mrb[40].mxu0 %v3617_v53  ;;  %2213 = vmatprep.mubr.bf16.mxu1 %v3618_v54  ;;  %v4634_v54 = vld [vmem:[%s4821_s2] ss:$0 sm:$0xff] }
 0x16b   :  { %2969 = vmatprep.mubr.msk.bf16.mxu0 %vm1684_vm0, %v3620_v55 }
 0x171   :  { %2214 = vmatmul.mubr.bf16.gmra.mrb[44].mxu1 %v3622_v56 }
 0x172   :  { %2568 = vmatmul.mubr.bf16.gmra.mrb[44].mxu0 %v3623_v57  ;;  %2221 = vmatprep.mubr.bf16.mxu1 %v3624_v58 }
 0x173   :  { %2970 = vmatprep.mubr.msk.bf16.mxu0 %vm1684_vm0, %v3626_v59 }
 0x179   :  { %2222 = vmatmul.mubr.bf16.gmra.mrb[48].mxu1 %v3628_v60 }
 0x17a   :  { %2576 = vmatmul.mubr.bf16.gmra.mrb[48].mxu0 %v3629_v61  ;;  %2229 = vmatprep.mubr.bf16.mxu1 %v3630_v62 }
 0x17b   :  { %2971 = vmatprep.mubr.msk.bf16.mxu0 %vm1684_vm0, %v3632_v63 }
 0x181   :  { %2230 = vmatmul.mubr.bf16.gmra.mrb[52].mxu1 %v3634_v1 }
 0x182   :  { %2584 = vmatmul.mubr.bf16.gmra.mrb[52].mxu0 %v3635_v2  ;;  %2237 = vmatprep.mubr.bf16.mxu1 %v3636_v3 }
 0x183   :  { %2972 = vmatprep.mubr.msk.bf16.mxu0 %vm1684_vm0, %v3638_v4 }
 0x189   :  { %2238 = vmatmul.mubr.bf16.gmra.mrb[56].mxu1 %v3640_v5 }
 0x18a   :  { %2592 = vmatmul.mubr.bf16.gmra.mrb[56].mxu0 %v3641_v6  ;;  %2245 = vmatprep.mubr.bf16.mxu1 %v3642_v7 }
 0x18b   :  { %2973 = vmatprep.mubr.msk.bf16.mxu0 %vm1684_vm0, %v3644_v8 }
 0x191   :  { %2246 = vmatmul.mubr.bf16.gmra.mrb[60].mxu1 %v3646_v9 }
 0x192   :  { %2600 = vmatmul.mubr.bf16.gmra.mrb[60].mxu0 %v3647_v10  ;;  %2253 = vmatprep.mubr.bf16.mxu1 %v3648_v11 }
 0x193   :  { %2974 = vmatprep.mubr.msk.bf16.mxu0 %vm1684_vm0, %v3650_v0 }
 0x199   :  { %2254 = vmatmul.mubr.bf16.gmra.mrb[64].mxu1 %v3652_v12 }
 0x19a   :  { %2608 = vmatmul.mubr.bf16.gmra.mrb[64].mxu0 %v3653_v13  ;;  %2261 = vmatprep.mubr.bf16.mxu1 %v3654_v14 }
 0x19b   :  { %2975 = vmatprep.mubr.msk.bf16.mxu0 %vm1684_vm0, %v3656_v15 }
 0x1a1   :  { %2262 = vmatmul.mubr.bf16.gmra.mrb[68].mxu1 %v3658_v16 }
 0x1a2   :  { %2616 = vmatmul.mubr.bf16.gmra.mrb[68].mxu0 %v3659_v17 }
 0x1a4   :  { %v1950_v18 = vpop.f32.mrb[0].mxu1 }
 0x1a5   :  { %v1952_v19 = vpop.f32.mrb[1].mxu1  ;;  %v3026_v55 = vadd.f32 %v4634_v54, %v1950_v18 }
 0x1a6   :  { %v1953_v20 = vpop.f32.mrb[2].mxu1 }
 0x1a7   :  { %v1955_v21 = vpop.f32.mrb[3].mxu1  ;;  %v3028_v57 = vadd.f32 %v4634_v54, %v1953_v20 }
 0x1ac   :  { %v1958_v22 = vpop.f32.mrb[4].mxu1 }
 0x1ad   :  { %v1960_v23 = vpop.f32.mrb[5].mxu1  ;;  %v3030_v63 = vadd.f32 %v4634_v54, %v1958_v22 }
 0x1ae   :  { %v1961_v24 = vpop.f32.mrb[6].mxu1 }
 0x1af   :  { %v1963_v25 = vpop.f32.mrb[7].mxu1  ;;  %v3032_v2 = vadd.f32 %v4634_v54, %v1961_v24 }
 0x1b4   :  { %v1966_v26 = vpop.f32.mrb[8].mxu1 }
 0x1b5   :  { %v1968_v27 = vpop.f32.mrb[9].mxu1  ;;  %v3034_v8 = vadd.f32 %v4634_v54, %v1966_v26 }
 0x1b6   :  { %v1969_v28 = vpop.f32.mrb[10].mxu1 }
 0x1b7   :  { %v1971_v29 = vpop.f32.mrb[11].mxu1  ;;  %v3036_v10 = vadd.f32 %v4634_v54, %v1969_v28 }
 0x1bc   :  { %v1974_v30 = vpop.f32.mrb[12].mxu1 }
 0x1bd   :  { %v1976_v31 = vpop.f32.mrb[13].mxu1  ;;  %v3038_v15 = vadd.f32 %v4634_v54, %v1974_v30 }
 0x1be   :  { %v1977_v32 = vpop.f32.mrb[14].mxu1 }
 0x1bf   :  { %v1979_v33 = vpop.f32.mrb[15].mxu1  ;;  %v3040_v17 = vadd.f32 %v4634_v54, %v1977_v32 }
 0x1c4   :  { %v1982_v34 = vpop.f32.mrb[16].mxu1 }
 0x1c5   :  { %v1984_v35 = vpop.f32.mrb[17].mxu1  ;;  %v3042_v23 = vadd.f32 %v4634_v54, %v1982_v34 }
 0x1c6   :  { %v1985_v36 = vpop.f32.mrb[18].mxu1 }
 0x1c7   :  { %v1987_v37 = vpop.f32.mrb[19].mxu1  ;;  %v3044_v25 = vadd.f32 %v4634_v54, %v1985_v36 }
 0x1cc   :  { %v1990_v38 = vpop.f32.mrb[20].mxu1 }
 0x1cd   :  { %v1992_v39 = vpop.f32.mrb[21].mxu1  ;;  %v3046_v32 = vadd.f32 %v4634_v54, %v1990_v38 }
 0x1ce   :  { %v1993_v40 = vpop.f32.mrb[22].mxu1 }
 0x1cf   :  { %v1995_v41 = vpop.f32.mrb[23].mxu1  ;;  %v3048_v35 = vadd.f32 %v4634_v54, %v1993_v40 }
 0x1d4   :  { %v4619_v42 = vpop.f32.mrb[24].mxu1 }
 0x1d5   :  { %v2000_v43 = vpop.f32.mrb[25].mxu1 }
 0x1d6   :  { %v4621_v44 = vpop.f32.mrb[26].mxu1 }
 0x1d7   :  { %v2003_v45 = vpop.f32.mrb[27].mxu1  ;;  %v3052_v40 = vadd.f32 %v4634_v54, %v4621_v44 }
 0x1dc   :  { %v4623_v46 = vpop.f32.mrb[28].mxu1 }
 0x1dd   :  { %v2008_v47 = vpop.f32.mrb[29].mxu1 }
 0x1de   :  { %v4625_v48 = vpop.f32.mrb[30].mxu1  ;;  %v3050_v47 = vadd.f32 %v4634_v54, %v4619_v42  ;;  %v3054_v42 = vadd.f32 %v4634_v54, %v4623_v46 }
 0x1df   :  { %v2011_v49 = vpop.f32.mrb[31].mxu1  ;;  %v3056_v44 = vadd.f32 %v4634_v54, %v4625_v48 }
 0x1e4   :  { %v4627_v50 = vpop.f32.mrb[32].mxu1 }
 0x1e5   :  { %v2016_v51 = vpop.f32.mrb[33].mxu1  ;;  %v3058_v46 = vadd.f32 %v4634_v54, %v4627_v50 }
 0x1e6   :  { %v4629_v52 = vpop.f32.mrb[34].mxu1 }
 0x1e7   :  { %v2019_v53 = vpop.f32.mrb[35].mxu1  ;;  %v3060_v48 = vadd.f32 %v4634_v54, %v4629_v52 }
 0x1ed   :  { %v2481_v56 = vpop.f32.mrb[0].mxu0 }
 0x1ee   :  { %v4638_v58 = vadd.f32 %v3026_v55, %v2481_v56  ;;  %v2483_v59 = vpop.f32.mrb[1].mxu0 }
 0x1ef   :  { %v2484_v60 = vpop.f32.mrb[2].mxu0 }
 0x1f0   :  { %v4640_v61 = vadd.f32 %v3028_v57, %v2484_v60  ;;  %v2486_v62 = vpop.f32.mrb[3].mxu0 }
 0x1f5   :  { %v2489_v1 = vpop.f32.mrb[4].mxu0 }
 0x1f6   :  { %v4644_v3 = vadd.f32 %v3030_v63, %v2489_v1  ;;  %v2491_v4 = vpop.f32.mrb[5].mxu0 }
 0x1f7   :  { %v2492_v5 = vpop.f32.mrb[6].mxu0 }
 0x1f8   :  { %v4646_v6 = vadd.f32 %v3032_v2, %v2492_v5  ;;  %v2494_v7 = vpop.f32.mrb[7].mxu0 }
 0x1fd   :  { %v2497_v9 = vpop.f32.mrb[8].mxu0 }
 0x1fe   :  { %v4650_v11 = vadd.f32 %v3034_v8, %v2497_v9  ;;  %v2499_v0 = vpop.f32.mrb[9].mxu0 }
 0x1ff   :  { %v2500_v12 = vpop.f32.mrb[10].mxu0 }
 0x200   :  { %v4652_v13 = vadd.f32 %v3036_v10, %v2500_v12  ;;  %v2502_v14 = vpop.f32.mrb[11].mxu0 }
 0x205   :  { %v2505_v16 = vpop.f32.mrb[12].mxu0 }
 0x206   :  { %v4656_v18 = vadd.f32 %v3038_v15, %v2505_v16  ;;  %v2507_v19 = vpop.f32.mrb[13].mxu0 }
 0x207   :  { %v2508_v20 = vpop.f32.mrb[14].mxu0 }
 0x208   :  { %v4658_v21 = vadd.f32 %v3040_v17, %v2508_v20  ;;  %v2510_v22 = vpop.f32.mrb[15].mxu0 }
 0x20d   :  { %v2513_v24 = vpop.f32.mrb[16].mxu0 }
 0x20e   :  { %v4662_v26 = vadd.f32 %v3042_v23, %v2513_v24  ;;  %v2515_v27 = vpop.f32.mrb[17].mxu0 }
 0x20f   :  { %v2516_v28 = vpop.f32.mrb[18].mxu0 }
 0x210   :  { %v4664_v29 = vadd.f32 %v3044_v25, %v2516_v28  ;;  %v2518_v30 = vpop.f32.mrb[19].mxu0 }
 0x212   :  { %v2624_v31 = vmax.f32 %v4638_v58, %v4664_v29 }
 0x215   :  { %v2521_v33 = vpop.f32.mrb[20].mxu0 }
 0x216   :  { %v4670_v37 = vadd.f32 %v3046_v32, %v2521_v33  ;;  %v2523_v34 = vpop.f32.mrb[21].mxu0 }
 0x217   :  { %v2524_v39 = vpop.f32.mrb[22].mxu0 }
 0x218   :  { %v2625_v36 = vmax.f32 %v4640_v61, %v4670_v37  ;;  %v4674_v41 = vadd.f32 %v3048_v35, %v2524_v39  ;;  %v2526_v43 = vpop.f32.mrb[23].mxu0 }
 0x21a   :  { %v2626_v45 = vmax.f32 %v4644_v3, %v4674_v41 }
 0x21d   :  { %v2529_v38 = vpop.f32.mrb[24].mxu0 }
 0x21e   :  { %v4682_v49 = vadd.f32 %v3050_v47, %v2529_v38  ;;  %v2531_v51 = vpop.f32.mrb[25].mxu0 }
 0x21f   :  { %v2532_v53 = vpop.f32.mrb[26].mxu0 }
 0x220   :  { %v2627_v55 = vmax.f32 %v4646_v6, %v4682_v49  ;;  %v4686_v56 = vadd.f32 %v3052_v40, %v2532_v53  ;;  %v2534_v57 = vpop.f32.mrb[27].mxu0 }
 0x222   :  { %v2628_v59 = vmax.f32 %v4650_v11, %v4686_v56 }
 0x225   :  { %v2537_v60 = vpop.f32.mrb[28].mxu0 }
 0x226   :  { %v4694_v62 = vadd.f32 %v3054_v42, %v2537_v60  ;;  %v2539_v63 = vpop.f32.mrb[29].mxu0 }
 0x227   :  { %v2540_v1 = vpop.f32.mrb[30].mxu0 }
 0x228   :  { %v2629_v2 = vmax.f32 %v4652_v13, %v4694_v62  ;;  %v4698_v4 = vadd.f32 %v3056_v44, %v2540_v1  ;;  %v2542_v5 = vpop.f32.mrb[31].mxu0 }
 0x22a   :  { %v2630_v7 = vmax.f32 %v4656_v18, %v4698_v4 }
 0x22d   :  { %v2545_v8 = vpop.f32.mrb[32].mxu0 }
 0x22e   :  { %v4706_v9 = vadd.f32 %v3058_v46, %v2545_v8  ;;  %v2547_v10 = vpop.f32.mrb[33].mxu0 }
 0x22f   :  { %v2548_v0 = vpop.f32.mrb[34].mxu0 }
 0x230   :  { %v2631_v12 = vmax.f32 %v4658_v21, %v4706_v9  ;;  %v4710_v14 = vadd.f32 %v3060_v48, %v2548_v0  ;;  %v2550_v15 = vpop.f32.mrb[35].mxu0 }
 0x232   :  { %v2632_v16 = vmax.f32 %v4662_v26, %v4710_v14 }
 0x234   :  { %v2199_v17 = vpop.f32.mrb[36].mxu1 }
 0x235   :  { %v3062_v50 = vadd.f32 %v4634_v54, %v2199_v17  ;;  %v2553_v19 = vpop.f32.mrb[36].mxu0  ;;  %v2201_v20 = vpop.f32.mrb[37].mxu1 }
 0x236   :  { %v2555_v22 = vpop.f32.mrb[37].mxu0  ;;  %v2202_v52 = vpop.f32.mrb[38].mxu1 }
 0x237   :  { %v3063_v23 = vadd.f32 %v3062_v50, %v2553_v19  ;;  %v3064_v24 = vadd.f32 %v4634_v54, %v2202_v52  ;;  %v2556_v25 = vpop.f32.mrb[38].mxu0  ;;  %v2204_v27 = vpop.f32.mrb[39].mxu1 }
 0x238   :  { %v2558_v28 = vpop.f32.mrb[39].mxu0 }
 0x239   :  { %v4716_v30 = vadd.f32 %v3064_v24, %v2556_v25 }
 0x23c   :  { %v2207_v32 = vpop.f32.mrb[40].mxu1 }
 0x23d   :  { %v3066_v33 = vadd.f32 %v4634_v54, %v2207_v32  ;;  %v2561_v35 = vpop.f32.mrb[40].mxu0  ;;  %v2209_v34 = vpop.f32.mrb[41].mxu1 }
 0x23e   :  { %v2563_v39 = vpop.f32.mrb[41].mxu0  ;;  %v2210_v43 = vpop.f32.mrb[42].mxu1 }
 0x23f   :  { %v4719_v47 = vadd.f32 %v3066_v33, %v2561_v35  ;;  %v3068_v38 = vadd.f32 %v4634_v54, %v2210_v43  ;;  %v2564_v40 = vpop.f32.mrb[42].mxu0  ;;  %v2212_v51 = vpop.f32.mrb[43].mxu1 }
 0x240   :  { %v2566_v53 = vpop.f32.mrb[43].mxu0 }
 0x241   :  { %v4722_v57 = vadd.f32 %v3068_v38, %v2564_v40 }
 0x244   :  { %v2215_v42 = vpop.f32.mrb[44].mxu1 }
 0x245   :  { %v3070_v60 = vadd.f32 %v4634_v54, %v2215_v42  ;;  %v2569_v44 = vpop.f32.mrb[44].mxu0  ;;  %v2217_v63 = vpop.f32.mrb[45].mxu1 }
 0x246   :  { %v2571_v1 = vpop.f32.mrb[45].mxu0  ;;  %v2218_v5 = vpop.f32.mrb[46].mxu1 }
 0x247   :  { %v4725_v46 = vadd.f32 %v3070_v60, %v2569_v44  ;;  %v3072_v8 = vadd.f32 %v4634_v54, %v2218_v5  ;;  %v2572_v48 = vpop.f32.mrb[46].mxu0  ;;  %v2220_v10 = vpop.f32.mrb[47].mxu1 }
 0x248   :  { %v2574_v0 = vpop.f32.mrb[47].mxu0 }
 0x249   :  { %v4728_v15 = vadd.f32 %v3072_v8, %v2572_v48 }
 0x24c   :  { %v2223_v17 = vpop.f32.mrb[48].mxu1 }
 0x24d   :  { %v3074_v50 = vadd.f32 %v4634_v54, %v2223_v17  ;;  %v2577_v19 = vpop.f32.mrb[48].mxu0  ;;  %v2225_v20 = vpop.f32.mrb[49].mxu1 }
 0x24e   :  { %v2579_v22 = vpop.f32.mrb[49].mxu0  ;;  %v2226_v52 = vpop.f32.mrb[50].mxu1 }
 0x24f   :  { %v4731_v24 = vadd.f32 %v3074_v50, %v2577_v19  ;;  %v3076_v25 = vadd.f32 %v4634_v54, %v2226_v52  ;;  %v2580_v27 = vpop.f32.mrb[50].mxu0  ;;  %v2228_v28 = vpop.f32.mrb[51].mxu1 }
 0x250   :  { %v2582_v32 = vpop.f32.mrb[51].mxu0 }
 0x251   :  { %v4734_v33 = vadd.f32 %v3076_v25, %v2580_v27 }
 0x254   :  { %v2231_v35 = vpop.f32.mrb[52].mxu1 }
 0x255   :  { %v3078_v34 = vadd.f32 %v4634_v54, %v2231_v35  ;;  %v2585_v39 = vpop.f32.mrb[52].mxu0  ;;  %v2233_v43 = vpop.f32.mrb[53].mxu1 }
 0x256   :  { %v2587_v38 = vpop.f32.mrb[53].mxu0  ;;  %v2234_v40 = vpop.f32.mrb[54].mxu1 }
 0x257   :  { %v4737_v51 = vadd.f32 %v3078_v34, %v2585_v39  ;;  %v3080_v53 = vadd.f32 %v4634_v54, %v2234_v40  ;;  %v2588_v42 = vpop.f32.mrb[54].mxu0  ;;  %v2236_v60 = vpop.f32.mrb[55].mxu1 }
 0x258   :  { %v2590_v44 = vpop.f32.mrb[55].mxu0 }
 0x259   :  { %v3081_v63 = vadd.f32 %v3080_v53, %v2588_v42 }
 0x25b   :  { %v2633_v1 = vmax.f32 %v3063_v23, %v3081_v63 }
 0x25c   :  { %v2239_v5 = vpop.f32.mrb[56].mxu1 }
 0x25d   :  { %v2642_v8 = vmax.f32 %v2624_v31, %v2633_v1  ;;  %v3082_v48 = vadd.f32 %v4634_v54, %v2239_v5  ;;  %v2593_v10 = vpop.f32.mrb[56].mxu0  ;;  %v2241_v0 = vpop.f32.mrb[57].mxu1 }
 0x25e   :  { %v2595_v17 = vpop.f32.mrb[57].mxu0  ;;  %v2242_v50 = vpop.f32.mrb[58].mxu1 }
 0x25f   :  { %v2985_v19 = vpack.c.bf16 %v2642_v8, %v2642_v8  ;;  %v3083_v20 = vadd.f32 %v3082_v48, %v2593_v10  ;;  %v3084_v22 = vadd.f32 %v4634_v54, %v2242_v50  ;;  %v2596_v52 = vpop.f32.mrb[58].mxu0  ;;  %v2244_v25 = vpop.f32.mrb[59].mxu1 }
 0x260   :  { %v2598_v27 = vpop.f32.mrb[59].mxu0 }
 0x261   :  { %2689 = vst.msk [vmem:[%s4822_s3] sm:$0xf] %vm2688_vm1, %v2985_v19  ;;  %v2634_v58 = vmax.f32 %v4716_v30, %v3083_v20  ;;  %v3085_v29 = vadd.f32 %v3084_v22, %v2596_v52 }
 0x263   :  { %v2643_v31 = vmax.f32 %v2625_v36, %v2634_v58  ;;  %v2635_v23 = vmax.f32 %v4719_v47, %v3085_v29 }
 0x264   :  { %v2247_v28 = vpop.f32.mrb[60].mxu1 }
 0x265   :  { %v2986_v32 = vpack.c.bf16 %v2643_v31, %v2643_v31  ;;  %v2644_v35 = vmax.f32 %v2626_v45, %v2635_v23  ;;  %v3086_v34 = vadd.f32 %v4634_v54, %v2247_v28  ;;  %v2601_v39 = vpop.f32.mrb[60].mxu0  ;;  %v2249_v43 = vpop.f32.mrb[61].mxu1 }
 0x266   :  { %v2603_v38 = vpop.f32.mrb[61].mxu0  ;;  %v2250_v40 = vpop.f32.mrb[62].mxu1 }
 0x267   :  { %2690 = vst.msk [vmem:[%s4822_s3 + $0x4] sm:$0xf] %vm2688_vm1, %v2986_v32  ;;  %v2987_v61 = vpack.c.bf16 %v2644_v35, %v2644_v35  ;;  %v3087_v37 = vadd.f32 %v3086_v34, %v2601_v39  ;;  %v3088_v36 = vadd.f32 %v4634_v54, %v2250_v40  ;;  %v2604_v30 = vpop.f32.mrb[62].mxu0  ;;  %v2252_v47 = vpop.f32.mrb[63].mxu1 }
 0x268   :  { %v2606_v53 = vpop.f32.mrb[63].mxu0 }
 0x269   :  { %2691 = vst.msk [vmem:[%s4822_s3 + $0x8] sm:$0xf] %vm2688_vm1, %v2987_v61  ;;  %v2636_v3 = vmax.f32 %v4722_v57, %v3087_v37  ;;  %v3089_v41 = vadd.f32 %v3088_v36, %v2604_v30 }
 0x26b   :  { %v2645_v45 = vmax.f32 %v2627_v55, %v2636_v3  ;;  %v2637_v42 = vmax.f32 %v4725_v46, %v3089_v41 }
 0x26c   :  { %v2255_v60 = vpop.f32.mrb[64].mxu1 }
 0x26d   :  { %v2988_v44 = vpack.c.bf16 %v2645_v45, %v2645_v45  ;;  %v2646_v63 = vmax.f32 %v2628_v59, %v2637_v42  ;;  %v3090_v1 = vadd.f32 %v4634_v54, %v2255_v60  ;;  %v2609_v5 = vpop.f32.mrb[64].mxu0  ;;  %v2257_v8 = vpop.f32.mrb[65].mxu1 }
 0x26e   :  { %v2611_v48 = vpop.f32.mrb[65].mxu0  ;;  %v2258_v10 = vpop.f32.mrb[66].mxu1 }
 0x26f   :  { %2692 = vst.msk [vmem:[%s4822_s3 + $0xc] sm:$0xf] %vm2688_vm1, %v2988_v44  ;;  %v2989_v6 = vpack.c.bf16 %v2646_v63, %v2646_v63  ;;  %v3091_v49 = vadd.f32 %v3090_v1, %v2609_v5  ;;  %v3092_v55 = vadd.f32 %v4634_v54, %v2258_v10  ;;  %v2612_v57 = vpop.f32.mrb[66].mxu0  ;;  %v2260_v46 = vpop.f32.mrb[67].mxu1 }
 0x270   :  { %v2614_v0 = vpop.f32.mrb[67].mxu0 }
 0x271   :  { %2693 = vst.msk [vmem:[%s4822_s3 + $0x10] sm:$0xf] %vm2688_vm1, %v2989_v6  ;;  %v2638_v11 = vmax.f32 %v4728_v15, %v3091_v49  ;;  %v3093_v56 = vadd.f32 %v3092_v55, %v2612_v57 }
 0x273   :  { %v2647_v59 = vmax.f32 %v2629_v2, %v2638_v11  ;;  %v2639_v17 = vmax.f32 %v4731_v24, %v3093_v56 }
 0x274   :  { %v2263_v50 = vpop.f32.mrb[68].mxu1 }
 0x275   :  { %v2990_v19 = vpack.c.bf16 %v2647_v59, %v2647_v59  ;;  %v2648_v20 = vmax.f32 %v2630_v7, %v2639_v17  ;;  %v3094_v22 = vadd.f32 %v4634_v54, %v2263_v50  ;;  %v2617_v52 = vpop.f32.mrb[68].mxu0  ;;  %v2265_v25 = vpop.f32.mrb[69].mxu1 }
 0x276   :  { %v2619_v27 = vpop.f32.mrb[69].mxu0  ;;  %v2266_v58 = vpop.f32.mrb[70].mxu1 }
 0x277   :  { %2694 = vst.msk [vmem:[%s4822_s3 + $0x14] sm:$0xf] %vm2688_vm1, %v2990_v19  ;;  %v2991_v13 = vpack.c.bf16 %v2648_v20, %v2648_v20  ;;  %v3095_v62 = vadd.f32 %v3094_v22, %v2617_v52  ;;  %v3096_v2 = vadd.f32 %v4634_v54, %v2266_v58  ;;  %v2620_v15 = vpop.f32.mrb[70].mxu0  ;;  %v2268_v24 = vpop.f32.mrb[71].mxu1 }
 0x278   :  { %v2622_v29 = vpop.f32.mrb[71].mxu0 }
 0x279   :  { %2695 = vst.msk [vmem:[%s4822_s3 + $0x18] sm:$0xf] %vm2688_vm1, %v2991_v13  ;;  %v2640_v18 = vmax.f32 %v4734_v33, %v3095_v62  ;;  %v3097_v4 = vadd.f32 %v3096_v2, %v2620_v15 }
 0x27b   :  { %v2649_v7 = vmax.f32 %v2631_v12, %v2640_v18  ;;  %v2641_v31 = vmax.f32 %v4737_v51, %v3097_v4 }
 0x27d   :  { %v2992_v23 = vpack.c.bf16 %v2649_v7, %v2649_v7  ;;  %v2650_v54 = vmax.f32 %v2632_v16, %v2641_v31 }
 0x27f   :  { %2696 = vst.msk [vmem:[%s4822_s3 + $0x1c] sm:$0xf] %vm2688_vm1, %v2992_v23  ;;  %v2993_v28 = vpack.c.bf16 %v2650_v54, %v2650_v54 }
 0x281   :  { %2697 = vst.msk [vmem:[%s4822_s3 + $0x20] sm:$0xf] %vm2688_vm1, %v2993_v28 }

// kernel: zipper_forward.4
= control target key start
LH: loop header
LB: loop body
LE: loop exit
PB: predicated region body
PF: predicated region fallthrough
CT: control target
= control target key end

     0   :  { %v6579_v1 = vmov 0   ;;  %vm80_vm0 = vcmask 130048   ;;  %s6571_s1 = inlined_call_operand.vmem [shape: bf16[16,512], index: 1, kind: input, shape index: {}]   ;;  %s6572_s0 = inlined_call_operand.vmem [shape: bf16[16,16], index: 0, kind: input, shape index: {}]   ;;  %s6573_s2 = inlined_call_operand.vmem [shape: bf16[128,512], index: 2, kind: input, shape index: {}]   ;;  %s6574_s5 = inlined_call_operand.vmem [shape: bf16[128,512], index: 5, kind: input, shape index: {}]   ;;  %s6575_s4 = inlined_call_operand.vmem [shape: bf16[128,512], index: 4, kind: input, shape index: {}]   ;;  %s6576_s3 = inlined_call_operand.vmem [shape: f32[1,512], index: 3, kind: input, shape index: {}]   ;;  %s6577_s6 = inlined_call_operand.vmem [shape: f32[1,512], index: 6, kind: input, shape index: {}]   ;;  %s6578_s7 = inlined_call_operand.vmem [shape: f32[2,128], index: 7, kind: output, shape index: {}]  }
   0x1   :  { %v3467_v0 = vld [vmem:[%s6571_s1 + $0x4] ss:$16 sps:$4 sm:$0xff]   ;;  %116 = vmatprep.mubr.bf16.mxu0 %v6579_v1  ;;  %159 = vmatprep.mubr.bf16.mxu1 %v6579_v1  ;;  %v3469_v2 = vld [vmem:[%s6571_s1 + $0xc] ss:$16 sps:$4 sm:$0xff]   ;;  %v3471_v3 = vld [vmem:[%s6571_s1] ss:$16 sps:$4 sm:$0xff]  }
   0x2   :  { %84 = vmatprep.subr.bf16.mxu0 %v3467_v0  ;;  %v3472_v4 = vld [vmem:[%s6571_s1 + $0x8] ss:$16 sps:$4 sm:$0xff]   ;;  %127 = vmatprep.subr.bf16.mxu1 %v3469_v2  ;;  %v3473_v5 = vld [vmem:[%s6572_s0] sm:$0xff]   ;;  %v4132_v7 = vld [vmem:[%s6573_s2 + $0xc] ss:$16 sps:$4 sm:$0xff]  }
   0x3   :  { %85 = vmatpush1.bf16.msra.mxu0 %v3471_v3  ;;  %128 = vmatpush1.bf16.msra.mxu1 %v3472_v4  ;;  %v4127_v6 = vld [vmem:[%s6573_s2 + $0x4] ss:$16 sps:$4 sm:$0xff]   ;;  %v4137_v8 = vld [vmem:[%s6573_s2] ss:$16 sps:$4 sm:$0xff]   ;;  %v4143_v9 = vld [vmem:[%s6573_s2 + $0x8] ss:$16 sps:$4 sm:$0xff]  }
   0x4   :  { %362 = vmatprep.subr.bf16.mxu0 %v4127_v6  ;;  %403 = vmatprep.subr.bf16.mxu1 %v4132_v7  ;;  %v4149_v10 = vld [vmem:[%s6573_s2 + $0x24] ss:$16 sps:$4 sm:$0xff]   ;;  %v4155_v11 = vld [vmem:[%s6573_s2 + $0x2c] ss:$16 sps:$4 sm:$0xff]   ;;  %v4160_v12 = vld [vmem:[%s6573_s2 + $0x20] ss:$16 sps:$4 sm:$0xff]  }
   0x5   :  { %v4165_v13 = vld [vmem:[%s6573_s2 + $0x28] ss:$16 sps:$4 sm:$0xff]   ;;  %v4172_v14 = vld [vmem:[%s6573_s2 + $0x44] ss:$16 sps:$4 sm:$0xff]   ;;  %v4178_v15 = vld [vmem:[%s6573_s2 + $0x4c] ss:$16 sps:$4 sm:$0xff]  }
   0x6   :  { %3320 = vmatmul.mubr.msk.bf16.vlgmr.msra.gmra.mrb[0].mxu0 %vm80_vm0, %v3473_v5  ;;  %3321 = vmatmul.mubr.msk.bf16.vlgmr.msra.gmra.mrb[0].mxu1 %vm80_vm0, %v3473_v5  ;;  %v4186_v16 = vld [vmem:[%s6573_s2 + $0x40] ss:$16 sps:$4 sm:$0xff]   ;;  %v4193_v17 = vld [vmem:[%s6573_s2 + $0x48] ss:$16 sps:$4 sm:$0xff]   ;;  %v4198_v18 = vld [vmem:[%s6573_s2 + $0x64] ss:$16 sps:$4 sm:$0xff]  }
   0x7   :  { %363 = vmatpush1.bf16.msra.mxu0 %v4137_v8  ;;  %404 = vmatpush1.bf16.msra.mxu1 %v4143_v9  ;;  %v4204_v19 = vld [vmem:[%s6573_s2 + $0x6c] ss:$16 sps:$4 sm:$0xff]   ;;  %v4210_v20 = vld [vmem:[%s6573_s2 + $0x60] ss:$16 sps:$4 sm:$0xff]   ;;  %v4215_v21 = vld [vmem:[%s6573_s2 + $0x68] ss:$16 sps:$4 sm:$0xff]  }
   0x8   :  { %364 = vmatprep.subr.bf16.mxu0 %v4149_v10  ;;  %405 = vmatprep.subr.bf16.mxu1 %v4155_v11  ;;  %v4222_v22 = vld [vmem:[%s6573_s2 + $0x84] ss:$16 sps:$4 sm:$0xff]   ;;  %v4228_v23 = vld [vmem:[%s6573_s2 + $0x8c] ss:$16 sps:$4 sm:$0xff]   ;;  %v4234_v24 = vld [vmem:[%s6573_s2 + $0x80] ss:$16 sps:$4 sm:$0xff]  }
   0x9   :  { %394 = vmatprep.mubr.bf16.mxu0 %v6579_v1  ;;  %435 = vmatprep.mubr.bf16.mxu1 %v6579_v1  ;;  %v4241_v25 = vld [vmem:[%s6573_s2 + $0x88] ss:$16 sps:$4 sm:$0xff]   ;;  %v4246_v26 = vld [vmem:[%s6573_s2 + $0xa4] ss:$16 sps:$4 sm:$0xff]   ;;  %v4252_v27 = vld [vmem:[%s6573_s2 + $0xac] ss:$16 sps:$4 sm:$0xff]  }
   0xa   :  { %v4258_v28 = vld [vmem:[%s6573_s2 + $0xa0] ss:$16 sps:$4 sm:$0xff]   ;;  %v4265_v29 = vld [vmem:[%s6573_s2 + $0xa8] ss:$16 sps:$4 sm:$0xff]   ;;  %v4270_v30 = vld [vmem:[%s6573_s2 + $0xc4] ss:$16 sps:$4 sm:$0xff]  }
   0xb   :  { %365 = vmatpush1.bf16.msra.mxu0 %v4160_v12  ;;  %406 = vmatpush1.bf16.msra.mxu1 %v4165_v13  ;;  %v4276_v31 = vld [vmem:[%s6573_s2 + $0xcc] ss:$16 sps:$4 sm:$0xff]   ;;  %v4282_v32 = vld [vmem:[%s6573_s2 + $0xc0] ss:$16 sps:$4 sm:$0xff]   ;;  %v4289_v33 = vld [vmem:[%s6573_s2 + $0xc8] ss:$16 sps:$4 sm:$0xff]  }
   0xc   :  { %366 = vmatprep.subr.bf16.mxu0 %v4172_v14  ;;  %407 = vmatprep.subr.bf16.mxu1 %v4178_v15  ;;  %v4294_v34 = vld [vmem:[%s6573_s2 + $0xe4] ss:$16 sps:$4 sm:$0xff]   ;;  %v4300_v35 = vld [vmem:[%s6573_s2 + $0xec] ss:$16 sps:$4 sm:$0xff]   ;;  %v4306_v36 = vld [vmem:[%s6573_s2 + $0xe0] ss:$16 sps:$4 sm:$0xff]  }
   0xd   :  { %v4313_v37 = vld [vmem:[%s6573_s2 + $0xe8] ss:$16 sps:$4 sm:$0xff]   ;;  %v4325_v38 = vld [vmem:[%s6574_s5 + $0x4] ss:$16 sps:$4 sm:$0xff]   ;;  %v4330_v39 = vld [vmem:[%s6574_s5] ss:$16 sps:$4 sm:$0xff]  }
   0xe   :  { %v4336_v40 = vld [vmem:[%s6574_s5 + $0xc] ss:$16 sps:$4 sm:$0xff]   ;;  %v4341_v41 = vld [vmem:[%s6574_s5 + $0x8] ss:$16 sps:$4 sm:$0xff]   ;;  %v4347_v42 = vld [vmem:[%s6574_s5 + $0x24] ss:$16 sps:$4 sm:$0xff]  }
   0xf   :  { %367 = vmatpush1.bf16.msra.mxu0 %v4186_v16  ;;  %408 = vmatpush1.bf16.msra.mxu1 %v4193_v17  ;;  %v4352_v43 = vld [vmem:[%s6574_s5 + $0x20] ss:$16 sps:$4 sm:$0xff]   ;;  %v4358_v44 = vld [vmem:[%s6574_s5 + $0x2c] ss:$16 sps:$4 sm:$0xff]   ;;  %v4365_v45 = vld [vmem:[%s6574_s5 + $0x28] ss:$16 sps:$4 sm:$0xff]  }
  0x10   :  { %368 = vmatprep.subr.bf16.mxu0 %v4198_v18  ;;  %409 = vmatprep.subr.bf16.mxu1 %v4204_v19  ;;  %v4371_v46 = vld [vmem:[%s6574_s5 + $0x44] ss:$16 sps:$4 sm:$0xff]   ;;  %v4377_v47 = vld [vmem:[%s6574_s5 + $0x40] ss:$16 sps:$4 sm:$0xff]   ;;  %v4382_v48 = vld [vmem:[%s6574_s5 + $0x4c] ss:$16 sps:$4 sm:$0xff]  }
  0x11   :  { %6915 = vst [vmem:[#allocation2_spill] sm:$0xff] %v4377_v47  ;;  %6916 = vst [vmem:[#allocation3_spill] sm:$0xff] %v4382_v48  ;;  %v4388_v49 = vld [vmem:[%s6574_s5 + $0x64] ss:$16 sps:$4 sm:$0xff]   ;;  %v4394_v50 = vld [vmem:[%s6574_s5 + $0x48] ss:$16 sps:$4 sm:$0xff]  }
  0x12   :  { %6917 = vst [vmem:[#allocation4_spill] sm:$0xff] %v4388_v49  ;;  %6918 = vst [vmem:[#allocation5_spill] sm:$0xff] %v4394_v50  ;;  %v4400_v51 = vld [vmem:[%s6574_s5 + $0x60] ss:$16 sps:$4 sm:$0xff]   ;;  %v4405_v52 = vld [vmem:[%s6574_s5 + $0x6c] ss:$16 sps:$4 sm:$0xff]  }
  0x13   :  { %369 = vmatpush1.bf16.msra.mxu0 %v4210_v20  ;;  %410 = vmatpush1.bf16.msra.mxu1 %v4215_v21  ;;  %6919 = vst [vmem:[#allocation6_spill] sm:$0xff] %v4400_v51  ;;  %6920 = vst [vmem:[#allocation7_spill] sm:$0xff] %v4405_v52  ;;  %v4411_v53 = vld [vmem:[%s6574_s5 + $0x68] ss:$16 sps:$4 sm:$0xff]   ;;  %v4416_v54 = vld [vmem:[%s6574_s5 + $0x84] ss:$16 sps:$4 sm:$0xff]  }
  0x14   :  { %370 = vmatprep.subr.bf16.mxu0 %v4222_v22  ;;  %411 = vmatprep.subr.bf16.mxu1 %v4228_v23  ;;  %6921 = vst [vmem:[#allocation8_spill] sm:$0xff] %v4411_v53  ;;  %6922 = vst [vmem:[#allocation9_spill] sm:$0xff] %v4416_v54  ;;  %v4423_v55 = vld [vmem:[%s6574_s5 + $0x80] ss:$16 sps:$4 sm:$0xff]   ;;  %v4433_v56 = vld [vmem:[%s6574_s5 + $0x8c] ss:$16 sps:$4 sm:$0xff]  }
  0x15   :  { %6923 = vst [vmem:[#allocation10_spill] sm:$0xff] %v4423_v55  ;;  %6924 = vst [vmem:[#allocation11_spill] sm:$0xff] %v4433_v56  ;;  %v4438_v57 = vld [vmem:[%s6574_s5 + $0x88] ss:$16 sps:$4 sm:$0xff]   ;;  %v4444_v58 = vld [vmem:[%s6574_s5 + $0xa4] ss:$16 sps:$4 sm:$0xff]  }
  0x16   :  { %6925 = vst [vmem:[#allocation12_spill] sm:$0xff] %v4438_v57  ;;  %6926 = vst [vmem:[#allocation13_spill] sm:$0xff] %v4444_v58  ;;  %v4450_v59 = vld [vmem:[%s6574_s5 + $0xa0] ss:$16 sps:$4 sm:$0xff]   ;;  %v4456_v60 = vld [vmem:[%s6574_s5 + $0xac] ss:$16 sps:$4 sm:$0xff]  }
  0x17   :  { %371 = vmatpush1.bf16.msra.mxu0 %v4234_v24  ;;  %412 = vmatpush1.bf16.msra.mxu1 %v4241_v25  ;;  %6927 = vst [vmem:[#allocation14_spill] sm:$0xff] %v4450_v59  ;;  %6928 = vst [vmem:[#allocation15_spill] sm:$0xff] %v4456_v60  ;;  %v4462_v61 = vld [vmem:[%s6574_s5 + $0xa8] ss:$16 sps:$4 sm:$0xff]   ;;  %v4468_v62 = vld [vmem:[%s6574_s5 + $0xc4] ss:$16 sps:$4 sm:$0xff]  }
  0x18   :  { %372 = vmatprep.subr.bf16.mxu0 %v4246_v26  ;;  %413 = vmatprep.subr.bf16.mxu1 %v4252_v27  ;;  %6929 = vst [vmem:[#allocation16_spill] sm:$0xff] %v4462_v61  ;;  %6930 = vst [vmem:[#allocation17_spill] sm:$0xff] %v4468_v62  ;;  %v4474_v63 = vld [vmem:[%s6574_s5 + $0xc0] ss:$16 sps:$4 sm:$0xff]   ;;  %v4480_v0 = vld [vmem:[%s6574_s5 + $0xcc] ss:$16 sps:$4 sm:$0xff]  }
  0x19   :  { %6931 = vst [vmem:[#allocation18_spill] sm:$0xff] %v4474_v63  ;;  %6932 = vst [vmem:[#allocation19_spill] sm:$0xff] %v4480_v0  ;;  %v4486_v2 = vld [vmem:[%s6574_s5 + $0xc8] ss:$16 sps:$4 sm:$0xff]   ;;  %v4492_v3 = vld [vmem:[%s6574_s5 + $0xe4] ss:$16 sps:$4 sm:$0xff]  }
  0x1a   :  { %6933 = vst [vmem:[#allocation20_spill] sm:$0xff] %v4486_v2  ;;  %6934 = vst [vmem:[#allocation21_spill] sm:$0xff] %v4492_v3  ;;  %v4498_v4 = vld [vmem:[%s6574_s5 + $0xe0] ss:$16 sps:$4 sm:$0xff]   ;;  %v4504_v5 = vld [vmem:[%s6574_s5 + $0xec] ss:$16 sps:$4 sm:$0xff]  }
  0x1b   :  { %373 = vmatpush1.bf16.msra.mxu0 %v4258_v28  ;;  %414 = vmatpush1.bf16.msra.mxu1 %v4265_v29  ;;  %6935 = vst [vmem:[#allocation22_spill] sm:$0xff] %v4498_v4  ;;  %6936 = vst [vmem:[#allocation23_spill] sm:$0xff] %v4504_v5 }
  0x1c   :  { %374 = vmatprep.subr.bf16.mxu0 %v4270_v30  ;;  %415 = vmatprep.subr.bf16.mxu1 %v4276_v31 }
  0x1f   :  { %375 = vmatpush1.bf16.msra.mxu0 %v4282_v32  ;;  %416 = vmatpush1.bf16.msra.mxu1 %v4289_v33 }
  0x20   :  { %376 = vmatprep.subr.bf16.mxu0 %v4294_v34  ;;  %417 = vmatprep.subr.bf16.mxu1 %v4300_v35 }
  0x23   :  { %377 = vmatpush1.bf16.msra.mxu0 %v4306_v36  ;;  %418 = vmatpush1.bf16.msra.mxu1 %v4313_v37 }
  0x24   :  { %697 = vmatprep.subr.bf16.mxu0 %v4325_v38  ;;  %738 = vmatprep.subr.bf16.mxu1 %v4336_v40 }
  0x26   :  { %395 = vmatmul.mubr.bf16.vlgmr.msra.gmra.mrb[4].mxu0 %v6579_v1  ;;  %436 = vmatmul.mubr.bf16.vlgmr.msra.gmra.mrb[4].mxu1 %v6579_v1 }
  0x27   :  { %729 = vmatprep.mubr.bf16.mxu0 %v6579_v1  ;;  %770 = vmatprep.mubr.bf16.mxu1 %v6579_v1  ;;  %v4510_v1 = vld [vmem:[%s6574_s5 + $0xe8] ss:$16 sps:$4 sm:$0xff]  }
  0x28   :  { %698 = vmatpush1.bf16.msra.mxu0 %v4330_v39  ;;  %739 = vmatpush1.bf16.msra.mxu1 %v4341_v41  ;;  %6937 = vst [vmem:[#allocation24_spill] sm:$0xff] %v4510_v1 }
  0x29   :  { %699 = vmatprep.subr.bf16.mxu0 %v4347_v42  ;;  %740 = vmatprep.subr.bf16.mxu1 %v4358_v44 }
  0x2c   :  { %700 = vmatpush1.bf16.msra.mxu0 %v4352_v43  ;;  %741 = vmatpush1.bf16.msra.mxu1 %v4365_v45 }
  0x2d   :  { %701 = vmatprep.subr.bf16.mxu0 %v4371_v46  ;;  %742 = vmatprep.subr.bf16.mxu1 %v4382_v48 }
  0x30   :  { %702 = vmatpush1.bf16.msra.mxu0 %v4377_v47  ;;  %743 = vmatpush1.bf16.msra.mxu1 %v4394_v50 }
  0x31   :  { %703 = vmatprep.subr.bf16.mxu0 %v4388_v49  ;;  %744 = vmatprep.subr.bf16.mxu1 %v4405_v52 }
  0x34   :  { %704 = vmatpush1.bf16.msra.mxu0 %v4400_v51  ;;  %745 = vmatpush1.bf16.msra.mxu1 %v4411_v53 }
  0x35   :  { %705 = vmatprep.subr.bf16.mxu0 %v4416_v54  ;;  %746 = vmatprep.subr.bf16.mxu1 %v4433_v56 }
  0x38   :  { %706 = vmatpush1.bf16.msra.mxu0 %v4423_v55  ;;  %747 = vmatpush1.bf16.msra.mxu1 %v4438_v57 }
  0x39   :  { %707 = vmatprep.subr.bf16.mxu0 %v4444_v58  ;;  %748 = vmatprep.subr.bf16.mxu1 %v4456_v60 }
  0x3c   :  { %708 = vmatpush1.bf16.msra.mxu0 %v4450_v59  ;;  %749 = vmatpush1.bf16.msra.mxu1 %v4462_v61  ;;  %v33_v61 = vld [vmem:[%s6576_s3] sm:$0xf] }
  0x3d   :  { %709 = vmatprep.subr.bf16.mxu0 %v4468_v62  ;;  %750 = vmatprep.subr.bf16.mxu1 %v4480_v0  ;;  %v4574_v0 = vld [vmem:[%s6575_s4 + $0x4c] ss:$16 sps:$4 sm:$0xff]  }
  0x3e   :  { %6948 = vst [vmem:[#allocation34_spill] sm:$0xff] %v4574_v0 }
  0x40   :  { %710 = vmatpush1.bf16.msra.mxu0 %v4474_v63  ;;  %751 = vmatpush1.bf16.msra.mxu1 %v4486_v2  ;;  %v6938_v2 = vmov 0   ;;  %v4550_v63 = vld [vmem:[%s6575_s4 + $0x2c] ss:$16 sps:$4 sm:$0xff]  }
  0x41   :  { %711 = vmatprep.subr.bf16.mxu0 %v4492_v3  ;;  %752 = vmatprep.subr.bf16.mxu1 %v4504_v5  ;;  %v4518_v3 = vld [vmem:[%s6575_s4 + $0x4] ss:$16 sps:$4 sm:$0xff]   ;;  %v4536_v5 = vld [vmem:[%s6575_s4 + $0x8] ss:$16 sps:$4 sm:$0xff]   ;;  %6944 = vst [vmem:[#allocation30_spill] sm:$0xff] %v4550_v63 }
  0x42   :  { %6939 = vst [vmem:[#allocation25_spill] sm:$0xff] %v4518_v3  ;;  %6942 = vst [vmem:[#allocation28_spill] sm:$0xff] %v4536_v5 }
  0x44   :  { %712 = vmatpush1.bf16.msra.mxu0 %v4498_v4  ;;  %753 = vmatpush1.bf16.msra.mxu1 %v4510_v1  ;;  %v4523_v4 = vld [vmem:[%s6575_s4 + $0xc] ss:$16 sps:$4 sm:$0xff]   ;;  %v4531_v1 = vld [vmem:[%s6575_s4] ss:$16 sps:$4 sm:$0xff]  }
  0x45   :  { %6940 = vst [vmem:[#allocation26_spill] sm:$0xff] %v4523_v4  ;;  %939 = vmatprep.subr.bf16.mxu0 %v4518_v3  ;;  %6941 = vst [vmem:[#allocation27_spill] sm:$0xff] %v4531_v1  ;;  %980 = vmatprep.subr.bf16.mxu1 %v4523_v4  ;;  %v4545_v3 = vld [vmem:[%s6575_s4 + $0x24] ss:$16 sps:$4 sm:$0xff]   ;;  %v4555_v4 = vld [vmem:[%s6575_s4 + $0x20] ss:$16 sps:$4 sm:$0xff]  }
  0x46   :  { %6943 = vst [vmem:[#allocation29_spill] sm:$0xff] %v4545_v3  ;;  %6945 = vst [vmem:[#allocation31_spill] sm:$0xff] %v4555_v4 }
  0x47   :  { %730 = vmatmul.mubr.bf16.vlgmr.msra.gmra.mrb[8].mxu0 %v6938_v2  ;;  %771 = vmatmul.mubr.bf16.vlgmr.msra.gmra.mrb[8].mxu1 %v6938_v2 }
  0x48   :  { %971 = vmatprep.mubr.bf16.mxu0 %v6938_v2  ;;  %1012 = vmatprep.mubr.bf16.mxu1 %v6938_v2 }
  0x49   :  { %940 = vmatpush1.bf16.msra.mxu0 %v4531_v1  ;;  %981 = vmatpush1.bf16.msra.mxu1 %v4536_v5  ;;  %v4560_v1 = vld [vmem:[%s6575_s4 + $0x28] ss:$16 sps:$4 sm:$0xff]   ;;  %v4569_v5 = vld [vmem:[%s6575_s4 + $0x44] ss:$16 sps:$4 sm:$0xff]  }
  0x4a   :  { %6946 = vst [vmem:[#allocation32_spill] sm:$0xff] %v4560_v1  ;;  %941 = vmatprep.subr.bf16.mxu0 %v4545_v3  ;;  %982 = vmatprep.subr.bf16.mxu1 %v4550_v63  ;;  %6947 = vst [vmem:[#allocation33_spill] sm:$0xff] %v4569_v5  ;;  %v4579_v3 = vld [vmem:[%s6575_s4 + $0x40] ss:$16 sps:$4 sm:$0xff]   ;;  %v4598_v63 = vld [vmem:[%s6575_s4 + $0x6c] ss:$16 sps:$4 sm:$0xff]  }
  0x4b   :  { %6949 = vst [vmem:[#allocation35_spill] sm:$0xff] %v4579_v3  ;;  %6952 = vst [vmem:[#allocation38_spill] sm:$0xff] %v4598_v63 }
  0x4d   :  { %942 = vmatpush1.bf16.msra.mxu0 %v4555_v4  ;;  %983 = vmatpush1.bf16.msra.mxu1 %v4560_v1  ;;  %v4584_v4 = vld [vmem:[%s6575_s4 + $0x48] ss:$16 sps:$4 sm:$0xff]   ;;  %v4593_v1 = vld [vmem:[%s6575_s4 + $0x64] ss:$16 sps:$4 sm:$0xff]  }
  0x4e   :  { %6950 = vst [vmem:[#allocation36_spill] sm:$0xff] %v4584_v4  ;;  %943 = vmatprep.subr.bf16.mxu0 %v4569_v5  ;;  %984 = vmatprep.subr.bf16.mxu1 %v4574_v0  ;;  %6951 = vst [vmem:[#allocation37_spill] sm:$0xff] %v4593_v1  ;;  %v4603_v5 = vld [vmem:[%s6575_s4 + $0x60] ss:$16 sps:$4 sm:$0xff]   ;;  %v4622_v0 = vld [vmem:[%s6575_s4 + $0x8c] ss:$16 sps:$4 sm:$0xff]  }
  0x4f   :  { %6953 = vst [vmem:[#allocation39_spill] sm:$0xff] %v4603_v5  ;;  %6956 = vst [vmem:[#allocation42_spill] sm:$0xff] %v4622_v0 }
  0x51   :  { %944 = vmatpush1.bf16.msra.mxu0 %v4579_v3  ;;  %985 = vmatpush1.bf16.msra.mxu1 %v4584_v4  ;;  %v4608_v3 = vld [vmem:[%s6575_s4 + $0x68] ss:$16 sps:$4 sm:$0xff]   ;;  %v4617_v4 = vld [vmem:[%s6575_s4 + $0x84] ss:$16 sps:$4 sm:$0xff]  }
  0x52   :  { %6954 = vst [vmem:[#allocation40_spill] sm:$0xff] %v4608_v3  ;;  %945 = vmatprep.subr.bf16.mxu0 %v4593_v1  ;;  %986 = vmatprep.subr.bf16.mxu1 %v4598_v63  ;;  %6955 = vst [vmem:[#allocation41_spill] sm:$0xff] %v4617_v4  ;;  %v4627_v1 = vld [vmem:[%s6575_s4 + $0x80] ss:$16 sps:$4 sm:$0xff]   ;;  %v4644_v63 = vld [vmem:[%s6575_s4 + $0xac] ss:$16 sps:$4 sm:$0xff]  }
  0x53   :  { %6957 = vst [vmem:[#allocation43_spill] sm:$0xff] %v4627_v1  ;;  %6960 = vst [vmem:[#allocation46_spill] sm:$0xff] %v4644_v63 }
  0x55   :  { %946 = vmatpush1.bf16.msra.mxu0 %v4603_v5  ;;  %987 = vmatpush1.bf16.msra.mxu1 %v4608_v3  ;;  %v4632_v5 = vld [vmem:[%s6575_s4 + $0x88] ss:$16 sps:$4 sm:$0xff]   ;;  %v4639_v3 = vld [vmem:[%s6575_s4 + $0xa4] ss:$16 sps:$4 sm:$0xff]  }
  0x56   :  { %6958 = vst [vmem:[#allocation44_spill] sm:$0xff] %v4632_v5  ;;  %947 = vmatprep.subr.bf16.mxu0 %v4617_v4  ;;  %988 = vmatprep.subr.bf16.mxu1 %v4622_v0  ;;  %6959 = vst [vmem:[#allocation45_spill] sm:$0xff] %v4639_v3  ;;  %v4651_v4 = vld [vmem:[%s6575_s4 + $0xa0] ss:$16 sps:$4 sm:$0xff]   ;;  %v4656_v0 = vld [vmem:[%s6575_s4 + $0xa8] ss:$16 sps:$4 sm:$0xff]  }
  0x57   :  { %6961 = vst [vmem:[#allocation47_spill] sm:$0xff] %v4651_v4  ;;  %6962 = vst [vmem:[#allocation48_spill] sm:$0xff] %v4656_v0 }
  0x59   :  { %948 = vmatpush1.bf16.msra.mxu0 %v4627_v1  ;;  %989 = vmatpush1.bf16.msra.mxu1 %v4632_v5  ;;  %v4663_v1 = vld [vmem:[%s6575_s4 + $0xc4] ss:$16 sps:$4 sm:$0xff]   ;;  %v4668_v5 = vld [vmem:[%s6575_s4 + $0xcc] ss:$16 sps:$4 sm:$0xff]  }
  0x5a   :  { %949 = vmatprep.subr.bf16.mxu0 %v4639_v3  ;;  %990 = vmatprep.subr.bf16.mxu1 %v4644_v63  ;;  %6963 = vst [vmem:[#allocation49_spill] sm:$0xff] %v4663_v1  ;;  %6964 = vst [vmem:[#allocation50_spill] sm:$0xff] %v4668_v5  ;;  %v4675_v3 = vld [vmem:[%s6575_s4 + $0xc0] ss:$16 sps:$4 sm:$0xff]   ;;  %v4680_v63 = vld [vmem:[%s6575_s4 + $0xc8] ss:$16 sps:$4 sm:$0xff]  }
  0x5b   :  { %6965 = vst [vmem:[#allocation51_spill] sm:$0xff] %v4675_v3  ;;  %6966 = vst [vmem:[#allocation52_spill] sm:$0xff] %v4680_v63 }
  0x5d   :  { %950 = vmatpush1.bf16.msra.mxu0 %v4651_v4  ;;  %991 = vmatpush1.bf16.msra.mxu1 %v4656_v0  ;;  %v4687_v4 = vld [vmem:[%s6575_s4 + $0xe4] ss:$16 sps:$4 sm:$0xff]   ;;  %v4692_v0 = vld [vmem:[%s6575_s4 + $0xec] ss:$16 sps:$4 sm:$0xff]  }
  0x5e   :  { %951 = vmatprep.subr.bf16.mxu0 %v4663_v1  ;;  %992 = vmatprep.subr.bf16.mxu1 %v4668_v5  ;;  %6967 = vst [vmem:[#allocation53_spill] sm:$0xff] %v4687_v4  ;;  %6968 = vst [vmem:[#allocation54_spill] sm:$0xff] %v4692_v0  ;;  %v4699_v1 = vld [vmem:[%s6575_s4 + $0xe0] ss:$16 sps:$4 sm:$0xff]   ;;  %v4704_v5 = vld [vmem:[%s6575_s4 + $0xe8] ss:$16 sps:$4 sm:$0xff]  }
  0x5f   :  { %6969 = vst [vmem:[#allocation55_spill] sm:$0xff] %v4699_v1  ;;  %6970 = vst [vmem:[#allocation56_spill] sm:$0xff] %v4704_v5 }
  0x61   :  { %952 = vmatpush1.bf16.msra.mxu0 %v4675_v3  ;;  %993 = vmatpush1.bf16.msra.mxu1 %v4680_v63  ;;  %v35_v63 = vlaneseq }
  0x62   :  { %953 = vmatprep.subr.bf16.mxu0 %v4687_v4  ;;  %994 = vmatprep.subr.bf16.mxu1 %v4692_v0 }
  0x63   :  { %v4712_v3 = vshrl.u32 %v35_v63, 7 }
  0x65   :  { %954 = vmatpush1.bf16.msra.mxu0 %v4699_v1  ;;  %995 = vmatpush1.bf16.msra.mxu1 %v4704_v5  ;;  %6971 = vst [vmem:[#allocation57_spill] sm:$0xff] %v4712_v3  ;;  %v6675_v62 = vsub.s32 0, %v4712_v3  ;;  %v6678_v4 = vsub.s32 2, %v4712_v3  ;;  %v6683_v0 = vsub.s32 3, %v4712_v3  ;;  %v6684_v1 = vsub.s32 1, %v4712_v3 }
  0x66   :  { %1071 = vmatprep.subr.bf16.mxu0 %v4127_v6  ;;  %1112 = vmatprep.subr.bf16.mxu1 %v4132_v7 }
  0x67   :  { %v38_v6 = vrot.slane %v33_v61, %v6675_v62  ;;  %v46_v7 = vrot.slane %v33_v61, %v6678_v4  ;;  %v50_v60 = vrot.slane %v33_v61, %v6683_v0  ;;  %v42_v58 = vrot.slane %v33_v61, %v6684_v1 }
  0xd9   :  { %v118_v5 = vpop.f32.mrb[0].mxu0  ;;  %v161_v59 = vpop.f32.mrb[0].mxu1 }
  0xda   :  { %v120_v63 = vpop.f32.mrb[1].mxu0  ;;  %v163_v55 = vpop.f32.mrb[1].mxu1  ;;  %v4737_v49 = vadd.f32 %v118_v5, %v38_v6  ;;  %v4746_v5 = vadd.f32 %v161_v59, %v46_v7 }
  0xdb   :  { %v122_v57 = vpop.f32.mrb[2].mxu0  ;;  %v165_v53 = vpop.f32.mrb[2].mxu1  ;;  %v4739_v50 = vadd.f32 %v120_v63, %v42_v58 }
  0xdc   :  { %v4729_v56 = vadd.f32 %v122_v57, %v38_v6  ;;  %v124_v54 = vpop.f32.mrb[3].mxu0  ;;  %v4733_v62 = vadd.f32 %v165_v53, %v46_v7  ;;  %v167_v52 = vpop.f32.mrb[3].mxu1 }
  0xdd   :  { %v4731_v51 = vadd.f32 %v124_v54, %v42_v58  ;;  %v4735_v4 = vadd.f32 %v167_v52, %v50_v60  ;;  %v4743_v52 = vadd.f32 %v163_v55, %v50_v60 }
  0xde   :  { %6972 = vst [vmem:[#allocation58_spill] sm:$0xff] %v4729_v56  ;;  %6974 = vst [vmem:[#allocation60_spill] sm:$0xff] %v4733_v62 }
  0xdf   :  { %6973 = vst [vmem:[#allocation59_spill] sm:$0xff] %v4731_v51  ;;  %6975 = vst [vmem:[#allocation61_spill] sm:$0xff] %v4735_v4 }
  0xf9   :  { %v396_v0 = vpop.f32.mrb[4].mxu0  ;;  %v437_v1 = vpop.f32.mrb[4].mxu1 }
  0xfa   :  { %v444_v61 = vadd.f32 %v396_v0, %v4737_v49  ;;  %v398_v3 = vpop.f32.mrb[5].mxu0  ;;  %v439_v56 = vpop.f32.mrb[5].mxu1  ;;  %v446_v6 = vadd.f32 %v437_v1, %v4746_v5 }
  0xfb   :  { %v445_v57 = vadd.f32 %v398_v3, %v4739_v50  ;;  %v400_v47 = vpop.f32.mrb[6].mxu0  ;;  %v441_v53 = vpop.f32.mrb[6].mxu1  ;;  %v447_v58 = vadd.f32 %v439_v56, %v4743_v52 }
  0xfc   :  { %v3354_v54 = vmul.f32 -1.442695, %v444_v61  ;;  %v401_v51 = vpop.f32.mrb[7].mxu0  ;;  %v442_v48 = vpop.f32.mrb[7].mxu1  ;;  %v6999_v53 = vld [vmem:[#allocation25_spill] sm:$0xff] }
  0xfd   :  { %v3355_v62 = vmul.f32 -1.442695, %v445_v57  ;;  %v3356_v0 = vmul.f32 -1.442695, %v447_v58  ;;  %v7000_v58 = vld [vmem:[#allocation26_spill] sm:$0xff] }
  0xfe   :  { %3618 = vpow2.f32 %v3354_v54 }
  0xff   :  { %3620 = vpow2.f32 %v3355_v62 }
 0x100   :  { %3622 = vpow2.f32 %v3356_v0  ;;  %v1021_v0 = vld [vmem:[%s6577_s6] sm:$0xf] }
 0x101   :  { %3624 = vtanh.f32 %v446_v6  ;;  %v7001_v6 = vld [vmem:[#allocation57_spill] sm:$0xff] }
 0x108   :  { %v3619_v63 = vpop.eup %3618 }
 0x109   :  { %v3621_v3 = vpop.eup %3620  ;;  %v451_v4 = vadd.f32 1.0, %v3619_v63  ;;  %v7002_v63 = vsub.s32 0, %v7001_v6 }
 0x10a   :  { %v457_v47 = vadd.f32 1.0, %v3621_v3  ;;  %v3623_v48 = vpop.eup %3622 }
 0x10b   :  { %3626 = vrcp.f32 %v451_v4  ;;  %v3625_v51 = vpop.eup %3624  ;;  %v464_v61 = vadd.f32 1.0, %v3623_v48  ;;  %v6998_v4 = vld [vmem:[#allocation24_spill] sm:$0xff]  ;;  %v4825_v3 = vrot.slane %v1021_v0, %v7002_v63 }
 0x10c   :  { %3628 = vrcp.f32 %v457_v47  ;;  %v7003_v47 = vsub.s32 1, %v7001_v6 }
 0x10d   :  { %3630 = vrcp.f32 %v464_v61 }
 0x10e   :  { %v4829_v48 = vrot.slane %v1021_v0, %v7003_v47  ;;  %v7004_v47 = vsub.s32 3, %v7001_v6 }
 0x115   :  { %v3627_v55 = vpop.eup %3626 }
 0x116   :  { %v3629_v60 = vpop.eup %3628  ;;  %v468_v62 = vmul.f32 %v3627_v55, %v3625_v51 }
 0x117   :  { %v467_v56 = vmul.f32 0.0, %v3629_v60  ;;  %v3631_v1 = vpop.eup %3630 }
 0x119   :  { %v4749_v59 = vadd.f32 %v468_v62, %v467_v56 }
 0x11b   :  { %3632 = vtanh.f32 %v4749_v59 }
 0x125   :  { %v3633_v7 = vpop.eup %3632 }
 0x126   :  { %v471_v57 = vmul.f32 %v3633_v7, %v3631_v1 }
 0x128   :  { %v472_v54 = vpack.c.bf16 %v471_v57, %v471_v57 }
 0x12a   :  { %972 = vmatmul.mubr.bf16.vlgmr.msra.gmra.mrb[12].mxu0 %v472_v54  ;;  %1013 = vmatmul.mubr.bf16.vlgmr.msra.gmra.mrb[12].mxu1 %v472_v54 }
 0x12b   :  { %1072 = vmatpush1.bf16.msra.mxu0 %v4137_v8  ;;  %1113 = vmatpush1.bf16.msra.mxu1 %v4143_v9  ;;  %v6976_v8 = vld [vmem:[#allocation3_spill] sm:$0xff]  ;;  %v6977_v9 = vld [vmem:[#allocation2_spill] sm:$0xff] }
 0x12c   :  { %1073 = vmatprep.subr.bf16.mxu0 %v4149_v10  ;;  %1114 = vmatprep.subr.bf16.mxu1 %v4155_v11  ;;  %v6978_v10 = vld [vmem:[#allocation5_spill] sm:$0xff]  ;;  %v6979_v11 = vld [vmem:[#allocation4_spill] sm:$0xff] }
 0x12d   :  { %1103 = vmatprep.mubr.bf16.mxu0 %v6938_v2  ;;  %1144 = vmatprep.mubr.bf16.mxu1 %v6938_v2 }
 0x12f   :  { %1074 = vmatpush1.bf16.msra.mxu0 %v4160_v12  ;;  %1115 = vmatpush1.bf16.msra.mxu1 %v4165_v13  ;;  %v6980_v12 = vld [vmem:[#allocation7_spill] sm:$0xff]  ;;  %v6981_v13 = vld [vmem:[#allocation6_spill] sm:$0xff] }
 0x130   :  { %1075 = vmatprep.subr.bf16.mxu0 %v4172_v14  ;;  %1116 = vmatprep.subr.bf16.mxu1 %v4178_v15  ;;  %v6982_v14 = vld [vmem:[#allocation8_spill] sm:$0xff]  ;;  %v6983_v15 = vld [vmem:[#allocation9_spill] sm:$0xff] }
 0x133   :  { %1076 = vmatpush1.bf16.msra.mxu0 %v4186_v16  ;;  %1117 = vmatpush1.bf16.msra.mxu1 %v4193_v17  ;;  %v6984_v16 = vld [vmem:[#allocation11_spill] sm:$0xff]  ;;  %v731_v17 = vpop.f32.mrb[8].mxu0 }
 0x134   :  { %1077 = vmatprep.subr.bf16.mxu0 %v4198_v18  ;;  %1118 = vmatprep.subr.bf16.mxu1 %v4204_v19  ;;  %v6985_v18 = vld [vmem:[#allocation10_spill] sm:$0xff]  ;;  %v6986_v19 = vld [vmem:[#allocation12_spill] sm:$0xff] }
 0x137   :  { %1078 = vmatpush1.bf16.msra.mxu0 %v4210_v20  ;;  %1119 = vmatpush1.bf16.msra.mxu1 %v4215_v21  ;;  %v733_v20 = vpop.f32.mrb[9].mxu0  ;;  %v6987_v21 = vld [vmem:[#allocation13_spill] sm:$0xff] }
 0x138   :  { %1079 = vmatprep.subr.bf16.mxu0 %v4222_v22  ;;  %1120 = vmatprep.subr.bf16.mxu1 %v4228_v23  ;;  %v6988_v22 = vld [vmem:[#allocation15_spill] sm:$0xff]  ;;  %v735_v23 = vpop.f32.mrb[10].mxu0 }
 0x13b   :  { %1080 = vmatpush1.bf16.msra.mxu0 %v4234_v24  ;;  %1121 = vmatpush1.bf16.msra.mxu1 %v4241_v25  ;;  %v772_v24 = vpop.f32.mrb[8].mxu1  ;;  %v736_v25 = vpop.f32.mrb[11].mxu0 }
 0x13c   :  { %1081 = vmatprep.subr.bf16.mxu0 %v4246_v26  ;;  %1122 = vmatprep.subr.bf16.mxu1 %v4252_v27  ;;  %v774_v26 = vpop.f32.mrb[9].mxu1 }
 0x13d   :  { %v776_v27 = vpop.f32.mrb[10].mxu1 }
 0x13f   :  { %1082 = vmatpush1.bf16.msra.mxu0 %v4258_v28  ;;  %1123 = vmatpush1.bf16.msra.mxu1 %v4265_v29  ;;  %v6989_v28 = vld [vmem:[#allocation14_spill] sm:$0xff]  ;;  %v6990_v29 = vld [vmem:[#allocation16_spill] sm:$0xff] }
 0x140   :  { %1083 = vmatprep.subr.bf16.mxu0 %v4270_v30  ;;  %1124 = vmatprep.subr.bf16.mxu1 %v4276_v31  ;;  %v777_v30 = vpop.f32.mrb[11].mxu1  ;;  %v6991_v31 = vld [vmem:[#allocation17_spill] sm:$0xff] }
 0x143   :  { %1084 = vmatpush1.bf16.msra.mxu0 %v4282_v32  ;;  %1125 = vmatpush1.bf16.msra.mxu1 %v4289_v33  ;;  %v6992_v32 = vld [vmem:[#allocation19_spill] sm:$0xff]  ;;  %v6993_v33 = vld [vmem:[#allocation18_spill] sm:$0xff] }
 0x144   :  { %1085 = vmatprep.subr.bf16.mxu0 %v4294_v34  ;;  %1126 = vmatprep.subr.bf16.mxu1 %v4300_v35  ;;  %v6994_v34 = vld [vmem:[#allocation20_spill] sm:$0xff]  ;;  %v6995_v35 = vld [vmem:[#allocation21_spill] sm:$0xff] }
 0x147   :  { %1086 = vmatpush1.bf16.msra.mxu0 %v4306_v36  ;;  %1127 = vmatpush1.bf16.msra.mxu1 %v4313_v37  ;;  %v6996_v36 = vld [vmem:[#allocation23_spill] sm:$0xff]  ;;  %v6997_v37 = vld [vmem:[#allocation22_spill] sm:$0xff] }
 0x148   :  { %1198 = vmatprep.subr.bf16.mxu0 %v4325_v38  ;;  %1239 = vmatprep.subr.bf16.mxu1 %v4336_v40 }
 0x14a   :  { %1104 = vmatmul.mubr.bf16.vlgmr.msra.gmra.mrb[16].mxu0 %v472_v54  ;;  %1145 = vmatmul.mubr.bf16.vlgmr.msra.gmra.mrb[16].mxu1 %v472_v54 }
 0x14b   :  { %1199 = vmatpush1.bf16.msra.mxu0 %v4330_v39  ;;  %1240 = vmatpush1.bf16.msra.mxu1 %v4341_v41 }
 0x14c   :  { %1200 = vmatprep.subr.bf16.mxu0 %v4347_v42  ;;  %1241 = vmatprep.subr.bf16.mxu1 %v4358_v44 }
 0x14d   :  { %1230 = vmatprep.mubr.bf16.mxu0 %v6938_v2  ;;  %1271 = vmatprep.mubr.bf16.mxu1 %v6938_v2 }
 0x14f   :  { %1201 = vmatpush1.bf16.msra.mxu0 %v4352_v43  ;;  %1242 = vmatpush1.bf16.msra.mxu1 %v4365_v45 }
 0x150   :  { %1202 = vmatprep.subr.bf16.mxu0 %v4371_v46  ;;  %1243 = vmatprep.subr.bf16.mxu1 %v6976_v8 }
 0x153   :  { %1203 = vmatpush1.bf16.msra.mxu0 %v6977_v9  ;;  %1244 = vmatpush1.bf16.msra.mxu1 %v6978_v10 }
 0x154   :  { %1204 = vmatprep.subr.bf16.mxu0 %v6979_v11  ;;  %1245 = vmatprep.subr.bf16.mxu1 %v6980_v12 }
 0x157   :  { %1205 = vmatpush1.bf16.msra.mxu0 %v6981_v13  ;;  %1246 = vmatpush1.bf16.msra.mxu1 %v6982_v14 }
 0x158   :  { %1206 = vmatprep.subr.bf16.mxu0 %v6983_v15  ;;  %1247 = vmatprep.subr.bf16.mxu1 %v6984_v16 }
 0x15b   :  { %1207 = vmatpush1.bf16.msra.mxu0 %v6985_v18  ;;  %1248 = vmatpush1.bf16.msra.mxu1 %v6986_v19 }
 0x15c   :  { %1208 = vmatprep.subr.bf16.mxu0 %v6987_v21  ;;  %1249 = vmatprep.subr.bf16.mxu1 %v6988_v22 }
 0x15f   :  { %1209 = vmatpush1.bf16.msra.mxu0 %v6989_v28  ;;  %1250 = vmatpush1.bf16.msra.mxu1 %v6990_v29 }
 0x160   :  { %1210 = vmatprep.subr.bf16.mxu0 %v6991_v31  ;;  %1251 = vmatprep.subr.bf16.mxu1 %v6992_v32 }
 0x163   :  { %1211 = vmatpush1.bf16.msra.mxu0 %v6993_v33  ;;  %1252 = vmatpush1.bf16.msra.mxu1 %v6994_v34 }
 0x164   :  { %1212 = vmatprep.subr.bf16.mxu0 %v6995_v35  ;;  %1253 = vmatprep.subr.bf16.mxu1 %v6996_v36 }
 0x167   :  { %1213 = vmatpush1.bf16.msra.mxu0 %v6997_v37  ;;  %1254 = vmatpush1.bf16.msra.mxu1 %v6998_v4 }
 0x168   :  { %1283 = vmatprep.subr.bf16.mxu0 %v6999_v53  ;;  %1324 = vmatprep.subr.bf16.mxu1 %v7000_v58  ;;  %v4835_v58 = vrot.slane %v1021_v0, %v7004_v47 }
 0x1fd   :  { %v973_v51 = vpop.f32.mrb[12].mxu0  ;;  %v1014_v55 = vpop.f32.mrb[12].mxu1 }
 0x1fe   :  { %v974_v60 = vadd.f32 %v973_v51, %v731_v17  ;;  %v1015_v62 = vadd.f32 %v1014_v55, %v772_v24  ;;  %v975_v61 = vpop.f32.mrb[13].mxu0  ;;  %v1016_v56 = vpop.f32.mrb[13].mxu1 }
 0x1ff   :  { %v976_v1 = vadd.f32 %v975_v61, %v733_v20  ;;  %v1017_v7 = vadd.f32 %v1016_v56, %v774_v26  ;;  %v977_v57 = vpop.f32.mrb[14].mxu0  ;;  %v1018_v54 = vpop.f32.mrb[14].mxu1  ;;  %v7005_v20 = vsub.s32 2, %v7001_v6 }
 0x200   :  { %v1043_v23 = vadd.f32 %v4825_v3, %v974_v60  ;;  %v978_v25 = vpop.f32.mrb[15].mxu0  ;;  %v1019_v27 = vpop.f32.mrb[15].mxu1 }
 0x201   :  { %v1044_v30 = vadd.f32 %v4829_v48, %v976_v1  ;;  %v1046_v17 = vadd.f32 %v4835_v58, %v1017_v7  ;;  %v4840_v24 = vrot.slane %v1021_v0, %v7005_v20 }
 0x202   :  { %v3421_v63 = vmul.f32 -1.442695, %v1043_v23 }
 0x203   :  { %v3422_v53 = vmul.f32 -1.442695, %v1044_v30  ;;  %v3423_v26 = vmul.f32 -1.442695, %v1046_v17  ;;  %v1045_v51 = vadd.f32 %v4840_v24, %v1015_v62 }
 0x204   :  { %3634 = vpow2.f32 %v3421_v63 }
 0x205   :  { %3636 = vpow2.f32 %v3422_v53 }
 0x206   :  { %3638 = vpow2.f32 %v3423_v26 }
 0x207   :  { %3640 = vtanh.f32 %v1045_v51 }
 0x20e   :  { %v3635_v55 = vpop.eup %3634 }
 0x20f   :  { %v3637_v60 = vpop.eup %3636  ;;  %v1050_v61 = vadd.f32 1.0, %v3635_v55 }
 0x210   :  { %v1056_v56 = vadd.f32 1.0, %v3637_v60  ;;  %v3639_v1 = vpop.eup %3638 }
 0x211   :  { %3642 = vrcp.f32 %v1050_v61  ;;  %v3641_v57 = vpop.eup %3640  ;;  %v1063_v23 = vadd.f32 1.0, %v3639_v1 }
 0x212   :  { %3644 = vrcp.f32 %v1056_v56 }
 0x213   :  { %3646 = vrcp.f32 %v1063_v23 }
 0x21b   :  { %v3643_v53 = vpop.eup %3642 }
 0x21c   :  { %v3645_v54 = vpop.eup %3644  ;;  %v1067_v7 = vmul.f32 %v3643_v53, %v3641_v57 }
 0x21d   :  { %v1066_v6 = vmul.f32 0.0, %v3645_v54  ;;  %v1105_v0 = vpop.f32.mrb[16].mxu0  ;;  %v1146_v25 = vpop.f32.mrb[16].mxu1 }
 0x21e   :  { %v1157_v27 = vrot.slane %v1105_v0, 6  ;;  %v1107_v30 = vpop.f32.mrb[17].mxu0  ;;  %v1148_v62 = vpop.f32.mrb[17].mxu1  ;;  %v1159_v53 = vrot.slane %v1146_v25, 6  ;;  %v7008_v25 = vld [vmem:[#allocation29_spill] sm:$0xff] }
 0x21f   :  { %v4843_v63 = vadd.f32 %v1067_v7, %v1066_v6  ;;  %v1158_v47 = vrot.slane %v1107_v30, 6  ;;  %v1109_v17 = vpop.f32.mrb[18].mxu0  ;;  %v1150_v20 = vpop.f32.mrb[18].mxu1  ;;  %v1160_v1 = vrot.slane %v1148_v62, 6  ;;  %v7006_v62 = vld [vmem:[#allocation27_spill] sm:$0xff] }
 0x220   :  { %v1165_v26 = vadd.f32 %v1157_v27, %v4737_v49  ;;  %v1110_v51 = vpop.f32.mrb[19].mxu0  ;;  %v1151_v55 = vpop.f32.mrb[19].mxu1  ;;  %v1167_v23 = vadd.f32 %v1159_v53, %v4746_v5  ;;  %v7015_v53 = vld [vmem:[#allocation36_spill] sm:$0xff] }
 0x221   :  { %3648 = vtanh.f32 %v4843_v63  ;;  %v1166_v60 = vadd.f32 %v1158_v47, %v4739_v50  ;;  %v1168_v57 = vadd.f32 %v1160_v1, %v4743_v52  ;;  %v3647_v54 = vpop.eup %3646  ;;  %v7009_v51 = vld [vmem:[#allocation30_spill] sm:$0xff]  ;;  %v7010_v55 = vld [vmem:[#allocation31_spill] sm:$0xff] }
 0x222   :  { %v3424_v61 = vmul.f32 -1.442695, %v1165_v26  ;;  %v7007_v26 = vld [vmem:[#allocation28_spill] sm:$0xff] }
 0x223   :  { %v3425_v56 = vmul.f32 -1.442695, %v1166_v60  ;;  %v3426_v6 = vmul.f32 -1.442695, %v1168_v57  ;;  %v7011_v60 = vld [vmem:[#allocation32_spill] sm:$0xff]  ;;  %v7014_v57 = vld [vmem:[#allocation35_spill] sm:$0xff] }
 0x224   :  { %3650 = vpow2.f32 %v3424_v61  ;;  %v7012_v61 = vld [vmem:[#allocation33_spill] sm:$0xff] }
 0x225   :  { %3652 = vpow2.f32 %v3425_v56  ;;  %v7013_v56 = vld [vmem:[#allocation34_spill] sm:$0xff] }
 0x226   :  { %3654 = vpow2.f32 %v3426_v6  ;;  %v7017_v6 = vld [vmem:[#allocation38_spill] sm:$0xff] }
 0x227   :  { %3656 = vtanh.f32 %v1167_v23 }
 0x22b   :  { %v3649_v7 = vpop.eup %3648 }
 0x22c   :  { %v1070_v0 = vmul.f32 %v3649_v7, %v3647_v54  ;;  %v7016_v7 = vld [vmem:[#allocation37_spill] sm:$0xff] }
 0x22e   :  { %v3651_v27 = vpop.eup %3650  ;;  %v1197_v30 = vpack.c.bf16 %v1070_v0, %v1070_v0  ;;  %v1189_v0 = vrot.slane %v4749_v59, 6  ;;  %v7024_v59 = vld [vmem:[#allocation45_spill] sm:$0xff] }
 0x22f   :  { %v3653_v17 = vpop.eup %3652  ;;  %v1172_v20 = vadd.f32 1.0, %v3651_v27 }
 0x230   :  { %v1178_v47 = vadd.f32 1.0, %v3653_v17  ;;  %1231 = vmatmul.mubr.bf16.vlgmr.msra.gmra.mrb[20].mxu0 %v1197_v30  ;;  %1272 = vmatmul.mubr.bf16.vlgmr.msra.gmra.mrb[20].mxu1 %v1197_v30  ;;  %v3655_v1 = vpop.eup %3654 }
 0x231   :  { %3658 = vrcp.f32 %v1172_v20  ;;  %1284 = vmatpush1.bf16.msra.mxu0 %v7006_v62  ;;  %1325 = vmatpush1.bf16.msra.mxu1 %v7007_v26  ;;  %v3657_v54 = vpop.eup %3656  ;;  %v1185_v17 = vadd.f32 1.0, %v3655_v1  ;;  %v7019_v62 = vld [vmem:[#allocation40_spill] sm:$0xff]  ;;  %v7020_v26 = vld [vmem:[#allocation41_spill] sm:$0xff]  ;;  %v7025_v1 = vld [vmem:[#allocation46_spill] sm:$0xff] }
 0x232   :  { %3660 = vrcp.f32 %v1178_v47  ;;  %1285 = vmatprep.subr.bf16.mxu0 %v7008_v25  ;;  %1326 = vmatprep.subr.bf16.mxu1 %v7009_v51  ;;  %v7018_v47 = vld [vmem:[#allocation39_spill] sm:$0xff]  ;;  %v7021_v25 = vld [vmem:[#allocation42_spill] sm:$0xff] }
 0x233   :  { %1315 = vmatprep.mubr.bf16.mxu0 %v6938_v2  ;;  %1356 = vmatprep.mubr.bf16.mxu1 %v6938_v2  ;;  %3662 = vrcp.f32 %v1185_v17  ;;  %v7031_v17 = vld [vmem:[#allocation52_spill] sm:$0xff] }
 0x235   :  { %1286 = vmatpush1.bf16.msra.mxu0 %v7010_v55  ;;  %1327 = vmatpush1.bf16.msra.mxu1 %v7011_v60  ;;  %v7022_v55 = vld [vmem:[#allocation43_spill] sm:$0xff]  ;;  %v7023_v60 = vld [vmem:[#allocation44_spill] sm:$0xff] }
 0x236   :  { %1287 = vmatprep.subr.bf16.mxu0 %v7012_v61  ;;  %1328 = vmatprep.subr.bf16.mxu1 %v7013_v56 }
 0x239   :  { %1288 = vmatpush1.bf16.msra.mxu0 %v7014_v57  ;;  %1329 = vmatpush1.bf16.msra.mxu1 %v7015_v53 }
 0x23a   :  { %1289 = vmatprep.subr.bf16.mxu0 %v7016_v7  ;;  %1330 = vmatprep.subr.bf16.mxu1 %v7017_v6 }
 0x23b   :  { %v3659_v23 = vpop.eup %3658 }
 0x23c   :  { %v3661_v27 = vpop.eup %3660  ;;  %v1192_v30 = vmul.f32 %v3659_v23, %v3657_v54  ;;  %v7026_v54 = vld [vmem:[#allocation47_spill] sm:$0xff]  ;;  %v7027_v23 = vld [vmem:[#allocation48_spill] sm:$0xff] }
 0x23d   :  { %v1191_v20 = vmul.f32 %v3661_v27, %v1189_v0  ;;  %1290 = vmatpush1.bf16.msra.mxu0 %v7018_v47  ;;  %1331 = vmatpush1.bf16.msra.mxu1 %v7019_v62  ;;  %v7028_v0 = vld [vmem:[#allocation49_spill] sm:$0xff]  ;;  %v7029_v27 = vld [vmem:[#allocation50_spill] sm:$0xff] }
 0x23e   :  { %1291 = vmatprep.subr.bf16.mxu0 %v7020_v26  ;;  %1332 = vmatprep.subr.bf16.mxu1 %v7021_v25 }
 0x23f   :  { %v4869_v51 = vadd.f32 %v1192_v30, %v1191_v20  ;;  %v7030_v30 = vld [vmem:[#allocation51_spill] sm:$0xff]  ;;  %v3663_v20 = vpop.eup %3662 }
 0x241   :  { %1292 = vmatpush1.bf16.msra.mxu0 %v7022_v55  ;;  %1333 = vmatpush1.bf16.msra.mxu1 %v7023_v60  ;;  %3664 = vtanh.f32 %v4869_v51  ;;  %v7032_v60 = vld [vmem:[#allocation53_spill] sm:$0xff]  ;;  %v7033_v55 = vld [vmem:[#allocation54_spill] sm:$0xff] }
 0x242   :  { %1293 = vmatprep.subr.bf16.mxu0 %v7024_v59  ;;  %1334 = vmatprep.subr.bf16.mxu1 %v7025_v1  ;;  %v7034_v1 = vld [vmem:[#allocation55_spill] sm:$0xff] }
 0x245   :  { %1294 = vmatpush1.bf16.msra.mxu0 %v7026_v54  ;;  %1335 = vmatpush1.bf16.msra.mxu1 %v7027_v23  ;;  %v7035_v54 = vld [vmem:[#allocation56_spill] sm:$0xff] }
 0x246   :  { %1295 = vmatprep.subr.bf16.mxu0 %v7028_v0  ;;  %1336 = vmatprep.subr.bf16.mxu1 %v7029_v27  ;;  %v4889_v0 = vld [vmem:[%s6573_s2 + $0x4] ss:$16 sps:$4 sm:$0xff]  }
 0x247   :  { %7036 = vst [vmem:[#allocation3_spill] sm:$0xff] %v4889_v0 }
 0x249   :  { %1296 = vmatpush1.bf16.msra.mxu0 %v7030_v30  ;;  %1337 = vmatpush1.bf16.msra.mxu1 %v7031_v17  ;;  %v4895_v17 = vld [vmem:[%s6573_s2 + $0xc] ss:$16 sps:$4 sm:$0xff]  }
 0x24a   :  { %1297 = vmatprep.subr.bf16.mxu0 %v7032_v60  ;;  %1338 = vmatprep.subr.bf16.mxu1 %v7033_v55 }
 0x24b   :  { %v3665_v59 = vpop.eup %3664 }
 0x24c   :  { %v1195_v25 = vmul.f32 %v3665_v59, %v3663_v20  ;;  %v4905_v20 = vld [vmem:[%s6573_s2] ss:$16 sps:$4 sm:$0xff]  }
 0x24d   :  { %1298 = vmatpush1.bf16.msra.mxu0 %v7034_v1  ;;  %1339 = vmatpush1.bf16.msra.mxu1 %v7035_v54  ;;  %7037 = vst [vmem:[#allocation2_spill] sm:$0xff] %v4905_v20 }
 0x24e   :  { %1393 = vmatprep.subr.bf16.mxu0 %v4889_v0  ;;  %1434 = vmatprep.subr.bf16.mxu1 %v4895_v17  ;;  %v1196_v55 = vpack.c.bf16 %v1195_v25, %v1195_v25  ;;  %v4911_v0 = vld [vmem:[%s6573_s2 + $0x8] ss:$16 sps:$4 sm:$0xff]   ;;  %v4917_v25 = vld [vmem:[%s6573_s2 + $0x24] ss:$16 sps:$4 sm:$0xff]  }
 0x24f   :  { %7038 = vst [vmem:[#allocation5_spill] sm:$0xff] %v4911_v0  ;;  %7039 = vst [vmem:[#allocation4_spill] sm:$0xff] %v4917_v25 }
 0x250   :  { %v4898_v59 = vrot.slane %v1196_v55, 1  ;;  %v4923_v55 = vld [vmem:[%s6573_s2 + $0x2c] ss:$16 sps:$4 sm:$0xff]  }
 0x251   :  { %7040 = vst [vmem:[#allocation7_spill] sm:$0xff] %v4923_v55 }
 0x252   :  { %1316 = vmatmul.mubr.bf16.vlgmr.msra.gmra.mrb[24].mxu0 %v4898_v59  ;;  %1357 = vmatmul.mubr.bf16.vlgmr.msra.gmra.mrb[24].mxu1 %v4898_v59 }
 0x253   :  { %1394 = vmatpush1.bf16.msra.mxu0 %v4905_v20  ;;  %1435 = vmatpush1.bf16.msra.mxu1 %v4911_v0  ;;  %v4931_v0 = vld [vmem:[%s6573_s2 + $0x20] ss:$16 sps:$4 sm:$0xff]   ;;  %v4949_v20 = vld [vmem:[%s6573_s2 + $0x4c] ss:$16 sps:$4 sm:$0xff]  }
 0x254   :  { %1395 = vmatprep.subr.bf16.mxu0 %v4917_v25  ;;  %1436 = vmatprep.subr.bf16.mxu1 %v4923_v55  ;;  %7041 = vst [vmem:[#allocation6_spill] sm:$0xff] %v4931_v0  ;;  %v4937_v25 = vld [vmem:[%s6573_s2 + $0x28] ss:$16 sps:$4 sm:$0xff]   ;;  %v4943_v55 = vld [vmem:[%s6573_s2 + $0x44] ss:$16 sps:$4 sm:$0xff]   ;;  %7044 = vst [vmem:[#allocation11_spill] sm:$0xff] %v4949_v20 }
 0x255   :  { %1425 = vmatprep.mubr.bf16.mxu0 %v6938_v2  ;;  %1466 = vmatprep.mubr.bf16.mxu1 %v6938_v2  ;;  %7042 = vst [vmem:[#allocation8_spill] sm:$0xff] %v4937_v25  ;;  %7043 = vst [vmem:[#allocation9_spill] sm:$0xff] %v4943_v55 }
 0x257   :  { %1396 = vmatpush1.bf16.msra.mxu0 %v4931_v0  ;;  %1437 = vmatpush1.bf16.msra.mxu1 %v4937_v25  ;;  %v4955_v0 = vld [vmem:[%s6573_s2 + $0x40] ss:$16 sps:$4 sm:$0xff]   ;;  %v4961_v25 = vld [vmem:[%s6573_s2 + $0x48] ss:$16 sps:$4 sm:$0xff]  }
 0x258   :  { %1397 = vmatprep.subr.bf16.mxu0 %v4943_v55  ;;  %1438 = vmatprep.subr.bf16.mxu1 %v4949_v20  ;;  %7045 = vst [vmem:[#allocation10_spill] sm:$0xff] %v4955_v0  ;;  %7046 = vst [vmem:[#allocation12_spill] sm:$0xff] %v4961_v25  ;;  %v4967_v55 = vld [vmem:[%s6573_s2 + $0x64] ss:$16 sps:$4 sm:$0xff]   ;;  %v4973_v20 = vld [vmem:[%s6573_s2 + $0x6c] ss:$16 sps:$4 sm:$0xff]  }
 0x259   :  { %7047 = vst [vmem:[#allocation13_spill] sm:$0xff] %v4967_v55  ;;  %7048 = vst [vmem:[#allocation15_spill] sm:$0xff] %v4973_v20 }
 0x25b   :  { %1398 = vmatpush1.bf16.msra.mxu0 %v4955_v0  ;;  %1439 = vmatpush1.bf16.msra.mxu1 %v4961_v25  ;;  %v4979_v0 = vld [vmem:[%s6573_s2 + $0x60] ss:$16 sps:$4 sm:$0xff]   ;;  %v4985_v25 = vld [vmem:[%s6573_s2 + $0x68] ss:$16 sps:$4 sm:$0xff]  }
 0x25c   :  { %1399 = vmatprep.subr.bf16.mxu0 %v4967_v55  ;;  %1440 = vmatprep.subr.bf16.mxu1 %v4973_v20  ;;  %7049 = vst [vmem:[#allocation14_spill] sm:$0xff] %v4979_v0  ;;  %7050 = vst [vmem:[#allocation16_spill] sm:$0xff] %v4985_v25  ;;  %v4991_v55 = vld [vmem:[%s6573_s2 + $0x84] ss:$16 sps:$4 sm:$0xff]   ;;  %v4997_v20 = vld [vmem:[%s6573_s2 + $0x8c] ss:$16 sps:$4 sm:$0xff]  }
 0x25d   :  { %7051 = vst [vmem:[#allocation17_spill] sm:$0xff] %v4991_v55  ;;  %7052 = vst [vmem:[#allocation19_spill] sm:$0xff] %v4997_v20 }
 0x25f   :  { %1400 = vmatpush1.bf16.msra.mxu0 %v4979_v0  ;;  %1441 = vmatpush1.bf16.msra.mxu1 %v4985_v25  ;;  %v5003_v0 = vld [vmem:[%s6573_s2 + $0x80] ss:$16 sps:$4 sm:$0xff]   ;;  %v5009_v25 = vld [vmem:[%s6573_s2 + $0x88] ss:$16 sps:$4 sm:$0xff]  }
 0x260   :  { %1401 = vmatprep.subr.bf16.mxu0 %v4991_v55  ;;  %1442 = vmatprep.subr.bf16.mxu1 %v4997_v20  ;;  %7053 = vst [vmem:[#allocation18_spill] sm:$0xff] %v5003_v0  ;;  %7054 = vst [vmem:[#allocation20_spill] sm:$0xff] %v5009_v25  ;;  %v5015_v55 = vld [vmem:[%s6573_s2 + $0xa4] ss:$16 sps:$4 sm:$0xff]   ;;  %v5021_v20 = vld [vmem:[%s6573_s2 + $0xac] ss:$16 sps:$4 sm:$0xff]  }
 0x261   :  { %7055 = vst [vmem:[#allocation21_spill] sm:$0xff] %v5015_v55  ;;  %7056 = vst [vmem:[#allocation23_spill] sm:$0xff] %v5021_v20 }
 0x263   :  { %1402 = vmatpush1.bf16.msra.mxu0 %v5003_v0  ;;  %1443 = vmatpush1.bf16.msra.mxu1 %v5009_v25  ;;  %v5027_v0 = vld [vmem:[%s6573_s2 + $0xa0] ss:$16 sps:$4 sm:$0xff]   ;;  %v5033_v25 = vld [vmem:[%s6573_s2 + $0xa8] ss:$16 sps:$4 sm:$0xff]  }
 0x264   :  { %1403 = vmatprep.subr.bf16.mxu0 %v5015_v55  ;;  %1444 = vmatprep.subr.bf16.mxu1 %v5021_v20  ;;  %7057 = vst [vmem:[#allocation22_spill] sm:$0xff] %v5027_v0  ;;  %7058 = vst [vmem:[#allocation24_spill] sm:$0xff] %v5033_v25  ;;  %v5039_v55 = vld [vmem:[%s6573_s2 + $0xc4] ss:$16 sps:$4 sm:$0xff]   ;;  %v5045_v20 = vld [vmem:[%s6573_s2 + $0xcc] ss:$16 sps:$4 sm:$0xff]  }
 0x265   :  { %7059 = vst [vmem:[#allocation57_spill] sm:$0xff] %v5039_v55  ;;  %7060 = vst [vmem:[#allocation27_spill] sm:$0xff] %v5045_v20 }
 0x267   :  { %1404 = vmatpush1.bf16.msra.mxu0 %v5027_v0  ;;  %1445 = vmatpush1.bf16.msra.mxu1 %v5033_v25  ;;  %v5051_v0 = vld [vmem:[%s6573_s2 + $0xc0] ss:$16 sps:$4 sm:$0xff]   ;;  %v5057_v25 = vld [vmem:[%s6573_s2 + $0xc8] ss:$16 sps:$4 sm:$0xff]  }
 0x268   :  { %1405 = vmatprep.subr.bf16.mxu0 %v5039_v55  ;;  %1446 = vmatprep.subr.bf16.mxu1 %v5045_v20  ;;  %7061 = vst [vmem:[#allocation28_spill] sm:$0xff] %v5051_v0  ;;  %7062 = vst [vmem:[#allocation29_spill] sm:$0xff] %v5057_v25  ;;  %v5063_v55 = vld [vmem:[%s6573_s2 + $0xe4] ss:$16 sps:$4 sm:$0xff]   ;;  %v5069_v20 = vld [vmem:[%s6573_s2 + $0xec] ss:$16 sps:$4 sm:$0xff]  }
 0x269   :  { %7063 = vst [vmem:[#allocation30_spill] sm:$0xff] %v5063_v55  ;;  %7064 = vst [vmem:[#allocation31_spill] sm:$0xff] %v5069_v20 }
 0x26b   :  { %1406 = vmatpush1.bf16.msra.mxu0 %v5051_v0  ;;  %1447 = vmatpush1.bf16.msra.mxu1 %v5057_v25  ;;  %v5075_v0 = vld [vmem:[%s6573_s2 + $0xe0] ss:$16 sps:$4 sm:$0xff]   ;;  %v5081_v25 = vld [vmem:[%s6573_s2 + $0xe8] ss:$16 sps:$4 sm:$0xff]  }
 0x26c   :  { %1407 = vmatprep.subr.bf16.mxu0 %v5063_v55  ;;  %1448 = vmatprep.subr.bf16.mxu1 %v5069_v20  ;;  %7065 = vst [vmem:[#allocation32_spill] sm:$0xff] %v5075_v0  ;;  %7066 = vst [vmem:[#allocation33_spill] sm:$0xff] %v5081_v25 }
 0x26f   :  { %1408 = vmatpush1.bf16.msra.mxu0 %v5075_v0  ;;  %1449 = vmatpush1.bf16.msra.mxu1 %v5081_v25 }
 0x270   :  { %1520 = vmatprep.subr.bf16.mxu0 %v4325_v38  ;;  %1561 = vmatprep.subr.bf16.mxu1 %v4336_v40  ;;  %v7067_v38 = vld [vmem:[#allocation25_spill] sm:$0xff] }
 0x272   :  { %1426 = vmatmul.mubr.bf16.vlgmr.msra.gmra.mrb[28].mxu0 %v4898_v59  ;;  %1467 = vmatmul.mubr.bf16.vlgmr.msra.gmra.mrb[28].mxu1 %v4898_v59 }
 0x273   :  { %1521 = vmatpush1.bf16.msra.mxu0 %v4330_v39  ;;  %1562 = vmatpush1.bf16.msra.mxu1 %v4341_v41  ;;  %v7068_v39 = vld [vmem:[#allocation26_spill] sm:$0xff] }
 0x274   :  { %1522 = vmatprep.subr.bf16.mxu0 %v4347_v42  ;;  %1563 = vmatprep.subr.bf16.mxu1 %v4358_v44 }
 0x275   :  { %1552 = vmatprep.mubr.bf16.mxu0 %v6938_v2  ;;  %1593 = vmatprep.mubr.bf16.mxu1 %v6938_v2 }
 0x277   :  { %1523 = vmatpush1.bf16.msra.mxu0 %v4352_v43  ;;  %1564 = vmatpush1.bf16.msra.mxu1 %v4365_v45 }
 0x278   :  { %1524 = vmatprep.subr.bf16.mxu0 %v4371_v46  ;;  %1565 = vmatprep.subr.bf16.mxu1 %v6976_v8 }
 0x27b   :  { %1525 = vmatpush1.bf16.msra.mxu0 %v6977_v9  ;;  %1566 = vmatpush1.bf16.msra.mxu1 %v6978_v10 }
 0x27c   :  { %1526 = vmatprep.subr.bf16.mxu0 %v6979_v11  ;;  %1567 = vmatprep.subr.bf16.mxu1 %v6980_v12 }
 0x27f   :  { %1527 = vmatpush1.bf16.msra.mxu0 %v6981_v13  ;;  %1568 = vmatpush1.bf16.msra.mxu1 %v6982_v14 }
 0x280   :  { %1528 = vmatprep.subr.bf16.mxu0 %v6983_v15  ;;  %1569 = vmatprep.subr.bf16.mxu1 %v6984_v16 }
 0x283   :  { %1529 = vmatpush1.bf16.msra.mxu0 %v6985_v18  ;;  %1570 = vmatpush1.bf16.msra.mxu1 %v6986_v19 }
 0x284   :  { %1530 = vmatprep.subr.bf16.mxu0 %v6987_v21  ;;  %1571 = vmatprep.subr.bf16.mxu1 %v6988_v22 }
 0x287   :  { %1531 = vmatpush1.bf16.msra.mxu0 %v6989_v28  ;;  %1572 = vmatpush1.bf16.msra.mxu1 %v6990_v29 }
 0x288   :  { %1532 = vmatprep.subr.bf16.mxu0 %v6991_v31  ;;  %1573 = vmatprep.subr.bf16.mxu1 %v6992_v32 }
 0x28b   :  { %1533 = vmatpush1.bf16.msra.mxu0 %v6993_v33  ;;  %1574 = vmatpush1.bf16.msra.mxu1 %v6994_v34 }
 0x28c   :  { %1534 = vmatprep.subr.bf16.mxu0 %v6995_v35  ;;  %1575 = vmatprep.subr.bf16.mxu1 %v6996_v36 }
 0x28f   :  { %1535 = vmatpush1.bf16.msra.mxu0 %v6997_v37  ;;  %1576 = vmatpush1.bf16.msra.mxu1 %v6998_v4 }
 0x290   :  { %1605 = vmatprep.subr.bf16.mxu0 %v7067_v38  ;;  %1646 = vmatprep.subr.bf16.mxu1 %v7068_v39 }
 0x303   :  { %v1232_v40 = vpop.f32.mrb[20].mxu0  ;;  %v1273_v41 = vpop.f32.mrb[20].mxu1 }
 0x304   :  { %v1234_v42 = vpop.f32.mrb[21].mxu0  ;;  %v1275_v43 = vpop.f32.mrb[21].mxu1 }
 0x305   :  { %v1236_v44 = vpop.f32.mrb[22].mxu0  ;;  %v1277_v45 = vpop.f32.mrb[22].mxu1 }
 0x306   :  { %v1237_v46 = vpop.f32.mrb[23].mxu0  ;;  %v1278_v8 = vpop.f32.mrb[23].mxu1 }
 0x325   :  { %v1317_v9 = vpop.f32.mrb[24].mxu0  ;;  %v1358_v10 = vpop.f32.mrb[24].mxu1 }
 0x326   :  { %v1318_v11 = vadd.f32 %v1317_v9, %v1232_v40  ;;  %v1359_v12 = vadd.f32 %v1358_v10, %v1273_v41  ;;  %v1319_v13 = vpop.f32.mrb[25].mxu0  ;;  %v1360_v14 = vpop.f32.mrb[25].mxu1 }
 0x327   :  { %v1320_v15 = vadd.f32 %v1319_v13, %v1234_v42  ;;  %v1361_v16 = vadd.f32 %v1360_v14, %v1275_v43  ;;  %v1321_v18 = vpop.f32.mrb[26].mxu0  ;;  %v1362_v19 = vpop.f32.mrb[26].mxu1 }
 0x328   :  { %v1365_v21 = vadd.f32 %v1318_v11, %v4825_v3  ;;  %v1322_v22 = vpop.f32.mrb[27].mxu0  ;;  %v1363_v28 = vpop.f32.mrb[27].mxu1  ;;  %v1367_v35 = vadd.f32 %v1359_v12, %v4840_v24 }
 0x329   :  { %v1366_v29 = vadd.f32 %v1320_v15, %v4829_v48  ;;  %v1368_v33 = vadd.f32 %v1361_v16, %v4835_v58 }
 0x32a   :  { %v3427_v31 = vmul.f32 -1.442695, %v1365_v21 }
 0x32b   :  { %v3428_v32 = vmul.f32 -1.442695, %v1366_v29  ;;  %v3429_v34 = vmul.f32 -1.442695, %v1368_v33 }
 0x32c   :  { %3666 = vpow2.f32 %v3427_v31 }
 0x32d   :  { %3668 = vpow2.f32 %v3428_v32 }
 0x32e   :  { %3670 = vpow2.f32 %v3429_v34 }
 0x32f   :  { %3672 = vtanh.f32 %v1367_v35 }
 0x336   :  { %v3667_v36 = vpop.eup %3666 }
 0x337   :  { %v3669_v37 = vpop.eup %3668  ;;  %v1372_v4 = vadd.f32 1.0, %v3667_v36 }
 0x338   :  { %v1378_v59 = vadd.f32 1.0, %v3669_v37  ;;  %v3671_v38 = vpop.eup %3670 }
 0x339   :  { %3674 = vrcp.f32 %v1372_v4  ;;  %v3673_v39 = vpop.eup %3672  ;;  %v1385_v43 = vadd.f32 1.0, %v3671_v38 }
 0x33a   :  { %3676 = vrcp.f32 %v1378_v59 }
 0x33b   :  { %3678 = vrcp.f32 %v1385_v43  ;;  %v5163_v43 = vld [vmem:[%s6575_s4 + $0x20] ss:$16 sps:$4 sm:$0xff]  }
 0x343   :  { %v3675_v40 = vpop.eup %3674 }
 0x344   :  { %v3677_v41 = vpop.eup %3676  ;;  %v1389_v42 = vmul.f32 %v3675_v40, %v3673_v39  ;;  %v5137_v39 = vld [vmem:[%s6575_s4] ss:$16 sps:$4 sm:$0xff]   ;;  %v5143_v40 = vld [vmem:[%s6575_s4 + $0x8] ss:$16 sps:$4 sm:$0xff]  }
 0x345   :  { %v1388_v44 = vmul.f32 %v3677_v41, %v4843_v63  ;;  %v1427_v45 = vpop.f32.mrb[28].mxu0  ;;  %v1468_v46 = vpop.f32.mrb[28].mxu1  ;;  %v5149_v41 = vld [vmem:[%s6575_s4 + $0x24] ss:$16 sps:$4 sm:$0xff]  }
 0x346   :  { %v1479_v8 = vrot.slane %v1427_v45, 4  ;;  %v1429_v9 = vpop.f32.mrb[29].mxu0  ;;  %v1470_v10 = vpop.f32.mrb[29].mxu1  ;;  %v1481_v29 = vrot.slane %v1468_v46, 4 }
 0x347   :  { %v5127_v11 = vadd.f32 %v1389_v42, %v1388_v44  ;;  %v1480_v12 = vrot.slane %v1429_v9, 4  ;;  %v1431_v13 = vpop.f32.mrb[30].mxu0  ;;  %v1472_v14 = vpop.f32.mrb[30].mxu1  ;;  %v1482_v22 = vrot.slane %v1470_v10, 4  ;;  %v5155_v42 = vld [vmem:[%s6575_s4 + $0x2c] ss:$16 sps:$4 sm:$0xff]  }
 0x348   :  { %v1487_v15 = vadd.f32 %v1479_v8, %v4737_v49  ;;  %v1432_v16 = vpop.f32.mrb[31].mxu0  ;;  %v1473_v18 = vpop.f32.mrb[31].mxu1  ;;  %v1489_v34 = vadd.f32 %v1481_v29, %v4746_v5  ;;  %v5169_v44 = vld [vmem:[%s6575_s4 + $0x28] ss:$16 sps:$4 sm:$0xff]   ;;  %v1511_v9 = vrot.slane %v4869_v51, 6  ;;  %v7087_v29 = vld [vmem:[#allocation10_spill] sm:$0xff] }
 0x349   :  { %v1488_v19 = vadd.f32 %v1480_v12, %v4739_v50  ;;  %3680 = vtanh.f32 %v5127_v11  ;;  %v1490_v28 = vadd.f32 %v1482_v22, %v4743_v52  ;;  %v3679_v31 = vpop.eup %3678  ;;  %v7085_v22 = vld [vmem:[#allocation9_spill] sm:$0xff] }
 0x34a   :  { %v3430_v63 = vmul.f32 -1.442695, %v1487_v15  ;;  %v7077_v15 = vld [vmem:[#allocation54_spill] sm:$0xff] }
 0x34b   :  { %v3431_v21 = vmul.f32 -1.442695, %v1488_v19  ;;  %v3432_v33 = vmul.f32 -1.442695, %v1490_v28  ;;  %v7086_v28 = vld [vmem:[#allocation11_spill] sm:$0xff] }
 0x34c   :  { %3682 = vpow2.f32 %v3430_v63  ;;  %v7080_v63 = vld [vmem:[#allocation5_spill] sm:$0xff] }
 0x34d   :  { %3684 = vpow2.f32 %v3431_v21  ;;  %v7082_v21 = vld [vmem:[#allocation7_spill] sm:$0xff] }
 0x34e   :  { %3686 = vpow2.f32 %v3432_v33  ;;  %v7090_v33 = vld [vmem:[#allocation15_spill] sm:$0xff] }
 0x34f   :  { %3688 = vtanh.f32 %v1489_v34  ;;  %v7091_v34 = vld [vmem:[#allocation14_spill] sm:$0xff] }
 0x353   :  { %v3681_v32 = vpop.eup %3680 }
 0x354   :  { %v1392_v35 = vmul.f32 %v3681_v32, %v3679_v31  ;;  %v7088_v31 = vld [vmem:[#allocation12_spill] sm:$0xff]  ;;  %v7089_v32 = vld [vmem:[#allocation13_spill] sm:$0xff] }
 0x356   :  { %v3683_v36 = vpop.eup %3682  ;;  %v1519_v37 = vpack.c.bf16 %v1392_v35, %v1392_v35  ;;  %v7092_v35 = vld [vmem:[#allocation16_spill] sm:$0xff] }
 0x357   :  { %v3685_v4 = vpop.eup %3684  ;;  %v1494_v59 = vadd.f32 1.0, %v3683_v36  ;;  %v7093_v36 = vld [vmem:[#allocation17_spill] sm:$0xff] }
 0x358   :  { %v1500_v38 = vadd.f32 1.0, %v3685_v4  ;;  %1553 = vmatmul.mubr.bf16.vlgmr.msra.gmra.mrb[32].mxu0 %v1519_v37  ;;  %1594 = vmatmul.mubr.bf16.vlgmr.msra.gmra.mrb[32].mxu1 %v1519_v37  ;;  %v3687_v45 = vpop.eup %3686  ;;  %v7094_v37 = vld [vmem:[#allocation19_spill] sm:$0xff]  ;;  %v7095_v4 = vld [vmem:[#allocation18_spill] sm:$0xff] }
 0x359   :  { %3690 = vrcp.f32 %v1494_v59  ;;  %1606 = vmatpush1.bf16.msra.mxu0 %v5137_v39  ;;  %1647 = vmatpush1.bf16.msra.mxu1 %v5143_v40  ;;  %v3689_v46 = vpop.eup %3688  ;;  %v1507_v13 = vadd.f32 1.0, %v3687_v45  ;;  %v7096_v59 = vld [vmem:[#allocation20_spill] sm:$0xff]  ;;  %v7098_v45 = vld [vmem:[#allocation23_spill] sm:$0xff] }
 0x35a   :  { %3692 = vrcp.f32 %v1500_v38  ;;  %1607 = vmatprep.subr.bf16.mxu0 %v5149_v41  ;;  %1648 = vmatprep.subr.bf16.mxu1 %v5155_v42  ;;  %v7097_v38 = vld [vmem:[#allocation21_spill] sm:$0xff] }
 0x35b   :  { %1637 = vmatprep.mubr.bf16.mxu0 %v6938_v2  ;;  %1678 = vmatprep.mubr.bf16.mxu1 %v6938_v2  ;;  %3694 = vrcp.f32 %v1507_v13  ;;  %v7104_v13 = vld [vmem:[#allocation29_spill] sm:$0xff] }
 0x35d   :  { %1608 = vmatpush1.bf16.msra.mxu0 %v5163_v43  ;;  %1649 = vmatpush1.bf16.msra.mxu1 %v5169_v44 }
 0x35e   :  { %1609 = vmatprep.subr.bf16.mxu0 %v7012_v61  ;;  %1650 = vmatprep.subr.bf16.mxu1 %v7013_v56  ;;  %v7069_v61 = vld [vmem:[#allocation42_spill] sm:$0xff] }
 0x361   :  { %1610 = vmatpush1.bf16.msra.mxu0 %v7014_v57  ;;  %1651 = vmatpush1.bf16.msra.mxu1 %v7015_v53  ;;  %v7070_v57 = vld [vmem:[#allocation43_spill] sm:$0xff]  ;;  %v7071_v53 = vld [vmem:[#allocation44_spill] sm:$0xff] }
 0x362   :  { %1611 = vmatprep.subr.bf16.mxu0 %v7016_v7  ;;  %1652 = vmatprep.subr.bf16.mxu1 %v7017_v6  ;;  %v7072_v7 = vld [vmem:[#allocation45_spill] sm:$0xff]  ;;  %v7073_v6 = vld [vmem:[#allocation46_spill] sm:$0xff] }
 0x363   :  { %v3691_v8 = vpop.eup %3690 }
 0x364   :  { %v3693_v10 = vpop.eup %3692  ;;  %v1514_v12 = vmul.f32 %v3691_v8, %v3689_v46  ;;  %v7099_v46 = vld [vmem:[#allocation22_spill] sm:$0xff]  ;;  %v7100_v8 = vld [vmem:[#allocation24_spill] sm:$0xff] }
 0x365   :  { %v1513_v14 = vmul.f32 %v3693_v10, %v1511_v9  ;;  %1612 = vmatpush1.bf16.msra.mxu0 %v7018_v47  ;;  %1653 = vmatpush1.bf16.msra.mxu1 %v7019_v62  ;;  %v7074_v47 = vld [vmem:[#allocation47_spill] sm:$0xff]  ;;  %v7075_v62 = vld [vmem:[#allocation49_spill] sm:$0xff]  ;;  %v3695_v51 = vpop.eup %3694 }
 0x366   :  { %1613 = vmatprep.subr.bf16.mxu0 %v7020_v26  ;;  %1654 = vmatprep.subr.bf16.mxu1 %v7069_v61  ;;  %v7076_v26 = vld [vmem:[#allocation52_spill] sm:$0xff]  ;;  %v7101_v9 = vld [vmem:[#allocation57_spill] sm:$0xff]  ;;  %v7102_v10 = vld [vmem:[#allocation27_spill] sm:$0xff] }
 0x367   :  { %v5183_v56 = vadd.f32 %v1514_v12, %v1513_v14  ;;  %v7103_v12 = vld [vmem:[#allocation28_spill] sm:$0xff]  ;;  %v5243_v61 = vld [vmem:[%s6574_s5 + $0xc] ss:$16 sps:$4 sm:$0xff]  }
 0x368   :  { %v5237_v14 = vld [vmem:[%s6574_s5 + $0x4] ss:$16 sps:$4 sm:$0xff]   ;;  %7106 = vst [vmem:[#allocation35_spill] sm:$0xff] %v5243_v61 }
 0x369   :  { %1614 = vmatpush1.bf16.msra.mxu0 %v7070_v57  ;;  %1655 = vmatpush1.bf16.msra.mxu1 %v7071_v53  ;;  %3696 = vtanh.f32 %v5183_v56  ;;  %7105 = vst [vmem:[#allocation34_spill] sm:$0xff] %v5237_v14  ;;  %v5249_v57 = vld [vmem:[%s6574_s5] ss:$16 sps:$4 sm:$0xff]   ;;  %v5255_v53 = vld [vmem:[%s6574_s5 + $0x8] ss:$16 sps:$4 sm:$0xff]  }
 0x36a   :  { %1615 = vmatprep.subr.bf16.mxu0 %v7072_v7  ;;  %1656 = vmatprep.subr.bf16.mxu1 %v7073_v6  ;;  %7107 = vst [vmem:[#allocation36_spill] sm:$0xff] %v5249_v57  ;;  %7108 = vst [vmem:[#allocation37_spill] sm:$0xff] %v5255_v53  ;;  %v5261_v7 = vld [vmem:[%s6574_s5 + $0x24] ss:$16 sps:$4 sm:$0xff]   ;;  %v5267_v6 = vld [vmem:[%s6574_s5 + $0x2c] ss:$16 sps:$4 sm:$0xff]  }
 0x36b   :  { %7109 = vst [vmem:[#allocation38_spill] sm:$0xff] %v5261_v7  ;;  %7110 = vst [vmem:[#allocation39_spill] sm:$0xff] %v5267_v6 }
 0x36d   :  { %1616 = vmatpush1.bf16.msra.mxu0 %v7074_v47  ;;  %1657 = vmatpush1.bf16.msra.mxu1 %v7027_v23  ;;  %v7078_v23 = vld [vmem:[#allocation3_spill] sm:$0xff]  ;;  %v5275_v47 = vld [vmem:[%s6574_s5 + $0x20] ss:$16 sps:$4 sm:$0xff]  }
 0x36e   :  { %1617 = vmatprep.subr.bf16.mxu0 %v7075_v62  ;;  %1658 = vmatprep.subr.bf16.mxu1 %v7029_v27  ;;  %7111 = vst [vmem:[#allocation40_spill] sm:$0xff] %v5275_v47  ;;  %v5281_v62 = vld [vmem:[%s6574_s5 + $0x28] ss:$16 sps:$4 sm:$0xff]  }
 0x36f   :  { %7112 = vst [vmem:[#allocation41_spill] sm:$0xff] %v5281_v62 }
 0x371   :  { %1618 = vmatpush1.bf16.msra.mxu0 %v7030_v30  ;;  %1659 = vmatpush1.bf16.msra.mxu1 %v7076_v26  ;;  %v7079_v30 = vld [vmem:[#allocation2_spill] sm:$0xff] }
 0x372   :  { %1619 = vmatprep.subr.bf16.mxu0 %v7032_v60  ;;  %1660 = vmatprep.subr.bf16.mxu1 %v7077_v15  ;;  %v7081_v60 = vld [vmem:[#allocation4_spill] sm:$0xff] }
 0x373   :  { %v3697_v16 = vpop.eup %3696  ;;  %v5287_v26 = vld [vmem:[%s6574_s5 + $0x44] ss:$16 sps:$4 sm:$0xff]   ;;  %v5299_v15 = vld [vmem:[%s6574_s5 + $0x40] ss:$16 sps:$4 sm:$0xff]  }
 0x374   :  { %v1517_v18 = vmul.f32 %v3697_v16, %v3695_v51  ;;  %7113 = vst [vmem:[#allocation48_spill] sm:$0xff] %v5287_v26  ;;  %v5293_v51 = vld [vmem:[%s6574_s5 + $0x4c] ss:$16 sps:$4 sm:$0xff]   ;;  %7115 = vst [vmem:[#allocation51_spill] sm:$0xff] %v5299_v15  ;;  %v5305_v16 = vld [vmem:[%s6574_s5 + $0x48] ss:$16 sps:$4 sm:$0xff]  }
 0x375   :  { %1620 = vmatpush1.bf16.msra.mxu0 %v7034_v1  ;;  %1661 = vmatpush1.bf16.msra.mxu1 %v7035_v54  ;;  %v7083_v1 = vld [vmem:[#allocation6_spill] sm:$0xff]  ;;  %v7084_v54 = vld [vmem:[#allocation8_spill] sm:$0xff]  ;;  %7114 = vst [vmem:[#allocation50_spill] sm:$0xff] %v5293_v51  ;;  %7116 = vst [vmem:[#allocation53_spill] sm:$0xff] %v5305_v16 }
 0x376   :  { %1715 = vmatprep.subr.bf16.mxu0 %v7078_v23  ;;  %1756 = vmatprep.subr.bf16.mxu1 %v4895_v17  ;;  %v1518_v27 = vpack.c.bf16 %v1517_v18, %v1517_v18  ;;  %v5311_v18 = vld [vmem:[%s6574_s5 + $0x64] ss:$16 sps:$4 sm:$0xff]  }
 0x377   :  { %7117 = vst [vmem:[#allocation55_spill] sm:$0xff] %v5311_v18 }
 0x378   :  { %v1603_v19 = vrot.slane %v1518_v27, 2  ;;  %v5317_v27 = vld [vmem:[%s6574_s5 + $0x6c] ss:$16 sps:$4 sm:$0xff]  }
 0x379   :  { %7118 = vst [vmem:[#allocation56_spill] sm:$0xff] %v5317_v27 }
 0x37a   :  { %1638 = vmatmul.mubr.bf16.vlgmr.msra.gmra.mrb[36].mxu0 %v1603_v19  ;;  %1679 = vmatmul.mubr.bf16.vlgmr.msra.gmra.mrb[36].mxu1 %v1603_v19 }
 0x37b   :  { %1716 = vmatpush1.bf16.msra.mxu0 %v7079_v30  ;;  %1757 = vmatpush1.bf16.msra.mxu1 %v7080_v63 }
 0x37c   :  { %1717 = vmatprep.subr.bf16.mxu0 %v7081_v60  ;;  %1758 = vmatprep.subr.bf16.mxu1 %v7082_v21 }
 0x37d   :  { %1747 = vmatprep.mubr.bf16.mxu0 %v6938_v2  ;;  %1788 = vmatprep.mubr.bf16.mxu1 %v6938_v2 }
 0x37f   :  { %1718 = vmatpush1.bf16.msra.mxu0 %v7083_v1  ;;  %1759 = vmatpush1.bf16.msra.mxu1 %v7084_v54 }
 0x380   :  { %1719 = vmatprep.subr.bf16.mxu0 %v7085_v22  ;;  %1760 = vmatprep.subr.bf16.mxu1 %v7086_v28 }
 0x383   :  { %1720 = vmatpush1.bf16.msra.mxu0 %v7087_v29  ;;  %1761 = vmatpush1.bf16.msra.mxu1 %v7088_v31 }
 0x384   :  { %1721 = vmatprep.subr.bf16.mxu0 %v7089_v32  ;;  %1762 = vmatprep.subr.bf16.mxu1 %v7090_v33 }
 0x387   :  { %1722 = vmatpush1.bf16.msra.mxu0 %v7091_v34  ;;  %1763 = vmatpush1.bf16.msra.mxu1 %v7092_v35 }
 0x388   :  { %1723 = vmatprep.subr.bf16.mxu0 %v7093_v36  ;;  %1764 = vmatprep.subr.bf16.mxu1 %v7094_v37 }
 0x38b   :  { %1724 = vmatpush1.bf16.msra.mxu0 %v7095_v4  ;;  %1765 = vmatpush1.bf16.msra.mxu1 %v7096_v59 }
 0x38c   :  { %1725 = vmatprep.subr.bf16.mxu0 %v7097_v38  ;;  %1766 = vmatprep.subr.bf16.mxu1 %v7098_v45 }
 0x38f   :  { %1726 = vmatpush1.bf16.msra.mxu0 %v7099_v46  ;;  %1767 = vmatpush1.bf16.msra.mxu1 %v7100_v8 }
 0x390   :  { %1727 = vmatprep.subr.bf16.mxu0 %v7101_v9  ;;  %1768 = vmatprep.subr.bf16.mxu1 %v7102_v10 }
 0x393   :  { %1728 = vmatpush1.bf16.msra.mxu0 %v7103_v12  ;;  %1769 = vmatpush1.bf16.msra.mxu1 %v7104_v13 }
 0x394   :  { %1729 = vmatprep.subr.bf16.mxu0 %v5063_v55  ;;  %1770 = vmatprep.subr.bf16.mxu1 %v5069_v20 }
 0x397   :  { %1730 = vmatpush1.bf16.msra.mxu0 %v5075_v0  ;;  %1771 = vmatpush1.bf16.msra.mxu1 %v5081_v25 }
 0x398   :  { %1842 = vmatprep.subr.bf16.mxu0 %v5237_v14  ;;  %1883 = vmatprep.subr.bf16.mxu1 %v5243_v61 }
 0x39a   :  { %1748 = vmatmul.mubr.bf16.vlgmr.msra.gmra.mrb[40].mxu0 %v1603_v19  ;;  %1789 = vmatmul.mubr.bf16.vlgmr.msra.gmra.mrb[40].mxu1 %v1603_v19  ;;  %v5323_v19 = vld [vmem:[%s6574_s5 + $0x60] ss:$16 sps:$4 sm:$0xff]  }
 0x39b   :  { %1843 = vmatpush1.bf16.msra.mxu0 %v5249_v57  ;;  %1884 = vmatpush1.bf16.msra.mxu1 %v5255_v53  ;;  %7119 = vst [vmem:[#allocation25_spill] sm:$0xff] %v5323_v19 }
 0x39c   :  { %1844 = vmatprep.subr.bf16.mxu0 %v5261_v7  ;;  %1885 = vmatprep.subr.bf16.mxu1 %v5267_v6 }
 0x39d   :  { %1874 = vmatprep.mubr.bf16.mxu0 %v6938_v2  ;;  %1915 = vmatprep.mubr.bf16.mxu1 %v6938_v2 }
 0x39f   :  { %1845 = vmatpush1.bf16.msra.mxu0 %v5275_v47  ;;  %1886 = vmatpush1.bf16.msra.mxu1 %v5281_v62 }
 0x3a0   :  { %1846 = vmatprep.subr.bf16.mxu0 %v5287_v26  ;;  %1887 = vmatprep.subr.bf16.mxu1 %v5293_v51 }
 0x3a3   :  { %1847 = vmatpush1.bf16.msra.mxu0 %v5299_v15  ;;  %1888 = vmatpush1.bf16.msra.mxu1 %v5305_v16  ;;  %v5329_v16 = vld [vmem:[%s6574_s5 + $0x68] ss:$16 sps:$4 sm:$0xff]  }
 0x3a4   :  { %1848 = vmatprep.subr.bf16.mxu0 %v5311_v18  ;;  %1889 = vmatprep.subr.bf16.mxu1 %v5317_v27  ;;  %7120 = vst [vmem:[#allocation26_spill] sm:$0xff] %v5329_v16  ;;  %v5335_v18 = vld [vmem:[%s6574_s5 + $0x84] ss:$16 sps:$4 sm:$0xff]   ;;  %v5341_v27 = vld [vmem:[%s6574_s5 + $0x8c] ss:$16 sps:$4 sm:$0xff]  }
 0x3a5   :  { %7121 = vst [vmem:[#allocation42_spill] sm:$0xff] %v5335_v18  ;;  %7122 = vst [vmem:[#allocation43_spill] sm:$0xff] %v5341_v27 }
 0x3a7   :  { %1849 = vmatpush1.bf16.msra.mxu0 %v5323_v19  ;;  %1890 = vmatpush1.bf16.msra.mxu1 %v5329_v16  ;;  %v5347_v19 = vld [vmem:[%s6574_s5 + $0x80] ss:$16 sps:$4 sm:$0xff]   ;;  %v5353_v16 = vld [vmem:[%s6574_s5 + $0x88] ss:$16 sps:$4 sm:$0xff]  }
 0x3a8   :  { %1850 = vmatprep.subr.bf16.mxu0 %v5335_v18  ;;  %1891 = vmatprep.subr.bf16.mxu1 %v5341_v27  ;;  %7123 = vst [vmem:[#allocation44_spill] sm:$0xff] %v5347_v19  ;;  %7124 = vst [vmem:[#allocation45_spill] sm:$0xff] %v5353_v16  ;;  %v5359_v18 = vld [vmem:[%s6574_s5 + $0xa4] ss:$16 sps:$4 sm:$0xff]   ;;  %v5365_v27 = vld [vmem:[%s6574_s5 + $0xac] ss:$16 sps:$4 sm:$0xff]  }
 0x3a9   :  { %7125 = vst [vmem:[#allocation46_spill] sm:$0xff] %v5359_v18  ;;  %7126 = vst [vmem:[#allocation47_spill] sm:$0xff] %v5365_v27 }
 0x3ab   :  { %1851 = vmatpush1.bf16.msra.mxu0 %v5347_v19  ;;  %1892 = vmatpush1.bf16.msra.mxu1 %v5353_v16  ;;  %v5371_v19 = vld [vmem:[%s6574_s5 + $0xa0] ss:$16 sps:$4 sm:$0xff]   ;;  %v5377_v16 = vld [vmem:[%s6574_s5 + $0xa8] ss:$16 sps:$4 sm:$0xff]  }
 0x3ac   :  { %1852 = vmatprep.subr.bf16.mxu0 %v5359_v18  ;;  %1893 = vmatprep.subr.bf16.mxu1 %v5365_v27  ;;  %7127 = vst [vmem:[#allocation49_spill] sm:$0xff] %v5371_v19  ;;  %7128 = vst [vmem:[#allocation52_spill] sm:$0xff] %v5377_v16  ;;  %v5383_v18 = vld [vmem:[%s6574_s5 + $0xc4] ss:$16 sps:$4 sm:$0xff]   ;;  %v5389_v27 = vld [vmem:[%s6574_s5 + $0xcc] ss:$16 sps:$4 sm:$0xff]  }
 0x3ad   :  { %7129 = vst [vmem:[#allocation54_spill] sm:$0xff] %v5383_v18  ;;  %7130 = vst [vmem:[#allocation3_spill] sm:$0xff] %v5389_v27 }
 0x3af   :  { %1853 = vmatpush1.bf16.msra.mxu0 %v5371_v19  ;;  %1894 = vmatpush1.bf16.msra.mxu1 %v5377_v16  ;;  %v5395_v19 = vld [vmem:[%s6574_s5 + $0xc0] ss:$16 sps:$4 sm:$0xff]   ;;  %v5401_v16 = vld [vmem:[%s6574_s5 + $0xc8] ss:$16 sps:$4 sm:$0xff]  }
 0x3b0   :  { %1854 = vmatprep.subr.bf16.mxu0 %v5383_v18  ;;  %1895 = vmatprep.subr.bf16.mxu1 %v5389_v27  ;;  %7131 = vst [vmem:[#allocation2_spill] sm:$0xff] %v5395_v19  ;;  %7132 = vst [vmem:[#allocation5_spill] sm:$0xff] %v5401_v16  ;;  %v5407_v18 = vld [vmem:[%s6574_s5 + $0xe4] ss:$16 sps:$4 sm:$0xff]   ;;  %v5413_v27 = vld [vmem:[%s6574_s5 + $0xec] ss:$16 sps:$4 sm:$0xff]  }
 0x3b1   :  { %7133 = vst [vmem:[#allocation4_spill] sm:$0xff] %v5407_v18  ;;  %7134 = vst [vmem:[#allocation7_spill] sm:$0xff] %v5413_v27 }
 0x3b3   :  { %1855 = vmatpush1.bf16.msra.mxu0 %v5395_v19  ;;  %1896 = vmatpush1.bf16.msra.mxu1 %v5401_v16  ;;  %v5419_v19 = vld [vmem:[%s6574_s5 + $0xe0] ss:$16 sps:$4 sm:$0xff]   ;;  %v5425_v16 = vld [vmem:[%s6574_s5 + $0xe8] ss:$16 sps:$4 sm:$0xff]  }
 0x3b4   :  { %1856 = vmatprep.subr.bf16.mxu0 %v5407_v18  ;;  %1897 = vmatprep.subr.bf16.mxu1 %v5413_v27  ;;  %7135 = vst [vmem:[#allocation6_spill] sm:$0xff] %v5419_v19  ;;  %7136 = vst [vmem:[#allocation8_spill] sm:$0xff] %v5425_v16  ;;  %v5431_v18 = vld [vmem:[%s6575_s4 + $0x4] ss:$16 sps:$4 sm:$0xff]   ;;  %v5437_v27 = vld [vmem:[%s6575_s4 + $0xc] ss:$16 sps:$4 sm:$0xff]  }
 0x3b5   :  { %7137 = vst [vmem:[#allocation9_spill] sm:$0xff] %v5431_v18  ;;  %7138 = vst [vmem:[#allocation11_spill] sm:$0xff] %v5437_v27 }
 0x3b7   :  { %1857 = vmatpush1.bf16.msra.mxu0 %v5419_v19  ;;  %1898 = vmatpush1.bf16.msra.mxu1 %v5425_v16 }
 0x3b8   :  { %1927 = vmatprep.subr.bf16.mxu0 %v5431_v18  ;;  %1968 = vmatprep.subr.bf16.mxu1 %v5437_v27 }
 0x42b   :  { %v1554_v19 = vpop.f32.mrb[32].mxu0  ;;  %v1595_v15 = vpop.f32.mrb[32].mxu1 }
 0x42c   :  { %v1556_v51 = vpop.f32.mrb[33].mxu0  ;;  %v1597_v26 = vpop.f32.mrb[33].mxu1 }
 0x42d   :  { %v1558_v62 = vpop.f32.mrb[34].mxu0  ;;  %v1599_v16 = vpop.f32.mrb[34].mxu1 }
 0x42e   :  { %v1559_v47 = vpop.f32.mrb[35].mxu0  ;;  %v1600_v6 = vpop.f32.mrb[35].mxu1 }
 0x44d   :  { %v1639_v7 = vpop.f32.mrb[36].mxu0  ;;  %v1680_v53 = vpop.f32.mrb[36].mxu1 }
 0x44e   :  { %v1640_v57 = vadd.f32 %v1639_v7, %v1554_v19  ;;  %v1681_v61 = vadd.f32 %v1680_v53, %v1595_v15  ;;  %v1641_v18 = vpop.f32.mrb[37].mxu0  ;;  %v1682_v14 = vpop.f32.mrb[37].mxu1 }
 0x44f   :  { %v1642_v25 = vadd.f32 %v1641_v18, %v1556_v51  ;;  %v1683_v0 = vadd.f32 %v1682_v14, %v1597_v26  ;;  %v1643_v20 = vpop.f32.mrb[38].mxu0  ;;  %v1684_v55 = vpop.f32.mrb[38].mxu1 }
 0x450   :  { %v1687_v27 = vadd.f32 %v1640_v57, %v4825_v3  ;;  %v1644_v13 = vpop.f32.mrb[39].mxu0  ;;  %v1685_v12 = vpop.f32.mrb[39].mxu1  ;;  %v1689_v53 = vadd.f32 %v1681_v61, %v4840_v24 }
 0x451   :  { %v1688_v10 = vadd.f32 %v1642_v25, %v4829_v48  ;;  %v1690_v6 = vadd.f32 %v1683_v0, %v4835_v58 }
 0x452   :  { %v3433_v62 = vmul.f32 -1.442695, %v1687_v27 }
 0x453   :  { %v3434_v16 = vmul.f32 -1.442695, %v1688_v10  ;;  %v3435_v7 = vmul.f32 -1.442695, %v1690_v6 }
 0x454   :  { %3698 = vpow2.f32 %v3433_v62 }
 0x455   :  { %3700 = vpow2.f32 %v3434_v16 }
 0x456   :  { %3702 = vpow2.f32 %v3435_v7 }
 0x457   :  { %3704 = vtanh.f32 %v1689_v53 }
 0x45e   :  { %v3699_v47 = vpop.eup %3698 }
 0x45f   :  { %v3701_v51 = vpop.eup %3700  ;;  %v1694_v14 = vadd.f32 1.0, %v3699_v47 }
 0x460   :  { %v1700_v20 = vadd.f32 1.0, %v3701_v51  ;;  %v3703_v55 = vpop.eup %3702 }
 0x461   :  { %3706 = vrcp.f32 %v1694_v14  ;;  %v3705_v12 = vpop.eup %3704  ;;  %v1707_v57 = vadd.f32 1.0, %v3703_v55 }
 0x462   :  { %3708 = vrcp.f32 %v1700_v20 }
 0x463   :  { %3710 = vrcp.f32 %v1707_v57 }
 0x46b   :  { %v3707_v25 = vpop.eup %3706 }
 0x46c   :  { %v3709_v13 = vpop.eup %3708  ;;  %v1711_v10 = vmul.f32 %v3707_v25, %v3705_v12 }
 0x46d   :  { %v1710_v26 = vmul.f32 %v3709_v13, %v5127_v11  ;;  %v1749_v0 = vpop.f32.mrb[40].mxu0  ;;  %v1790_v15 = vpop.f32.mrb[40].mxu1 }
 0x46e   :  { %v1801_v18 = vrot.slane %v1749_v0, 2  ;;  %v1751_v61 = vpop.f32.mrb[41].mxu0  ;;  %v1792_v27 = vpop.f32.mrb[41].mxu1  ;;  %v1803_v12 = vrot.slane %v1790_v15, 2 }
 0x46f   :  { %v5445_v19 = vadd.f32 %v1711_v10, %v1710_v26  ;;  %v1802_v62 = vrot.slane %v1751_v61, 2  ;;  %v1753_v16 = vpop.f32.mrb[42].mxu0  ;;  %v1794_v6 = vpop.f32.mrb[42].mxu1  ;;  %v1804_v20 = vrot.slane %v1792_v27, 2  ;;  %v5475_v27 = vld [vmem:[%s6575_s4 + $0x40] ss:$16 sps:$4 sm:$0xff]  }
 0x470   :  { %v1809_v7 = vadd.f32 %v1801_v18, %v4737_v49  ;;  %v1754_v53 = vpop.f32.mrb[43].mxu0  ;;  %v1795_v47 = vpop.f32.mrb[43].mxu1  ;;  %v1811_v57 = vadd.f32 %v1803_v12, %v4746_v5  ;;  %v5469_v5 = vld [vmem:[%s6575_s4 + $0x4c] ss:$16 sps:$4 sm:$0xff]   ;;  %v5487_v6 = vld [vmem:[%s6575_s4 + $0x64] ss:$16 sps:$4 sm:$0xff]  }
 0x471   :  { %v1810_v51 = vadd.f32 %v1802_v62, %v4739_v50  ;;  %3712 = vtanh.f32 %v5445_v19  ;;  %v1812_v55 = vadd.f32 %v1804_v20, %v4743_v52  ;;  %v3711_v25 = vpop.eup %3710  ;;  %v5463_v52 = vld [vmem:[%s6575_s4 + $0x44] ss:$16 sps:$4 sm:$0xff]   ;;  %v5481_v62 = vld [vmem:[%s6575_s4 + $0x48] ss:$16 sps:$4 sm:$0xff]   ;;  %v1833_v47 = vrot.slane %v5183_v56, 6 }
 0x472   :  { %v3436_v11 = vmul.f32 -1.442695, %v1809_v7  ;;  %v5493_v7 = vld [vmem:[%s6575_s4 + $0x6c] ss:$16 sps:$4 sm:$0xff]   ;;  %v5506_v12 = vld [vmem:[%s6575_s4 + $0x68] ss:$16 sps:$4 sm:$0xff]  }
 0x473   :  { %v3437_v14 = vmul.f32 -1.442695, %v1810_v51  ;;  %v3438_v10 = vmul.f32 -1.442695, %v1812_v55  ;;  %v5500_v55 = vld [vmem:[%s6575_s4 + $0x60] ss:$16 sps:$4 sm:$0xff]  }
 0x474   :  { %3714 = vpow2.f32 %v3436_v11  ;;  %v5512_v56 = vld [vmem:[%s6575_s4 + $0x84] ss:$16 sps:$4 sm:$0xff]  }
 0x475   :  { %3716 = vpow2.f32 %v3437_v14 }
 0x476   :  { %3718 = vpow2.f32 %v3438_v10  ;;  %v5526_v10 = vld [vmem:[%s6575_s4 + $0x80] ss:$16 sps:$4 sm:$0xff]  }
 0x477   :  { %3720 = vtanh.f32 %v1811_v57  ;;  %v5532_v57 = vld [vmem:[%s6575_s4 + $0x88] ss:$16 sps:$4 sm:$0xff]  }
 0x47b   :  { %v3713_v13 = vpop.eup %3712 }
 0x47c   :  { %v1714_v49 = vmul.f32 %v3713_v13, %v3711_v25  ;;  %v5518_v25 = vld [vmem:[%s6575_s4 + $0x8c] ss:$16 sps:$4 sm:$0xff]  }
 0x47e   :  { %v3715_v26 = vpop.eup %3714  ;;  %v1841_v0 = vpack.c.bf16 %v1714_v49, %v1714_v49  ;;  %v5539_v49 = vld [vmem:[%s6575_s4 + $0xa4] ss:$16 sps:$4 sm:$0xff]  }
 0x47f   :  { %v3717_v18 = vpop.eup %3716  ;;  %v1816_v50 = vadd.f32 1.0, %v3715_v26  ;;  %v5545_v26 = vld [vmem:[%s6575_s4 + $0xac] ss:$16 sps:$4 sm:$0xff]  }
 0x480   :  { %v1822_v61 = vadd.f32 1.0, %v3717_v18  ;;  %1875 = vmatmul.mubr.bf16.vlgmr.msra.gmra.mrb[44].mxu0 %v1841_v0  ;;  %1916 = vmatmul.mubr.bf16.vlgmr.msra.gmra.mrb[44].mxu1 %v1841_v0  ;;  %v3719_v15 = vpop.eup %3718  ;;  %v5551_v0 = vld [vmem:[%s6575_s4 + $0xa0] ss:$16 sps:$4 sm:$0xff]   ;;  %v5557_v18 = vld [vmem:[%s6575_s4 + $0xa8] ss:$16 sps:$4 sm:$0xff]  }
 0x481   :  { %3722 = vrcp.f32 %v1816_v50  ;;  %1928 = vmatpush1.bf16.msra.mxu0 %v5137_v39  ;;  %1969 = vmatpush1.bf16.msra.mxu1 %v5143_v40  ;;  %v3721_v16 = vpop.eup %3720  ;;  %v1829_v14 = vadd.f32 1.0, %v3719_v15  ;;  %v5563_v50 = vld [vmem:[%s6575_s4 + $0xc4] ss:$16 sps:$4 sm:$0xff]   ;;  %v5575_v15 = vld [vmem:[%s6575_s4 + $0xc0] ss:$16 sps:$4 sm:$0xff]  }
 0x482   :  { %3724 = vrcp.f32 %v1822_v61  ;;  %1929 = vmatprep.subr.bf16.mxu0 %v5149_v41  ;;  %1970 = vmatprep.subr.bf16.mxu1 %v5155_v42  ;;  %v5569_v61 = vld [vmem:[%s6575_s4 + $0xcc] ss:$16 sps:$4 sm:$0xff]  }
 0x483   :  { %1959 = vmatprep.mubr.bf16.mxu0 %v6938_v2  ;;  %2000 = vmatprep.mubr.bf16.mxu1 %v6938_v2  ;;  %3726 = vrcp.f32 %v1829_v14 }
 0x485   :  { %1930 = vmatpush1.bf16.msra.mxu0 %v5163_v43  ;;  %1971 = vmatpush1.bf16.msra.mxu1 %v5169_v44 }
 0x486   :  { %1931 = vmatprep.subr.bf16.mxu0 %v5463_v52  ;;  %1972 = vmatprep.subr.bf16.mxu1 %v5469_v5 }
 0x489   :  { %1932 = vmatpush1.bf16.msra.mxu0 %v5475_v27  ;;  %1973 = vmatpush1.bf16.msra.mxu1 %v5481_v62 }
 0x48a   :  { %1933 = vmatprep.subr.bf16.mxu0 %v5487_v6  ;;  %1974 = vmatprep.subr.bf16.mxu1 %v5493_v7 }
 0x48b   :  { %v3723_v53 = vpop.eup %3722 }
 0x48c   :  { %v3725_v51 = vpop.eup %3724  ;;  %v1836_v11 = vmul.f32 %v3723_v53, %v3721_v16  ;;  %v5581_v16 = vld [vmem:[%s6575_s4 + $0xc8] ss:$16 sps:$4 sm:$0xff]  }
 0x48d   :  { %v1835_v20 = vmul.f32 %v3725_v51, %v1833_v47  ;;  %1934 = vmatpush1.bf16.msra.mxu0 %v5500_v55  ;;  %1975 = vmatpush1.bf16.msra.mxu1 %v5506_v12  ;;  %v3727_v53 = vpop.eup %3726  ;;  %v5587_v47 = vld [vmem:[%s6575_s4 + $0xe4] ss:$16 sps:$4 sm:$0xff]   ;;  %v5593_v51 = vld [vmem:[%s6575_s4 + $0xec] ss:$16 sps:$4 sm:$0xff]  }
 0x48e   :  { %1935 = vmatprep.subr.bf16.mxu0 %v5512_v56  ;;  %1976 = vmatprep.subr.bf16.mxu1 %v5518_v25  ;;  %7139 = vst [vmem:[#allocation10_spill] sm:$0xff] %v5587_v47  ;;  %7140 = vst [vmem:[#allocation12_spill] sm:$0xff] %v5593_v51 }
 0x48f   :  { %v5521_v13 = vadd.f32 %v1836_v11, %v1835_v20  ;;  %v5599_v20 = vld [vmem:[%s6575_s4 + $0xe0] ss:$16 sps:$4 sm:$0xff]  }
 0x491   :  { %1936 = vmatpush1.bf16.msra.mxu0 %v5526_v10  ;;  %1977 = vmatpush1.bf16.msra.mxu1 %v5532_v57  ;;  %3728 = vtanh.f32 %v5521_v13 }
 0x492   :  { %1937 = vmatprep.subr.bf16.mxu0 %v5539_v49  ;;  %1978 = vmatprep.subr.bf16.mxu1 %v5545_v26 }
 0x495   :  { %1938 = vmatpush1.bf16.msra.mxu0 %v5551_v0  ;;  %1979 = vmatpush1.bf16.msra.mxu1 %v5557_v18 }
 0x496   :  { %1939 = vmatprep.subr.bf16.mxu0 %v5563_v50  ;;  %1980 = vmatprep.subr.bf16.mxu1 %v5569_v61 }
 0x499   :  { %1940 = vmatpush1.bf16.msra.mxu0 %v5575_v15  ;;  %1981 = vmatpush1.bf16.msra.mxu1 %v5581_v16 }
 0x49a   :  { %1941 = vmatprep.subr.bf16.mxu0 %v5587_v47  ;;  %1982 = vmatprep.subr.bf16.mxu1 %v5593_v51  ;;  %v5605_v47 = vld [vmem:[%s6575_s4 + $0xe8] ss:$16 sps:$4 sm:$0xff]  }
 0x49b   :  { %v3729_v11 = vpop.eup %3728 }
 0x49c   :  { %v1839_v14 = vmul.f32 %v3729_v11, %v3727_v53  ;;  %v7167_v11 = vld [vmem:[#allocation45_spill] sm:$0xff] }
 0x49d   :  { %1942 = vmatpush1.bf16.msra.mxu0 %v5599_v20  ;;  %1983 = vmatpush1.bf16.msra.mxu1 %v5605_v47 }
 0x49e   :  { %2037 = vmatprep.subr.bf16.mxu0 %v7078_v23  ;;  %2078 = vmatprep.subr.bf16.mxu1 %v4895_v17  ;;  %v1840_v51 = vpack.c.bf16 %v1839_v14, %v1839_v14  ;;  %v7141_v17 = vld [vmem:[#allocation27_spill] sm:$0xff]  ;;  %v7142_v23 = vld [vmem:[#allocation28_spill] sm:$0xff]  ;;  %v7168_v14 = vld [vmem:[#allocation46_spill] sm:$0xff] }
 0x4a0   :  { %v1925_v53 = vrot.slane %v1840_v51, 3  ;;  %v7166_v51 = vld [vmem:[#allocation44_spill] sm:$0xff] }
 0x4a2   :  { %1960 = vmatmul.mubr.bf16.vlgmr.msra.gmra.mrb[48].mxu0 %v1925_v53  ;;  %2001 = vmatmul.mubr.bf16.vlgmr.msra.gmra.mrb[48].mxu1 %v1925_v53 }
 0x4a3   :  { %2038 = vmatpush1.bf16.msra.mxu0 %v7079_v30  ;;  %2079 = vmatpush1.bf16.msra.mxu1 %v7080_v63  ;;  %v7143_v30 = vld [vmem:[#allocation29_spill] sm:$0xff]  ;;  %v7144_v63 = vld [vmem:[#allocation30_spill] sm:$0xff] }
 0x4a4   :  { %2039 = vmatprep.subr.bf16.mxu0 %v7081_v60  ;;  %2080 = vmatprep.subr.bf16.mxu1 %v7082_v21  ;;  %v7145_v60 = vld [vmem:[#allocation31_spill] sm:$0xff]  ;;  %v7146_v21 = vld [vmem:[#allocation32_spill] sm:$0xff] }
 0x4a5   :  { %2069 = vmatprep.mubr.bf16.mxu0 %v6938_v2  ;;  %2110 = vmatprep.mubr.bf16.mxu1 %v6938_v2 }
 0x4a7   :  { %2040 = vmatpush1.bf16.msra.mxu0 %v7083_v1  ;;  %2081 = vmatpush1.bf16.msra.mxu1 %v7084_v54  ;;  %v7147_v1 = vld [vmem:[#allocation33_spill] sm:$0xff]  ;;  %v7148_v54 = vld [vmem:[#allocation34_spill] sm:$0xff] }
 0x4a8   :  { %2041 = vmatprep.subr.bf16.mxu0 %v7085_v22  ;;  %2082 = vmatprep.subr.bf16.mxu1 %v7086_v28  ;;  %v7149_v22 = vld [vmem:[#allocation35_spill] sm:$0xff]  ;;  %v7150_v28 = vld [vmem:[#allocation36_spill] sm:$0xff] }
 0x4ab   :  { %2042 = vmatpush1.bf16.msra.mxu0 %v7087_v29  ;;  %2083 = vmatpush1.bf16.msra.mxu1 %v7088_v31  ;;  %v7151_v29 = vld [vmem:[#allocation37_spill] sm:$0xff]  ;;  %v7152_v31 = vld [vmem:[#allocation38_spill] sm:$0xff] }
 0x4ac   :  { %2043 = vmatprep.subr.bf16.mxu0 %v7089_v32  ;;  %2084 = vmatprep.subr.bf16.mxu1 %v7090_v33  ;;  %v7153_v32 = vld [vmem:[#allocation39_spill] sm:$0xff]  ;;  %v7154_v33 = vld [vmem:[#allocation40_spill] sm:$0xff] }
 0x4af   :  { %2044 = vmatpush1.bf16.msra.mxu0 %v7091_v34  ;;  %2085 = vmatpush1.bf16.msra.mxu1 %v7092_v35  ;;  %v7155_v34 = vld [vmem:[#allocation41_spill] sm:$0xff]  ;;  %v7156_v35 = vld [vmem:[#allocation48_spill] sm:$0xff] }
 0x4b0   :  { %2045 = vmatprep.subr.bf16.mxu0 %v7093_v36  ;;  %2086 = vmatprep.subr.bf16.mxu1 %v7094_v37  ;;  %v7157_v36 = vld [vmem:[#allocation50_spill] sm:$0xff]  ;;  %v7158_v37 = vld [vmem:[#allocation51_spill] sm:$0xff] }
 0x4b3   :  { %2046 = vmatpush1.bf16.msra.mxu0 %v7095_v4  ;;  %2087 = vmatpush1.bf16.msra.mxu1 %v7096_v59  ;;  %v7159_v4 = vld [vmem:[#allocation53_spill] sm:$0xff]  ;;  %v7160_v59 = vld [vmem:[#allocation55_spill] sm:$0xff] }
 0x4b4   :  { %2047 = vmatprep.subr.bf16.mxu0 %v7097_v38  ;;  %2088 = vmatprep.subr.bf16.mxu1 %v7098_v45  ;;  %v7161_v38 = vld [vmem:[#allocation56_spill] sm:$0xff]  ;;  %v7162_v45 = vld [vmem:[#allocation25_spill] sm:$0xff] }
 0x4b7   :  { %2048 = vmatpush1.bf16.msra.mxu0 %v7099_v46  ;;  %2089 = vmatpush1.bf16.msra.mxu1 %v7100_v8  ;;  %v7163_v46 = vld [vmem:[#allocation26_spill] sm:$0xff] }
 0x4b8   :  { %2049 = vmatprep.subr.bf16.mxu0 %v7101_v9  ;;  %2090 = vmatprep.subr.bf16.mxu1 %v7141_v17  ;;  %v7164_v8 = vld [vmem:[#allocation42_spill] sm:$0xff]  ;;  %v7165_v9 = vld [vmem:[#allocation43_spill] sm:$0xff]  ;;  %v7170_v17 = vld [vmem:[#allocation49_spill] sm:$0xff] }
 0x4bb   :  { %2050 = vmatpush1.bf16.msra.mxu0 %v7142_v23  ;;  %2091 = vmatpush1.bf16.msra.mxu1 %v7143_v30  ;;  %v7171_v23 = vld [vmem:[#allocation52_spill] sm:$0xff]  ;;  %v7172_v30 = vld [vmem:[#allocation54_spill] sm:$0xff] }
 0x4bc   :  { %2051 = vmatprep.subr.bf16.mxu0 %v7144_v63  ;;  %2092 = vmatprep.subr.bf16.mxu1 %v7145_v60  ;;  %v7173_v63 = vld [vmem:[#allocation3_spill] sm:$0xff]  ;;  %v7174_v60 = vld [vmem:[#allocation2_spill] sm:$0xff] }
 0x4bf   :  { %2052 = vmatpush1.bf16.msra.mxu0 %v7146_v21  ;;  %2093 = vmatpush1.bf16.msra.mxu1 %v7147_v1  ;;  %v7175_v21 = vld [vmem:[#allocation5_spill] sm:$0xff]  ;;  %v7176_v1 = vld [vmem:[#allocation4_spill] sm:$0xff] }
 0x4c0   :  { %2152 = vmatprep.subr.bf16.mxu0 %v7148_v54  ;;  %2193 = vmatprep.subr.bf16.mxu1 %v7149_v22 }
 0x4c2   :  { %2070 = vmatmul.mubr.bf16.vlgmr.msra.gmra.mrb[52].mxu0 %v1925_v53  ;;  %2111 = vmatmul.mubr.bf16.vlgmr.msra.gmra.mrb[52].mxu1 %v1925_v53  ;;  %v7169_v53 = vld [vmem:[#allocation47_spill] sm:$0xff] }
 0x4c3   :  { %2153 = vmatpush1.bf16.msra.mxu0 %v7150_v28  ;;  %2194 = vmatpush1.bf16.msra.mxu1 %v7151_v29 }
 0x4c4   :  { %2154 = vmatprep.subr.bf16.mxu0 %v7152_v31  ;;  %2195 = vmatprep.subr.bf16.mxu1 %v7153_v32 }
 0x4c5   :  { %2184 = vmatprep.mubr.bf16.mxu0 %v6938_v2  ;;  %2225 = vmatprep.mubr.bf16.mxu1 %v6938_v2 }
 0x4c7   :  { %2155 = vmatpush1.bf16.msra.mxu0 %v7154_v33  ;;  %2196 = vmatpush1.bf16.msra.mxu1 %v7155_v34 }
 0x4c8   :  { %2156 = vmatprep.subr.bf16.mxu0 %v7156_v35  ;;  %2197 = vmatprep.subr.bf16.mxu1 %v7157_v36 }
 0x4cb   :  { %2157 = vmatpush1.bf16.msra.mxu0 %v7158_v37  ;;  %2198 = vmatpush1.bf16.msra.mxu1 %v7159_v4 }
 0x4cc   :  { %2158 = vmatprep.subr.bf16.mxu0 %v7160_v59  ;;  %2199 = vmatprep.subr.bf16.mxu1 %v7161_v38 }
 0x4cf   :  { %2159 = vmatpush1.bf16.msra.mxu0 %v7162_v45  ;;  %2200 = vmatpush1.bf16.msra.mxu1 %v7163_v46 }
 0x4d0   :  { %2160 = vmatprep.subr.bf16.mxu0 %v7164_v8  ;;  %2201 = vmatprep.subr.bf16.mxu1 %v7165_v9 }
 0x4d3   :  { %2161 = vmatpush1.bf16.msra.mxu0 %v7166_v51  ;;  %2202 = vmatpush1.bf16.msra.mxu1 %v7167_v11  ;;  %v7177_v51 = vld [vmem:[#allocation7_spill] sm:$0xff]  ;;  %v7178_v11 = vld [vmem:[#allocation6_spill] sm:$0xff] }
 0x4d4   :  { %2162 = vmatprep.subr.bf16.mxu0 %v7168_v14  ;;  %2203 = vmatprep.subr.bf16.mxu1 %v7169_v53  ;;  %v7179_v14 = vld [vmem:[#allocation8_spill] sm:$0xff]  ;;  %v7180_v53 = vld [vmem:[#allocation9_spill] sm:$0xff] }
 0x4d7   :  { %2163 = vmatpush1.bf16.msra.mxu0 %v7170_v17  ;;  %2204 = vmatpush1.bf16.msra.mxu1 %v7171_v23  ;;  %v7181_v17 = vld [vmem:[#allocation11_spill] sm:$0xff] }
 0x4d8   :  { %2164 = vmatprep.subr.bf16.mxu0 %v7172_v30  ;;  %2205 = vmatprep.subr.bf16.mxu1 %v7173_v63 }
 0x4db   :  { %2165 = vmatpush1.bf16.msra.mxu0 %v7174_v60  ;;  %2206 = vmatpush1.bf16.msra.mxu1 %v7175_v21 }
 0x4dc   :  { %2166 = vmatprep.subr.bf16.mxu0 %v7176_v1  ;;  %2207 = vmatprep.subr.bf16.mxu1 %v7177_v51 }
 0x4df   :  { %2167 = vmatpush1.bf16.msra.mxu0 %v7178_v11  ;;  %2208 = vmatpush1.bf16.msra.mxu1 %v7179_v14 }
 0x4e0   :  { %2234 = vmatprep.subr.bf16.mxu0 %v7180_v53  ;;  %2275 = vmatprep.subr.bf16.mxu1 %v7181_v17 }
 0x553   :  { %v1876_v23 = vpop.f32.mrb[44].mxu0  ;;  %v1917_v30 = vpop.f32.mrb[44].mxu1 }
 0x554   :  { %v1878_v9 = vpop.f32.mrb[45].mxu0  ;;  %v1919_v63 = vpop.f32.mrb[45].mxu1 }
 0x555   :  { %v1880_v8 = vpop.f32.mrb[46].mxu0  ;;  %v1921_v60 = vpop.f32.mrb[46].mxu1 }
 0x556   :  { %v1881_v46 = vpop.f32.mrb[47].mxu0  ;;  %v1922_v21 = vpop.f32.mrb[47].mxu1 }
 0x575   :  { %v1961_v45 = vpop.f32.mrb[48].mxu0  ;;  %v2002_v1 = vpop.f32.mrb[48].mxu1 }
 0x576   :  { %v1962_v38 = vadd.f32 %v1961_v45, %v1876_v23  ;;  %v2003_v51 = vadd.f32 %v2002_v1, %v1917_v30  ;;  %v1963_v59 = vpop.f32.mrb[49].mxu0  ;;  %v2004_v11 = vpop.f32.mrb[49].mxu1 }
 0x577   :  { %v1964_v4 = vadd.f32 %v1963_v59, %v1878_v9  ;;  %v2005_v14 = vadd.f32 %v2004_v11, %v1919_v63  ;;  %v1965_v37 = vpop.f32.mrb[50].mxu0  ;;  %v2006_v53 = vpop.f32.mrb[50].mxu1  ;;  %v7182_v63 = vld [vmem:[#allocation58_spill] sm:$0xff] }
 0x578   :  { %v2009_v17 = vadd.f32 %v1962_v38, %v4825_v3  ;;  %v1966_v36 = vpop.f32.mrb[51].mxu0  ;;  %v2007_v35 = vpop.f32.mrb[51].mxu1  ;;  %v2011_v23 = vadd.f32 %v2003_v51, %v4840_v24 }
 0x579   :  { %v2010_v34 = vadd.f32 %v1964_v4, %v4829_v48  ;;  %v2012_v46 = vadd.f32 %v2005_v14, %v4835_v58 }
 0x57a   :  { %v3439_v8 = vmul.f32 -1.442695, %v2009_v17 }
 0x57b   :  { %v3440_v60 = vmul.f32 -1.442695, %v2010_v34  ;;  %v3441_v45 = vmul.f32 -1.442695, %v2012_v46 }
 0x57c   :  { %3730 = vpow2.f32 %v3439_v8 }
 0x57d   :  { %3732 = vpow2.f32 %v3440_v60  ;;  %v7183_v60 = vld [vmem:[#allocation59_spill] sm:$0xff] }
 0x57e   :  { %3734 = vpow2.f32 %v3441_v45 }
 0x57f   :  { %3736 = vtanh.f32 %v2011_v23 }
 0x586   :  { %v3731_v30 = vpop.eup %3730 }
 0x587   :  { %v3733_v59 = vpop.eup %3732  ;;  %v2016_v9 = vadd.f32 1.0, %v3731_v30 }
 0x588   :  { %v2022_v37 = vadd.f32 1.0, %v3733_v59  ;;  %v3735_v35 = vpop.eup %3734 }
 0x589   :  { %3738 = vrcp.f32 %v2016_v9  ;;  %v3737_v36 = vpop.eup %3736  ;;  %v2029_v11 = vadd.f32 1.0, %v3735_v35 }
 0x58a   :  { %3740 = vrcp.f32 %v2022_v37 }
 0x58b   :  { %3742 = vrcp.f32 %v2029_v11 }
 0x593   :  { %v3739_v4 = vpop.eup %3738 }
 0x594   :  { %v3741_v38 = vpop.eup %3740  ;;  %v2033_v34 = vmul.f32 %v3739_v4, %v3737_v36 }
 0x595   :  { %v2032_v53 = vmul.f32 %v3741_v38, %v5445_v19  ;;  %v2071_v14 = vpop.f32.mrb[52].mxu0  ;;  %v2112_v17 = vpop.f32.mrb[52].mxu1  ;;  %v7184_v19 = vld [vmem:[#allocation61_spill] sm:$0xff]  ;;  %v7185_v38 = vld [vmem:[#allocation60_spill] sm:$0xff] }
 0x596   :  { %v2119_v51 = vadd.f32 %v2071_v14, %v7182_v63  ;;  %v2073_v21 = vpop.f32.mrb[53].mxu0  ;;  %v2114_v1 = vpop.f32.mrb[53].mxu1 }
 0x597   :  { %v5684_v8 = vadd.f32 %v2033_v34, %v2032_v53  ;;  %v2120_v46 = vadd.f32 %v2073_v21, %v7183_v60  ;;  %v2075_v45 = vpop.f32.mrb[54].mxu0  ;;  %v2116_v23 = vpop.f32.mrb[54].mxu1  ;;  %v2122_v35 = vadd.f32 %v2114_v1, %v7184_v19  ;;  %v2121_v34 = vadd.f32 %v2112_v17, %v7185_v38 }
 0x598   :  { %v3442_v30 = vmul.f32 -1.442695, %v2119_v51  ;;  %v2076_v59 = vpop.f32.mrb[55].mxu0  ;;  %v2117_v9 = vpop.f32.mrb[55].mxu1 }
 0x599   :  { %v3443_v37 = vmul.f32 -1.442695, %v2120_v46  ;;  %3744 = vtanh.f32 %v5684_v8  ;;  %v3444_v36 = vmul.f32 -1.442695, %v2122_v35  ;;  %v3743_v4 = vpop.eup %3742  ;;  %v7186_v59 = vld [vmem:[#allocation10_spill] sm:$0xff]  ;;  %v7187_v9 = vld [vmem:[#allocation12_spill] sm:$0xff] }
 0x59a   :  { %3746 = vpow2.f32 %v3442_v30 }
 0x59b   :  { %3748 = vpow2.f32 %v3443_v37 }
 0x59c   :  { %3750 = vpow2.f32 %v3444_v36  ;;  %v5731_v36 = vld [vmem:[%s6573_s2 + $0x4] ss:$16 sps:$4 sm:$0xff]  }
 0x59d   :  { %3752 = vtanh.f32 %v2121_v34  ;;  %v5745_v34 = vld [vmem:[%s6573_s2] ss:$16 sps:$4 sm:$0xff]  }
 0x5a3   :  { %v3745_v53 = vpop.eup %3744 }
 0x5a4   :  { %v3747_v14 = vpop.eup %3746  ;;  %v2036_v21 = vmul.f32 %v3745_v53, %v3743_v4  ;;  %v5737_v4 = vld [vmem:[%s6573_s2 + $0xc] ss:$16 sps:$4 sm:$0xff]   ;;  %v5751_v53 = vld [vmem:[%s6573_s2 + $0x8] ss:$16 sps:$4 sm:$0xff]  }
 0x5a5   :  { %v3749_v45 = vpop.eup %3748  ;;  %v2126_v23 = vadd.f32 1.0, %v3747_v14  ;;  %v5757_v14 = vld [vmem:[%s6573_s2 + $0x24] ss:$16 sps:$4 sm:$0xff]  }
 0x5a6   :  { %v2132_v11 = vadd.f32 1.0, %v3749_v45  ;;  %v2151_v51 = vpack.c.bf16 %v2036_v21, %v2036_v21  ;;  %v3751_v17 = vpop.eup %3750  ;;  %v5763_v21 = vld [vmem:[%s6573_s2 + $0x2c] ss:$16 sps:$4 sm:$0xff]   ;;  %v5771_v45 = vld [vmem:[%s6573_s2 + $0x20] ss:$16 sps:$4 sm:$0xff]  }
 0x5a7   :  { %3754 = vrcp.f32 %v2126_v23  ;;  %v2139_v46 = vadd.f32 1.0, %v3751_v17  ;;  %v5777_v23 = vld [vmem:[%s6573_s2 + $0x28] ss:$16 sps:$4 sm:$0xff]   ;;  %v5795_v17 = vld [vmem:[%s6573_s2 + $0x40] ss:$16 sps:$4 sm:$0xff]  }
 0x5a8   :  { %3756 = vrcp.f32 %v2132_v11  ;;  %2185 = vmatmul.mubr.bf16.vlgmr.msra.gmra.mrb[56].mxu0 %v2151_v51  ;;  %2226 = vmatmul.mubr.bf16.vlgmr.msra.gmra.mrb[56].mxu1 %v2151_v51  ;;  %7188 = vst [vmem:[#allocation13_spill] sm:$0xff] %v5777_v23  ;;  %v5783_v11 = vld [vmem:[%s6573_s2 + $0x44] ss:$16 sps:$4 sm:$0xff]   ;;  %v5789_v51 = vld [vmem:[%s6573_s2 + $0x4c] ss:$16 sps:$4 sm:$0xff]   ;;  %7191 = vst [vmem:[#allocation16_spill] sm:$0xff] %v5795_v17 }
 0x5a9   :  { %2235 = vmatpush1.bf16.msra.mxu0 %v5137_v39  ;;  %2276 = vmatpush1.bf16.msra.mxu1 %v5143_v40  ;;  %v3753_v39 = vpop.eup %3752  ;;  %v2143_v40 = vrot.slane %v5521_v13, 6  ;;  %3758 = vrcp.f32 %v2139_v46  ;;  %7189 = vst [vmem:[#allocation15_spill] sm:$0xff] %v5783_v11  ;;  %7190 = vst [vmem:[#allocation14_spill] sm:$0xff] %v5789_v51  ;;  %v5831_v46 = vld [vmem:[%s6573_s2 + $0x84] ss:$16 sps:$4 sm:$0xff]  }
 0x5aa   :  { %2236 = vmatprep.subr.bf16.mxu0 %v5149_v41  ;;  %2277 = vmatprep.subr.bf16.mxu1 %v5155_v42  ;;  %7197 = vst [vmem:[#allocation23_spill] sm:$0xff] %v5831_v46 }
 0x5ab   :  { %2266 = vmatprep.mubr.bf16.mxu0 %v6938_v2  ;;  %2307 = vmatprep.mubr.bf16.mxu1 %v6938_v2 }
 0x5ad   :  { %2237 = vmatpush1.bf16.msra.mxu0 %v5163_v43  ;;  %2278 = vmatpush1.bf16.msra.mxu1 %v5169_v44 }
 0x5ae   :  { %2238 = vmatprep.subr.bf16.mxu0 %v5463_v52  ;;  %2279 = vmatprep.subr.bf16.mxu1 %v5469_v5 }
 0x5b1   :  { %v3755_v1 = vpop.eup %3754  ;;  %2239 = vmatpush1.bf16.msra.mxu0 %v5475_v27  ;;  %2280 = vmatpush1.bf16.msra.mxu1 %v5481_v62 }
 0x5b2   :  { %v3757_v41 = vpop.eup %3756  ;;  %v2146_v42 = vmul.f32 %v3755_v1, %v3753_v39  ;;  %2240 = vmatprep.subr.bf16.mxu0 %v5487_v6  ;;  %2281 = vmatprep.subr.bf16.mxu1 %v5493_v7  ;;  %v5801_v39 = vld [vmem:[%s6573_s2 + $0x48] ss:$16 sps:$4 sm:$0xff]   ;;  %v5807_v1 = vld [vmem:[%s6573_s2 + $0x64] ss:$16 sps:$4 sm:$0xff]  }
 0x5b3   :  { %v2145_v43 = vmul.f32 %v3757_v41, %v2143_v40  ;;  %v3759_v13 = vpop.eup %3758  ;;  %7192 = vst [vmem:[#allocation17_spill] sm:$0xff] %v5801_v39  ;;  %7193 = vst [vmem:[#allocation19_spill] sm:$0xff] %v5807_v1  ;;  %v5813_v40 = vld [vmem:[%s6573_s2 + $0x6c] ss:$16 sps:$4 sm:$0xff]   ;;  %v5819_v41 = vld [vmem:[%s6573_s2 + $0x60] ss:$16 sps:$4 sm:$0xff]  }
 0x5b4   :  { %7194 = vst [vmem:[#allocation18_spill] sm:$0xff] %v5813_v40  ;;  %7195 = vst [vmem:[#allocation20_spill] sm:$0xff] %v5819_v41 }
 0x5b5   :  { %v5705_v44 = vadd.f32 %v2146_v42, %v2145_v43  ;;  %2241 = vmatpush1.bf16.msra.mxu0 %v5500_v55  ;;  %2282 = vmatpush1.bf16.msra.mxu1 %v5506_v12  ;;  %v5825_v42 = vld [vmem:[%s6573_s2 + $0x68] ss:$16 sps:$4 sm:$0xff]   ;;  %v5837_v43 = vld [vmem:[%s6573_s2 + $0x8c] ss:$16 sps:$4 sm:$0xff]  }
 0x5b6   :  { %2242 = vmatprep.subr.bf16.mxu0 %v5512_v56  ;;  %2283 = vmatprep.subr.bf16.mxu1 %v5518_v25  ;;  %7196 = vst [vmem:[#allocation21_spill] sm:$0xff] %v5825_v42  ;;  %7198 = vst [vmem:[#allocation22_spill] sm:$0xff] %v5837_v43 }
 0x5b7   :  { %3760 = vtanh.f32 %v5705_v44 }
 0x5b9   :  { %2243 = vmatpush1.bf16.msra.mxu0 %v5526_v10  ;;  %2284 = vmatpush1.bf16.msra.mxu1 %v5532_v57 }
 0x5ba   :  { %2244 = vmatprep.subr.bf16.mxu0 %v5539_v49  ;;  %2285 = vmatprep.subr.bf16.mxu1 %v5545_v26 }
 0x5bd   :  { %2245 = vmatpush1.bf16.msra.mxu0 %v5551_v0  ;;  %2286 = vmatpush1.bf16.msra.mxu1 %v5557_v18 }
 0x5be   :  { %2246 = vmatprep.subr.bf16.mxu0 %v5563_v50  ;;  %2287 = vmatprep.subr.bf16.mxu1 %v5569_v61 }
 0x5c1   :  { %v3761_v30 = vpop.eup %3760  ;;  %2247 = vmatpush1.bf16.msra.mxu0 %v5575_v15  ;;  %2288 = vmatpush1.bf16.msra.mxu1 %v5581_v16 }
 0x5c2   :  { %2248 = vmatprep.subr.bf16.mxu0 %v7186_v59  ;;  %2289 = vmatprep.subr.bf16.mxu1 %v7187_v9  ;;  %v2149_v37 = vmul.f32 %v3761_v30, %v3759_v13  ;;  %v5843_v13 = vld [vmem:[%s6573_s2 + $0x80] ss:$16 sps:$4 sm:$0xff]   ;;  %v5849_v30 = vld [vmem:[%s6573_s2 + $0x88] ss:$16 sps:$4 sm:$0xff]  }
 0x5c3   :  { %7199 = vst [vmem:[#allocation24_spill] sm:$0xff] %v5843_v13  ;;  %7200 = vst [vmem:[#allocation57_spill] sm:$0xff] %v5849_v30 }
 0x5c4   :  { %v5726_v35 = vpack.c.bf16 %v2149_v37, %v2149_v37  ;;  %v5855_v37 = vld [vmem:[%s6573_s2 + $0xa4] ss:$16 sps:$4 sm:$0xff]  }
 0x5c5   :  { %2249 = vmatpush1.bf16.msra.mxu0 %v5599_v20  ;;  %2290 = vmatpush1.bf16.msra.mxu1 %v5605_v47  ;;  %7201 = vst [vmem:[#allocation27_spill] sm:$0xff] %v5855_v37 }
 0x5c6   :  { %2344 = vmatprep.subr.bf16.mxu0 %v5731_v36  ;;  %2385 = vmatprep.subr.bf16.mxu1 %v5737_v4 }
 0x5c8   :  { %2267 = vmatmul.mubr.bf16.vlgmr.msra.gmra.mrb[60].mxu0 %v5726_v35  ;;  %2308 = vmatmul.mubr.bf16.vlgmr.msra.gmra.mrb[60].mxu1 %v5726_v35 }
 0x5c9   :  { %2345 = vmatpush1.bf16.msra.mxu0 %v5745_v34  ;;  %2386 = vmatpush1.bf16.msra.mxu1 %v5751_v53 }
 0x5ca   :  { %2346 = vmatprep.subr.bf16.mxu0 %v5757_v14  ;;  %2387 = vmatprep.subr.bf16.mxu1 %v5763_v21 }
 0x5cb   :  { %2376 = vmatprep.mubr.bf16.mxu0 %v6938_v2  ;;  %2417 = vmatprep.mubr.bf16.mxu1 %v6938_v2 }
 0x5cd   :  { %2347 = vmatpush1.bf16.msra.mxu0 %v5771_v45  ;;  %2388 = vmatpush1.bf16.msra.mxu1 %v5777_v23 }
 0x5ce   :  { %2348 = vmatprep.subr.bf16.mxu0 %v5783_v11  ;;  %2389 = vmatprep.subr.bf16.mxu1 %v5789_v51 }
 0x5d1   :  { %2349 = vmatpush1.bf16.msra.mxu0 %v5795_v17  ;;  %2390 = vmatpush1.bf16.msra.mxu1 %v5801_v39 }
 0x5d2   :  { %2350 = vmatprep.subr.bf16.mxu0 %v5807_v1  ;;  %2391 = vmatprep.subr.bf16.mxu1 %v5813_v40 }
 0x5d5   :  { %2351 = vmatpush1.bf16.msra.mxu0 %v5819_v41  ;;  %2392 = vmatpush1.bf16.msra.mxu1 %v5825_v42 }
 0x5d6   :  { %2352 = vmatprep.subr.bf16.mxu0 %v5831_v46  ;;  %2393 = vmatprep.subr.bf16.mxu1 %v5837_v43  ;;  %v5861_v43 = vld [vmem:[%s6573_s2 + $0xac] ss:$16 sps:$4 sm:$0xff]  }
 0x5d7   :  { %7202 = vst [vmem:[#allocation28_spill] sm:$0xff] %v5861_v43 }
 0x5d9   :  { %2353 = vmatpush1.bf16.msra.mxu0 %v5843_v13  ;;  %2394 = vmatpush1.bf16.msra.mxu1 %v5849_v30  ;;  %v5867_v13 = vld [vmem:[%s6573_s2 + $0xa0] ss:$16 sps:$4 sm:$0xff]   ;;  %v5873_v30 = vld [vmem:[%s6573_s2 + $0xa8] ss:$16 sps:$4 sm:$0xff]  }
 0x5da   :  { %2354 = vmatprep.subr.bf16.mxu0 %v5855_v37  ;;  %2395 = vmatprep.subr.bf16.mxu1 %v5861_v43  ;;  %7203 = vst [vmem:[#allocation29_spill] sm:$0xff] %v5867_v13  ;;  %7204 = vst [vmem:[#allocation30_spill] sm:$0xff] %v5873_v30  ;;  %v5879_v37 = vld [vmem:[%s6573_s2 + $0xc4] ss:$16 sps:$4 sm:$0xff]   ;;  %v5885_v43 = vld [vmem:[%s6573_s2 + $0xcc] ss:$16 sps:$4 sm:$0xff]  }
 0x5db   :  { %7205 = vst [vmem:[#allocation31_spill] sm:$0xff] %v5879_v37  ;;  %7206 = vst [vmem:[#allocation32_spill] sm:$0xff] %v5885_v43 }
 0x5dd   :  { %2355 = vmatpush1.bf16.msra.mxu0 %v5867_v13  ;;  %2396 = vmatpush1.bf16.msra.mxu1 %v5873_v30  ;;  %v5891_v13 = vld [vmem:[%s6573_s2 + $0xc0] ss:$16 sps:$4 sm:$0xff]   ;;  %v5897_v30 = vld [vmem:[%s6573_s2 + $0xc8] ss:$16 sps:$4 sm:$0xff]  }
 0x5de   :  { %2356 = vmatprep.subr.bf16.mxu0 %v5879_v37  ;;  %2397 = vmatprep.subr.bf16.mxu1 %v5885_v43  ;;  %7207 = vst [vmem:[#allocation33_spill] sm:$0xff] %v5891_v13  ;;  %7208 = vst [vmem:[#allocation34_spill] sm:$0xff] %v5897_v30  ;;  %v5903_v37 = vld [vmem:[%s6573_s2 + $0xe4] ss:$16 sps:$4 sm:$0xff]   ;;  %v5909_v43 = vld [vmem:[%s6573_s2 + $0xec] ss:$16 sps:$4 sm:$0xff]  }
 0x5df   :  { %7209 = vst [vmem:[#allocation35_spill] sm:$0xff] %v5903_v37  ;;  %7210 = vst [vmem:[#allocation36_spill] sm:$0xff] %v5909_v43 }
 0x5e1   :  { %2357 = vmatpush1.bf16.msra.mxu0 %v5891_v13  ;;  %2398 = vmatpush1.bf16.msra.mxu1 %v5897_v30  ;;  %v5915_v13 = vld [vmem:[%s6573_s2 + $0xe0] ss:$16 sps:$4 sm:$0xff]   ;;  %v5921_v30 = vld [vmem:[%s6573_s2 + $0xe8] ss:$16 sps:$4 sm:$0xff]  }
 0x5e2   :  { %2358 = vmatprep.subr.bf16.mxu0 %v5903_v37  ;;  %2399 = vmatprep.subr.bf16.mxu1 %v5909_v43  ;;  %7211 = vst [vmem:[#allocation37_spill] sm:$0xff] %v5915_v13  ;;  %7212 = vst [vmem:[#allocation38_spill] sm:$0xff] %v5921_v30  ;;  %v7222_v43 = vld [vmem:[#allocation42_spill] sm:$0xff] }
 0x5e5   :  { %2359 = vmatpush1.bf16.msra.mxu0 %v5915_v13  ;;  %2400 = vmatpush1.bf16.msra.mxu1 %v5921_v30  ;;  %v7215_v30 = vld [vmem:[#allocation50_spill] sm:$0xff] }
 0x5e6   :  { %2471 = vmatprep.subr.bf16.mxu0 %v7148_v54  ;;  %2512 = vmatprep.subr.bf16.mxu1 %v7149_v22  ;;  %v7213_v54 = vld [vmem:[#allocation41_spill] sm:$0xff]  ;;  %v7214_v22 = vld [vmem:[#allocation48_spill] sm:$0xff]  ;;  %v7221_v13 = vld [vmem:[#allocation26_spill] sm:$0xff] }
 0x5e8   :  { %2377 = vmatmul.mubr.bf16.vlgmr.msra.gmra.mrb[64].mxu0 %v5726_v35  ;;  %2418 = vmatmul.mubr.bf16.vlgmr.msra.gmra.mrb[64].mxu1 %v5726_v35  ;;  %v7216_v35 = vld [vmem:[#allocation51_spill] sm:$0xff] }
 0x5e9   :  { %2472 = vmatpush1.bf16.msra.mxu0 %v7150_v28  ;;  %2513 = vmatpush1.bf16.msra.mxu1 %v7151_v29  ;;  %v7217_v28 = vld [vmem:[#allocation53_spill] sm:$0xff]  ;;  %v7218_v29 = vld [vmem:[#allocation55_spill] sm:$0xff] }
 0x5ea   :  { %2473 = vmatprep.subr.bf16.mxu0 %v7152_v31  ;;  %2514 = vmatprep.subr.bf16.mxu1 %v7153_v32  ;;  %v7219_v31 = vld [vmem:[#allocation56_spill] sm:$0xff]  ;;  %v7220_v32 = vld [vmem:[#allocation25_spill] sm:$0xff] }
 0x5eb   :  { %2503 = vmatprep.mubr.bf16.mxu0 %v6938_v2  ;;  %2544 = vmatprep.mubr.bf16.mxu1 %v6938_v2 }
 0x5ed   :  { %2474 = vmatpush1.bf16.msra.mxu0 %v7154_v33  ;;  %2515 = vmatpush1.bf16.msra.mxu1 %v7213_v54  ;;  %v7223_v33 = vld [vmem:[#allocation43_spill] sm:$0xff]  ;;  %v7224_v54 = vld [vmem:[#allocation44_spill] sm:$0xff] }
 0x5ee   :  { %2475 = vmatprep.subr.bf16.mxu0 %v7214_v22  ;;  %2516 = vmatprep.subr.bf16.mxu1 %v7215_v30  ;;  %v7225_v22 = vld [vmem:[#allocation45_spill] sm:$0xff]  ;;  %v7226_v30 = vld [vmem:[#allocation46_spill] sm:$0xff] }
 0x5f1   :  { %2476 = vmatpush1.bf16.msra.mxu0 %v7216_v35  ;;  %2517 = vmatpush1.bf16.msra.mxu1 %v7217_v28  ;;  %v7227_v35 = vld [vmem:[#allocation47_spill] sm:$0xff]  ;;  %v7228_v28 = vld [vmem:[#allocation49_spill] sm:$0xff] }
 0x5f2   :  { %2477 = vmatprep.subr.bf16.mxu0 %v7218_v29  ;;  %2518 = vmatprep.subr.bf16.mxu1 %v7219_v31  ;;  %v7229_v29 = vld [vmem:[#allocation52_spill] sm:$0xff]  ;;  %v7230_v31 = vld [vmem:[#allocation54_spill] sm:$0xff] }
 0x5f5   :  { %2478 = vmatpush1.bf16.msra.mxu0 %v7220_v32  ;;  %2519 = vmatpush1.bf16.msra.mxu1 %v7221_v13  ;;  %v7231_v32 = vld [vmem:[#allocation3_spill] sm:$0xff]  ;;  %v7232_v13 = vld [vmem:[#allocation2_spill] sm:$0xff] }
 0x5f6   :  { %2479 = vmatprep.subr.bf16.mxu0 %v7222_v43  ;;  %2520 = vmatprep.subr.bf16.mxu1 %v7223_v33  ;;  %v7233_v43 = vld [vmem:[#allocation5_spill] sm:$0xff]  ;;  %v7234_v33 = vld [vmem:[#allocation4_spill] sm:$0xff] }
 0x5f9   :  { %2480 = vmatpush1.bf16.msra.mxu0 %v7224_v54  ;;  %2521 = vmatpush1.bf16.msra.mxu1 %v7225_v22  ;;  %v7235_v54 = vld [vmem:[#allocation7_spill] sm:$0xff]  ;;  %v7236_v22 = vld [vmem:[#allocation6_spill] sm:$0xff] }
 0x5fa   :  { %2481 = vmatprep.subr.bf16.mxu0 %v7226_v30  ;;  %2522 = vmatprep.subr.bf16.mxu1 %v7227_v35  ;;  %v7237_v30 = vld [vmem:[#allocation8_spill] sm:$0xff]  ;;  %v7238_v35 = vld [vmem:[#allocation9_spill] sm:$0xff] }
 0x5fd   :  { %2482 = vmatpush1.bf16.msra.mxu0 %v7228_v28  ;;  %2523 = vmatpush1.bf16.msra.mxu1 %v7229_v29  ;;  %v7239_v28 = vld [vmem:[#allocation11_spill] sm:$0xff] }
 0x5fe   :  { %2483 = vmatprep.subr.bf16.mxu0 %v7230_v31  ;;  %2524 = vmatprep.subr.bf16.mxu1 %v7231_v32 }
 0x601   :  { %2484 = vmatpush1.bf16.msra.mxu0 %v7232_v13  ;;  %2525 = vmatpush1.bf16.msra.mxu1 %v7233_v43 }
 0x602   :  { %2485 = vmatprep.subr.bf16.mxu0 %v7234_v33  ;;  %2526 = vmatprep.subr.bf16.mxu1 %v7235_v54 }
 0x605   :  { %2486 = vmatpush1.bf16.msra.mxu0 %v7236_v22  ;;  %2527 = vmatpush1.bf16.msra.mxu1 %v7237_v30 }
 0x606   :  { %2556 = vmatprep.subr.bf16.mxu0 %v7238_v35  ;;  %2597 = vmatprep.subr.bf16.mxu1 %v7239_v28 }
 0x67b   :  { %v2186_v29 = vpop.f32.mrb[56].mxu0  ;;  %v2227_v31 = vpop.f32.mrb[56].mxu1 }
 0x67c   :  { %v2188_v37 = vpop.f32.mrb[57].mxu0  ;;  %v2229_v32 = vpop.f32.mrb[57].mxu1 }
 0x67d   :  { %v2190_v46 = vpop.f32.mrb[58].mxu0  ;;  %v2231_v13 = vpop.f32.mrb[58].mxu1 }
 0x67e   :  { %v2191_v42 = vpop.f32.mrb[59].mxu0  ;;  %v2232_v43 = vpop.f32.mrb[59].mxu1 }
 0x69b   :  { %v2268_v41 = vpop.f32.mrb[60].mxu0  ;;  %v2309_v33 = vpop.f32.mrb[60].mxu1 }
 0x69c   :  { %v2269_v40 = vadd.f32 %v2268_v41, %v2186_v29  ;;  %v2310_v54 = vadd.f32 %v2309_v33, %v2227_v31  ;;  %v2270_v1 = vpop.f32.mrb[61].mxu0  ;;  %v2311_v22 = vpop.f32.mrb[61].mxu1 }
 0x69d   :  { %v2271_v39 = vadd.f32 %v2270_v1, %v2188_v37  ;;  %v2312_v30 = vadd.f32 %v2311_v22, %v2229_v32  ;;  %v2272_v17 = vpop.f32.mrb[62].mxu0  ;;  %v2313_v35 = vpop.f32.mrb[62].mxu1 }
 0x69e   :  { %v2316_v28 = vadd.f32 %v2269_v40, %v4825_v3  ;;  %v2273_v51 = vpop.f32.mrb[63].mxu0  ;;  %v2314_v11 = vpop.f32.mrb[63].mxu1  ;;  %v2318_v29 = vadd.f32 %v2310_v54, %v4840_v24 }
 0x69f   :  { %v2317_v23 = vadd.f32 %v2271_v39, %v4829_v48  ;;  %v2319_v42 = vadd.f32 %v2312_v30, %v4835_v58 }
 0x6a0   :  { %v3445_v46 = vmul.f32 -1.442695, %v2316_v28 }
 0x6a1   :  { %v3446_v13 = vmul.f32 -1.442695, %v2317_v23  ;;  %v3447_v41 = vmul.f32 -1.442695, %v2319_v42 }
 0x6a2   :  { %3762 = vpow2.f32 %v3445_v46 }
 0x6a3   :  { %3764 = vpow2.f32 %v3446_v13 }
 0x6a4   :  { %3766 = vpow2.f32 %v3447_v41 }
 0x6a5   :  { %3768 = vtanh.f32 %v2318_v29 }
 0x6ac   :  { %v3763_v31 = vpop.eup %3762 }
 0x6ad   :  { %v3765_v1 = vpop.eup %3764  ;;  %v2323_v37 = vadd.f32 1.0, %v3763_v31 }
 0x6ae   :  { %v2329_v17 = vadd.f32 1.0, %v3765_v1  ;;  %v3767_v11 = vpop.eup %3766 }
 0x6af   :  { %3770 = vrcp.f32 %v2323_v37  ;;  %v3769_v51 = vpop.eup %3768  ;;  %v2336_v32 = vadd.f32 1.0, %v3767_v11 }
 0x6b0   :  { %3772 = vrcp.f32 %v2329_v17 }
 0x6b1   :  { %3774 = vrcp.f32 %v2336_v32 }
 0x6b9   :  { %v3771_v39 = vpop.eup %3770 }
 0x6ba   :  { %v3773_v40 = vpop.eup %3772  ;;  %v2340_v23 = vmul.f32 %v3771_v39, %v3769_v51 }
 0x6bb   :  { %v2339_v43 = vmul.f32 %v3773_v40, %v5684_v8  ;;  %v2378_v33 = vpop.f32.mrb[64].mxu0  ;;  %v2419_v22 = vpop.f32.mrb[64].mxu1 }
 0x6bc   :  { %v2430_v30 = vrot.slane %v2378_v33, 6  ;;  %v2380_v54 = vpop.f32.mrb[65].mxu0  ;;  %v2421_v35 = vpop.f32.mrb[65].mxu1  ;;  %v2432_v51 = vrot.slane %v2419_v22, 6  ;;  %v5977_v22 = vld [vmem:[%s6575_s4] ss:$16 sps:$4 sm:$0xff]  }
 0x6bd   :  { %v5967_v28 = vadd.f32 %v2340_v23, %v2339_v43  ;;  %v2431_v46 = vrot.slane %v2380_v54, 6  ;;  %v2382_v13 = vpop.f32.mrb[66].mxu0  ;;  %v2423_v42 = vpop.f32.mrb[66].mxu1  ;;  %v2433_v17 = vrot.slane %v2421_v35, 6  ;;  %v5983_v35 = vld [vmem:[%s6575_s4 + $0x8] ss:$16 sps:$4 sm:$0xff]  }
 0x6be   :  { %v2438_v41 = vadd.f32 %v2430_v30, %v7182_v63  ;;  %v2383_v29 = vpop.f32.mrb[67].mxu0  ;;  %v2424_v31 = vpop.f32.mrb[67].mxu1  ;;  %v2440_v32 = vadd.f32 %v2432_v51, %v7185_v38  ;;  %v5989_v42 = vld [vmem:[%s6575_s4 + $0x24] ss:$16 sps:$4 sm:$0xff]  }
 0x6bf   :  { %v2439_v1 = vadd.f32 %v2431_v46, %v7183_v60  ;;  %3776 = vtanh.f32 %v5967_v28  ;;  %v2441_v11 = vadd.f32 %v2433_v17, %v7184_v19  ;;  %v3775_v39 = vpop.eup %3774  ;;  %v6003_v29 = vld [vmem:[%s6575_s4 + $0x20] ss:$16 sps:$4 sm:$0xff]   ;;  %v6009_v31 = vld [vmem:[%s6575_s4 + $0x28] ss:$16 sps:$4 sm:$0xff]   ;;  %v2462_v17 = vrot.slane %v5705_v44, 6 }
 0x6c0   :  { %v3448_v8 = vmul.f32 -1.442695, %v2438_v41  ;;  %v5995_v41 = vld [vmem:[%s6575_s4 + $0x2c] ss:$16 sps:$4 sm:$0xff]   ;;  %v7256_v44 = vld [vmem:[#allocation30_spill] sm:$0xff] }
 0x6c1   :  { %v3449_v37 = vmul.f32 -1.442695, %v2439_v1  ;;  %v3450_v23 = vmul.f32 -1.442695, %v2441_v11 }
 0x6c2   :  { %3778 = vpow2.f32 %v3448_v8 }
 0x6c3   :  { %3780 = vpow2.f32 %v3449_v37 }
 0x6c4   :  { %3782 = vpow2.f32 %v3450_v23  ;;  %v7259_v23 = vld [vmem:[#allocation33_spill] sm:$0xff] }
 0x6c5   :  { %3784 = vtanh.f32 %v2440_v32  ;;  %v7260_v32 = vld [vmem:[#allocation34_spill] sm:$0xff] }
 0x6c9   :  { %v3777_v40 = vpop.eup %3776 }
 0x6ca   :  { %v2343_v43 = vmul.f32 %v3777_v40, %v3775_v39 }
 0x6cc   :  { %v3779_v33 = vpop.eup %3778  ;;  %v2470_v30 = vpack.c.bf16 %v2343_v43, %v2343_v43  ;;  %v7261_v43 = vld [vmem:[#allocation35_spill] sm:$0xff] }
 0x6cd   :  { %v3781_v54 = vpop.eup %3780  ;;  %v2445_v46 = vadd.f32 1.0, %v3779_v33  ;;  %v7262_v33 = vld [vmem:[#allocation36_spill] sm:$0xff] }
 0x6ce   :  { %v2451_v13 = vadd.f32 1.0, %v3781_v54  ;;  %2504 = vmatmul.mubr.bf16.vlgmr.msra.gmra.mrb[68].mxu0 %v2470_v30  ;;  %2545 = vmatmul.mubr.bf16.vlgmr.msra.gmra.mrb[68].mxu1 %v2470_v30  ;;  %v3783_v1 = vpop.eup %3782  ;;  %v7263_v30 = vld [vmem:[#allocation37_spill] sm:$0xff]  ;;  %v7264_v54 = vld [vmem:[#allocation38_spill] sm:$0xff] }
 0x6cf   :  { %3786 = vrcp.f32 %v2445_v46  ;;  %2557 = vmatpush1.bf16.msra.mxu0 %v5977_v22  ;;  %2598 = vmatpush1.bf16.msra.mxu1 %v5983_v35  ;;  %v3785_v8 = vpop.eup %3784  ;;  %v2458_v39 = vadd.f32 1.0, %v3783_v1  ;;  %v6077_v46 = vld [vmem:[%s6574_s5 + $0x4] ss:$16 sps:$4 sm:$0xff]   ;;  %v6089_v1 = vld [vmem:[%s6574_s5] ss:$16 sps:$4 sm:$0xff]  }
 0x6d0   :  { %3788 = vrcp.f32 %v2451_v13  ;;  %2558 = vmatprep.subr.bf16.mxu0 %v5989_v42  ;;  %2599 = vmatprep.subr.bf16.mxu1 %v5995_v41  ;;  %7265 = vst [vmem:[#allocation39_spill] sm:$0xff] %v6077_v46  ;;  %v6083_v13 = vld [vmem:[%s6574_s5 + $0xc] ss:$16 sps:$4 sm:$0xff]   ;;  %7267 = vst [vmem:[#allocation58_spill] sm:$0xff] %v6089_v1 }
 0x6d1   :  { %2588 = vmatprep.mubr.bf16.mxu0 %v6938_v2  ;;  %2629 = vmatprep.mubr.bf16.mxu1 %v6938_v2  ;;  %3790 = vrcp.f32 %v2458_v39  ;;  %7266 = vst [vmem:[#allocation40_spill] sm:$0xff] %v6083_v13  ;;  %v6127_v39 = vld [vmem:[%s6574_s5 + $0x44] ss:$16 sps:$4 sm:$0xff]  }
 0x6d2   :  { %7273 = vst [vmem:[#allocation41_spill] sm:$0xff] %v6127_v39 }
 0x6d3   :  { %2559 = vmatpush1.bf16.msra.mxu0 %v6003_v29  ;;  %2600 = vmatpush1.bf16.msra.mxu1 %v6009_v31 }
 0x6d4   :  { %2560 = vmatprep.subr.bf16.mxu0 %v5463_v52  ;;  %2601 = vmatprep.subr.bf16.mxu1 %v5469_v5 }
 0x6d7   :  { %2561 = vmatpush1.bf16.msra.mxu0 %v5475_v27  ;;  %2602 = vmatpush1.bf16.msra.mxu1 %v5481_v62 }
 0x6d8   :  { %2562 = vmatprep.subr.bf16.mxu0 %v5487_v6  ;;  %2603 = vmatprep.subr.bf16.mxu1 %v5493_v7 }
 0x6d9   :  { %v3787_v37 = vpop.eup %3786 }
 0x6da   :  { %v3789_v11 = vpop.eup %3788  ;;  %v2465_v51 = vmul.f32 %v3787_v37, %v3785_v8  ;;  %v6095_v8 = vld [vmem:[%s6574_s5 + $0x8] ss:$16 sps:$4 sm:$0xff]   ;;  %v6101_v37 = vld [vmem:[%s6574_s5 + $0x24] ss:$16 sps:$4 sm:$0xff]  }
 0x6db   :  { %v2464_v40 = vmul.f32 %v3789_v11, %v2462_v17  ;;  %2563 = vmatpush1.bf16.msra.mxu0 %v5500_v55  ;;  %2604 = vmatpush1.bf16.msra.mxu1 %v5506_v12  ;;  %v3791_v5 = vpop.eup %3790  ;;  %v7240_v55 = vld [vmem:[#allocation13_spill] sm:$0xff]  ;;  %v7241_v12 = vld [vmem:[#allocation15_spill] sm:$0xff]  ;;  %7268 = vst [vmem:[#allocation59_spill] sm:$0xff] %v6095_v8  ;;  %7269 = vst [vmem:[#allocation61_spill] sm:$0xff] %v6101_v37 }
 0x6dc   :  { %2564 = vmatprep.subr.bf16.mxu0 %v5512_v56  ;;  %2605 = vmatprep.subr.bf16.mxu1 %v5518_v25  ;;  %v7242_v56 = vld [vmem:[#allocation14_spill] sm:$0xff]  ;;  %v7243_v25 = vld [vmem:[#allocation16_spill] sm:$0xff]  ;;  %v6107_v17 = vld [vmem:[%s6574_s5 + $0x2c] ss:$16 sps:$4 sm:$0xff]  }
 0x6dd   :  { %v6023_v52 = vadd.f32 %v2465_v51, %v2464_v40  ;;  %7270 = vst [vmem:[#allocation60_spill] sm:$0xff] %v6107_v17  ;;  %v6115_v11 = vld [vmem:[%s6574_s5 + $0x20] ss:$16 sps:$4 sm:$0xff]   ;;  %v6121_v51 = vld [vmem:[%s6574_s5 + $0x28] ss:$16 sps:$4 sm:$0xff]  }
 0x6de   :  { %7271 = vst [vmem:[#allocation10_spill] sm:$0xff] %v6115_v11  ;;  %7272 = vst [vmem:[#allocation12_spill] sm:$0xff] %v6121_v51  ;;  %v6133_v40 = vld [vmem:[%s6574_s5 + $0x4c] ss:$16 sps:$4 sm:$0xff]  }
 0x6df   :  { %2565 = vmatpush1.bf16.msra.mxu0 %v5526_v10  ;;  %2606 = vmatpush1.bf16.msra.mxu1 %v5532_v57  ;;  %3792 = vtanh.f32 %v6023_v52  ;;  %v7244_v10 = vld [vmem:[#allocation17_spill] sm:$0xff]  ;;  %v7245_v57 = vld [vmem:[#allocation19_spill] sm:$0xff]  ;;  %7274 = vst [vmem:[#allocation48_spill] sm:$0xff] %v6133_v40 }
 0x6e0   :  { %2566 = vmatprep.subr.bf16.mxu0 %v5539_v49  ;;  %2607 = vmatprep.subr.bf16.mxu1 %v5545_v26  ;;  %v7246_v49 = vld [vmem:[#allocation18_spill] sm:$0xff]  ;;  %v7247_v26 = vld [vmem:[#allocation20_spill] sm:$0xff] }
 0x6e3   :  { %2567 = vmatpush1.bf16.msra.mxu0 %v5551_v0  ;;  %2608 = vmatpush1.bf16.msra.mxu1 %v5557_v18  ;;  %v7248_v0 = vld [vmem:[#allocation21_spill] sm:$0xff]  ;;  %v7249_v18 = vld [vmem:[#allocation23_spill] sm:$0xff] }
 0x6e4   :  { %2568 = vmatprep.subr.bf16.mxu0 %v5563_v50  ;;  %2609 = vmatprep.subr.bf16.mxu1 %v5569_v61  ;;  %v7250_v50 = vld [vmem:[#allocation22_spill] sm:$0xff]  ;;  %v7251_v61 = vld [vmem:[#allocation24_spill] sm:$0xff] }
 0x6e7   :  { %2569 = vmatpush1.bf16.msra.mxu0 %v5575_v15  ;;  %2610 = vmatpush1.bf16.msra.mxu1 %v5581_v16  ;;  %v7252_v15 = vld [vmem:[#allocation57_spill] sm:$0xff]  ;;  %v7253_v16 = vld [vmem:[#allocation27_spill] sm:$0xff] }
 0x6e8   :  { %2570 = vmatprep.subr.bf16.mxu0 %v7186_v59  ;;  %2611 = vmatprep.subr.bf16.mxu1 %v7187_v9  ;;  %v7257_v59 = vld [vmem:[#allocation31_spill] sm:$0xff]  ;;  %v7258_v9 = vld [vmem:[#allocation32_spill] sm:$0xff] }
 0x6e9   :  { %v3793_v27 = vpop.eup %3792 }
 0x6ea   :  { %v2468_v62 = vmul.f32 %v3793_v27, %v3791_v5  ;;  %v6139_v5 = vld [vmem:[%s6574_s5 + $0x40] ss:$16 sps:$4 sm:$0xff]   ;;  %v6145_v27 = vld [vmem:[%s6574_s5 + $0x48] ss:$16 sps:$4 sm:$0xff]  }
 0x6eb   :  { %2571 = vmatpush1.bf16.msra.mxu0 %v5599_v20  ;;  %2612 = vmatpush1.bf16.msra.mxu1 %v5605_v47  ;;  %v7254_v47 = vld [vmem:[#allocation28_spill] sm:$0xff]  ;;  %v7255_v20 = vld [vmem:[#allocation29_spill] sm:$0xff]  ;;  %7275 = vst [vmem:[#allocation50_spill] sm:$0xff] %v6139_v5  ;;  %7276 = vst [vmem:[#allocation51_spill] sm:$0xff] %v6145_v27 }
 0x6ec   :  { %2666 = vmatprep.subr.bf16.mxu0 %v5731_v36  ;;  %2707 = vmatprep.subr.bf16.mxu1 %v5737_v4  ;;  %v2469_v6 = vpack.c.bf16 %v2468_v62, %v2468_v62  ;;  %v6151_v62 = vld [vmem:[%s6574_s5 + $0x64] ss:$16 sps:$4 sm:$0xff]  }
 0x6ed   :  { %7277 = vst [vmem:[#allocation53_spill] sm:$0xff] %v6151_v62 }
 0x6ee   :  { %v2554_v7 = vrot.slane %v2469_v6, 1  ;;  %v6157_v6 = vld [vmem:[%s6574_s5 + $0x6c] ss:$16 sps:$4 sm:$0xff]  }
 0x6ef   :  { %7278 = vst [vmem:[#allocation55_spill] sm:$0xff] %v6157_v6 }
 0x6f0   :  { %2589 = vmatmul.mubr.bf16.vlgmr.msra.gmra.mrb[72].mxu0 %v2554_v7  ;;  %2630 = vmatmul.mubr.bf16.vlgmr.msra.gmra.mrb[72].mxu1 %v2554_v7 }
 0x6f1   :  { %2667 = vmatpush1.bf16.msra.mxu0 %v5745_v34  ;;  %2708 = vmatpush1.bf16.msra.mxu1 %v5751_v53 }
 0x6f2   :  { %2668 = vmatprep.subr.bf16.mxu0 %v5757_v14  ;;  %2709 = vmatprep.subr.bf16.mxu1 %v5763_v21 }
 0x6f3   :  { %2698 = vmatprep.mubr.bf16.mxu0 %v6938_v2  ;;  %2739 = vmatprep.mubr.bf16.mxu1 %v6938_v2 }
 0x6f5   :  { %2669 = vmatpush1.bf16.msra.mxu0 %v5771_v45  ;;  %2710 = vmatpush1.bf16.msra.mxu1 %v7240_v55 }
 0x6f6   :  { %2670 = vmatprep.subr.bf16.mxu0 %v7241_v12  ;;  %2711 = vmatprep.subr.bf16.mxu1 %v7242_v56 }
 0x6f9   :  { %2671 = vmatpush1.bf16.msra.mxu0 %v7243_v25  ;;  %2712 = vmatpush1.bf16.msra.mxu1 %v7244_v10 }
 0x6fa   :  { %2672 = vmatprep.subr.bf16.mxu0 %v7245_v57  ;;  %2713 = vmatprep.subr.bf16.mxu1 %v7246_v49 }
 0x6fd   :  { %2673 = vmatpush1.bf16.msra.mxu0 %v7247_v26  ;;  %2714 = vmatpush1.bf16.msra.mxu1 %v7248_v0 }
 0x6fe   :  { %2674 = vmatprep.subr.bf16.mxu0 %v7249_v18  ;;  %2715 = vmatprep.subr.bf16.mxu1 %v7250_v50 }
 0x701   :  { %2675 = vmatpush1.bf16.msra.mxu0 %v7251_v61  ;;  %2716 = vmatpush1.bf16.msra.mxu1 %v7252_v15 }
 0x702   :  { %2676 = vmatprep.subr.bf16.mxu0 %v7253_v16  ;;  %2717 = vmatprep.subr.bf16.mxu1 %v7254_v47 }
 0x705   :  { %2677 = vmatpush1.bf16.msra.mxu0 %v7255_v20  ;;  %2718 = vmatpush1.bf16.msra.mxu1 %v7256_v44 }
 0x706   :  { %2678 = vmatprep.subr.bf16.mxu0 %v7257_v59  ;;  %2719 = vmatprep.subr.bf16.mxu1 %v7258_v9 }
 0x709   :  { %2679 = vmatpush1.bf16.msra.mxu0 %v7259_v23  ;;  %2720 = vmatpush1.bf16.msra.mxu1 %v7260_v32 }
 0x70a   :  { %2680 = vmatprep.subr.bf16.mxu0 %v7261_v43  ;;  %2721 = vmatprep.subr.bf16.mxu1 %v7262_v33 }
 0x70d   :  { %2681 = vmatpush1.bf16.msra.mxu0 %v7263_v30  ;;  %2722 = vmatpush1.bf16.msra.mxu1 %v7264_v54 }
 0x70e   :  { %2793 = vmatprep.subr.bf16.mxu0 %v6077_v46  ;;  %2834 = vmatprep.subr.bf16.mxu1 %v6083_v13 }
 0x710   :  { %2699 = vmatmul.mubr.bf16.vlgmr.msra.gmra.mrb[76].mxu0 %v2554_v7  ;;  %2740 = vmatmul.mubr.bf16.vlgmr.msra.gmra.mrb[76].mxu1 %v2554_v7  ;;  %v6163_v7 = vld [vmem:[%s6574_s5 + $0x60] ss:$16 sps:$4 sm:$0xff]  }
 0x711   :  { %2794 = vmatpush1.bf16.msra.mxu0 %v6089_v1  ;;  %2835 = vmatpush1.bf16.msra.mxu1 %v6095_v8  ;;  %7279 = vst [vmem:[#allocation56_spill] sm:$0xff] %v6163_v7 }
 0x712   :  { %2795 = vmatprep.subr.bf16.mxu0 %v6101_v37  ;;  %2836 = vmatprep.subr.bf16.mxu1 %v6107_v17 }
 0x713   :  { %2825 = vmatprep.mubr.bf16.mxu0 %v6938_v2  ;;  %2866 = vmatprep.mubr.bf16.mxu1 %v6938_v2 }
 0x715   :  { %2796 = vmatpush1.bf16.msra.mxu0 %v6115_v11  ;;  %2837 = vmatpush1.bf16.msra.mxu1 %v6121_v51 }
 0x716   :  { %2797 = vmatprep.subr.bf16.mxu0 %v6127_v39  ;;  %2838 = vmatprep.subr.bf16.mxu1 %v6133_v40 }
 0x719   :  { %2798 = vmatpush1.bf16.msra.mxu0 %v6139_v5  ;;  %2839 = vmatpush1.bf16.msra.mxu1 %v6145_v27  ;;  %v6169_v27 = vld [vmem:[%s6574_s5 + $0x68] ss:$16 sps:$4 sm:$0xff]  }
 0x71a   :  { %2799 = vmatprep.subr.bf16.mxu0 %v6151_v62  ;;  %2840 = vmatprep.subr.bf16.mxu1 %v6157_v6  ;;  %7280 = vst [vmem:[#allocation25_spill] sm:$0xff] %v6169_v27  ;;  %v6175_v62 = vld [vmem:[%s6574_s5 + $0x84] ss:$16 sps:$4 sm:$0xff]   ;;  %v6181_v6 = vld [vmem:[%s6574_s5 + $0x8c] ss:$16 sps:$4 sm:$0xff]  }
 0x71b   :  { %7281 = vst [vmem:[#allocation26_spill] sm:$0xff] %v6175_v62  ;;  %7282 = vst [vmem:[#allocation42_spill] sm:$0xff] %v6181_v6 }
 0x71d   :  { %2800 = vmatpush1.bf16.msra.mxu0 %v6163_v7  ;;  %2841 = vmatpush1.bf16.msra.mxu1 %v6169_v27  ;;  %v6187_v7 = vld [vmem:[%s6574_s5 + $0x80] ss:$16 sps:$4 sm:$0xff]   ;;  %v6193_v27 = vld [vmem:[%s6574_s5 + $0x88] ss:$16 sps:$4 sm:$0xff]  }
 0x71e   :  { %2801 = vmatprep.subr.bf16.mxu0 %v6175_v62  ;;  %2842 = vmatprep.subr.bf16.mxu1 %v6181_v6  ;;  %7283 = vst [vmem:[#allocation43_spill] sm:$0xff] %v6187_v7  ;;  %7284 = vst [vmem:[#allocation44_spill] sm:$0xff] %v6193_v27  ;;  %v6199_v62 = vld [vmem:[%s6574_s5 + $0xa4] ss:$16 sps:$4 sm:$0xff]   ;;  %v6205_v6 = vld [vmem:[%s6574_s5 + $0xac] ss:$16 sps:$4 sm:$0xff]  }
 0x71f   :  { %7285 = vst [vmem:[#allocation45_spill] sm:$0xff] %v6199_v62  ;;  %7286 = vst [vmem:[#allocation46_spill] sm:$0xff] %v6205_v6 }
 0x721   :  { %2802 = vmatpush1.bf16.msra.mxu0 %v6187_v7  ;;  %2843 = vmatpush1.bf16.msra.mxu1 %v6193_v27  ;;  %v6211_v7 = vld [vmem:[%s6574_s5 + $0xa0] ss:$16 sps:$4 sm:$0xff]   ;;  %v6217_v27 = vld [vmem:[%s6574_s5 + $0xa8] ss:$16 sps:$4 sm:$0xff]  }
 0x722   :  { %2803 = vmatprep.subr.bf16.mxu0 %v6199_v62  ;;  %2844 = vmatprep.subr.bf16.mxu1 %v6205_v6  ;;  %7287 = vst [vmem:[#allocation47_spill] sm:$0xff] %v6211_v7  ;;  %7288 = vst [vmem:[#allocation49_spill] sm:$0xff] %v6217_v27  ;;  %v6223_v62 = vld [vmem:[%s6574_s5 + $0xc4] ss:$16 sps:$4 sm:$0xff]   ;;  %v6229_v6 = vld [vmem:[%s6574_s5 + $0xcc] ss:$16 sps:$4 sm:$0xff]  }
 0x723   :  { %7289 = vst [vmem:[#allocation52_spill] sm:$0xff] %v6223_v62  ;;  %7290 = vst [vmem:[#allocation54_spill] sm:$0xff] %v6229_v6 }
 0x725   :  { %2804 = vmatpush1.bf16.msra.mxu0 %v6211_v7  ;;  %2845 = vmatpush1.bf16.msra.mxu1 %v6217_v27  ;;  %v6235_v7 = vld [vmem:[%s6574_s5 + $0xc0] ss:$16 sps:$4 sm:$0xff]   ;;  %v6241_v27 = vld [vmem:[%s6574_s5 + $0xc8] ss:$16 sps:$4 sm:$0xff]  }
 0x726   :  { %2805 = vmatprep.subr.bf16.mxu0 %v6223_v62  ;;  %2846 = vmatprep.subr.bf16.mxu1 %v6229_v6  ;;  %7291 = vst [vmem:[#allocation3_spill] sm:$0xff] %v6235_v7  ;;  %7292 = vst [vmem:[#allocation2_spill] sm:$0xff] %v6241_v27  ;;  %v6247_v62 = vld [vmem:[%s6574_s5 + $0xe4] ss:$16 sps:$4 sm:$0xff]   ;;  %v6253_v6 = vld [vmem:[%s6574_s5 + $0xec] ss:$16 sps:$4 sm:$0xff]  }
 0x727   :  { %7293 = vst [vmem:[#allocation5_spill] sm:$0xff] %v6247_v62  ;;  %7294 = vst [vmem:[#allocation4_spill] sm:$0xff] %v6253_v6 }
 0x729   :  { %2806 = vmatpush1.bf16.msra.mxu0 %v6235_v7  ;;  %2847 = vmatpush1.bf16.msra.mxu1 %v6241_v27  ;;  %v6259_v7 = vld [vmem:[%s6574_s5 + $0xe0] ss:$16 sps:$4 sm:$0xff]   ;;  %v6265_v27 = vld [vmem:[%s6574_s5 + $0xe8] ss:$16 sps:$4 sm:$0xff]  }
 0x72a   :  { %2807 = vmatprep.subr.bf16.mxu0 %v6247_v62  ;;  %2848 = vmatprep.subr.bf16.mxu1 %v6253_v6  ;;  %7295 = vst [vmem:[#allocation7_spill] sm:$0xff] %v6259_v7  ;;  %7296 = vst [vmem:[#allocation6_spill] sm:$0xff] %v6265_v27  ;;  %v6271_v62 = vld [vmem:[%s6575_s4 + $0x4] ss:$16 sps:$4 sm:$0xff]   ;;  %v6277_v6 = vld [vmem:[%s6575_s4 + $0xc] ss:$16 sps:$4 sm:$0xff]  }
 0x72b   :  { %7297 = vst [vmem:[#allocation8_spill] sm:$0xff] %v6271_v62  ;;  %7298 = vst [vmem:[#allocation9_spill] sm:$0xff] %v6277_v6 }
 0x72d   :  { %2808 = vmatpush1.bf16.msra.mxu0 %v6259_v7  ;;  %2849 = vmatpush1.bf16.msra.mxu1 %v6265_v27 }
 0x72e   :  { %2878 = vmatprep.subr.bf16.mxu0 %v6271_v62  ;;  %2919 = vmatprep.subr.bf16.mxu1 %v6277_v6 }
 0x7a1   :  { %v2505_v7 = vpop.f32.mrb[68].mxu0  ;;  %v2546_v5 = vpop.f32.mrb[68].mxu1 }
 0x7a2   :  { %v2507_v40 = vpop.f32.mrb[69].mxu0  ;;  %v2548_v39 = vpop.f32.mrb[69].mxu1 }
 0x7a3   :  { %v2509_v51 = vpop.f32.mrb[70].mxu0  ;;  %v2550_v27 = vpop.f32.mrb[70].mxu1 }
 0x7a4   :  { %v2510_v11 = vpop.f32.mrb[71].mxu0  ;;  %v2551_v17 = vpop.f32.mrb[71].mxu1 }
 0x7c3   :  { %v2590_v37 = vpop.f32.mrb[72].mxu0  ;;  %v2631_v8 = vpop.f32.mrb[72].mxu1 }
 0x7c4   :  { %v2591_v1 = vadd.f32 %v2590_v37, %v2505_v7  ;;  %v2632_v13 = vadd.f32 %v2631_v8, %v2546_v5  ;;  %v2592_v62 = vpop.f32.mrb[73].mxu0  ;;  %v2633_v46 = vpop.f32.mrb[73].mxu1 }
 0x7c5   :  { %v2593_v54 = vadd.f32 %v2592_v62, %v2507_v40  ;;  %v2634_v30 = vadd.f32 %v2633_v46, %v2548_v39  ;;  %v2594_v33 = vpop.f32.mrb[74].mxu0  ;;  %v2635_v43 = vpop.f32.mrb[74].mxu1 }
 0x7c6   :  { %v2638_v6 = vadd.f32 %v2591_v1, %v4825_v3  ;;  %v2595_v32 = vpop.f32.mrb[75].mxu0  ;;  %v2636_v23 = vpop.f32.mrb[75].mxu1  ;;  %v2640_v8 = vadd.f32 %v2632_v13, %v4840_v24 }
 0x7c7   :  { %v2639_v9 = vadd.f32 %v2593_v54, %v4829_v48  ;;  %v2641_v17 = vadd.f32 %v2634_v30, %v4835_v58 }
 0x7c8   :  { %v3451_v51 = vmul.f32 -1.442695, %v2638_v6 }
 0x7c9   :  { %v3452_v27 = vmul.f32 -1.442695, %v2639_v9  ;;  %v3453_v37 = vmul.f32 -1.442695, %v2641_v17 }
 0x7ca   :  { %3794 = vpow2.f32 %v3451_v51 }
 0x7cb   :  { %3796 = vpow2.f32 %v3452_v27 }
 0x7cc   :  { %3798 = vpow2.f32 %v3453_v37 }
 0x7cd   :  { %3800 = vtanh.f32 %v2640_v8 }
 0x7d4   :  { %v3795_v11 = vpop.eup %3794 }
 0x7d5   :  { %v3797_v40 = vpop.eup %3796  ;;  %v2645_v46 = vadd.f32 1.0, %v3795_v11 }
 0x7d6   :  { %v2651_v43 = vadd.f32 1.0, %v3797_v40  ;;  %v3799_v23 = vpop.eup %3798 }
 0x7d7   :  { %3802 = vrcp.f32 %v2645_v46  ;;  %v3801_v32 = vpop.eup %3800  ;;  %v2658_v1 = vadd.f32 1.0, %v3799_v23 }
 0x7d8   :  { %3804 = vrcp.f32 %v2651_v43 }
 0x7d9   :  { %3806 = vrcp.f32 %v2658_v1 }
 0x7e1   :  { %v3803_v33 = vpop.eup %3802 }
 0x7e2   :  { %v3805_v54 = vpop.eup %3804  ;;  %v2662_v9 = vmul.f32 %v3803_v33, %v3801_v32 }
 0x7e3   :  { %v2661_v39 = vmul.f32 %v3805_v54, %v5967_v28  ;;  %v2700_v30 = vpop.f32.mrb[76].mxu0  ;;  %v2741_v5 = vpop.f32.mrb[76].mxu1 }
 0x7e4   :  { %v2752_v62 = vrot.slane %v2700_v30, 4  ;;  %v2702_v13 = vpop.f32.mrb[77].mxu0  ;;  %v2743_v6 = vpop.f32.mrb[77].mxu1  ;;  %v2754_v32 = vrot.slane %v2741_v5, 4  ;;  %v6303_v5 = vld [vmem:[%s6575_s4 + $0x44] ss:$16 sps:$4 sm:$0xff]  }
 0x7e5   :  { %v6285_v7 = vadd.f32 %v2662_v9, %v2661_v39  ;;  %v2753_v51 = vrot.slane %v2702_v13, 4  ;;  %v2704_v27 = vpop.f32.mrb[78].mxu0  ;;  %v2745_v17 = vpop.f32.mrb[78].mxu1  ;;  %v2755_v43 = vrot.slane %v2743_v6, 4  ;;  %v6309_v6 = vld [vmem:[%s6575_s4 + $0x4c] ss:$16 sps:$4 sm:$0xff]  }
 0x7e6   :  { %v2760_v37 = vadd.f32 %v2752_v62, %v7182_v63  ;;  %v2705_v8 = vpop.f32.mrb[79].mxu0  ;;  %v2746_v11 = vpop.f32.mrb[79].mxu1  ;;  %v2762_v1 = vadd.f32 %v2754_v32, %v7185_v38 }
 0x7e7   :  { %v2761_v40 = vadd.f32 %v2753_v51, %v7183_v60  ;;  %3808 = vtanh.f32 %v6285_v7  ;;  %v2763_v23 = vadd.f32 %v2755_v43, %v7184_v19  ;;  %v3807_v33 = vpop.eup %3806  ;;  %v6321_v8 = vld [vmem:[%s6575_s4 + $0x48] ss:$16 sps:$4 sm:$0xff]   ;;  %v2784_v43 = vrot.slane %v6023_v52, 6  ;;  %v6352_v52 = vld [vmem:[%s6575_s4 + $0x84] ss:$16 sps:$4 sm:$0xff]  }
 0x7e8   :  { %v3454_v28 = vmul.f32 -1.442695, %v2760_v37  ;;  %v6315_v37 = vld [vmem:[%s6575_s4 + $0x40] ss:$16 sps:$4 sm:$0xff]  }
 0x7e9   :  { %v3455_v46 = vmul.f32 -1.442695, %v2761_v40  ;;  %v3456_v9 = vmul.f32 -1.442695, %v2763_v23  ;;  %v6327_v40 = vld [vmem:[%s6575_s4 + $0x64] ss:$16 sps:$4 sm:$0xff]  }
 0x7ea   :  { %3810 = vpow2.f32 %v3454_v28  ;;  %v6333_v28 = vld [vmem:[%s6575_s4 + $0x6c] ss:$16 sps:$4 sm:$0xff]  }
 0x7eb   :  { %3812 = vpow2.f32 %v3455_v46 }
 0x7ec   :  { %3814 = vpow2.f32 %v3456_v9  ;;  %v6340_v9 = vld [vmem:[%s6575_s4 + $0x60] ss:$16 sps:$4 sm:$0xff]  }
 0x7ed   :  { %3816 = vtanh.f32 %v2762_v1  ;;  %v6346_v1 = vld [vmem:[%s6575_s4 + $0x68] ss:$16 sps:$4 sm:$0xff]  }
 0x7f1   :  { %v3809_v54 = vpop.eup %3808 }
 0x7f2   :  { %v2665_v39 = vmul.f32 %v3809_v54, %v3807_v33 }
 0x7f4   :  { %v3811_v30 = vpop.eup %3810  ;;  %v2792_v62 = vpack.c.bf16 %v2665_v39, %v2665_v39  ;;  %v6358_v39 = vld [vmem:[%s6575_s4 + $0x8c] ss:$16 sps:$4 sm:$0xff]  }
 0x7f5   :  { %v3813_v13 = vpop.eup %3812  ;;  %v2767_v51 = vadd.f32 1.0, %v3811_v30 }
 0x7f6   :  { %v2773_v27 = vadd.f32 1.0, %v3813_v13  ;;  %2826 = vmatmul.mubr.bf16.vlgmr.msra.gmra.mrb[80].mxu0 %v2792_v62  ;;  %2867 = vmatmul.mubr.bf16.vlgmr.msra.gmra.mrb[80].mxu1 %v2792_v62  ;;  %v3815_v17 = vpop.eup %3814  ;;  %v6366_v62 = vld [vmem:[%s6575_s4 + $0x80] ss:$16 sps:$4 sm:$0xff]   ;;  %v6372_v13 = vld [vmem:[%s6575_s4 + $0x88] ss:$16 sps:$4 sm:$0xff]  }
 0x7f7   :  { %3818 = vrcp.f32 %v2767_v51  ;;  %2879 = vmatpush1.bf16.msra.mxu0 %v5977_v22  ;;  %2920 = vmatpush1.bf16.msra.mxu1 %v5983_v35  ;;  %v3817_v11 = vpop.eup %3816  ;;  %v2780_v33 = vadd.f32 1.0, %v3815_v17  ;;  %v6379_v51 = vld [vmem:[%s6575_s4 + $0xa4] ss:$16 sps:$4 sm:$0xff]   ;;  %v6391_v17 = vld [vmem:[%s6575_s4 + $0xa0] ss:$16 sps:$4 sm:$0xff]  }
 0x7f8   :  { %3820 = vrcp.f32 %v2773_v27  ;;  %2880 = vmatprep.subr.bf16.mxu0 %v5989_v42  ;;  %2921 = vmatprep.subr.bf16.mxu1 %v5995_v41  ;;  %v6385_v27 = vld [vmem:[%s6575_s4 + $0xac] ss:$16 sps:$4 sm:$0xff]  }
 0x7f9   :  { %2910 = vmatprep.mubr.bf16.mxu0 %v6938_v2  ;;  %2951 = vmatprep.mubr.bf16.mxu1 %v6938_v2  ;;  %3822 = vrcp.f32 %v2780_v33 }
 0x7fb   :  { %2881 = vmatpush1.bf16.msra.mxu0 %v6003_v29  ;;  %2922 = vmatpush1.bf16.msra.mxu1 %v6009_v31 }
 0x7fc   :  { %2882 = vmatprep.subr.bf16.mxu0 %v6303_v5  ;;  %2923 = vmatprep.subr.bf16.mxu1 %v6309_v6 }
 0x7ff   :  { %2883 = vmatpush1.bf16.msra.mxu0 %v6315_v37  ;;  %2924 = vmatpush1.bf16.msra.mxu1 %v6321_v8 }
 0x800   :  { %2884 = vmatprep.subr.bf16.mxu0 %v6327_v40  ;;  %2925 = vmatprep.subr.bf16.mxu1 %v6333_v28 }
 0x801   :  { %v3819_v46 = vpop.eup %3818 }
 0x802   :  { %v3821_v23 = vpop.eup %3820  ;;  %v2787_v32 = vmul.f32 %v3819_v46, %v3817_v11  ;;  %v6397_v11 = vld [vmem:[%s6575_s4 + $0xa8] ss:$16 sps:$4 sm:$0xff]   ;;  %v6403_v46 = vld [vmem:[%s6575_s4 + $0xc4] ss:$16 sps:$4 sm:$0xff]  }
 0x803   :  { %v2786_v54 = vmul.f32 %v3821_v23, %v2784_v43  ;;  %2885 = vmatpush1.bf16.msra.mxu0 %v6340_v9  ;;  %2926 = vmatpush1.bf16.msra.mxu1 %v6346_v1  ;;  %7299 = vst [vmem:[#allocation11_spill] sm:$0xff] %v6403_v46  ;;  %v6409_v43 = vld [vmem:[%s6575_s4 + $0xcc] ss:$16 sps:$4 sm:$0xff]   ;;  %v6415_v23 = vld [vmem:[%s6575_s4 + $0xc0] ss:$16 sps:$4 sm:$0xff]   ;;  %v3823_v33 = vpop.eup %3822 }
 0x804   :  { %2886 = vmatprep.subr.bf16.mxu0 %v6352_v52  ;;  %2927 = vmatprep.subr.bf16.mxu1 %v6358_v39  ;;  %7300 = vst [vmem:[#allocation13_spill] sm:$0xff] %v6409_v43  ;;  %7301 = vst [vmem:[#allocation15_spill] sm:$0xff] %v6415_v23 }
 0x805   :  { %v6361_v30 = vadd.f32 %v2787_v32, %v2786_v54  ;;  %v6421_v32 = vld [vmem:[%s6575_s4 + $0xc8] ss:$16 sps:$4 sm:$0xff]   ;;  %v6427_v54 = vld [vmem:[%s6575_s4 + $0xe4] ss:$16 sps:$4 sm:$0xff]  }
 0x806   :  { %7302 = vst [vmem:[#allocation14_spill] sm:$0xff] %v6421_v32  ;;  %7303 = vst [vmem:[#allocation16_spill] sm:$0xff] %v6427_v54 }
 0x807   :  { %2887 = vmatpush1.bf16.msra.mxu0 %v6366_v62  ;;  %2928 = vmatpush1.bf16.msra.mxu1 %v6372_v13  ;;  %3824 = vtanh.f32 %v6361_v30 }
 0x808   :  { %2888 = vmatprep.subr.bf16.mxu0 %v6379_v51  ;;  %2929 = vmatprep.subr.bf16.mxu1 %v6385_v27 }
 0x80b   :  { %2889 = vmatpush1.bf16.msra.mxu0 %v6391_v17  ;;  %2930 = vmatpush1.bf16.msra.mxu1 %v6397_v11 }
 0x80c   :  { %2890 = vmatprep.subr.bf16.mxu0 %v6403_v46  ;;  %2931 = vmatprep.subr.bf16.mxu1 %v6409_v43  ;;  %v6433_v43 = vld [vmem:[%s6575_s4 + $0xec] ss:$16 sps:$4 sm:$0xff]  }
 0x80d   :  { %7304 = vst [vmem:[#allocation17_spill] sm:$0xff] %v6433_v43 }
 0x80f   :  { %2891 = vmatpush1.bf16.msra.mxu0 %v6415_v23  ;;  %2932 = vmatpush1.bf16.msra.mxu1 %v6421_v32  ;;  %v6439_v32 = vld [vmem:[%s6575_s4 + $0xe0] ss:$16 sps:$4 sm:$0xff]  }
 0x810   :  { %2892 = vmatprep.subr.bf16.mxu0 %v6427_v54  ;;  %2933 = vmatprep.subr.bf16.mxu1 %v6433_v43  ;;  %v6445_v54 = vld [vmem:[%s6575_s4 + $0xe8] ss:$16 sps:$4 sm:$0xff]  }
 0x811   :  { %v3825_v23 = vpop.eup %3824 }
 0x812   :  { %v2790_v46 = vmul.f32 %v3825_v23, %v3823_v33  ;;  %v7332_v33 = vld [vmem:[#allocation45_spill] sm:$0xff] }
 0x813   :  { %2893 = vmatpush1.bf16.msra.mxu0 %v6439_v32  ;;  %2934 = vmatpush1.bf16.msra.mxu1 %v6445_v54 }
 0x814   :  { %2988 = vmatprep.subr.bf16.mxu0 %v5731_v36  ;;  %3029 = vmatprep.subr.bf16.mxu1 %v5737_v4  ;;  %v2791_v43 = vpack.c.bf16 %v2790_v46, %v2790_v46  ;;  %v7305_v36 = vld [vmem:[#allocation32_spill] sm:$0xff]  ;;  %v7306_v4 = vld [vmem:[#allocation33_spill] sm:$0xff]  ;;  %v7330_v46 = vld [vmem:[#allocation43_spill] sm:$0xff] }
 0x816   :  { %v2876_v23 = vrot.slane %v2791_v43, 2  ;;  %v7331_v43 = vld [vmem:[#allocation44_spill] sm:$0xff] }
 0x818   :  { %2911 = vmatmul.mubr.bf16.vlgmr.msra.gmra.mrb[84].mxu0 %v2876_v23  ;;  %2952 = vmatmul.mubr.bf16.vlgmr.msra.gmra.mrb[84].mxu1 %v2876_v23 }
 0x819   :  { %2989 = vmatpush1.bf16.msra.mxu0 %v5745_v34  ;;  %3030 = vmatpush1.bf16.msra.mxu1 %v5751_v53  ;;  %v7307_v34 = vld [vmem:[#allocation34_spill] sm:$0xff]  ;;  %v7308_v53 = vld [vmem:[#allocation35_spill] sm:$0xff] }
 0x81a   :  { %2990 = vmatprep.subr.bf16.mxu0 %v5757_v14  ;;  %3031 = vmatprep.subr.bf16.mxu1 %v5763_v21  ;;  %v7309_v14 = vld [vmem:[#allocation36_spill] sm:$0xff]  ;;  %v7310_v21 = vld [vmem:[#allocation37_spill] sm:$0xff] }
 0x81b   :  { %3020 = vmatprep.mubr.bf16.mxu0 %v6938_v2  ;;  %3061 = vmatprep.mubr.bf16.mxu1 %v6938_v2 }
 0x81d   :  { %2991 = vmatpush1.bf16.msra.mxu0 %v5771_v45  ;;  %3032 = vmatpush1.bf16.msra.mxu1 %v7240_v55  ;;  %v7311_v45 = vld [vmem:[#allocation38_spill] sm:$0xff]  ;;  %v7312_v55 = vld [vmem:[#allocation39_spill] sm:$0xff] }
 0x81e   :  { %2992 = vmatprep.subr.bf16.mxu0 %v7241_v12  ;;  %3033 = vmatprep.subr.bf16.mxu1 %v7242_v56  ;;  %v7313_v12 = vld [vmem:[#allocation40_spill] sm:$0xff]  ;;  %v7314_v56 = vld [vmem:[#allocation58_spill] sm:$0xff] }
 0x821   :  { %2993 = vmatpush1.bf16.msra.mxu0 %v7243_v25  ;;  %3034 = vmatpush1.bf16.msra.mxu1 %v7244_v10  ;;  %v7315_v25 = vld [vmem:[#allocation59_spill] sm:$0xff]  ;;  %v7316_v10 = vld [vmem:[#allocation61_spill] sm:$0xff] }
 0x822   :  { %2994 = vmatprep.subr.bf16.mxu0 %v7245_v57  ;;  %3035 = vmatprep.subr.bf16.mxu1 %v7246_v49  ;;  %v7317_v57 = vld [vmem:[#allocation60_spill] sm:$0xff]  ;;  %v7318_v49 = vld [vmem:[#allocation10_spill] sm:$0xff] }
 0x825   :  { %2995 = vmatpush1.bf16.msra.mxu0 %v7247_v26  ;;  %3036 = vmatpush1.bf16.msra.mxu1 %v7248_v0  ;;  %v7319_v26 = vld [vmem:[#allocation12_spill] sm:$0xff]  ;;  %v7320_v0 = vld [vmem:[#allocation41_spill] sm:$0xff] }
 0x826   :  { %2996 = vmatprep.subr.bf16.mxu0 %v7249_v18  ;;  %3037 = vmatprep.subr.bf16.mxu1 %v7250_v50  ;;  %v7321_v18 = vld [vmem:[#allocation48_spill] sm:$0xff]  ;;  %v7322_v50 = vld [vmem:[#allocation50_spill] sm:$0xff] }
 0x829   :  { %2997 = vmatpush1.bf16.msra.mxu0 %v7251_v61  ;;  %3038 = vmatpush1.bf16.msra.mxu1 %v7252_v15  ;;  %v7323_v61 = vld [vmem:[#allocation51_spill] sm:$0xff]  ;;  %v7324_v15 = vld [vmem:[#allocation53_spill] sm:$0xff] }
 0x82a   :  { %2998 = vmatprep.subr.bf16.mxu0 %v7253_v16  ;;  %3039 = vmatprep.subr.bf16.mxu1 %v7254_v47  ;;  %v7325_v16 = vld [vmem:[#allocation55_spill] sm:$0xff]  ;;  %v7326_v47 = vld [vmem:[#allocation56_spill] sm:$0xff] }
 0x82d   :  { %2999 = vmatpush1.bf16.msra.mxu0 %v7255_v20  ;;  %3040 = vmatpush1.bf16.msra.mxu1 %v7256_v44  ;;  %v7327_v20 = vld [vmem:[#allocation25_spill] sm:$0xff]  ;;  %v7328_v44 = vld [vmem:[#allocation26_spill] sm:$0xff] }
 0x82e   :  { %3000 = vmatprep.subr.bf16.mxu0 %v7257_v59  ;;  %3041 = vmatprep.subr.bf16.mxu1 %v7305_v36  ;;  %v7329_v59 = vld [vmem:[#allocation42_spill] sm:$0xff]  ;;  %v7334_v36 = vld [vmem:[#allocation47_spill] sm:$0xff] }
 0x831   :  { %3001 = vmatpush1.bf16.msra.mxu0 %v7306_v4  ;;  %3042 = vmatpush1.bf16.msra.mxu1 %v7307_v34  ;;  %v7335_v4 = vld [vmem:[#allocation49_spill] sm:$0xff]  ;;  %v7336_v34 = vld [vmem:[#allocation52_spill] sm:$0xff] }
 0x832   :  { %3002 = vmatprep.subr.bf16.mxu0 %v7308_v53  ;;  %3043 = vmatprep.subr.bf16.mxu1 %v7309_v14  ;;  %v7337_v53 = vld [vmem:[#allocation54_spill] sm:$0xff]  ;;  %v7338_v14 = vld [vmem:[#allocation3_spill] sm:$0xff] }
 0x835   :  { %3003 = vmatpush1.bf16.msra.mxu0 %v7310_v21  ;;  %3044 = vmatpush1.bf16.msra.mxu1 %v7311_v45  ;;  %v7339_v21 = vld [vmem:[#allocation2_spill] sm:$0xff]  ;;  %v7340_v45 = vld [vmem:[#allocation5_spill] sm:$0xff] }
 0x836   :  { %3115 = vmatprep.subr.bf16.mxu0 %v7312_v55  ;;  %3156 = vmatprep.subr.bf16.mxu1 %v7313_v12  ;;  %v7341_v55 = vld [vmem:[#allocation4_spill] sm:$0xff]  ;;  %v7342_v12 = vld [vmem:[#allocation7_spill] sm:$0xff] }
 0x838   :  { %3021 = vmatmul.mubr.bf16.vlgmr.msra.gmra.mrb[88].mxu0 %v2876_v23  ;;  %3062 = vmatmul.mubr.bf16.vlgmr.msra.gmra.mrb[88].mxu1 %v2876_v23  ;;  %v7333_v23 = vld [vmem:[#allocation46_spill] sm:$0xff] }
 0x839   :  { %3116 = vmatpush1.bf16.msra.mxu0 %v7314_v56  ;;  %3157 = vmatpush1.bf16.msra.mxu1 %v7315_v25  ;;  %v7343_v56 = vld [vmem:[#allocation6_spill] sm:$0xff]  ;;  %v7344_v25 = vld [vmem:[#allocation8_spill] sm:$0xff] }
 0x83a   :  { %3117 = vmatprep.subr.bf16.mxu0 %v7316_v10  ;;  %3158 = vmatprep.subr.bf16.mxu1 %v7317_v57  ;;  %v7345_v10 = vld [vmem:[#allocation9_spill] sm:$0xff] }
 0x83b   :  { %3147 = vmatprep.mubr.bf16.mxu0 %v6938_v2  ;;  %3188 = vmatprep.mubr.bf16.mxu1 %v6938_v2 }
 0x83d   :  { %3118 = vmatpush1.bf16.msra.mxu0 %v7318_v49  ;;  %3159 = vmatpush1.bf16.msra.mxu1 %v7319_v26 }
 0x83e   :  { %3119 = vmatprep.subr.bf16.mxu0 %v7320_v0  ;;  %3160 = vmatprep.subr.bf16.mxu1 %v7321_v18 }
 0x841   :  { %3120 = vmatpush1.bf16.msra.mxu0 %v7322_v50  ;;  %3161 = vmatpush1.bf16.msra.mxu1 %v7323_v61 }
 0x842   :  { %3121 = vmatprep.subr.bf16.mxu0 %v7324_v15  ;;  %3162 = vmatprep.subr.bf16.mxu1 %v7325_v16 }
 0x845   :  { %3122 = vmatpush1.bf16.msra.mxu0 %v7326_v47  ;;  %3163 = vmatpush1.bf16.msra.mxu1 %v7327_v20 }
 0x846   :  { %3123 = vmatprep.subr.bf16.mxu0 %v7328_v44  ;;  %3164 = vmatprep.subr.bf16.mxu1 %v7329_v59 }
 0x849   :  { %3124 = vmatpush1.bf16.msra.mxu0 %v7330_v46  ;;  %3165 = vmatpush1.bf16.msra.mxu1 %v7331_v43 }
 0x84a   :  { %3125 = vmatprep.subr.bf16.mxu0 %v7332_v33  ;;  %3166 = vmatprep.subr.bf16.mxu1 %v7333_v23 }
 0x84d   :  { %3126 = vmatpush1.bf16.msra.mxu0 %v7334_v36  ;;  %3167 = vmatpush1.bf16.msra.mxu1 %v7335_v4 }
 0x84e   :  { %3127 = vmatprep.subr.bf16.mxu0 %v7336_v34  ;;  %3168 = vmatprep.subr.bf16.mxu1 %v7337_v53 }
 0x851   :  { %3128 = vmatpush1.bf16.msra.mxu0 %v7338_v14  ;;  %3169 = vmatpush1.bf16.msra.mxu1 %v7339_v21 }
 0x852   :  { %3129 = vmatprep.subr.bf16.mxu0 %v7340_v45  ;;  %3170 = vmatprep.subr.bf16.mxu1 %v7341_v55 }
 0x855   :  { %3130 = vmatpush1.bf16.msra.mxu0 %v7342_v12  ;;  %3171 = vmatpush1.bf16.msra.mxu1 %v7343_v56 }
 0x856   :  { %3200 = vmatprep.subr.bf16.mxu0 %v7344_v25  ;;  %3241 = vmatprep.subr.bf16.mxu1 %v7345_v10 }
 0x8c9   :  { %v2827_v57 = vpop.f32.mrb[80].mxu0  ;;  %v2868_v49 = vpop.f32.mrb[80].mxu1 }
 0x8ca   :  { %v2829_v26 = vpop.f32.mrb[81].mxu0  ;;  %v2870_v0 = vpop.f32.mrb[81].mxu1 }
 0x8cb   :  { %v2831_v18 = vpop.f32.mrb[82].mxu0  ;;  %v2872_v50 = vpop.f32.mrb[82].mxu1 }
 0x8cc   :  { %v2832_v61 = vpop.f32.mrb[83].mxu0  ;;  %v2873_v15 = vpop.f32.mrb[83].mxu1 }
 0x8eb   :  { %v2912_v16 = vpop.f32.mrb[84].mxu0  ;;  %v2953_v47 = vpop.f32.mrb[84].mxu1 }
 0x8ec   :  { %v2913_v20 = vadd.f32 %v2912_v16, %v2827_v57  ;;  %v2954_v44 = vadd.f32 %v2953_v47, %v2868_v49  ;;  %v2914_v59 = vpop.f32.mrb[85].mxu0  ;;  %v2955_v46 = vpop.f32.mrb[85].mxu1 }
 0x8ed   :  { %v2915_v43 = vadd.f32 %v2914_v59, %v2829_v26  ;;  %v2956_v33 = vadd.f32 %v2955_v46, %v2870_v0  ;;  %v2916_v23 = vpop.f32.mrb[86].mxu0  ;;  %v2957_v36 = vpop.f32.mrb[86].mxu1 }
 0x8ee   :  { %v2960_v4 = vadd.f32 %v2913_v20, %v4825_v3  ;;  %v2917_v34 = vpop.f32.mrb[87].mxu0  ;;  %v2958_v53 = vpop.f32.mrb[87].mxu1  ;;  %v2962_v56 = vadd.f32 %v2954_v44, %v4840_v24 }
 0x8ef   :  { %v2961_v14 = vadd.f32 %v2915_v43, %v4829_v48  ;;  %v2963_v55 = vadd.f32 %v2956_v33, %v4835_v58 }
 0x8f0   :  { %v3457_v21 = vmul.f32 -1.442695, %v2960_v4 }
 0x8f1   :  { %v3458_v45 = vmul.f32 -1.442695, %v2961_v14  ;;  %v3459_v12 = vmul.f32 -1.442695, %v2963_v55 }
 0x8f2   :  { %3826 = vpow2.f32 %v3457_v21 }
 0x8f3   :  { %3828 = vpow2.f32 %v3458_v45 }
 0x8f4   :  { %3830 = vpow2.f32 %v3459_v12 }
 0x8f5   :  { %3832 = vtanh.f32 %v2962_v56 }
 0x8fc   :  { %v3827_v25 = vpop.eup %3826 }
 0x8fd   :  { %v3829_v10 = vpop.eup %3828  ;;  %v2967_v57 = vadd.f32 1.0, %v3827_v25 }
 0x8fe   :  { %v2973_v49 = vadd.f32 1.0, %v3829_v10  ;;  %v3831_v26 = vpop.eup %3830 }
 0x8ff   :  { %3834 = vrcp.f32 %v2967_v57  ;;  %v3833_v0 = vpop.eup %3832  ;;  %v2980_v15 = vadd.f32 1.0, %v3831_v26 }
 0x900   :  { %3836 = vrcp.f32 %v2973_v49 }
 0x901   :  { %3838 = vrcp.f32 %v2980_v15 }
 0x909   :  { %v3835_v18 = vpop.eup %3834 }
 0x90a   :  { %v3837_v50 = vpop.eup %3836  ;;  %v2984_v61 = vmul.f32 %v3835_v18, %v3833_v0 }
 0x90b   :  { %v2983_v16 = vmul.f32 %v3837_v50, %v6285_v7  ;;  %v3022_v47 = vpop.f32.mrb[88].mxu0  ;;  %v3063_v20 = vpop.f32.mrb[88].mxu1 }
 0x90c   :  { %v3074_v59 = vrot.slane %v3022_v47, 2  ;;  %v3024_v44 = vpop.f32.mrb[89].mxu0  ;;  %v3065_v46 = vpop.f32.mrb[89].mxu1  ;;  %v3076_v12 = vrot.slane %v3063_v20, 2 }
 0x90d   :  { %v6523_v43 = vadd.f32 %v2984_v61, %v2983_v16  ;;  %v3075_v33 = vrot.slane %v3024_v44, 2  ;;  %v3026_v23 = vpop.f32.mrb[90].mxu0  ;;  %v3067_v36 = vpop.f32.mrb[90].mxu1  ;;  %v3077_v45 = vrot.slane %v3065_v46, 2 }
 0x90e   :  { %v3082_v4 = vadd.f32 %v3074_v59, %v7182_v63  ;;  %v3027_v34 = vpop.f32.mrb[91].mxu0  ;;  %v3068_v53 = vpop.f32.mrb[91].mxu1  ;;  %v3084_v57 = vadd.f32 %v3076_v12, %v7185_v38 }
 0x90f   :  { %v3083_v14 = vadd.f32 %v3075_v33, %v7183_v60  ;;  %3840 = vtanh.f32 %v6523_v43  ;;  %v3085_v55 = vadd.f32 %v3077_v45, %v7184_v19  ;;  %v3839_v56 = vpop.eup %3838 }
 0x910   :  { %v3460_v7 = vmul.f32 -1.442695, %v3082_v4 }
 0x911   :  { %v3461_v21 = vmul.f32 -1.442695, %v3083_v14  ;;  %v3462_v10 = vmul.f32 -1.442695, %v3085_v55 }
 0x912   :  { %3842 = vpow2.f32 %v3460_v7 }
 0x913   :  { %3844 = vpow2.f32 %v3461_v21 }
 0x914   :  { %3846 = vpow2.f32 %v3462_v10 }
 0x915   :  { %3848 = vtanh.f32 %v3084_v57 }
 0x919   :  { %v3841_v25 = vpop.eup %3840 }
 0x91a   :  { %v2987_v63 = vmul.f32 %v3841_v25, %v3839_v56 }
 0x91c   :  { %v3843_v49 = vpop.eup %3842  ;;  %v3114_v26 = vpack.c.bf16 %v2987_v63, %v2987_v63 }
 0x91d   :  { %v3845_v0 = vpop.eup %3844  ;;  %v3089_v60 = vadd.f32 1.0, %v3843_v49 }
 0x91e   :  { %v3095_v18 = vadd.f32 1.0, %v3845_v0  ;;  %3148 = vmatmul.mubr.bf16.vlgmr.msra.gmra.mrb[92].mxu0 %v3114_v26  ;;  %3189 = vmatmul.mubr.bf16.vlgmr.msra.gmra.mrb[92].mxu1 %v3114_v26  ;;  %v3847_v19 = vpop.eup %3846 }
 0x91f   :  { %3850 = vrcp.f32 %v3089_v60  ;;  %3201 = vmatpush1.bf16.msra.mxu0 %v5977_v22  ;;  %3242 = vmatpush1.bf16.msra.mxu1 %v5983_v35  ;;  %v3849_v38 = vpop.eup %3848 }
 0x920   :  { %3852 = vrcp.f32 %v3095_v18  ;;  %3202 = vmatprep.subr.bf16.mxu0 %v5989_v42  ;;  %3243 = vmatprep.subr.bf16.mxu1 %v5995_v41  ;;  %v3102_v41 = vadd.f32 1.0, %v3847_v19 }
 0x921   :  { %3232 = vmatprep.mubr.bf16.mxu0 %v6938_v2  ;;  %3273 = vmatprep.mubr.bf16.mxu1 %v6938_v2  ;;  %v3106_v2 = vrot.slane %v6361_v30, 6 }
 0x922   :  { %3854 = vrcp.f32 %v3102_v41 }
 0x923   :  { %3203 = vmatpush1.bf16.msra.mxu0 %v6003_v29  ;;  %3244 = vmatpush1.bf16.msra.mxu1 %v6009_v31 }
 0x924   :  { %3204 = vmatprep.subr.bf16.mxu0 %v6303_v5  ;;  %3245 = vmatprep.subr.bf16.mxu1 %v6309_v6  ;;  %v7346_v5 = vld [vmem:[#allocation11_spill] sm:$0xff]  ;;  %v7347_v6 = vld [vmem:[#allocation13_spill] sm:$0xff] }
 0x927   :  { %3205 = vmatpush1.bf16.msra.mxu0 %v6315_v37  ;;  %3246 = vmatpush1.bf16.msra.mxu1 %v6321_v8  ;;  %v7348_v37 = vld [vmem:[#allocation15_spill] sm:$0xff]  ;;  %v7349_v8 = vld [vmem:[#allocation14_spill] sm:$0xff] }
 0x928   :  { %3206 = vmatprep.subr.bf16.mxu0 %v6327_v40  ;;  %3247 = vmatprep.subr.bf16.mxu1 %v6333_v28  ;;  %v7350_v28 = vld [vmem:[#allocation16_spill] sm:$0xff] }
 0x929   :  { %v3851_v22 = vpop.eup %3850 }
 0x92a   :  { %v3853_v35 = vpop.eup %3852  ;;  %v3109_v42 = vmul.f32 %v3851_v22, %v3849_v38 }
 0x92b   :  { %v3108_v29 = vmul.f32 %v3853_v35, %v3106_v2  ;;  %3207 = vmatpush1.bf16.msra.mxu0 %v6340_v9  ;;  %3248 = vmatpush1.bf16.msra.mxu1 %v6346_v1  ;;  %v7351_v9 = vld [vmem:[#allocation17_spill] sm:$0xff] }
 0x92c   :  { %3208 = vmatprep.subr.bf16.mxu0 %v6352_v52  ;;  %3249 = vmatprep.subr.bf16.mxu1 %v6358_v39  ;;  %v3855_v40 = vpop.eup %3854 }
 0x92d   :  { %v3110_v31 = vadd.f32 %v3109_v42, %v3108_v29 }
 0x92f   :  { %3209 = vmatpush1.bf16.msra.mxu0 %v6366_v62  ;;  %3250 = vmatpush1.bf16.msra.mxu1 %v6372_v13  ;;  %3856 = vtanh.f32 %v3110_v31 }
 0x930   :  { %3210 = vmatprep.subr.bf16.mxu0 %v6379_v51  ;;  %3251 = vmatprep.subr.bf16.mxu1 %v6385_v27 }
 0x933   :  { %3211 = vmatpush1.bf16.msra.mxu0 %v6391_v17  ;;  %3252 = vmatpush1.bf16.msra.mxu1 %v6397_v11 }
 0x934   :  { %3212 = vmatprep.subr.bf16.mxu0 %v7346_v5  ;;  %3253 = vmatprep.subr.bf16.mxu1 %v7347_v6 }
 0x937   :  { %3213 = vmatpush1.bf16.msra.mxu0 %v7348_v37  ;;  %3254 = vmatpush1.bf16.msra.mxu1 %v7349_v8 }
 0x938   :  { %3214 = vmatprep.subr.bf16.mxu0 %v7350_v28  ;;  %3255 = vmatprep.subr.bf16.mxu1 %v7351_v9 }
 0x939   :  { %v3857_v1 = vpop.eup %3856 }
 0x93a   :  { %v3112_v52 = vmul.f32 %v3857_v1, %v3855_v40 }
 0x93b   :  { %3215 = vmatpush1.bf16.msra.mxu0 %v6439_v32  ;;  %3256 = vmatpush1.bf16.msra.mxu1 %v6445_v54 }
 0x93c   :  { %v3113_v39 = vpack.c.bf16 %v3112_v52, %v3112_v52 }
 0x93e   :  { %v3198_v30 = vrot.slane %v3113_v39, 3 }
 0x940   :  { %3233 = vmatmul.mubr.bf16.vlgmr.msra.gmra.mrb[96].mxu0 %v3198_v30  ;;  %3274 = vmatmul.mubr.bf16.vlgmr.msra.gmra.mrb[96].mxu1 %v3198_v30 }
 0x9f1   :  { %v3149_v62 = vpop.f32.mrb[92].mxu0  ;;  %v3190_v13 = vpop.f32.mrb[92].mxu1 }
 0x9f2   :  { %v3151_v51 = vpop.f32.mrb[93].mxu0  ;;  %v3192_v27 = vpop.f32.mrb[93].mxu1 }
 0x9f3   :  { %v3153_v17 = vpop.f32.mrb[94].mxu0  ;;  %v3194_v11 = vpop.f32.mrb[94].mxu1 }
 0x9f4   :  { %v3154_v50 = vpop.f32.mrb[95].mxu0  ;;  %v3195_v61 = vpop.f32.mrb[95].mxu1 }
 0xa13   :  { %v3234_v15 = vpop.f32.mrb[96].mxu0  ;;  %v3275_v16 = vpop.f32.mrb[96].mxu1 }
 0xa14   :  { %v3235_v47 = vadd.f32 %v3234_v15, %v3149_v62  ;;  %v3276_v20 = vadd.f32 %v3275_v16, %v3190_v13  ;;  %v3236_v59 = vpop.f32.mrb[97].mxu0  ;;  %v3277_v32 = vpop.f32.mrb[97].mxu1 }
 0xa15   :  { %v3237_v44 = vadd.f32 %v3236_v59, %v3151_v51  ;;  %v3278_v54 = vadd.f32 %v3277_v32, %v3192_v27  ;;  %v3238_v46 = vpop.f32.mrb[98].mxu0  ;;  %v3279_v33 = vpop.f32.mrb[98].mxu1 }
 0xa16   :  { %v3282_v23 = vadd.f32 %v3235_v47, %v4825_v3  ;;  %v3239_v36 = vpop.f32.mrb[99].mxu0  ;;  %v3280_v4 = vpop.f32.mrb[99].mxu1  ;;  %v3284_v45 = vadd.f32 %v3276_v20, %v4840_v24 }
 0xa17   :  { %v3283_v34 = vadd.f32 %v3237_v44, %v4829_v48  ;;  %v3285_v7 = vadd.f32 %v3278_v54, %v4835_v58 }
 0xa18   :  { %v3463_v53 = vmul.f32 -1.442695, %v3282_v23 }
 0xa19   :  { %v3464_v14 = vmul.f32 -1.442695, %v3283_v34  ;;  %v3465_v21 = vmul.f32 -1.442695, %v3285_v7 }
 0xa1a   :  { %3858 = vpow2.f32 %v3463_v53 }
 0xa1b   :  { %3860 = vpow2.f32 %v3464_v14 }
 0xa1c   :  { %3862 = vpow2.f32 %v3465_v21 }
 0xa1d   :  { %3864 = vtanh.f32 %v3284_v45 }
 0xa24   :  { %v3859_v55 = vpop.eup %3858 }
 0xa25   :  { %v3861_v12 = vpop.eup %3860  ;;  %v3289_v56 = vadd.f32 1.0, %v3859_v55 }
 0xa26   :  { %v3295_v25 = vadd.f32 1.0, %v3861_v12  ;;  %v3863_v3 = vpop.eup %3862 }
 0xa27   :  { %3866 = vrcp.f32 %v3289_v56  ;;  %v3865_v10 = vpop.eup %3864  ;;  %v3302_v49 = vadd.f32 1.0, %v3863_v3 }
 0xa28   :  { %3868 = vrcp.f32 %v3295_v25 }
 0xa29   :  { %3870 = vrcp.f32 %v3302_v49 }
 0xa31   :  { %v3867_v48 = vpop.eup %3866 }
 0xa32   :  { %v3869_v57 = vpop.eup %3868  ;;  %v3306_v63 = vmul.f32 %v3867_v48, %v3865_v10 }
 0xa33   :  { %v3305_v26 = vmul.f32 %v3869_v57, %v6523_v43  ;;  %v3871_v24 = vpop.eup %3870 }
 0xa35   :  { %v3307_v58 = vadd.f32 %v3306_v63, %v3305_v26 }
 0xa37   :  { %3872 = vtanh.f32 %v3307_v58 }
 0xa41   :  { %v3873_v0 = vpop.eup %3872 }
 0xa42   :  { %v3309_v60 = vmul.f32 %v3873_v0, %v3871_v24 }
 0xa44   :  { %3310 = vst [vmem:[%s6578_s7] sm:$0x3] %v3309_v60 }

// kernel: zipper_forward.7
= control target key start
LH: loop header
LB: loop body
LE: loop exit
PB: predicated region body
PF: predicated region fallthrough
CT: control target
= control target key end

     0   :  { %v916_v36 = vlaneseq  ;;  %v9761_v37 = vmov 1966171168   ;;  %s12892_s0 = inlined_call_operand.vmem [shape: bf16[2,3456], index: 0, kind: input, shape index: {}]   ;;  %s12893_s1 = inlined_call_operand.vmem [shape: f32[2,128], index: 1, kind: input, shape index: {}]   ;;  %s12894_s2 = inlined_call_operand.vmem [shape: bf16[3456,408], index: 2, kind: input, shape index: {}]   ;;  %s12895_s3 = inlined_call_operand.vmem [shape: f32[1,408], index: 3, kind: input, shape index: {}]   ;;  %s12896_s4 = inlined_call_operand.vmem [shape: f32[408,25], index: 4, kind: input, shape index: {}]   ;;  %s12897_s5 = inlined_call_operand.vmem [shape: f32[1,25], index: 5, kind: input, shape index: {}]   ;;  %s12898_s6 = inlined_call_operand.vmem [shape: f32[128,25], index: 6, kind: input, shape index: {}]   ;;  %s12899_s7 = inlined_call_operand.vmem [shape: f32[1,25], index: 7, kind: input, shape index: {}]   ;;  %s12900_s8 = inlined_call_operand.vmem [shape: f32[25,20], index: 8, kind: input, shape index: {}]   ;;  %s12901_s9 = inlined_call_operand.vmem [shape: f32[25,20], index: 9, kind: input, shape index: {}]   ;;  %s12902_s10 = inlined_call_operand.vmem [shape: f32[1,20], index: 10, kind: input, shape index: {}]   ;;  %s12903_s11 = inlined_call_operand.vmem [shape: f32[20,10], index: 11, kind: input, shape index: {}]   ;;  %s12904_s12 = inlined_call_operand.vmem [shape: f32[1,10], index: 12, kind: input, shape index: {}]   ;;  %s12905_s13 = inlined_call_operand.hbm [shape: f32[2,10], index: 13, kind: output, shape index: {}]  }
   0x1   :  { %v8428_v0 = vld [vmem:[%s12894_s2 + $0x4] ss:$16 sps:$4 sm:$0xff]   ;;  %v8430_v1 = vld [vmem:[%s12894_s2 + $0xc] ss:$16 sps:$4 sm:$0xff]   ;;  %v8432_v2 = vld [vmem:[%s12894_s2] ss:$16 sps:$4 sm:$0xff]   ;;  %v942_v38 = vunpack.c.l.s4 %v9761_v37 }
   0x2   :  { %5457 = vmatprep.subr.bf16.mxu0 %v8428_v0  ;;  %v8433_v3 = vld [vmem:[%s12894_s2 + $0x8] ss:$16 sps:$4 sm:$0xff]   ;;  %6031 = vmatprep.subr.bf16.mxu1 %v8430_v1  ;;  %v8434_v4 = vld [vmem:[%s12894_s2 + $0x24] ss:$16 sps:$4 sm:$0xff]   ;;  %v8436_v5 = vld [vmem:[%s12894_s2 + $0x2c] ss:$16 sps:$4 sm:$0xff]  }
   0x3   :  { %5458 = vmatpush1.bf16.msra.mxu0 %v8432_v2  ;;  %6032 = vmatpush1.bf16.msra.mxu1 %v8433_v3  ;;  %v8438_v6 = vld [vmem:[%s12894_s2 + $0x20] ss:$16 sps:$4 sm:$0xff]   ;;  %v8439_v7 = vld [vmem:[%s12894_s2 + $0x28] ss:$16 sps:$4 sm:$0xff]   ;;  %v8440_v8 = vld [vmem:[%s12894_s2 + $0x44] ss:$16 sps:$4 sm:$0xff]   ;;  %v943_v43 = vunpack.c.0.s8 %v942_v38 }
   0x4   :  { %5459 = vmatprep.subr.bf16.mxu0 %v8434_v4  ;;  %6033 = vmatprep.subr.bf16.mxu1 %v8436_v5  ;;  %v8442_v9 = vld [vmem:[%s12894_s2 + $0x4c] ss:$16 sps:$4 sm:$0xff]   ;;  %v8444_v10 = vld [vmem:[%s12894_s2 + $0x40] ss:$16 sps:$4 sm:$0xff]   ;;  %v8445_v11 = vld [vmem:[%s12894_s2 + $0x48] ss:$16 sps:$4 sm:$0xff]  }
   0x5   :  { %v8446_v12 = vld [vmem:[%s12894_s2 + $0x64] ss:$16 sps:$4 sm:$0xff]   ;;  %v8448_v13 = vld [vmem:[%s12894_s2 + $0x6c] ss:$16 sps:$4 sm:$0xff]   ;;  %v8450_v14 = vld [vmem:[%s12894_s2 + $0x60] ss:$16 sps:$4 sm:$0xff]  }
   0x6   :  { %v8451_v15 = vld [vmem:[%s12894_s2 + $0x68] ss:$16 sps:$4 sm:$0xff]   ;;  %v8452_v16 = vld [vmem:[%s12894_s2 + $0x84] ss:$16 sps:$4 sm:$0xff]   ;;  %v8454_v17 = vld [vmem:[%s12894_s2 + $0x8c] ss:$16 sps:$4 sm:$0xff]  }
   0x7   :  { %5460 = vmatpush1.bf16.msra.mxu0 %v8438_v6  ;;  %6034 = vmatpush1.bf16.msra.mxu1 %v8439_v7  ;;  %v8456_v18 = vld [vmem:[%s12894_s2 + $0x80] ss:$16 sps:$4 sm:$0xff]   ;;  %v8457_v19 = vld [vmem:[%s12894_s2 + $0x88] ss:$16 sps:$4 sm:$0xff]   ;;  %v8458_v20 = vld [vmem:[%s12894_s2 + $0xa4] ss:$16 sps:$4 sm:$0xff]  }
   0x8   :  { %5461 = vmatprep.subr.bf16.mxu0 %v8440_v8  ;;  %6035 = vmatprep.subr.bf16.mxu1 %v8442_v9  ;;  %v8460_v21 = vld [vmem:[%s12894_s2 + $0xac] ss:$16 sps:$4 sm:$0xff]   ;;  %v8462_v22 = vld [vmem:[%s12894_s2 + $0xa0] ss:$16 sps:$4 sm:$0xff]   ;;  %v8463_v23 = vld [vmem:[%s12894_s2 + $0xa8] ss:$16 sps:$4 sm:$0xff]  }
   0x9   :  { %v8464_v24 = vld [vmem:[%s12894_s2 + $0xc4] ss:$16 sps:$4 sm:$0xff]   ;;  %v8466_v25 = vld [vmem:[%s12894_s2 + $0xcc] ss:$16 sps:$4 sm:$0xff]   ;;  %v8468_v26 = vld [vmem:[%s12894_s2 + $0xc0] ss:$16 sps:$4 sm:$0xff]  }
   0xa   :  { %v8469_v27 = vld [vmem:[%s12894_s2 + $0xc8] ss:$16 sps:$4 sm:$0xff]   ;;  %v8470_v28 = vld [vmem:[%s12894_s2 + $0xe4] ss:$16 sps:$4 sm:$0xff]   ;;  %v8472_v29 = vld [vmem:[%s12894_s2 + $0xec] ss:$16 sps:$4 sm:$0xff]  }
   0xb   :  { %5462 = vmatpush1.bf16.msra.mxu0 %v8444_v10  ;;  %6036 = vmatpush1.bf16.msra.mxu1 %v8445_v11  ;;  %v8474_v30 = vld [vmem:[%s12894_s2 + $0xe0] ss:$16 sps:$4 sm:$0xff]   ;;  %v8475_v31 = vld [vmem:[%s12894_s2 + $0xe8] ss:$16 sps:$4 sm:$0xff]   ;;  %v8476_v32 = vld [vmem:[%s12894_s2 + $0x104] ss:$16 sps:$4 sm:$0xff]  }
   0xc   :  { %5463 = vmatprep.subr.bf16.mxu0 %v8446_v12  ;;  %6037 = vmatprep.subr.bf16.mxu1 %v8448_v13  ;;  %v8478_v33 = vld [vmem:[%s12894_s2 + $0x10c] ss:$16 sps:$4 sm:$0xff]   ;;  %v8480_v34 = vld [vmem:[%s12894_s2 + $0x100] ss:$16 sps:$4 sm:$0xff]   ;;  %v8481_v35 = vld [vmem:[%s12894_s2 + $0x108] ss:$16 sps:$4 sm:$0xff]  }
   0xd   :  { %v8482_v39 = vld [vmem:[%s12894_s2 + $0x124] ss:$16 sps:$4 sm:$0xff]   ;;  %v8484_v40 = vld [vmem:[%s12894_s2 + $0x12c] ss:$16 sps:$4 sm:$0xff]   ;;  %v8486_v41 = vld [vmem:[%s12894_s2 + $0x120] ss:$16 sps:$4 sm:$0xff]  }
   0xe   :  { %v9955_v42 = vshrl.u32 %v916_v36, 7  ;;  %v8487_v44 = vld [vmem:[%s12894_s2 + $0x128] ss:$16 sps:$4 sm:$0xff]   ;;  %v8488_v45 = vld [vmem:[%s12894_s2 + $0x144] ss:$16 sps:$4 sm:$0xff]  }
   0xf   :  { %5464 = vmatpush1.bf16.msra.mxu0 %v8450_v14  ;;  %6038 = vmatpush1.bf16.msra.mxu1 %v8451_v15  ;;  %v8490_v46 = vld [vmem:[%s12894_s2 + $0x14c] ss:$16 sps:$4 sm:$0xff]   ;;  %v8492_v47 = vld [vmem:[%s12894_s2 + $0x140] ss:$16 sps:$4 sm:$0xff]   ;;  %v8493_v48 = vld [vmem:[%s12894_s2 + $0x148] ss:$16 sps:$4 sm:$0xff]  }
  0x10   :  { %5465 = vmatprep.subr.bf16.mxu0 %v8452_v16  ;;  %6039 = vmatprep.subr.bf16.mxu1 %v8454_v17  ;;  %v9973_v49 = vsub.s32 %v943_v43, %v9955_v42  ;;  %v8494_v50 = vld [vmem:[%s12894_s2 + $0x164] ss:$16 sps:$4 sm:$0xff]   ;;  %v8496_v51 = vld [vmem:[%s12894_s2 + $0x16c] ss:$16 sps:$4 sm:$0xff]   ;;  %v8498_v53 = vld [vmem:[%s12894_s2 + $0x160] ss:$16 sps:$4 sm:$0xff]  }
  0x11   :  { %v9984_v52 = vld [vmem:[%s12892_s0] sm:$0xff]  ;;  %v8499_v55 = vld [vmem:[%s12894_s2 + $0x168] ss:$16 sps:$4 sm:$0xff]   ;;  %v8502_v57 = vld [vmem:[%s12894_s2 + $0x18c] ss:$16 sps:$4 sm:$0xff]  }
  0x12   :  { %v947_v54 = vrot.slane %v9984_v52, %v9973_v49  ;;  %v8500_v56 = vld [vmem:[%s12894_s2 + $0x184] ss:$16 sps:$4 sm:$0xff]   ;;  %v8504_v59 = vld [vmem:[%s12894_s2 + $0x180] ss:$16 sps:$4 sm:$0xff]   ;;  %v8505_v61 = vld [vmem:[%s12894_s2 + $0x188] ss:$16 sps:$4 sm:$0xff]  }
  0x13   :  { %5466 = vmatpush1.bf16.msra.mxu0 %v8456_v18  ;;  %6040 = vmatpush1.bf16.msra.mxu1 %v8457_v19  ;;  %v8506_v62 = vld [vmem:[%s12894_s2 + $0x1a4] ss:$16 sps:$4 sm:$0xff]   ;;  %v8508_v63 = vld [vmem:[%s12894_s2 + $0x1ac] ss:$16 sps:$4 sm:$0xff]   ;;  %v8510_v0 = vld [vmem:[%s12894_s2 + $0x1a0] ss:$16 sps:$4 sm:$0xff]  }
  0x14   :  { %5467 = vmatprep.subr.bf16.mxu0 %v8458_v20  ;;  %6041 = vmatprep.subr.bf16.mxu1 %v8460_v21  ;;  %v955_v58 = vcombine.high %v947_v54, %v947_v54  ;;  %v8511_v1 = vld [vmem:[%s12894_s2 + $0x1a8] ss:$16 sps:$4 sm:$0xff]   ;;  %v8512_v2 = vld [vmem:[%s12894_s2 + $0x1c4] ss:$16 sps:$4 sm:$0xff]   ;;  %v8514_v3 = vld [vmem:[%s12894_s2 + $0x1cc] ss:$16 sps:$4 sm:$0xff]   ;;  %v10053_v13 = vrot.slane %v947_v54, %v9973_v49 }
  0x15   :  { %v8516_v4 = vld [vmem:[%s12894_s2 + $0x1c0] ss:$16 sps:$4 sm:$0xff]   ;;  %v8517_v5 = vld [vmem:[%s12894_s2 + $0x1c8] ss:$16 sps:$4 sm:$0xff]   ;;  %v8518_v6 = vld [vmem:[%s12894_s2 + $0x1e4] ss:$16 sps:$4 sm:$0xff]  }
  0x16   :  { %v977_v60 = vrot.slane %v955_v58, %v9973_v49  ;;  %v8520_v7 = vld [vmem:[%s12894_s2 + $0x1ec] ss:$16 sps:$4 sm:$0xff]   ;;  %v8522_v8 = vld [vmem:[%s12894_s2 + $0x1e0] ss:$16 sps:$4 sm:$0xff]   ;;  %v8523_v9 = vld [vmem:[%s12894_s2 + $0x1e8] ss:$16 sps:$4 sm:$0xff]  }
  0x17   :  { %5468 = vmatpush1.bf16.msra.mxu0 %v8462_v22  ;;  %6042 = vmatpush1.bf16.msra.mxu1 %v8463_v23  ;;  %v8526_v10 = vld [vmem:[%s12894_s2 + $0x204] ss:$16 sps:$4 sm:$0xff]   ;;  %v8529_v11 = vld [vmem:[%s12894_s2 + $0x20c] ss:$16 sps:$4 sm:$0xff]   ;;  %v8524_v12 = vld [vmem:[%s12894_s2 + $0x200] ss:$16 sps:$4 sm:$0xff]  }
  0x18   :  { %5469 = vmatprep.subr.bf16.mxu0 %v8464_v24  ;;  %6043 = vmatprep.subr.bf16.mxu1 %v8466_v25  ;;  %v8527_v14 = vld [vmem:[%s12894_s2 + $0x208] ss:$16 sps:$4 sm:$0xff]   ;;  %v8532_v15 = vld [vmem:[%s12894_s2 + $0x224] ss:$16 sps:$4 sm:$0xff]   ;;  %v8535_v16 = vld [vmem:[%s12894_s2 + $0x22c] ss:$16 sps:$4 sm:$0xff]   ;;  %v987_v17 = vcombine.high %v977_v60, %v977_v60 }
  0x19   :  { %5489 = vmatprep.mubr.bf16.mxu0 %v977_v60  ;;  %6063 = vmatprep.mubr.bf16.mxu1 %v977_v60  ;;  %v8530_v18 = vld [vmem:[%s12894_s2 + $0x220] ss:$16 sps:$4 sm:$0xff]   ;;  %v8533_v19 = vld [vmem:[%s12894_s2 + $0x228] ss:$16 sps:$4 sm:$0xff]   ;;  %v8538_v20 = vld [vmem:[%s12894_s2 + $0x244] ss:$16 sps:$4 sm:$0xff]  }
  0x1a   :  { %v8541_v21 = vld [vmem:[%s12894_s2 + $0x24c] ss:$16 sps:$4 sm:$0xff]   ;;  %v8536_v22 = vld [vmem:[%s12894_s2 + $0x240] ss:$16 sps:$4 sm:$0xff]   ;;  %v8539_v23 = vld [vmem:[%s12894_s2 + $0x248] ss:$16 sps:$4 sm:$0xff]  }
  0x1b   :  { %5470 = vmatpush1.bf16.msra.mxu0 %v8468_v26  ;;  %6044 = vmatpush1.bf16.msra.mxu1 %v8469_v27  ;;  %v8544_v24 = vld [vmem:[%s12894_s2 + $0x264] ss:$16 sps:$4 sm:$0xff]   ;;  %v8547_v25 = vld [vmem:[%s12894_s2 + $0x26c] ss:$16 sps:$4 sm:$0xff]   ;;  %v8542_v26 = vld [vmem:[%s12894_s2 + $0x260] ss:$16 sps:$4 sm:$0xff]  }
  0x1c   :  { %5471 = vmatprep.subr.bf16.mxu0 %v8470_v28  ;;  %6045 = vmatprep.subr.bf16.mxu1 %v8472_v29  ;;  %v8545_v27 = vld [vmem:[%s12894_s2 + $0x268] ss:$16 sps:$4 sm:$0xff]   ;;  %v8550_v28 = vld [vmem:[%s12894_s2 + $0x284] ss:$16 sps:$4 sm:$0xff]   ;;  %v8553_v29 = vld [vmem:[%s12894_s2 + $0x28c] ss:$16 sps:$4 sm:$0xff]  }
  0x1d   :  { %v8562_v36 = vld [vmem:[%s12894_s2 + $0x2c4] ss:$16 sps:$4 sm:$0xff]   ;;  %v8565_v37 = vld [vmem:[%s12894_s2 + $0x2cc] ss:$16 sps:$4 sm:$0xff]   ;;  %v8560_v38 = vld [vmem:[%s12894_s2 + $0x2c0] ss:$16 sps:$4 sm:$0xff]  }
  0x1e   :  { %v8566_v43 = vld [vmem:[%s12894_s2 + $0x2e0] ss:$16 sps:$4 sm:$0xff]   ;;  %v8581_v54 = vld [vmem:[%s12894_s2 + $0x328] ss:$16 sps:$4 sm:$0xff]   ;;  %v8595_v60 = vld [vmem:[%s12894_s2 + $0x36c] ss:$16 sps:$4 sm:$0xff]  }
  0x1f   :  { %5472 = vmatpush1.bf16.msra.mxu0 %v8474_v30  ;;  %6046 = vmatpush1.bf16.msra.mxu1 %v8475_v31  ;;  %v8548_v30 = vld [vmem:[%s12894_s2 + $0x280] ss:$16 sps:$4 sm:$0xff]   ;;  %v8551_v31 = vld [vmem:[%s12894_s2 + $0x288] ss:$16 sps:$4 sm:$0xff]  }
  0x20   :  { %5473 = vmatprep.subr.bf16.mxu0 %v8476_v32  ;;  %6047 = vmatprep.subr.bf16.mxu1 %v8478_v33  ;;  %v8556_v32 = vld [vmem:[%s12894_s2 + $0x2a4] ss:$16 sps:$4 sm:$0xff]   ;;  %v8559_v33 = vld [vmem:[%s12894_s2 + $0x2ac] ss:$16 sps:$4 sm:$0xff]   ;;  %v8587_v58 = vld [vmem:[%s12894_s2 + $0x348] ss:$16 sps:$4 sm:$0xff]  }
  0x23   :  { %5474 = vmatpush1.bf16.msra.mxu0 %v8480_v34  ;;  %6048 = vmatpush1.bf16.msra.mxu1 %v8481_v35  ;;  %v8554_v34 = vld [vmem:[%s12894_s2 + $0x2a0] ss:$16 sps:$4 sm:$0xff]   ;;  %v8557_v35 = vld [vmem:[%s12894_s2 + $0x2a8] ss:$16 sps:$4 sm:$0xff]  }
  0x24   :  { %5475 = vmatprep.subr.bf16.mxu0 %v8482_v39  ;;  %6049 = vmatprep.subr.bf16.mxu1 %v8484_v40  ;;  %v8563_v39 = vld [vmem:[%s12894_s2 + $0x2c8] ss:$16 sps:$4 sm:$0xff]   ;;  %v8568_v40 = vld [vmem:[%s12894_s2 + $0x2e4] ss:$16 sps:$4 sm:$0xff]  }
  0x27   :  { %5476 = vmatpush1.bf16.msra.mxu0 %v8486_v41  ;;  %6050 = vmatpush1.bf16.msra.mxu1 %v8487_v44  ;;  %v8571_v41 = vld [vmem:[%s12894_s2 + $0x2ec] ss:$16 sps:$4 sm:$0xff]   ;;  %v8569_v44 = vld [vmem:[%s12894_s2 + $0x2e8] ss:$16 sps:$4 sm:$0xff]  }
  0x28   :  { %5477 = vmatprep.subr.bf16.mxu0 %v8488_v45  ;;  %6051 = vmatprep.subr.bf16.mxu1 %v8490_v46  ;;  %v8574_v45 = vld [vmem:[%s12894_s2 + $0x304] ss:$16 sps:$4 sm:$0xff]   ;;  %v8577_v46 = vld [vmem:[%s12894_s2 + $0x30c] ss:$16 sps:$4 sm:$0xff]  }
  0x2b   :  { %5478 = vmatpush1.bf16.msra.mxu0 %v8492_v47  ;;  %6052 = vmatpush1.bf16.msra.mxu1 %v8493_v48  ;;  %v8572_v47 = vld [vmem:[%s12894_s2 + $0x300] ss:$16 sps:$4 sm:$0xff]   ;;  %v8575_v48 = vld [vmem:[%s12894_s2 + $0x308] ss:$16 sps:$4 sm:$0xff]  }
  0x2c   :  { %5479 = vmatprep.subr.bf16.mxu0 %v8494_v50  ;;  %6053 = vmatprep.subr.bf16.mxu1 %v8496_v51  ;;  %v8580_v50 = vld [vmem:[%s12894_s2 + $0x324] ss:$16 sps:$4 sm:$0xff]   ;;  %v8583_v51 = vld [vmem:[%s12894_s2 + $0x32c] ss:$16 sps:$4 sm:$0xff]  }
  0x2f   :  { %5480 = vmatpush1.bf16.msra.mxu0 %v8498_v53  ;;  %6054 = vmatpush1.bf16.msra.mxu1 %v8499_v55  ;;  %v8578_v53 = vld [vmem:[%s12894_s2 + $0x320] ss:$16 sps:$4 sm:$0xff]   ;;  %v8586_v55 = vld [vmem:[%s12894_s2 + $0x344] ss:$16 sps:$4 sm:$0xff]  }
  0x30   :  { %5481 = vmatprep.subr.bf16.mxu0 %v8500_v56  ;;  %6055 = vmatprep.subr.bf16.mxu1 %v8502_v57  ;;  %v8589_v56 = vld [vmem:[%s12894_s2 + $0x34c] ss:$16 sps:$4 sm:$0xff]   ;;  %v8584_v57 = vld [vmem:[%s12894_s2 + $0x340] ss:$16 sps:$4 sm:$0xff]  }
  0x33   :  { %5482 = vmatpush1.bf16.msra.mxu0 %v8504_v59  ;;  %6056 = vmatpush1.bf16.msra.mxu1 %v8505_v61  ;;  %v8592_v59 = vld [vmem:[%s12894_s2 + $0x364] ss:$16 sps:$4 sm:$0xff]   ;;  %v8590_v61 = vld [vmem:[%s12894_s2 + $0x360] ss:$16 sps:$4 sm:$0xff]  }
  0x34   :  { %5483 = vmatprep.subr.bf16.mxu0 %v8506_v62  ;;  %6057 = vmatprep.subr.bf16.mxu1 %v8508_v63  ;;  %v8593_v62 = vld [vmem:[%s12894_s2 + $0x368] ss:$16 sps:$4 sm:$0xff]   ;;  %v8598_v63 = vld [vmem:[%s12894_s2 + $0x384] ss:$16 sps:$4 sm:$0xff]  }
  0x37   :  { %5484 = vmatpush1.bf16.msra.mxu0 %v8510_v0  ;;  %6058 = vmatpush1.bf16.msra.mxu1 %v8511_v1  ;;  %v8601_v0 = vld [vmem:[%s12894_s2 + $0x38c] ss:$16 sps:$4 sm:$0xff]   ;;  %v8596_v1 = vld [vmem:[%s12894_s2 + $0x380] ss:$16 sps:$4 sm:$0xff]  }
  0x38   :  { %5485 = vmatprep.subr.bf16.mxu0 %v8512_v2  ;;  %6059 = vmatprep.subr.bf16.mxu1 %v8514_v3  ;;  %v8599_v2 = vld [vmem:[%s12894_s2 + $0x388] ss:$16 sps:$4 sm:$0xff]   ;;  %v8604_v3 = vld [vmem:[%s12894_s2 + $0x3a4] ss:$16 sps:$4 sm:$0xff]  }
  0x3b   :  { %5486 = vmatpush1.bf16.msra.mxu0 %v8516_v4  ;;  %6060 = vmatpush1.bf16.msra.mxu1 %v8517_v5  ;;  %v8607_v4 = vld [vmem:[%s12894_s2 + $0x3ac] ss:$16 sps:$4 sm:$0xff]   ;;  %v8602_v5 = vld [vmem:[%s12894_s2 + $0x3a0] ss:$16 sps:$4 sm:$0xff]  }
  0x3c   :  { %5487 = vmatprep.subr.bf16.mxu0 %v8518_v6  ;;  %6061 = vmatprep.subr.bf16.mxu1 %v8520_v7  ;;  %v8605_v6 = vld [vmem:[%s12894_s2 + $0x3a8] ss:$16 sps:$4 sm:$0xff]   ;;  %v8610_v7 = vld [vmem:[%s12894_s2 + $0x3c4] ss:$16 sps:$4 sm:$0xff]  }
  0x3f   :  { %5488 = vmatpush1.bf16.msra.mxu0 %v8522_v8  ;;  %6062 = vmatpush1.bf16.msra.mxu1 %v8523_v9  ;;  %v8613_v8 = vld [vmem:[%s12894_s2 + $0x3cc] ss:$16 sps:$4 sm:$0xff]   ;;  %v940_v9 = vcombine.high %v9984_v52, %v9984_v52 }
  0x40   :  { %5498 = vmatprep.subr.bf16.mxu0 %v8526_v10  ;;  %6072 = vmatprep.subr.bf16.mxu1 %v8529_v11  ;;  %v8608_v10 = vld [vmem:[%s12894_s2 + $0x3c0] ss:$16 sps:$4 sm:$0xff]   ;;  %v8611_v11 = vld [vmem:[%s12894_s2 + $0x3c8] ss:$16 sps:$4 sm:$0xff]   ;;  %v8619_v52 = vld [vmem:[%s12894_s2 + $0x3ec] ss:$16 sps:$4 sm:$0xff]  }
  0x42   :  { %5490 = vmatmul.mubr.bf16.vlgmr.msra.gmra.mrb[0].mxu0 %v10053_v13  ;;  %6064 = vmatmul.mubr.bf16.vlgmr.msra.gmra.mrb[0].mxu1 %v10053_v13 }
  0x43   :  { %5499 = vmatpush1.bf16.msra.mxu0 %v8524_v12  ;;  %6073 = vmatpush1.bf16.msra.mxu1 %v8527_v14  ;;  %v8616_v12 = vld [vmem:[%s12894_s2 + $0x3e4] ss:$16 sps:$4 sm:$0xff]   ;;  %v10237_v14 = vrot.slane %v940_v9, %v9973_v49  ;;  %v8695_v9 = vld [vmem:[%s12894_s2 + $0x588] ss:$16 sps:$4 sm:$0xff]  }
  0x44   :  { %5500 = vmatprep.subr.bf16.mxu0 %v8532_v15  ;;  %6074 = vmatprep.subr.bf16.mxu1 %v8535_v16  ;;  %v8614_v15 = vld [vmem:[%s12894_s2 + $0x3e0] ss:$16 sps:$4 sm:$0xff]   ;;  %v8617_v16 = vld [vmem:[%s12894_s2 + $0x3e8] ss:$16 sps:$4 sm:$0xff]  }
  0x45   :  { %5530 = vmatprep.mubr.bf16.mxu0 %v987_v17  ;;  %6104 = vmatprep.mubr.bf16.mxu1 %v987_v17  ;;  %v8622_v17 = vld [vmem:[%s12894_s2 + $0x404] ss:$16 sps:$4 sm:$0xff]  }
  0x47   :  { %5501 = vmatpush1.bf16.msra.mxu0 %v8530_v18  ;;  %6075 = vmatpush1.bf16.msra.mxu1 %v8533_v19  ;;  %v8625_v18 = vld [vmem:[%s12894_s2 + $0x40c] ss:$16 sps:$4 sm:$0xff]   ;;  %v956_v19 = vcombine.high %v10237_v14, %v10237_v14 }
  0x48   :  { %5502 = vmatprep.subr.bf16.mxu0 %v8538_v20  ;;  %6076 = vmatprep.subr.bf16.mxu1 %v8541_v21  ;;  %v8620_v20 = vld [vmem:[%s12894_s2 + $0x400] ss:$16 sps:$4 sm:$0xff]   ;;  %v985_v21 = vcombine.high %v10053_v13, %v10053_v13 }
  0x49   :  { %v8626_v13 = vld [vmem:[%s12894_s2 + $0x420] ss:$16 sps:$4 sm:$0xff]  }
  0x4b   :  { %5503 = vmatpush1.bf16.msra.mxu0 %v8536_v22  ;;  %6077 = vmatpush1.bf16.msra.mxu1 %v8539_v23  ;;  %v8623_v22 = vld [vmem:[%s12894_s2 + $0x408] ss:$16 sps:$4 sm:$0xff]   ;;  %v8628_v23 = vld [vmem:[%s12894_s2 + $0x424] ss:$16 sps:$4 sm:$0xff]  }
  0x4c   :  { %5504 = vmatprep.subr.bf16.mxu0 %v8544_v24  ;;  %6078 = vmatprep.subr.bf16.mxu1 %v8547_v25  ;;  %v8631_v24 = vld [vmem:[%s12894_s2 + $0x42c] ss:$16 sps:$4 sm:$0xff]   ;;  %v10268_v25 = vrot.slane %v956_v19, %v9973_v49  ;;  %v8712_v19 = vld [vmem:[%s12894_s2 + $0x5e4] ss:$16 sps:$4 sm:$0xff]  }
  0x4f   :  { %5505 = vmatpush1.bf16.msra.mxu0 %v8542_v26  ;;  %6079 = vmatpush1.bf16.msra.mxu1 %v8545_v27  ;;  %v8629_v26 = vld [vmem:[%s12894_s2 + $0x428] ss:$16 sps:$4 sm:$0xff]   ;;  %v8634_v27 = vld [vmem:[%s12894_s2 + $0x444] ss:$16 sps:$4 sm:$0xff]  }
  0x50   :  { %5506 = vmatprep.subr.bf16.mxu0 %v8550_v28  ;;  %6080 = vmatprep.subr.bf16.mxu1 %v8553_v29  ;;  %v8637_v28 = vld [vmem:[%s12894_s2 + $0x44c] ss:$16 sps:$4 sm:$0xff]   ;;  %v8632_v29 = vld [vmem:[%s12894_s2 + $0x440] ss:$16 sps:$4 sm:$0xff]  }
  0x53   :  { %5507 = vmatpush1.bf16.msra.mxu0 %v8548_v30  ;;  %6081 = vmatpush1.bf16.msra.mxu1 %v8551_v31  ;;  %v8635_v30 = vld [vmem:[%s12894_s2 + $0x448] ss:$16 sps:$4 sm:$0xff]   ;;  %v8640_v31 = vld [vmem:[%s12894_s2 + $0x464] ss:$16 sps:$4 sm:$0xff]  }
  0x54   :  { %5508 = vmatprep.subr.bf16.mxu0 %v8556_v32  ;;  %6082 = vmatprep.subr.bf16.mxu1 %v8559_v33  ;;  %v8643_v32 = vld [vmem:[%s12894_s2 + $0x46c] ss:$16 sps:$4 sm:$0xff]   ;;  %v8638_v33 = vld [vmem:[%s12894_s2 + $0x460] ss:$16 sps:$4 sm:$0xff]  }
  0x57   :  { %5509 = vmatpush1.bf16.msra.mxu0 %v8554_v34  ;;  %6083 = vmatpush1.bf16.msra.mxu1 %v8557_v35  ;;  %v8641_v34 = vld [vmem:[%s12894_s2 + $0x468] ss:$16 sps:$4 sm:$0xff]   ;;  %v8646_v35 = vld [vmem:[%s12894_s2 + $0x484] ss:$16 sps:$4 sm:$0xff]  }
  0x58   :  { %5510 = vmatprep.subr.bf16.mxu0 %v8562_v36  ;;  %6084 = vmatprep.subr.bf16.mxu1 %v8565_v37  ;;  %v8649_v36 = vld [vmem:[%s12894_s2 + $0x48c] ss:$16 sps:$4 sm:$0xff]   ;;  %v8644_v37 = vld [vmem:[%s12894_s2 + $0x480] ss:$16 sps:$4 sm:$0xff]  }
  0x5b   :  { %5511 = vmatpush1.bf16.msra.mxu0 %v8560_v38  ;;  %6085 = vmatpush1.bf16.msra.mxu1 %v8563_v39  ;;  %v8647_v38 = vld [vmem:[%s12894_s2 + $0x488] ss:$16 sps:$4 sm:$0xff]   ;;  %v8652_v39 = vld [vmem:[%s12894_s2 + $0x4a4] ss:$16 sps:$4 sm:$0xff]  }
  0x5c   :  { %5512 = vmatprep.subr.bf16.mxu0 %v8568_v40  ;;  %6086 = vmatprep.subr.bf16.mxu1 %v8571_v41  ;;  %v8655_v40 = vld [vmem:[%s12894_s2 + $0x4ac] ss:$16 sps:$4 sm:$0xff]   ;;  %v8650_v41 = vld [vmem:[%s12894_s2 + $0x4a0] ss:$16 sps:$4 sm:$0xff]  }
  0x5f   :  { %5513 = vmatpush1.bf16.msra.mxu0 %v8566_v43  ;;  %6087 = vmatpush1.bf16.msra.mxu1 %v8569_v44  ;;  %v8653_v43 = vld [vmem:[%s12894_s2 + $0x4a8] ss:$16 sps:$4 sm:$0xff]   ;;  %v8658_v44 = vld [vmem:[%s12894_s2 + $0x4c4] ss:$16 sps:$4 sm:$0xff]  }
  0x60   :  { %5514 = vmatprep.subr.bf16.mxu0 %v8574_v45  ;;  %6088 = vmatprep.subr.bf16.mxu1 %v8577_v46  ;;  %v8661_v45 = vld [vmem:[%s12894_s2 + $0x4cc] ss:$16 sps:$4 sm:$0xff]   ;;  %v8656_v46 = vld [vmem:[%s12894_s2 + $0x4c0] ss:$16 sps:$4 sm:$0xff]  }
  0x63   :  { %5515 = vmatpush1.bf16.msra.mxu0 %v8572_v47  ;;  %6089 = vmatpush1.bf16.msra.mxu1 %v8575_v48  ;;  %v8659_v47 = vld [vmem:[%s12894_s2 + $0x4c8] ss:$16 sps:$4 sm:$0xff]   ;;  %v8664_v48 = vld [vmem:[%s12894_s2 + $0x4e4] ss:$16 sps:$4 sm:$0xff]  }
  0x64   :  { %5516 = vmatprep.subr.bf16.mxu0 %v8580_v50  ;;  %6090 = vmatprep.subr.bf16.mxu1 %v8583_v51  ;;  %v8667_v50 = vld [vmem:[%s12894_s2 + $0x4ec] ss:$16 sps:$4 sm:$0xff]   ;;  %v8662_v51 = vld [vmem:[%s12894_s2 + $0x4e0] ss:$16 sps:$4 sm:$0xff]  }
  0x67   :  { %5517 = vmatpush1.bf16.msra.mxu0 %v8578_v53  ;;  %6091 = vmatpush1.bf16.msra.mxu1 %v8581_v54  ;;  %v8665_v53 = vld [vmem:[%s12894_s2 + $0x4e8] ss:$16 sps:$4 sm:$0xff]   ;;  %v8670_v54 = vld [vmem:[%s12894_s2 + $0x504] ss:$16 sps:$4 sm:$0xff]  }
  0x68   :  { %5518 = vmatprep.subr.bf16.mxu0 %v8586_v55  ;;  %6092 = vmatprep.subr.bf16.mxu1 %v8589_v56  ;;  %v8673_v55 = vld [vmem:[%s12894_s2 + $0x50c] ss:$16 sps:$4 sm:$0xff]   ;;  %v8668_v56 = vld [vmem:[%s12894_s2 + $0x500] ss:$16 sps:$4 sm:$0xff]  }
  0x6b   :  { %5519 = vmatpush1.bf16.msra.mxu0 %v8584_v57  ;;  %6093 = vmatpush1.bf16.msra.mxu1 %v8587_v58  ;;  %v8671_v57 = vld [vmem:[%s12894_s2 + $0x508] ss:$16 sps:$4 sm:$0xff]   ;;  %v8676_v58 = vld [vmem:[%s12894_s2 + $0x524] ss:$16 sps:$4 sm:$0xff]  }
  0x6c   :  { %5520 = vmatprep.subr.bf16.mxu0 %v8592_v59  ;;  %6094 = vmatprep.subr.bf16.mxu1 %v8595_v60  ;;  %v8679_v59 = vld [vmem:[%s12894_s2 + $0x52c] ss:$16 sps:$4 sm:$0xff]   ;;  %v8674_v60 = vld [vmem:[%s12894_s2 + $0x520] ss:$16 sps:$4 sm:$0xff]  }
  0x6f   :  { %5521 = vmatpush1.bf16.msra.mxu0 %v8590_v61  ;;  %6095 = vmatpush1.bf16.msra.mxu1 %v8593_v62  ;;  %v8677_v61 = vld [vmem:[%s12894_s2 + $0x528] ss:$16 sps:$4 sm:$0xff]   ;;  %v8682_v62 = vld [vmem:[%s12894_s2 + $0x544] ss:$16 sps:$4 sm:$0xff]  }
  0x70   :  { %5522 = vmatprep.subr.bf16.mxu0 %v8598_v63  ;;  %6096 = vmatprep.subr.bf16.mxu1 %v8601_v0  ;;  %v8685_v63 = vld [vmem:[%s12894_s2 + $0x54c] ss:$16 sps:$4 sm:$0xff]   ;;  %v8680_v0 = vld [vmem:[%s12894_s2 + $0x540] ss:$16 sps:$4 sm:$0xff]  }
  0x73   :  { %5523 = vmatpush1.bf16.msra.mxu0 %v8596_v1  ;;  %6097 = vmatpush1.bf16.msra.mxu1 %v8599_v2  ;;  %v8683_v1 = vld [vmem:[%s12894_s2 + $0x548] ss:$16 sps:$4 sm:$0xff]   ;;  %v8688_v2 = vld [vmem:[%s12894_s2 + $0x564] ss:$16 sps:$4 sm:$0xff]  }
  0x74   :  { %5524 = vmatprep.subr.bf16.mxu0 %v8604_v3  ;;  %6098 = vmatprep.subr.bf16.mxu1 %v8607_v4  ;;  %v8691_v3 = vld [vmem:[%s12894_s2 + $0x56c] ss:$16 sps:$4 sm:$0xff]   ;;  %v8686_v4 = vld [vmem:[%s12894_s2 + $0x560] ss:$16 sps:$4 sm:$0xff]  }
  0x77   :  { %5525 = vmatpush1.bf16.msra.mxu0 %v8602_v5  ;;  %6099 = vmatpush1.bf16.msra.mxu1 %v8605_v6  ;;  %v8689_v5 = vld [vmem:[%s12894_s2 + $0x568] ss:$16 sps:$4 sm:$0xff]   ;;  %v8694_v6 = vld [vmem:[%s12894_s2 + $0x584] ss:$16 sps:$4 sm:$0xff]  }
  0x78   :  { %5526 = vmatprep.subr.bf16.mxu0 %v8610_v7  ;;  %6100 = vmatprep.subr.bf16.mxu1 %v8613_v8  ;;  %v8697_v7 = vld [vmem:[%s12894_s2 + $0x58c] ss:$16 sps:$4 sm:$0xff]   ;;  %v8692_v8 = vld [vmem:[%s12894_s2 + $0x580] ss:$16 sps:$4 sm:$0xff]  }
  0x7b   :  { %5527 = vmatpush1.bf16.msra.mxu0 %v8608_v10  ;;  %6101 = vmatpush1.bf16.msra.mxu1 %v8611_v11  ;;  %v8700_v10 = vld [vmem:[%s12894_s2 + $0x5a4] ss:$16 sps:$4 sm:$0xff]   ;;  %v8703_v11 = vld [vmem:[%s12894_s2 + $0x5ac] ss:$16 sps:$4 sm:$0xff]  }
  0x7c   :  { %5528 = vmatprep.subr.bf16.mxu0 %v8616_v12  ;;  %6102 = vmatprep.subr.bf16.mxu1 %v8619_v52  ;;  %v8698_v12 = vld [vmem:[%s12894_s2 + $0x5a0] ss:$16 sps:$4 sm:$0xff]   ;;  %v8701_v52 = vld [vmem:[%s12894_s2 + $0x5a8] ss:$16 sps:$4 sm:$0xff]  }
  0x7f   :  { %5529 = vmatpush1.bf16.msra.mxu0 %v8614_v15  ;;  %6103 = vmatpush1.bf16.msra.mxu1 %v8617_v16  ;;  %v8706_v15 = vld [vmem:[%s12894_s2 + $0x5c4] ss:$16 sps:$4 sm:$0xff]   ;;  %v8709_v16 = vld [vmem:[%s12894_s2 + $0x5cc] ss:$16 sps:$4 sm:$0xff]  }
  0x80   :  { %5539 = vmatprep.subr.bf16.mxu0 %v8622_v17  ;;  %6113 = vmatprep.subr.bf16.mxu1 %v8625_v18  ;;  %v8704_v17 = vld [vmem:[%s12894_s2 + $0x5c0] ss:$16 sps:$4 sm:$0xff]   ;;  %v8707_v18 = vld [vmem:[%s12894_s2 + $0x5c8] ss:$16 sps:$4 sm:$0xff]  }
  0x82   :  { %5531 = vmatmul.mubr.bf16.vlgmr.msra.gmra.mrb[0].mxu0 %v985_v21  ;;  %6105 = vmatmul.mubr.bf16.vlgmr.msra.gmra.mrb[0].mxu1 %v985_v21  ;;  %v8710_v21 = vld [vmem:[%s12894_s2 + $0x5e0] ss:$16 sps:$4 sm:$0xff]  }
  0x83   :  { %5540 = vmatpush1.bf16.msra.mxu0 %v8620_v20  ;;  %6114 = vmatpush1.bf16.msra.mxu1 %v8623_v22  ;;  %v8715_v20 = vld [vmem:[%s12894_s2 + $0x5ec] ss:$16 sps:$4 sm:$0xff]   ;;  %v8713_v22 = vld [vmem:[%s12894_s2 + $0x5e8] ss:$16 sps:$4 sm:$0xff]  }
  0x84   :  { %5541 = vmatprep.subr.bf16.mxu0 %v8628_v23  ;;  %6115 = vmatprep.subr.bf16.mxu1 %v8631_v24  ;;  %v8719_v23 = vld [vmem:[%s12894_s2 + $0x604] ss:$16 sps:$4 sm:$0xff]   ;;  %v8722_v24 = vld [vmem:[%s12894_s2 + $0x60c] ss:$16 sps:$4 sm:$0xff]  }
  0x85   :  { %5571 = vmatprep.mubr.bf16.mxu0 %v10268_v25  ;;  %6145 = vmatprep.mubr.bf16.mxu1 %v10268_v25 }
  0x87   :  { %5542 = vmatpush1.bf16.msra.mxu0 %v8626_v13  ;;  %6116 = vmatpush1.bf16.msra.mxu1 %v8629_v26  ;;  %v8717_v13 = vld [vmem:[%s12894_s2 + $0x600] ss:$16 sps:$4 sm:$0xff]   ;;  %v10457_v26 = vrot.slane %v10237_v14, %v9973_v49  ;;  %v988_v14 = vcombine.high %v10268_v25, %v10268_v25  ;;  %v8731_v25 = vld [vmem:[%s12894_s2 + $0x644] ss:$16 sps:$4 sm:$0xff]  }
  0x88   :  { %5543 = vmatprep.subr.bf16.mxu0 %v8634_v27  ;;  %6117 = vmatprep.subr.bf16.mxu1 %v8637_v28  ;;  %v8720_v27 = vld [vmem:[%s12894_s2 + $0x608] ss:$16 sps:$4 sm:$0xff]   ;;  %v8725_v28 = vld [vmem:[%s12894_s2 + $0x624] ss:$16 sps:$4 sm:$0xff]  }
  0x8b   :  { %5544 = vmatpush1.bf16.msra.mxu0 %v8632_v29  ;;  %6118 = vmatpush1.bf16.msra.mxu1 %v8635_v30  ;;  %v8728_v29 = vld [vmem:[%s12894_s2 + $0x62c] ss:$16 sps:$4 sm:$0xff]   ;;  %v8723_v30 = vld [vmem:[%s12894_s2 + $0x620] ss:$16 sps:$4 sm:$0xff]  }
  0x8c   :  { %5545 = vmatprep.subr.bf16.mxu0 %v8640_v31  ;;  %6119 = vmatprep.subr.bf16.mxu1 %v8643_v32  ;;  %v8726_v31 = vld [vmem:[%s12894_s2 + $0x628] ss:$16 sps:$4 sm:$0xff]   ;;  %v8734_v32 = vld [vmem:[%s12894_s2 + $0x64c] ss:$16 sps:$4 sm:$0xff]  }
  0x8f   :  { %5546 = vmatpush1.bf16.msra.mxu0 %v8638_v33  ;;  %6120 = vmatpush1.bf16.msra.mxu1 %v8641_v34  ;;  %v8729_v33 = vld [vmem:[%s12894_s2 + $0x640] ss:$16 sps:$4 sm:$0xff]   ;;  %v8732_v34 = vld [vmem:[%s12894_s2 + $0x648] ss:$16 sps:$4 sm:$0xff]  }
  0x90   :  { %5547 = vmatprep.subr.bf16.mxu0 %v8646_v35  ;;  %6121 = vmatprep.subr.bf16.mxu1 %v8649_v36  ;;  %v8737_v35 = vld [vmem:[%s12894_s2 + $0x664] ss:$16 sps:$4 sm:$0xff]   ;;  %v8740_v36 = vld [vmem:[%s12894_s2 + $0x66c] ss:$16 sps:$4 sm:$0xff]  }
  0x93   :  { %5548 = vmatpush1.bf16.msra.mxu0 %v8644_v37  ;;  %6122 = vmatpush1.bf16.msra.mxu1 %v8647_v38  ;;  %v8735_v37 = vld [vmem:[%s12894_s2 + $0x660] ss:$16 sps:$4 sm:$0xff]   ;;  %v8738_v38 = vld [vmem:[%s12894_s2 + $0x668] ss:$16 sps:$4 sm:$0xff]  }
  0x94   :  { %5549 = vmatprep.subr.bf16.mxu0 %v8652_v39  ;;  %6123 = vmatprep.subr.bf16.mxu1 %v8655_v40  ;;  %v8743_v39 = vld [vmem:[%s12894_s2 + $0x684] ss:$16 sps:$4 sm:$0xff]   ;;  %v8746_v40 = vld [vmem:[%s12894_s2 + $0x68c] ss:$16 sps:$4 sm:$0xff]  }
  0x97   :  { %5550 = vmatpush1.bf16.msra.mxu0 %v8650_v41  ;;  %6124 = vmatpush1.bf16.msra.mxu1 %v8653_v43  ;;  %v8741_v41 = vld [vmem:[%s12894_s2 + $0x680] ss:$16 sps:$4 sm:$0xff]   ;;  %v8744_v43 = vld [vmem:[%s12894_s2 + $0x688] ss:$16 sps:$4 sm:$0xff]  }
  0x98   :  { %5551 = vmatprep.subr.bf16.mxu0 %v8658_v44  ;;  %6125 = vmatprep.subr.bf16.mxu1 %v8661_v45  ;;  %v8749_v44 = vld [vmem:[%s12894_s2 + $0x6a4] ss:$16 sps:$4 sm:$0xff]   ;;  %v8752_v45 = vld [vmem:[%s12894_s2 + $0x6ac] ss:$16 sps:$4 sm:$0xff]  }
  0x9b   :  { %5552 = vmatpush1.bf16.msra.mxu0 %v8656_v46  ;;  %6126 = vmatpush1.bf16.msra.mxu1 %v8659_v47  ;;  %v8747_v46 = vld [vmem:[%s12894_s2 + $0x6a0] ss:$16 sps:$4 sm:$0xff]   ;;  %v8750_v47 = vld [vmem:[%s12894_s2 + $0x6a8] ss:$16 sps:$4 sm:$0xff]  }
  0x9c   :  { %5553 = vmatprep.subr.bf16.mxu0 %v8664_v48  ;;  %6127 = vmatprep.subr.bf16.mxu1 %v8667_v50  ;;  %v8755_v48 = vld [vmem:[%s12894_s2 + $0x6c4] ss:$16 sps:$4 sm:$0xff]   ;;  %v8758_v50 = vld [vmem:[%s12894_s2 + $0x6cc] ss:$16 sps:$4 sm:$0xff]  }
  0x9f   :  { %5554 = vmatpush1.bf16.msra.mxu0 %v8662_v51  ;;  %6128 = vmatpush1.bf16.msra.mxu1 %v8665_v53  ;;  %v8753_v51 = vld [vmem:[%s12894_s2 + $0x6c0] ss:$16 sps:$4 sm:$0xff]   ;;  %v8756_v53 = vld [vmem:[%s12894_s2 + $0x6c8] ss:$16 sps:$4 sm:$0xff]  }
  0xa0   :  { %5555 = vmatprep.subr.bf16.mxu0 %v8670_v54  ;;  %6129 = vmatprep.subr.bf16.mxu1 %v8673_v55  ;;  %v8761_v54 = vld [vmem:[%s12894_s2 + $0x6e4] ss:$16 sps:$4 sm:$0xff]   ;;  %v8764_v55 = vld [vmem:[%s12894_s2 + $0x6ec] ss:$16 sps:$4 sm:$0xff]  }
  0xa3   :  { %5556 = vmatpush1.bf16.msra.mxu0 %v8668_v56  ;;  %6130 = vmatpush1.bf16.msra.mxu1 %v8671_v57  ;;  %v8759_v56 = vld [vmem:[%s12894_s2 + $0x6e0] ss:$16 sps:$4 sm:$0xff]   ;;  %v8762_v57 = vld [vmem:[%s12894_s2 + $0x6e8] ss:$16 sps:$4 sm:$0xff]  }
  0xa4   :  { %5557 = vmatprep.subr.bf16.mxu0 %v8676_v58  ;;  %6131 = vmatprep.subr.bf16.mxu1 %v8679_v59  ;;  %v8767_v58 = vld [vmem:[%s12894_s2 + $0x704] ss:$16 sps:$4 sm:$0xff]   ;;  %v8770_v59 = vld [vmem:[%s12894_s2 + $0x70c] ss:$16 sps:$4 sm:$0xff]  }
  0xa7   :  { %5558 = vmatpush1.bf16.msra.mxu0 %v8674_v60  ;;  %6132 = vmatpush1.bf16.msra.mxu1 %v8677_v61  ;;  %v8765_v60 = vld [vmem:[%s12894_s2 + $0x700] ss:$16 sps:$4 sm:$0xff]   ;;  %v8768_v61 = vld [vmem:[%s12894_s2 + $0x708] ss:$16 sps:$4 sm:$0xff]  }
  0xa8   :  { %5559 = vmatprep.subr.bf16.mxu0 %v8682_v62  ;;  %6133 = vmatprep.subr.bf16.mxu1 %v8685_v63  ;;  %v8773_v62 = vld [vmem:[%s12894_s2 + $0x724] ss:$16 sps:$4 sm:$0xff]   ;;  %v8776_v63 = vld [vmem:[%s12894_s2 + $0x72c] ss:$16 sps:$4 sm:$0xff]  }
  0xab   :  { %5560 = vmatpush1.bf16.msra.mxu0 %v8680_v0  ;;  %6134 = vmatpush1.bf16.msra.mxu1 %v8683_v1  ;;  %v8771_v0 = vld [vmem:[%s12894_s2 + $0x720] ss:$16 sps:$4 sm:$0xff]   ;;  %v8774_v1 = vld [vmem:[%s12894_s2 + $0x728] ss:$16 sps:$4 sm:$0xff]  }
  0xac   :  { %5561 = vmatprep.subr.bf16.mxu0 %v8688_v2  ;;  %6135 = vmatprep.subr.bf16.mxu1 %v8691_v3  ;;  %v8779_v2 = vld [vmem:[%s12894_s2 + $0x744] ss:$16 sps:$4 sm:$0xff]   ;;  %v8782_v3 = vld [vmem:[%s12894_s2 + $0x74c] ss:$16 sps:$4 sm:$0xff]  }
  0xaf   :  { %5562 = vmatpush1.bf16.msra.mxu0 %v8686_v4  ;;  %6136 = vmatpush1.bf16.msra.mxu1 %v8689_v5  ;;  %v8777_v4 = vld [vmem:[%s12894_s2 + $0x740] ss:$16 sps:$4 sm:$0xff]   ;;  %v8780_v5 = vld [vmem:[%s12894_s2 + $0x748] ss:$16 sps:$4 sm:$0xff]  }
  0xb0   :  { %5563 = vmatprep.subr.bf16.mxu0 %v8694_v6  ;;  %6137 = vmatprep.subr.bf16.mxu1 %v8697_v7  ;;  %v8785_v6 = vld [vmem:[%s12894_s2 + $0x764] ss:$16 sps:$4 sm:$0xff]   ;;  %v8788_v7 = vld [vmem:[%s12894_s2 + $0x76c] ss:$16 sps:$4 sm:$0xff]  }
  0xb3   :  { %5564 = vmatpush1.bf16.msra.mxu0 %v8692_v8  ;;  %6138 = vmatpush1.bf16.msra.mxu1 %v8695_v9  ;;  %v8783_v8 = vld [vmem:[%s12894_s2 + $0x760] ss:$16 sps:$4 sm:$0xff]   ;;  %v8786_v9 = vld [vmem:[%s12894_s2 + $0x768] ss:$16 sps:$4 sm:$0xff]  }
  0xb4   :  { %5565 = vmatprep.subr.bf16.mxu0 %v8700_v10  ;;  %6139 = vmatprep.subr.bf16.mxu1 %v8703_v11  ;;  %v8791_v10 = vld [vmem:[%s12894_s2 + $0x784] ss:$16 sps:$4 sm:$0xff]   ;;  %v8794_v11 = vld [vmem:[%s12894_s2 + $0x78c] ss:$16 sps:$4 sm:$0xff]  }
  0xb7   :  { %5566 = vmatpush1.bf16.msra.mxu0 %v8698_v12  ;;  %6140 = vmatpush1.bf16.msra.mxu1 %v8701_v52  ;;  %v8789_v12 = vld [vmem:[%s12894_s2 + $0x780] ss:$16 sps:$4 sm:$0xff]   ;;  %v8792_v52 = vld [vmem:[%s12894_s2 + $0x788] ss:$16 sps:$4 sm:$0xff]  }
  0xb8   :  { %5567 = vmatprep.subr.bf16.mxu0 %v8706_v15  ;;  %6141 = vmatprep.subr.bf16.mxu1 %v8709_v16  ;;  %v8797_v15 = vld [vmem:[%s12894_s2 + $0x7a4] ss:$16 sps:$4 sm:$0xff]   ;;  %v8800_v16 = vld [vmem:[%s12894_s2 + $0x7ac] ss:$16 sps:$4 sm:$0xff]  }
  0xbb   :  { %5568 = vmatpush1.bf16.msra.mxu0 %v8704_v17  ;;  %6142 = vmatpush1.bf16.msra.mxu1 %v8707_v18  ;;  %v8795_v17 = vld [vmem:[%s12894_s2 + $0x7a0] ss:$16 sps:$4 sm:$0xff]   ;;  %v8798_v18 = vld [vmem:[%s12894_s2 + $0x7a8] ss:$16 sps:$4 sm:$0xff]  }
  0xbc   :  { %5569 = vmatprep.subr.bf16.mxu0 %v8712_v19  ;;  %6143 = vmatprep.subr.bf16.mxu1 %v8715_v20  ;;  %v8803_v19 = vld [vmem:[%s12894_s2 + $0x7c4] ss:$16 sps:$4 sm:$0xff]   ;;  %v8806_v20 = vld [vmem:[%s12894_s2 + $0x7cc] ss:$16 sps:$4 sm:$0xff]  }
  0xbf   :  { %5570 = vmatpush1.bf16.msra.mxu0 %v8710_v21  ;;  %6144 = vmatpush1.bf16.msra.mxu1 %v8713_v22  ;;  %v10631_v21 = vld.sshfl [vmem:[%s12892_s0 + $0x8] sm:$0xff pattern:$0x75316420]  ;;  %v8801_v22 = vld [vmem:[%s12894_s2 + $0x7c0] ss:$16 sps:$4 sm:$0xff]  }
  0xc0   :  { %5580 = vmatprep.subr.bf16.mxu0 %v8719_v23  ;;  %6154 = vmatprep.subr.bf16.mxu1 %v8722_v24  ;;  %v8804_v23 = vld [vmem:[%s12894_s2 + $0x7c8] ss:$16 sps:$4 sm:$0xff]   ;;  %v8809_v24 = vld [vmem:[%s12894_s2 + $0x7e4] ss:$16 sps:$4 sm:$0xff]  }
  0xc2   :  { %5572 = vmatmul.mubr.bf16.vlgmr.msra.gmra.mrb[0].mxu0 %v10457_v26  ;;  %6146 = vmatmul.mubr.bf16.vlgmr.msra.gmra.mrb[0].mxu1 %v10457_v26 }
  0xc3   :  { %5581 = vmatpush1.bf16.msra.mxu0 %v8717_v13  ;;  %6155 = vmatpush1.bf16.msra.mxu1 %v8720_v27  ;;  %v8812_v13 = vld [vmem:[%s12894_s2 + $0x7ec] ss:$16 sps:$4 sm:$0xff]   ;;  %v8807_v27 = vld [vmem:[%s12894_s2 + $0x7e0] ss:$16 sps:$4 sm:$0xff]  }
  0xc4   :  { %5582 = vmatprep.subr.bf16.mxu0 %v8725_v28  ;;  %6156 = vmatprep.subr.bf16.mxu1 %v8728_v29  ;;  %v8810_v28 = vld [vmem:[%s12894_s2 + $0x7e8] ss:$16 sps:$4 sm:$0xff]   ;;  %v8815_v29 = vld [vmem:[%s12894_s2 + $0x804] ss:$16 sps:$4 sm:$0xff]  }
  0xc5   :  { %5612 = vmatprep.mubr.bf16.mxu0 %v988_v14  ;;  %6186 = vmatprep.mubr.bf16.mxu1 %v988_v14  ;;  %v8818_v14 = vld [vmem:[%s12894_s2 + $0x80c] ss:$16 sps:$4 sm:$0xff]  }
  0xc7   :  { %5583 = vmatpush1.bf16.msra.mxu0 %v8723_v30  ;;  %6157 = vmatpush1.bf16.msra.mxu1 %v8726_v31  ;;  %v1004_v30 = vcombine.high %v10631_v21, %v10631_v21  ;;  %v986_v31 = vcombine.high %v10457_v26, %v10457_v26  ;;  %v8824_v26 = vld [vmem:[%s12894_s2 + $0x82c] ss:$16 sps:$4 sm:$0xff]  }
  0xc8   :  { %5584 = vmatprep.subr.bf16.mxu0 %v8731_v25  ;;  %6158 = vmatprep.subr.bf16.mxu1 %v8734_v32  ;;  %v8813_v25 = vld [vmem:[%s12894_s2 + $0x800] ss:$16 sps:$4 sm:$0xff]   ;;  %v8816_v32 = vld [vmem:[%s12894_s2 + $0x808] ss:$16 sps:$4 sm:$0xff]  }
  0xcb   :  { %5585 = vmatpush1.bf16.msra.mxu0 %v8729_v33  ;;  %6159 = vmatpush1.bf16.msra.mxu1 %v8732_v34  ;;  %v8821_v33 = vld [vmem:[%s12894_s2 + $0x824] ss:$16 sps:$4 sm:$0xff]   ;;  %v10674_v34 = vrot.slane %v1004_v30, %v9973_v49 }
  0xcc   :  { %5586 = vmatprep.subr.bf16.mxu0 %v8737_v35  ;;  %6160 = vmatprep.subr.bf16.mxu1 %v8740_v36  ;;  %v8819_v35 = vld [vmem:[%s12894_s2 + $0x820] ss:$16 sps:$4 sm:$0xff]   ;;  %v8822_v36 = vld [vmem:[%s12894_s2 + $0x828] ss:$16 sps:$4 sm:$0xff]   ;;  %v8905_v30 = vld [vmem:[%s12894_s2 + $0x9e4] ss:$16 sps:$4 sm:$0xff]  }
  0xcf   :  { %5587 = vmatpush1.bf16.msra.mxu0 %v8735_v37  ;;  %6161 = vmatpush1.bf16.msra.mxu1 %v8738_v38  ;;  %v8827_v37 = vld [vmem:[%s12894_s2 + $0x844] ss:$16 sps:$4 sm:$0xff]   ;;  %v8830_v38 = vld [vmem:[%s12894_s2 + $0x84c] ss:$16 sps:$4 sm:$0xff]  }
  0xd0   :  { %5588 = vmatprep.subr.bf16.mxu0 %v8743_v39  ;;  %6162 = vmatprep.subr.bf16.mxu1 %v8746_v40  ;;  %v8825_v39 = vld [vmem:[%s12894_s2 + $0x840] ss:$16 sps:$4 sm:$0xff]   ;;  %v8828_v40 = vld [vmem:[%s12894_s2 + $0x848] ss:$16 sps:$4 sm:$0xff]  }
  0xd3   :  { %5589 = vmatpush1.bf16.msra.mxu0 %v8741_v41  ;;  %6163 = vmatpush1.bf16.msra.mxu1 %v8744_v43  ;;  %v8833_v41 = vld [vmem:[%s12894_s2 + $0x864] ss:$16 sps:$4 sm:$0xff]   ;;  %v8836_v43 = vld [vmem:[%s12894_s2 + $0x86c] ss:$16 sps:$4 sm:$0xff]  }
  0xd4   :  { %5590 = vmatprep.subr.bf16.mxu0 %v8749_v44  ;;  %6164 = vmatprep.subr.bf16.mxu1 %v8752_v45  ;;  %v8831_v44 = vld [vmem:[%s12894_s2 + $0x860] ss:$16 sps:$4 sm:$0xff]   ;;  %v8834_v45 = vld [vmem:[%s12894_s2 + $0x868] ss:$16 sps:$4 sm:$0xff]  }
  0xd7   :  { %5591 = vmatpush1.bf16.msra.mxu0 %v8747_v46  ;;  %6165 = vmatpush1.bf16.msra.mxu1 %v8750_v47  ;;  %v8839_v46 = vld [vmem:[%s12894_s2 + $0x884] ss:$16 sps:$4 sm:$0xff]   ;;  %v8842_v47 = vld [vmem:[%s12894_s2 + $0x88c] ss:$16 sps:$4 sm:$0xff]  }
  0xd8   :  { %5592 = vmatprep.subr.bf16.mxu0 %v8755_v48  ;;  %6166 = vmatprep.subr.bf16.mxu1 %v8758_v50  ;;  %v8837_v48 = vld [vmem:[%s12894_s2 + $0x880] ss:$16 sps:$4 sm:$0xff]   ;;  %v8840_v50 = vld [vmem:[%s12894_s2 + $0x888] ss:$16 sps:$4 sm:$0xff]  }
  0xdb   :  { %5593 = vmatpush1.bf16.msra.mxu0 %v8753_v51  ;;  %6167 = vmatpush1.bf16.msra.mxu1 %v8756_v53  ;;  %v8845_v51 = vld [vmem:[%s12894_s2 + $0x8a4] ss:$16 sps:$4 sm:$0xff]   ;;  %v8848_v53 = vld [vmem:[%s12894_s2 + $0x8ac] ss:$16 sps:$4 sm:$0xff]  }
  0xdc   :  { %5594 = vmatprep.subr.bf16.mxu0 %v8761_v54  ;;  %6168 = vmatprep.subr.bf16.mxu1 %v8764_v55  ;;  %v8843_v54 = vld [vmem:[%s12894_s2 + $0x8a0] ss:$16 sps:$4 sm:$0xff]   ;;  %v8846_v55 = vld [vmem:[%s12894_s2 + $0x8a8] ss:$16 sps:$4 sm:$0xff]  }
  0xdf   :  { %5595 = vmatpush1.bf16.msra.mxu0 %v8759_v56  ;;  %6169 = vmatpush1.bf16.msra.mxu1 %v8762_v57  ;;  %v8851_v56 = vld [vmem:[%s12894_s2 + $0x8c4] ss:$16 sps:$4 sm:$0xff]   ;;  %v8854_v57 = vld [vmem:[%s12894_s2 + $0x8cc] ss:$16 sps:$4 sm:$0xff]  }
  0xe0   :  { %5596 = vmatprep.subr.bf16.mxu0 %v8767_v58  ;;  %6170 = vmatprep.subr.bf16.mxu1 %v8770_v59  ;;  %v8849_v58 = vld [vmem:[%s12894_s2 + $0x8c0] ss:$16 sps:$4 sm:$0xff]   ;;  %v8852_v59 = vld [vmem:[%s12894_s2 + $0x8c8] ss:$16 sps:$4 sm:$0xff]  }
  0xe3   :  { %5597 = vmatpush1.bf16.msra.mxu0 %v8765_v60  ;;  %6171 = vmatpush1.bf16.msra.mxu1 %v8768_v61  ;;  %v8857_v60 = vld [vmem:[%s12894_s2 + $0x8e4] ss:$16 sps:$4 sm:$0xff]   ;;  %v8860_v61 = vld [vmem:[%s12894_s2 + $0x8ec] ss:$16 sps:$4 sm:$0xff]  }
  0xe4   :  { %5598 = vmatprep.subr.bf16.mxu0 %v8773_v62  ;;  %6172 = vmatprep.subr.bf16.mxu1 %v8776_v63  ;;  %v8855_v62 = vld [vmem:[%s12894_s2 + $0x8e0] ss:$16 sps:$4 sm:$0xff]   ;;  %v8858_v63 = vld [vmem:[%s12894_s2 + $0x8e8] ss:$16 sps:$4 sm:$0xff]  }
  0xe7   :  { %5599 = vmatpush1.bf16.msra.mxu0 %v8771_v0  ;;  %6173 = vmatpush1.bf16.msra.mxu1 %v8774_v1  ;;  %v8863_v0 = vld [vmem:[%s12894_s2 + $0x904] ss:$16 sps:$4 sm:$0xff]   ;;  %v8866_v1 = vld [vmem:[%s12894_s2 + $0x90c] ss:$16 sps:$4 sm:$0xff]  }
  0xe8   :  { %5600 = vmatprep.subr.bf16.mxu0 %v8779_v2  ;;  %6174 = vmatprep.subr.bf16.mxu1 %v8782_v3  ;;  %v8861_v2 = vld [vmem:[%s12894_s2 + $0x900] ss:$16 sps:$4 sm:$0xff]   ;;  %v8864_v3 = vld [vmem:[%s12894_s2 + $0x908] ss:$16 sps:$4 sm:$0xff]  }
  0xeb   :  { %5601 = vmatpush1.bf16.msra.mxu0 %v8777_v4  ;;  %6175 = vmatpush1.bf16.msra.mxu1 %v8780_v5  ;;  %v8869_v4 = vld [vmem:[%s12894_s2 + $0x924] ss:$16 sps:$4 sm:$0xff]   ;;  %v8872_v5 = vld [vmem:[%s12894_s2 + $0x92c] ss:$16 sps:$4 sm:$0xff]  }
  0xec   :  { %5602 = vmatprep.subr.bf16.mxu0 %v8785_v6  ;;  %6176 = vmatprep.subr.bf16.mxu1 %v8788_v7  ;;  %v8867_v6 = vld [vmem:[%s12894_s2 + $0x920] ss:$16 sps:$4 sm:$0xff]   ;;  %v8870_v7 = vld [vmem:[%s12894_s2 + $0x928] ss:$16 sps:$4 sm:$0xff]  }
  0xef   :  { %5603 = vmatpush1.bf16.msra.mxu0 %v8783_v8  ;;  %6177 = vmatpush1.bf16.msra.mxu1 %v8786_v9  ;;  %v8875_v8 = vld [vmem:[%s12894_s2 + $0x944] ss:$16 sps:$4 sm:$0xff]   ;;  %v8878_v9 = vld [vmem:[%s12894_s2 + $0x94c] ss:$16 sps:$4 sm:$0xff]  }
  0xf0   :  { %5604 = vmatprep.subr.bf16.mxu0 %v8791_v10  ;;  %6178 = vmatprep.subr.bf16.mxu1 %v8794_v11  ;;  %v8873_v10 = vld [vmem:[%s12894_s2 + $0x940] ss:$16 sps:$4 sm:$0xff]   ;;  %v8876_v11 = vld [vmem:[%s12894_s2 + $0x948] ss:$16 sps:$4 sm:$0xff]  }
  0xf3   :  { %5605 = vmatpush1.bf16.msra.mxu0 %v8789_v12  ;;  %6179 = vmatpush1.bf16.msra.mxu1 %v8792_v52  ;;  %v8881_v12 = vld [vmem:[%s12894_s2 + $0x964] ss:$16 sps:$4 sm:$0xff]   ;;  %v8884_v52 = vld [vmem:[%s12894_s2 + $0x96c] ss:$16 sps:$4 sm:$0xff]  }
  0xf4   :  { %5606 = vmatprep.subr.bf16.mxu0 %v8797_v15  ;;  %6180 = vmatprep.subr.bf16.mxu1 %v8800_v16  ;;  %v8879_v15 = vld [vmem:[%s12894_s2 + $0x960] ss:$16 sps:$4 sm:$0xff]   ;;  %v8882_v16 = vld [vmem:[%s12894_s2 + $0x968] ss:$16 sps:$4 sm:$0xff]  }
  0xf7   :  { %5607 = vmatpush1.bf16.msra.mxu0 %v8795_v17  ;;  %6181 = vmatpush1.bf16.msra.mxu1 %v8798_v18  ;;  %v8887_v17 = vld [vmem:[%s12894_s2 + $0x984] ss:$16 sps:$4 sm:$0xff]   ;;  %v8890_v18 = vld [vmem:[%s12894_s2 + $0x98c] ss:$16 sps:$4 sm:$0xff]  }
  0xf8   :  { %5608 = vmatprep.subr.bf16.mxu0 %v8803_v19  ;;  %6182 = vmatprep.subr.bf16.mxu1 %v8806_v20  ;;  %v8885_v19 = vld [vmem:[%s12894_s2 + $0x980] ss:$16 sps:$4 sm:$0xff]   ;;  %v8888_v20 = vld [vmem:[%s12894_s2 + $0x988] ss:$16 sps:$4 sm:$0xff]  }
  0xfb   :  { %5609 = vmatpush1.bf16.msra.mxu0 %v8801_v22  ;;  %6183 = vmatpush1.bf16.msra.mxu1 %v8804_v23  ;;  %v8893_v22 = vld [vmem:[%s12894_s2 + $0x9a4] ss:$16 sps:$4 sm:$0xff]   ;;  %v8896_v23 = vld [vmem:[%s12894_s2 + $0x9ac] ss:$16 sps:$4 sm:$0xff]  }
  0xfc   :  { %5610 = vmatprep.subr.bf16.mxu0 %v8809_v24  ;;  %6184 = vmatprep.subr.bf16.mxu1 %v8812_v13  ;;  %v8891_v24 = vld [vmem:[%s12894_s2 + $0x9a0] ss:$16 sps:$4 sm:$0xff]   ;;  %v8894_v13 = vld [vmem:[%s12894_s2 + $0x9a8] ss:$16 sps:$4 sm:$0xff]  }
  0xff   :  { %5611 = vmatpush1.bf16.msra.mxu0 %v8807_v27  ;;  %6185 = vmatpush1.bf16.msra.mxu1 %v8810_v28  ;;  %v8899_v27 = vld [vmem:[%s12894_s2 + $0x9c4] ss:$16 sps:$4 sm:$0xff]   ;;  %v8902_v28 = vld [vmem:[%s12894_s2 + $0x9cc] ss:$16 sps:$4 sm:$0xff]  }
 0x100   :  { %5621 = vmatprep.subr.bf16.mxu0 %v8815_v29  ;;  %6195 = vmatprep.subr.bf16.mxu1 %v8818_v14  ;;  %v8897_v29 = vld [vmem:[%s12894_s2 + $0x9c0] ss:$16 sps:$4 sm:$0xff]   ;;  %v8900_v14 = vld [vmem:[%s12894_s2 + $0x9c8] ss:$16 sps:$4 sm:$0xff]  }
 0x102   :  { %5613 = vmatmul.mubr.bf16.vlgmr.msra.gmra.mrb[0].mxu0 %v986_v31  ;;  %6187 = vmatmul.mubr.bf16.vlgmr.msra.gmra.mrb[0].mxu1 %v986_v31  ;;  %v8908_v31 = vld [vmem:[%s12894_s2 + $0x9ec] ss:$16 sps:$4 sm:$0xff]  }
 0x103   :  { %5622 = vmatpush1.bf16.msra.mxu0 %v8813_v25  ;;  %6196 = vmatpush1.bf16.msra.mxu1 %v8816_v32  ;;  %v8903_v25 = vld [vmem:[%s12894_s2 + $0x9e0] ss:$16 sps:$4 sm:$0xff]   ;;  %v8906_v32 = vld [vmem:[%s12894_s2 + $0x9e8] ss:$16 sps:$4 sm:$0xff]  }
 0x104   :  { %5623 = vmatprep.subr.bf16.mxu0 %v8821_v33  ;;  %6197 = vmatprep.subr.bf16.mxu1 %v8824_v26  ;;  %v8911_v33 = vld [vmem:[%s12894_s2 + $0xa04] ss:$16 sps:$4 sm:$0xff]   ;;  %v8914_v26 = vld [vmem:[%s12894_s2 + $0xa0c] ss:$16 sps:$4 sm:$0xff]  }
 0x105   :  { %5653 = vmatprep.mubr.bf16.mxu0 %v10674_v34  ;;  %6227 = vmatprep.mubr.bf16.mxu1 %v10674_v34 }
 0x107   :  { %5624 = vmatpush1.bf16.msra.mxu0 %v8819_v35  ;;  %6198 = vmatpush1.bf16.msra.mxu1 %v8822_v36  ;;  %v10860_v35 = vrot.slane %v10631_v21, %v9973_v49  ;;  %v8909_v36 = vld [vmem:[%s12894_s2 + $0xa00] ss:$16 sps:$4 sm:$0xff]   ;;  %v8920_v21 = vld [vmem:[%s12894_s2 + $0xa2c] ss:$16 sps:$4 sm:$0xff]  }
 0x108   :  { %5625 = vmatprep.subr.bf16.mxu0 %v8827_v37  ;;  %6199 = vmatprep.subr.bf16.mxu1 %v8830_v38  ;;  %v8912_v37 = vld [vmem:[%s12894_s2 + $0xa08] ss:$16 sps:$4 sm:$0xff]   ;;  %v8917_v38 = vld [vmem:[%s12894_s2 + $0xa24] ss:$16 sps:$4 sm:$0xff]  }
 0x10b   :  { %5626 = vmatpush1.bf16.msra.mxu0 %v8825_v39  ;;  %6200 = vmatpush1.bf16.msra.mxu1 %v8828_v40  ;;  %v1036_v39 = vcombine.high %v10674_v34, %v10674_v34  ;;  %v8915_v40 = vld [vmem:[%s12894_s2 + $0xa20] ss:$16 sps:$4 sm:$0xff]   ;;  %v8923_v34 = vld [vmem:[%s12894_s2 + $0xa44] ss:$16 sps:$4 sm:$0xff]  }
 0x10c   :  { %5627 = vmatprep.subr.bf16.mxu0 %v8833_v41  ;;  %6201 = vmatprep.subr.bf16.mxu1 %v8836_v43  ;;  %v8918_v41 = vld [vmem:[%s12894_s2 + $0xa28] ss:$16 sps:$4 sm:$0xff]   ;;  %v8926_v43 = vld [vmem:[%s12894_s2 + $0xa4c] ss:$16 sps:$4 sm:$0xff]  }
 0x10f   :  { %5628 = vmatpush1.bf16.msra.mxu0 %v8831_v44  ;;  %6202 = vmatpush1.bf16.msra.mxu1 %v8834_v45  ;;  %v8921_v44 = vld [vmem:[%s12894_s2 + $0xa40] ss:$16 sps:$4 sm:$0xff]   ;;  %v8924_v45 = vld [vmem:[%s12894_s2 + $0xa48] ss:$16 sps:$4 sm:$0xff]  }
 0x110   :  { %5629 = vmatprep.subr.bf16.mxu0 %v8839_v46  ;;  %6203 = vmatprep.subr.bf16.mxu1 %v8842_v47  ;;  %v8929_v46 = vld [vmem:[%s12894_s2 + $0xa64] ss:$16 sps:$4 sm:$0xff]   ;;  %v8932_v47 = vld [vmem:[%s12894_s2 + $0xa6c] ss:$16 sps:$4 sm:$0xff]  }
 0x113   :  { %5630 = vmatpush1.bf16.msra.mxu0 %v8837_v48  ;;  %6204 = vmatpush1.bf16.msra.mxu1 %v8840_v50  ;;  %v8927_v48 = vld [vmem:[%s12894_s2 + $0xa60] ss:$16 sps:$4 sm:$0xff]   ;;  %v8930_v50 = vld [vmem:[%s12894_s2 + $0xa68] ss:$16 sps:$4 sm:$0xff]  }
 0x114   :  { %5631 = vmatprep.subr.bf16.mxu0 %v8845_v51  ;;  %6205 = vmatprep.subr.bf16.mxu1 %v8848_v53  ;;  %v8935_v51 = vld [vmem:[%s12894_s2 + $0xa84] ss:$16 sps:$4 sm:$0xff]   ;;  %v8938_v53 = vld [vmem:[%s12894_s2 + $0xa8c] ss:$16 sps:$4 sm:$0xff]  }
 0x117   :  { %5632 = vmatpush1.bf16.msra.mxu0 %v8843_v54  ;;  %6206 = vmatpush1.bf16.msra.mxu1 %v8846_v55  ;;  %v8933_v54 = vld [vmem:[%s12894_s2 + $0xa80] ss:$16 sps:$4 sm:$0xff]   ;;  %v8936_v55 = vld [vmem:[%s12894_s2 + $0xa88] ss:$16 sps:$4 sm:$0xff]  }
 0x118   :  { %5633 = vmatprep.subr.bf16.mxu0 %v8851_v56  ;;  %6207 = vmatprep.subr.bf16.mxu1 %v8854_v57  ;;  %v8941_v56 = vld [vmem:[%s12894_s2 + $0xaa4] ss:$16 sps:$4 sm:$0xff]   ;;  %v8944_v57 = vld [vmem:[%s12894_s2 + $0xaac] ss:$16 sps:$4 sm:$0xff]  }
 0x11b   :  { %5634 = vmatpush1.bf16.msra.mxu0 %v8849_v58  ;;  %6208 = vmatpush1.bf16.msra.mxu1 %v8852_v59  ;;  %v8939_v58 = vld [vmem:[%s12894_s2 + $0xaa0] ss:$16 sps:$4 sm:$0xff]   ;;  %v8942_v59 = vld [vmem:[%s12894_s2 + $0xaa8] ss:$16 sps:$4 sm:$0xff]  }
 0x11c   :  { %5635 = vmatprep.subr.bf16.mxu0 %v8857_v60  ;;  %6209 = vmatprep.subr.bf16.mxu1 %v8860_v61  ;;  %v8947_v60 = vld [vmem:[%s12894_s2 + $0xac4] ss:$16 sps:$4 sm:$0xff]   ;;  %v8950_v61 = vld [vmem:[%s12894_s2 + $0xacc] ss:$16 sps:$4 sm:$0xff]  }
 0x11f   :  { %5636 = vmatpush1.bf16.msra.mxu0 %v8855_v62  ;;  %6210 = vmatpush1.bf16.msra.mxu1 %v8858_v63  ;;  %v8945_v62 = vld [vmem:[%s12894_s2 + $0xac0] ss:$16 sps:$4 sm:$0xff]   ;;  %v8948_v63 = vld [vmem:[%s12894_s2 + $0xac8] ss:$16 sps:$4 sm:$0xff]  }
 0x120   :  { %5637 = vmatprep.subr.bf16.mxu0 %v8863_v0  ;;  %6211 = vmatprep.subr.bf16.mxu1 %v8866_v1  ;;  %v8953_v0 = vld [vmem:[%s12894_s2 + $0xae4] ss:$16 sps:$4 sm:$0xff]   ;;  %v8956_v1 = vld [vmem:[%s12894_s2 + $0xaec] ss:$16 sps:$4 sm:$0xff]  }
 0x123   :  { %5638 = vmatpush1.bf16.msra.mxu0 %v8861_v2  ;;  %6212 = vmatpush1.bf16.msra.mxu1 %v8864_v3  ;;  %v8951_v2 = vld [vmem:[%s12894_s2 + $0xae0] ss:$16 sps:$4 sm:$0xff]   ;;  %v8954_v3 = vld [vmem:[%s12894_s2 + $0xae8] ss:$16 sps:$4 sm:$0xff]  }
 0x124   :  { %5639 = vmatprep.subr.bf16.mxu0 %v8869_v4  ;;  %6213 = vmatprep.subr.bf16.mxu1 %v8872_v5  ;;  %v8959_v4 = vld [vmem:[%s12894_s2 + $0xb04] ss:$16 sps:$4 sm:$0xff]   ;;  %v8962_v5 = vld [vmem:[%s12894_s2 + $0xb0c] ss:$16 sps:$4 sm:$0xff]  }
 0x127   :  { %5640 = vmatpush1.bf16.msra.mxu0 %v8867_v6  ;;  %6214 = vmatpush1.bf16.msra.mxu1 %v8870_v7  ;;  %v8957_v6 = vld [vmem:[%s12894_s2 + $0xb00] ss:$16 sps:$4 sm:$0xff]   ;;  %v8960_v7 = vld [vmem:[%s12894_s2 + $0xb08] ss:$16 sps:$4 sm:$0xff]  }
 0x128   :  { %5641 = vmatprep.subr.bf16.mxu0 %v8875_v8  ;;  %6215 = vmatprep.subr.bf16.mxu1 %v8878_v9  ;;  %v8965_v8 = vld [vmem:[%s12894_s2 + $0xb24] ss:$16 sps:$4 sm:$0xff]   ;;  %v8968_v9 = vld [vmem:[%s12894_s2 + $0xb2c] ss:$16 sps:$4 sm:$0xff]  }
 0x12b   :  { %5642 = vmatpush1.bf16.msra.mxu0 %v8873_v10  ;;  %6216 = vmatpush1.bf16.msra.mxu1 %v8876_v11  ;;  %v8963_v10 = vld [vmem:[%s12894_s2 + $0xb20] ss:$16 sps:$4 sm:$0xff]   ;;  %v8966_v11 = vld [vmem:[%s12894_s2 + $0xb28] ss:$16 sps:$4 sm:$0xff]  }
 0x12c   :  { %5643 = vmatprep.subr.bf16.mxu0 %v8881_v12  ;;  %6217 = vmatprep.subr.bf16.mxu1 %v8884_v52  ;;  %v8971_v12 = vld [vmem:[%s12894_s2 + $0xb44] ss:$16 sps:$4 sm:$0xff]   ;;  %v8974_v52 = vld [vmem:[%s12894_s2 + $0xb4c] ss:$16 sps:$4 sm:$0xff]  }
 0x12f   :  { %5644 = vmatpush1.bf16.msra.mxu0 %v8879_v15  ;;  %6218 = vmatpush1.bf16.msra.mxu1 %v8882_v16  ;;  %v8969_v15 = vld [vmem:[%s12894_s2 + $0xb40] ss:$16 sps:$4 sm:$0xff]   ;;  %v8972_v16 = vld [vmem:[%s12894_s2 + $0xb48] ss:$16 sps:$4 sm:$0xff]  }
 0x130   :  { %5645 = vmatprep.subr.bf16.mxu0 %v8887_v17  ;;  %6219 = vmatprep.subr.bf16.mxu1 %v8890_v18  ;;  %v8977_v17 = vld [vmem:[%s12894_s2 + $0xb64] ss:$16 sps:$4 sm:$0xff]   ;;  %v8980_v18 = vld [vmem:[%s12894_s2 + $0xb6c] ss:$16 sps:$4 sm:$0xff]  }
 0x133   :  { %5646 = vmatpush1.bf16.msra.mxu0 %v8885_v19  ;;  %6220 = vmatpush1.bf16.msra.mxu1 %v8888_v20  ;;  %v8975_v19 = vld [vmem:[%s12894_s2 + $0xb60] ss:$16 sps:$4 sm:$0xff]   ;;  %v8978_v20 = vld [vmem:[%s12894_s2 + $0xb68] ss:$16 sps:$4 sm:$0xff]  }
 0x134   :  { %5647 = vmatprep.subr.bf16.mxu0 %v8893_v22  ;;  %6221 = vmatprep.subr.bf16.mxu1 %v8896_v23  ;;  %v8983_v22 = vld [vmem:[%s12894_s2 + $0xb84] ss:$16 sps:$4 sm:$0xff]   ;;  %v8986_v23 = vld [vmem:[%s12894_s2 + $0xb8c] ss:$16 sps:$4 sm:$0xff]  }
 0x137   :  { %5648 = vmatpush1.bf16.msra.mxu0 %v8891_v24  ;;  %6222 = vmatpush1.bf16.msra.mxu1 %v8894_v13  ;;  %v8981_v24 = vld [vmem:[%s12894_s2 + $0xb80] ss:$16 sps:$4 sm:$0xff]   ;;  %v8984_v13 = vld [vmem:[%s12894_s2 + $0xb88] ss:$16 sps:$4 sm:$0xff]  }
 0x138   :  { %5649 = vmatprep.subr.bf16.mxu0 %v8899_v27  ;;  %6223 = vmatprep.subr.bf16.mxu1 %v8902_v28  ;;  %v8989_v27 = vld [vmem:[%s12894_s2 + $0xba4] ss:$16 sps:$4 sm:$0xff]   ;;  %v8992_v28 = vld [vmem:[%s12894_s2 + $0xbac] ss:$16 sps:$4 sm:$0xff]  }
 0x13b   :  { %5650 = vmatpush1.bf16.msra.mxu0 %v8897_v29  ;;  %6224 = vmatpush1.bf16.msra.mxu1 %v8900_v14  ;;  %v8987_v29 = vld [vmem:[%s12894_s2 + $0xba0] ss:$16 sps:$4 sm:$0xff]   ;;  %v8990_v14 = vld [vmem:[%s12894_s2 + $0xba8] ss:$16 sps:$4 sm:$0xff]  }
 0x13c   :  { %5651 = vmatprep.subr.bf16.mxu0 %v8905_v30  ;;  %6225 = vmatprep.subr.bf16.mxu1 %v8908_v31  ;;  %v8995_v30 = vld [vmem:[%s12894_s2 + $0xbc4] ss:$16 sps:$4 sm:$0xff]   ;;  %v8998_v31 = vld [vmem:[%s12894_s2 + $0xbcc] ss:$16 sps:$4 sm:$0xff]  }
 0x13f   :  { %5652 = vmatpush1.bf16.msra.mxu0 %v8903_v25  ;;  %6226 = vmatpush1.bf16.msra.mxu1 %v8906_v32  ;;  %v9735_v25 = vld [vmem:[%s12892_s0 + $0x8] sm:$0xff] }
 0x140   :  { %5662 = vmatprep.subr.bf16.mxu0 %v8911_v33  ;;  %6236 = vmatprep.subr.bf16.mxu1 %v8914_v26  ;;  %v989_v32 = vcombine.high %v9735_v25, %v9735_v25  ;;  %v8993_v33 = vld [vmem:[%s12894_s2 + $0xbc0] ss:$16 sps:$4 sm:$0xff]   ;;  %v8996_v26 = vld [vmem:[%s12894_s2 + $0xbc8] ss:$16 sps:$4 sm:$0xff]  }
 0x141   :  { %v9077_v25 = vld [vmem:[%s12894_s2 + $0xd80] ss:$16 sps:$4 sm:$0xff]  }
 0x142   :  { %5654 = vmatmul.mubr.bf16.vlgmr.msra.gmra.mrb[0].mxu0 %v10860_v35  ;;  %6228 = vmatmul.mubr.bf16.vlgmr.msra.gmra.mrb[0].mxu1 %v10860_v35 }
 0x143   :  { %5663 = vmatpush1.bf16.msra.mxu0 %v8909_v36  ;;  %6237 = vmatpush1.bf16.msra.mxu1 %v8912_v37  ;;  %v9001_v36 = vld [vmem:[%s12894_s2 + $0xbe4] ss:$16 sps:$4 sm:$0xff]   ;;  %v9004_v37 = vld [vmem:[%s12894_s2 + $0xbec] ss:$16 sps:$4 sm:$0xff]  }
 0x144   :  { %5664 = vmatprep.subr.bf16.mxu0 %v8917_v38  ;;  %6238 = vmatprep.subr.bf16.mxu1 %v8920_v21  ;;  %v11050_v38 = vrot.slane %v989_v32, %v9973_v49  ;;  %v8999_v21 = vld [vmem:[%s12894_s2 + $0xbe0] ss:$16 sps:$4 sm:$0xff]   ;;  %v9080_v32 = vld [vmem:[%s12894_s2 + $0xd88] ss:$16 sps:$4 sm:$0xff]  }
 0x145   :  { %5694 = vmatprep.mubr.bf16.mxu0 %v1036_v39  ;;  %6268 = vmatprep.mubr.bf16.mxu1 %v1036_v39  ;;  %v9002_v39 = vld [vmem:[%s12894_s2 + $0xbe8] ss:$16 sps:$4 sm:$0xff]  }
 0x147   :  { %5665 = vmatpush1.bf16.msra.mxu0 %v8915_v40  ;;  %6239 = vmatpush1.bf16.msra.mxu1 %v8918_v41  ;;  %v9007_v40 = vld [vmem:[%s12894_s2 + $0xc04] ss:$16 sps:$4 sm:$0xff]   ;;  %v9010_v41 = vld [vmem:[%s12894_s2 + $0xc0c] ss:$16 sps:$4 sm:$0xff]  }
 0x148   :  { %5666 = vmatprep.subr.bf16.mxu0 %v8923_v34  ;;  %6240 = vmatprep.subr.bf16.mxu1 %v8926_v43  ;;  %v1005_v34 = vcombine.high %v11050_v38, %v11050_v38  ;;  %v1034_v43 = vcombine.high %v10860_v35, %v10860_v35  ;;  %v9016_v35 = vld [vmem:[%s12894_s2 + $0xc2c] ss:$16 sps:$4 sm:$0xff]  }
 0x14b   :  { %5667 = vmatpush1.bf16.msra.mxu0 %v8921_v44  ;;  %6241 = vmatpush1.bf16.msra.mxu1 %v8924_v45  ;;  %v9005_v44 = vld [vmem:[%s12894_s2 + $0xc00] ss:$16 sps:$4 sm:$0xff]   ;;  %v9008_v45 = vld [vmem:[%s12894_s2 + $0xc08] ss:$16 sps:$4 sm:$0xff]  }
 0x14c   :  { %5668 = vmatprep.subr.bf16.mxu0 %v8929_v46  ;;  %6242 = vmatprep.subr.bf16.mxu1 %v8932_v47  ;;  %v9013_v46 = vld [vmem:[%s12894_s2 + $0xc24] ss:$16 sps:$4 sm:$0xff]   ;;  %v11081_v47 = vrot.slane %v1005_v34, %v9973_v49 }
 0x14d   :  { %v9097_v34 = vld [vmem:[%s12894_s2 + $0xde4] ss:$16 sps:$4 sm:$0xff]  }
 0x14f   :  { %5669 = vmatpush1.bf16.msra.mxu0 %v8927_v48  ;;  %6243 = vmatpush1.bf16.msra.mxu1 %v8930_v50  ;;  %v9011_v48 = vld [vmem:[%s12894_s2 + $0xc20] ss:$16 sps:$4 sm:$0xff]   ;;  %v9014_v50 = vld [vmem:[%s12894_s2 + $0xc28] ss:$16 sps:$4 sm:$0xff]  }
 0x150   :  { %5670 = vmatprep.subr.bf16.mxu0 %v8935_v51  ;;  %6244 = vmatprep.subr.bf16.mxu1 %v8938_v53  ;;  %v9019_v51 = vld [vmem:[%s12894_s2 + $0xc44] ss:$16 sps:$4 sm:$0xff]   ;;  %v9022_v53 = vld [vmem:[%s12894_s2 + $0xc4c] ss:$16 sps:$4 sm:$0xff]  }
 0x153   :  { %5671 = vmatpush1.bf16.msra.mxu0 %v8933_v54  ;;  %6245 = vmatpush1.bf16.msra.mxu1 %v8936_v55  ;;  %v9017_v54 = vld [vmem:[%s12894_s2 + $0xc40] ss:$16 sps:$4 sm:$0xff]   ;;  %v9020_v55 = vld [vmem:[%s12894_s2 + $0xc48] ss:$16 sps:$4 sm:$0xff]  }
 0x154   :  { %5672 = vmatprep.subr.bf16.mxu0 %v8941_v56  ;;  %6246 = vmatprep.subr.bf16.mxu1 %v8944_v57  ;;  %v9025_v56 = vld [vmem:[%s12894_s2 + $0xc64] ss:$16 sps:$4 sm:$0xff]   ;;  %v9028_v57 = vld [vmem:[%s12894_s2 + $0xc6c] ss:$16 sps:$4 sm:$0xff]  }
 0x157   :  { %5673 = vmatpush1.bf16.msra.mxu0 %v8939_v58  ;;  %6247 = vmatpush1.bf16.msra.mxu1 %v8942_v59  ;;  %v9023_v58 = vld [vmem:[%s12894_s2 + $0xc60] ss:$16 sps:$4 sm:$0xff]   ;;  %v9026_v59 = vld [vmem:[%s12894_s2 + $0xc68] ss:$16 sps:$4 sm:$0xff]  }
 0x158   :  { %5674 = vmatprep.subr.bf16.mxu0 %v8947_v60  ;;  %6248 = vmatprep.subr.bf16.mxu1 %v8950_v61  ;;  %v9031_v60 = vld [vmem:[%s12894_s2 + $0xc84] ss:$16 sps:$4 sm:$0xff]   ;;  %v9034_v61 = vld [vmem:[%s12894_s2 + $0xc8c] ss:$16 sps:$4 sm:$0xff]  }
 0x15b   :  { %5675 = vmatpush1.bf16.msra.mxu0 %v8945_v62  ;;  %6249 = vmatpush1.bf16.msra.mxu1 %v8948_v63  ;;  %v9029_v62 = vld [vmem:[%s12894_s2 + $0xc80] ss:$16 sps:$4 sm:$0xff]   ;;  %v9032_v63 = vld [vmem:[%s12894_s2 + $0xc88] ss:$16 sps:$4 sm:$0xff]  }
 0x15c   :  { %5676 = vmatprep.subr.bf16.mxu0 %v8953_v0  ;;  %6250 = vmatprep.subr.bf16.mxu1 %v8956_v1  ;;  %v9037_v0 = vld [vmem:[%s12894_s2 + $0xca4] ss:$16 sps:$4 sm:$0xff]   ;;  %v9040_v1 = vld [vmem:[%s12894_s2 + $0xcac] ss:$16 sps:$4 sm:$0xff]  }
 0x15f   :  { %5677 = vmatpush1.bf16.msra.mxu0 %v8951_v2  ;;  %6251 = vmatpush1.bf16.msra.mxu1 %v8954_v3  ;;  %v9035_v2 = vld [vmem:[%s12894_s2 + $0xca0] ss:$16 sps:$4 sm:$0xff]   ;;  %v9038_v3 = vld [vmem:[%s12894_s2 + $0xca8] ss:$16 sps:$4 sm:$0xff]  }
 0x160   :  { %5678 = vmatprep.subr.bf16.mxu0 %v8959_v4  ;;  %6252 = vmatprep.subr.bf16.mxu1 %v8962_v5  ;;  %v9043_v4 = vld [vmem:[%s12894_s2 + $0xcc4] ss:$16 sps:$4 sm:$0xff]   ;;  %v9046_v5 = vld [vmem:[%s12894_s2 + $0xccc] ss:$16 sps:$4 sm:$0xff]  }
 0x163   :  { %5679 = vmatpush1.bf16.msra.mxu0 %v8957_v6  ;;  %6253 = vmatpush1.bf16.msra.mxu1 %v8960_v7  ;;  %v9041_v6 = vld [vmem:[%s12894_s2 + $0xcc0] ss:$16 sps:$4 sm:$0xff]   ;;  %v9044_v7 = vld [vmem:[%s12894_s2 + $0xcc8] ss:$16 sps:$4 sm:$0xff]  }
 0x164   :  { %5680 = vmatprep.subr.bf16.mxu0 %v8965_v8  ;;  %6254 = vmatprep.subr.bf16.mxu1 %v8968_v9  ;;  %v9049_v8 = vld [vmem:[%s12894_s2 + $0xce4] ss:$16 sps:$4 sm:$0xff]   ;;  %v9052_v9 = vld [vmem:[%s12894_s2 + $0xcec] ss:$16 sps:$4 sm:$0xff]  }
 0x167   :  { %5681 = vmatpush1.bf16.msra.mxu0 %v8963_v10  ;;  %6255 = vmatpush1.bf16.msra.mxu1 %v8966_v11  ;;  %v9047_v10 = vld [vmem:[%s12894_s2 + $0xce0] ss:$16 sps:$4 sm:$0xff]   ;;  %v9050_v11 = vld [vmem:[%s12894_s2 + $0xce8] ss:$16 sps:$4 sm:$0xff]  }
 0x168   :  { %5682 = vmatprep.subr.bf16.mxu0 %v8971_v12  ;;  %6256 = vmatprep.subr.bf16.mxu1 %v8974_v52  ;;  %v9055_v12 = vld [vmem:[%s12894_s2 + $0xd04] ss:$16 sps:$4 sm:$0xff]   ;;  %v9058_v52 = vld [vmem:[%s12894_s2 + $0xd0c] ss:$16 sps:$4 sm:$0xff]  }
 0x16b   :  { %5683 = vmatpush1.bf16.msra.mxu0 %v8969_v15  ;;  %6257 = vmatpush1.bf16.msra.mxu1 %v8972_v16  ;;  %v9053_v15 = vld [vmem:[%s12894_s2 + $0xd00] ss:$16 sps:$4 sm:$0xff]   ;;  %v9056_v16 = vld [vmem:[%s12894_s2 + $0xd08] ss:$16 sps:$4 sm:$0xff]  }
 0x16c   :  { %5684 = vmatprep.subr.bf16.mxu0 %v8977_v17  ;;  %6258 = vmatprep.subr.bf16.mxu1 %v8980_v18  ;;  %v9061_v17 = vld [vmem:[%s12894_s2 + $0xd24] ss:$16 sps:$4 sm:$0xff]   ;;  %v9064_v18 = vld [vmem:[%s12894_s2 + $0xd2c] ss:$16 sps:$4 sm:$0xff]  }
 0x16f   :  { %5685 = vmatpush1.bf16.msra.mxu0 %v8975_v19  ;;  %6259 = vmatpush1.bf16.msra.mxu1 %v8978_v20  ;;  %v9059_v19 = vld [vmem:[%s12894_s2 + $0xd20] ss:$16 sps:$4 sm:$0xff]   ;;  %v9062_v20 = vld [vmem:[%s12894_s2 + $0xd28] ss:$16 sps:$4 sm:$0xff]  }
 0x170   :  { %5686 = vmatprep.subr.bf16.mxu0 %v8983_v22  ;;  %6260 = vmatprep.subr.bf16.mxu1 %v8986_v23  ;;  %v9067_v22 = vld [vmem:[%s12894_s2 + $0xd44] ss:$16 sps:$4 sm:$0xff]   ;;  %v9070_v23 = vld [vmem:[%s12894_s2 + $0xd4c] ss:$16 sps:$4 sm:$0xff]  }
 0x173   :  { %5687 = vmatpush1.bf16.msra.mxu0 %v8981_v24  ;;  %6261 = vmatpush1.bf16.msra.mxu1 %v8984_v13  ;;  %v9065_v24 = vld [vmem:[%s12894_s2 + $0xd40] ss:$16 sps:$4 sm:$0xff]   ;;  %v9068_v13 = vld [vmem:[%s12894_s2 + $0xd48] ss:$16 sps:$4 sm:$0xff]  }
 0x174   :  { %5688 = vmatprep.subr.bf16.mxu0 %v8989_v27  ;;  %6262 = vmatprep.subr.bf16.mxu1 %v8992_v28  ;;  %v9073_v27 = vld [vmem:[%s12894_s2 + $0xd64] ss:$16 sps:$4 sm:$0xff]   ;;  %v9076_v28 = vld [vmem:[%s12894_s2 + $0xd6c] ss:$16 sps:$4 sm:$0xff]  }
 0x177   :  { %5689 = vmatpush1.bf16.msra.mxu0 %v8987_v29  ;;  %6263 = vmatpush1.bf16.msra.mxu1 %v8990_v14  ;;  %v9071_v29 = vld [vmem:[%s12894_s2 + $0xd60] ss:$16 sps:$4 sm:$0xff]   ;;  %v9074_v14 = vld [vmem:[%s12894_s2 + $0xd68] ss:$16 sps:$4 sm:$0xff]  }
 0x178   :  { %5690 = vmatprep.subr.bf16.mxu0 %v8995_v30  ;;  %6264 = vmatprep.subr.bf16.mxu1 %v8998_v31  ;;  %v9079_v30 = vld [vmem:[%s12894_s2 + $0xd84] ss:$16 sps:$4 sm:$0xff]   ;;  %v9082_v31 = vld [vmem:[%s12894_s2 + $0xd8c] ss:$16 sps:$4 sm:$0xff]  }
 0x17b   :  { %5691 = vmatpush1.bf16.msra.mxu0 %v8993_v33  ;;  %6265 = vmatpush1.bf16.msra.mxu1 %v8996_v26  ;;  %v9085_v33 = vld [vmem:[%s12894_s2 + $0xda4] ss:$16 sps:$4 sm:$0xff]   ;;  %v9088_v26 = vld [vmem:[%s12894_s2 + $0xdac] ss:$16 sps:$4 sm:$0xff]  }
 0x17c   :  { %5692 = vmatprep.subr.bf16.mxu0 %v9001_v36  ;;  %6266 = vmatprep.subr.bf16.mxu1 %v9004_v37  ;;  %v9083_v36 = vld [vmem:[%s12894_s2 + $0xda0] ss:$16 sps:$4 sm:$0xff]   ;;  %v9086_v37 = vld [vmem:[%s12894_s2 + $0xda8] ss:$16 sps:$4 sm:$0xff]  }
 0x17f   :  { %5693 = vmatpush1.bf16.msra.mxu0 %v8999_v21  ;;  %6267 = vmatpush1.bf16.msra.mxu1 %v9002_v39  ;;  %v9091_v21 = vld [vmem:[%s12894_s2 + $0xdc4] ss:$16 sps:$4 sm:$0xff]   ;;  %v9094_v39 = vld [vmem:[%s12894_s2 + $0xdcc] ss:$16 sps:$4 sm:$0xff]  }
 0x180   :  { %5703 = vmatprep.subr.bf16.mxu0 %v9007_v40  ;;  %6277 = vmatprep.subr.bf16.mxu1 %v9010_v41  ;;  %v9089_v40 = vld [vmem:[%s12894_s2 + $0xdc0] ss:$16 sps:$4 sm:$0xff]   ;;  %v9092_v41 = vld [vmem:[%s12894_s2 + $0xdc8] ss:$16 sps:$4 sm:$0xff]  }
 0x182   :  { %5695 = vmatmul.mubr.bf16.vlgmr.msra.gmra.mrb[0].mxu0 %v1034_v43  ;;  %6269 = vmatmul.mubr.bf16.vlgmr.msra.gmra.mrb[0].mxu1 %v1034_v43  ;;  %v9100_v43 = vld [vmem:[%s12894_s2 + $0xdec] ss:$16 sps:$4 sm:$0xff]  }
 0x183   :  { %5704 = vmatpush1.bf16.msra.mxu0 %v9005_v44  ;;  %6278 = vmatpush1.bf16.msra.mxu1 %v9008_v45  ;;  %v9095_v44 = vld [vmem:[%s12894_s2 + $0xde0] ss:$16 sps:$4 sm:$0xff]   ;;  %v9098_v45 = vld [vmem:[%s12894_s2 + $0xde8] ss:$16 sps:$4 sm:$0xff]  }
 0x184   :  { %5705 = vmatprep.subr.bf16.mxu0 %v9013_v46  ;;  %6279 = vmatprep.subr.bf16.mxu1 %v9016_v35  ;;  %v9104_v46 = vld [vmem:[%s12894_s2 + $0xe04] ss:$16 sps:$4 sm:$0xff]   ;;  %v9107_v35 = vld [vmem:[%s12894_s2 + $0xe0c] ss:$16 sps:$4 sm:$0xff]  }
 0x185   :  { %5735 = vmatprep.mubr.bf16.mxu0 %v11081_v47  ;;  %6309 = vmatprep.mubr.bf16.mxu1 %v11081_v47 }
 0x187   :  { %5706 = vmatpush1.bf16.msra.mxu0 %v9011_v48  ;;  %6280 = vmatpush1.bf16.msra.mxu1 %v9014_v50  ;;  %v11267_v48 = vrot.slane %v11050_v38, %v9973_v49  ;;  %v9102_v50 = vld [vmem:[%s12894_s2 + $0xe00] ss:$16 sps:$4 sm:$0xff]   ;;  %v9113_v38 = vld [vmem:[%s12894_s2 + $0xe2c] ss:$16 sps:$4 sm:$0xff]  }
 0x188   :  { %5707 = vmatprep.subr.bf16.mxu0 %v9019_v51  ;;  %6281 = vmatprep.subr.bf16.mxu1 %v9022_v53  ;;  %v9105_v51 = vld [vmem:[%s12894_s2 + $0xe08] ss:$16 sps:$4 sm:$0xff]   ;;  %v9110_v53 = vld [vmem:[%s12894_s2 + $0xe24] ss:$16 sps:$4 sm:$0xff]  }
 0x18b   :  { %5708 = vmatpush1.bf16.msra.mxu0 %v9017_v54  ;;  %6282 = vmatpush1.bf16.msra.mxu1 %v9020_v55  ;;  %v1037_v54 = vcombine.high %v11081_v47, %v11081_v47  ;;  %v9108_v55 = vld [vmem:[%s12894_s2 + $0xe20] ss:$16 sps:$4 sm:$0xff]   ;;  %v9116_v47 = vld [vmem:[%s12894_s2 + $0xe44] ss:$16 sps:$4 sm:$0xff]  }
 0x18c   :  { %5709 = vmatprep.subr.bf16.mxu0 %v9025_v56  ;;  %6283 = vmatprep.subr.bf16.mxu1 %v9028_v57  ;;  %v9111_v56 = vld [vmem:[%s12894_s2 + $0xe28] ss:$16 sps:$4 sm:$0xff]   ;;  %v9119_v57 = vld [vmem:[%s12894_s2 + $0xe4c] ss:$16 sps:$4 sm:$0xff]  }
 0x18f   :  { %5710 = vmatpush1.bf16.msra.mxu0 %v9023_v58  ;;  %6284 = vmatpush1.bf16.msra.mxu1 %v9026_v59  ;;  %v9114_v58 = vld [vmem:[%s12894_s2 + $0xe40] ss:$16 sps:$4 sm:$0xff]   ;;  %v9117_v59 = vld [vmem:[%s12894_s2 + $0xe48] ss:$16 sps:$4 sm:$0xff]  }
 0x190   :  { %5711 = vmatprep.subr.bf16.mxu0 %v9031_v60  ;;  %6285 = vmatprep.subr.bf16.mxu1 %v9034_v61  ;;  %v9122_v60 = vld [vmem:[%s12894_s2 + $0xe64] ss:$16 sps:$4 sm:$0xff]   ;;  %v9125_v61 = vld [vmem:[%s12894_s2 + $0xe6c] ss:$16 sps:$4 sm:$0xff]  }
 0x193   :  { %5712 = vmatpush1.bf16.msra.mxu0 %v9029_v62  ;;  %6286 = vmatpush1.bf16.msra.mxu1 %v9032_v63  ;;  %v9120_v62 = vld [vmem:[%s12894_s2 + $0xe60] ss:$16 sps:$4 sm:$0xff]   ;;  %v9123_v63 = vld [vmem:[%s12894_s2 + $0xe68] ss:$16 sps:$4 sm:$0xff]  }
 0x194   :  { %5713 = vmatprep.subr.bf16.mxu0 %v9037_v0  ;;  %6287 = vmatprep.subr.bf16.mxu1 %v9040_v1  ;;  %v9128_v0 = vld [vmem:[%s12894_s2 + $0xe84] ss:$16 sps:$4 sm:$0xff]   ;;  %v9131_v1 = vld [vmem:[%s12894_s2 + $0xe8c] ss:$16 sps:$4 sm:$0xff]  }
 0x197   :  { %5714 = vmatpush1.bf16.msra.mxu0 %v9035_v2  ;;  %6288 = vmatpush1.bf16.msra.mxu1 %v9038_v3  ;;  %v9126_v2 = vld [vmem:[%s12894_s2 + $0xe80] ss:$16 sps:$4 sm:$0xff]   ;;  %v9129_v3 = vld [vmem:[%s12894_s2 + $0xe88] ss:$16 sps:$4 sm:$0xff]  }
 0x198   :  { %5715 = vmatprep.subr.bf16.mxu0 %v9043_v4  ;;  %6289 = vmatprep.subr.bf16.mxu1 %v9046_v5  ;;  %v9134_v4 = vld [vmem:[%s12894_s2 + $0xea4] ss:$16 sps:$4 sm:$0xff]   ;;  %v9137_v5 = vld [vmem:[%s12894_s2 + $0xeac] ss:$16 sps:$4 sm:$0xff]  }
 0x19b   :  { %5716 = vmatpush1.bf16.msra.mxu0 %v9041_v6  ;;  %6290 = vmatpush1.bf16.msra.mxu1 %v9044_v7  ;;  %v9132_v6 = vld [vmem:[%s12894_s2 + $0xea0] ss:$16 sps:$4 sm:$0xff]   ;;  %v9135_v7 = vld [vmem:[%s12894_s2 + $0xea8] ss:$16 sps:$4 sm:$0xff]  }
 0x19c   :  { %5717 = vmatprep.subr.bf16.mxu0 %v9049_v8  ;;  %6291 = vmatprep.subr.bf16.mxu1 %v9052_v9  ;;  %v9140_v8 = vld [vmem:[%s12894_s2 + $0xec4] ss:$16 sps:$4 sm:$0xff]   ;;  %v9143_v9 = vld [vmem:[%s12894_s2 + $0xecc] ss:$16 sps:$4 sm:$0xff]  }
 0x19f   :  { %5718 = vmatpush1.bf16.msra.mxu0 %v9047_v10  ;;  %6292 = vmatpush1.bf16.msra.mxu1 %v9050_v11  ;;  %v9138_v10 = vld [vmem:[%s12894_s2 + $0xec0] ss:$16 sps:$4 sm:$0xff]   ;;  %v9141_v11 = vld [vmem:[%s12894_s2 + $0xec8] ss:$16 sps:$4 sm:$0xff]  }
 0x1a0   :  { %5719 = vmatprep.subr.bf16.mxu0 %v9055_v12  ;;  %6293 = vmatprep.subr.bf16.mxu1 %v9058_v52  ;;  %v9146_v12 = vld [vmem:[%s12894_s2 + $0xee4] ss:$16 sps:$4 sm:$0xff]   ;;  %v9149_v52 = vld [vmem:[%s12894_s2 + $0xeec] ss:$16 sps:$4 sm:$0xff]  }
 0x1a3   :  { %5720 = vmatpush1.bf16.msra.mxu0 %v9053_v15  ;;  %6294 = vmatpush1.bf16.msra.mxu1 %v9056_v16  ;;  %v9144_v15 = vld [vmem:[%s12894_s2 + $0xee0] ss:$16 sps:$4 sm:$0xff]   ;;  %v9147_v16 = vld [vmem:[%s12894_s2 + $0xee8] ss:$16 sps:$4 sm:$0xff]  }
 0x1a4   :  { %5721 = vmatprep.subr.bf16.mxu0 %v9061_v17  ;;  %6295 = vmatprep.subr.bf16.mxu1 %v9064_v18  ;;  %v9152_v17 = vld [vmem:[%s12894_s2 + $0xf04] ss:$16 sps:$4 sm:$0xff]   ;;  %v9155_v18 = vld [vmem:[%s12894_s2 + $0xf0c] ss:$16 sps:$4 sm:$0xff]  }
 0x1a7   :  { %5722 = vmatpush1.bf16.msra.mxu0 %v9059_v19  ;;  %6296 = vmatpush1.bf16.msra.mxu1 %v9062_v20  ;;  %v9150_v19 = vld [vmem:[%s12894_s2 + $0xf00] ss:$16 sps:$4 sm:$0xff]   ;;  %v9153_v20 = vld [vmem:[%s12894_s2 + $0xf08] ss:$16 sps:$4 sm:$0xff]  }
 0x1a8   :  { %5723 = vmatprep.subr.bf16.mxu0 %v9067_v22  ;;  %6297 = vmatprep.subr.bf16.mxu1 %v9070_v23  ;;  %v9158_v22 = vld [vmem:[%s12894_s2 + $0xf24] ss:$16 sps:$4 sm:$0xff]   ;;  %v9161_v23 = vld [vmem:[%s12894_s2 + $0xf2c] ss:$16 sps:$4 sm:$0xff]  }
 0x1ab   :  { %5724 = vmatpush1.bf16.msra.mxu0 %v9065_v24  ;;  %6298 = vmatpush1.bf16.msra.mxu1 %v9068_v13  ;;  %v9156_v24 = vld [vmem:[%s12894_s2 + $0xf20] ss:$16 sps:$4 sm:$0xff]   ;;  %v9159_v13 = vld [vmem:[%s12894_s2 + $0xf28] ss:$16 sps:$4 sm:$0xff]  }
 0x1ac   :  { %5725 = vmatprep.subr.bf16.mxu0 %v9073_v27  ;;  %6299 = vmatprep.subr.bf16.mxu1 %v9076_v28  ;;  %v9164_v27 = vld [vmem:[%s12894_s2 + $0xf44] ss:$16 sps:$4 sm:$0xff]   ;;  %v9167_v28 = vld [vmem:[%s12894_s2 + $0xf4c] ss:$16 sps:$4 sm:$0xff]  }
 0x1af   :  { %5726 = vmatpush1.bf16.msra.mxu0 %v9071_v29  ;;  %6300 = vmatpush1.bf16.msra.mxu1 %v9074_v14  ;;  %v9162_v29 = vld [vmem:[%s12894_s2 + $0xf40] ss:$16 sps:$4 sm:$0xff]   ;;  %v9165_v14 = vld [vmem:[%s12894_s2 + $0xf48] ss:$16 sps:$4 sm:$0xff]  }
 0x1b0   :  { %5727 = vmatprep.subr.bf16.mxu0 %v9079_v30  ;;  %6301 = vmatprep.subr.bf16.mxu1 %v9082_v31  ;;  %v9170_v30 = vld [vmem:[%s12894_s2 + $0xf64] ss:$16 sps:$4 sm:$0xff]   ;;  %v9173_v31 = vld [vmem:[%s12894_s2 + $0xf6c] ss:$16 sps:$4 sm:$0xff]  }
 0x1b3   :  { %5728 = vmatpush1.bf16.msra.mxu0 %v9077_v25  ;;  %6302 = vmatpush1.bf16.msra.mxu1 %v9080_v32  ;;  %v9168_v25 = vld [vmem:[%s12894_s2 + $0xf60] ss:$16 sps:$4 sm:$0xff]   ;;  %v9171_v32 = vld [vmem:[%s12894_s2 + $0xf68] ss:$16 sps:$4 sm:$0xff]  }
 0x1b4   :  { %5729 = vmatprep.subr.bf16.mxu0 %v9085_v33  ;;  %6303 = vmatprep.subr.bf16.mxu1 %v9088_v26  ;;  %v9176_v33 = vld [vmem:[%s12894_s2 + $0xf84] ss:$16 sps:$4 sm:$0xff]   ;;  %v9179_v26 = vld [vmem:[%s12894_s2 + $0xf8c] ss:$16 sps:$4 sm:$0xff]  }
 0x1b7   :  { %5730 = vmatpush1.bf16.msra.mxu0 %v9083_v36  ;;  %6304 = vmatpush1.bf16.msra.mxu1 %v9086_v37  ;;  %v9174_v36 = vld [vmem:[%s12894_s2 + $0xf80] ss:$16 sps:$4 sm:$0xff]   ;;  %v9177_v37 = vld [vmem:[%s12894_s2 + $0xf88] ss:$16 sps:$4 sm:$0xff]  }
 0x1b8   :  { %5731 = vmatprep.subr.bf16.mxu0 %v9091_v21  ;;  %6305 = vmatprep.subr.bf16.mxu1 %v9094_v39  ;;  %v9182_v21 = vld [vmem:[%s12894_s2 + $0xfa4] ss:$16 sps:$4 sm:$0xff]   ;;  %v9185_v39 = vld [vmem:[%s12894_s2 + $0xfac] ss:$16 sps:$4 sm:$0xff]  }
 0x1bb   :  { %5732 = vmatpush1.bf16.msra.mxu0 %v9089_v40  ;;  %6306 = vmatpush1.bf16.msra.mxu1 %v9092_v41 }
 0x1bc   :  { %5733 = vmatprep.subr.bf16.mxu0 %v9097_v34  ;;  %6307 = vmatprep.subr.bf16.mxu1 %v9100_v43 }
 0x1bf   :  { %5734 = vmatpush1.bf16.msra.mxu0 %v9095_v44  ;;  %6308 = vmatpush1.bf16.msra.mxu1 %v9098_v45 }
 0x1c0   :  { %5744 = vmatprep.subr.bf16.mxu0 %v9104_v46  ;;  %6318 = vmatprep.subr.bf16.mxu1 %v9107_v35 }
 0x1c2   :  { %5736 = vmatmul.mubr.bf16.vlgmr.msra.gmra.mrb[0].mxu0 %v11267_v48  ;;  %6310 = vmatmul.mubr.bf16.vlgmr.msra.gmra.mrb[0].mxu1 %v11267_v48 }
 0x1c3   :  { %5745 = vmatpush1.bf16.msra.mxu0 %v9102_v50  ;;  %6319 = vmatpush1.bf16.msra.mxu1 %v9105_v51 }
 0x1c4   :  { %5746 = vmatprep.subr.bf16.mxu0 %v9110_v53  ;;  %6320 = vmatprep.subr.bf16.mxu1 %v9113_v38 }
 0x1c5   :  { %5776 = vmatprep.mubr.bf16.mxu0 %v1037_v54  ;;  %6350 = vmatprep.mubr.bf16.mxu1 %v1037_v54 }
 0x1c7   :  { %5747 = vmatpush1.bf16.msra.mxu0 %v9108_v55  ;;  %6321 = vmatpush1.bf16.msra.mxu1 %v9111_v56 }
 0x1c8   :  { %5748 = vmatprep.subr.bf16.mxu0 %v9116_v47  ;;  %6322 = vmatprep.subr.bf16.mxu1 %v9119_v57 }
 0x1cb   :  { %5749 = vmatpush1.bf16.msra.mxu0 %v9114_v58  ;;  %6323 = vmatpush1.bf16.msra.mxu1 %v9117_v59 }
 0x1cc   :  { %5750 = vmatprep.subr.bf16.mxu0 %v9122_v60  ;;  %6324 = vmatprep.subr.bf16.mxu1 %v9125_v61 }
 0x1cf   :  { %5751 = vmatpush1.bf16.msra.mxu0 %v9120_v62  ;;  %6325 = vmatpush1.bf16.msra.mxu1 %v9123_v63 }
 0x1d0   :  { %5752 = vmatprep.subr.bf16.mxu0 %v9128_v0  ;;  %6326 = vmatprep.subr.bf16.mxu1 %v9131_v1 }
 0x1d3   :  { %5753 = vmatpush1.bf16.msra.mxu0 %v9126_v2  ;;  %6327 = vmatpush1.bf16.msra.mxu1 %v9129_v3 }
 0x1d4   :  { %5754 = vmatprep.subr.bf16.mxu0 %v9134_v4  ;;  %6328 = vmatprep.subr.bf16.mxu1 %v9137_v5 }
 0x1d7   :  { %5755 = vmatpush1.bf16.msra.mxu0 %v9132_v6  ;;  %6329 = vmatpush1.bf16.msra.mxu1 %v9135_v7 }
 0x1d8   :  { %5756 = vmatprep.subr.bf16.mxu0 %v9140_v8  ;;  %6330 = vmatprep.subr.bf16.mxu1 %v9143_v9 }
 0x1db   :  { %5757 = vmatpush1.bf16.msra.mxu0 %v9138_v10  ;;  %6331 = vmatpush1.bf16.msra.mxu1 %v9141_v11 }
 0x1dc   :  { %5758 = vmatprep.subr.bf16.mxu0 %v9146_v12  ;;  %6332 = vmatprep.subr.bf16.mxu1 %v9149_v52 }
 0x1df   :  { %5759 = vmatpush1.bf16.msra.mxu0 %v9144_v15  ;;  %6333 = vmatpush1.bf16.msra.mxu1 %v9147_v16 }
 0x1e0   :  { %5760 = vmatprep.subr.bf16.mxu0 %v9152_v17  ;;  %6334 = vmatprep.subr.bf16.mxu1 %v9155_v18 }
 0x1e3   :  { %5761 = vmatpush1.bf16.msra.mxu0 %v9150_v19  ;;  %6335 = vmatpush1.bf16.msra.mxu1 %v9153_v20 }
 0x1e4   :  { %5762 = vmatprep.subr.bf16.mxu0 %v9158_v22  ;;  %6336 = vmatprep.subr.bf16.mxu1 %v9161_v23 }
 0x1e7   :  { %5763 = vmatpush1.bf16.msra.mxu0 %v9156_v24  ;;  %6337 = vmatpush1.bf16.msra.mxu1 %v9159_v13 }
 0x1e8   :  { %5764 = vmatprep.subr.bf16.mxu0 %v9164_v27  ;;  %6338 = vmatprep.subr.bf16.mxu1 %v9167_v28 }
 0x1eb   :  { %5765 = vmatpush1.bf16.msra.mxu0 %v9162_v29  ;;  %6339 = vmatpush1.bf16.msra.mxu1 %v9165_v14 }
 0x1ec   :  { %5766 = vmatprep.subr.bf16.mxu0 %v9170_v30  ;;  %6340 = vmatprep.subr.bf16.mxu1 %v9173_v31 }
 0x1ef   :  { %5767 = vmatpush1.bf16.msra.mxu0 %v9168_v25  ;;  %6341 = vmatpush1.bf16.msra.mxu1 %v9171_v32 }
 0x1f0   :  { %5768 = vmatprep.subr.bf16.mxu0 %v9176_v33  ;;  %6342 = vmatprep.subr.bf16.mxu1 %v9179_v26 }
 0x1f1   :  { %18 = vsyncpa [#allocation3], 0  ;;  %v9180_v40 = vld [vmem:[%s12894_s2 + $0xfa0] ss:$16 sps:$4 sm:$0xff]   ;;  %v9183_v41 = vld [vmem:[%s12894_s2 + $0xfa8] ss:$16 sps:$4 sm:$0xff]   ;;  %v1035_v47 = vcombine.high %v11267_v48, %v11267_v48 }
 0x1f2   :  { %v9188_v34 = vld [vmem:[%s12894_s2 + $0xfc4] ss:$16 sps:$4 sm:$0xff]   ;;  %v9191_v43 = vld [vmem:[%s12894_s2 + $0xfcc] ss:$16 sps:$4 sm:$0xff]   ;;  %v9186_v45 = vld [vmem:[%s12894_s2 + $0xfc0] ss:$16 sps:$4 sm:$0xff]  }
 0x1f3   :  { %5769 = vmatpush1.bf16.msra.mxu0 %v9174_v36  ;;  %6343 = vmatpush1.bf16.msra.mxu1 %v9177_v37  ;;  %v11444_v44 = vld [vmem:[%s12892_s0 + $0x10] sm:$0xff]  ;;  %v9189_v46 = vld [vmem:[%s12894_s2 + $0xfc8] ss:$16 sps:$4 sm:$0xff]   ;;  %v9197_v50 = vld [vmem:[%s12894_s2 + $0xfec] ss:$16 sps:$4 sm:$0xff]   ;;  %vm6667_vm0 = vcmask 195584  }
 0x1f4   :  { %5770 = vmatprep.subr.bf16.mxu0 %v9182_v21  ;;  %6344 = vmatprep.subr.bf16.mxu1 %v9185_v39  ;;  %v9194_v35 = vld [vmem:[%s12894_s2 + $0xfe4] ss:$16 sps:$4 sm:$0xff]   ;;  %v11460_v51 = vrot.slane %v11444_v44, %v9973_v49  ;;  %v9192_v53 = vld [vmem:[%s12894_s2 + $0xfe0] ss:$16 sps:$4 sm:$0xff]   ;;  %v9195_v38 = vld [vmem:[%s12894_s2 + $0xfe8] ss:$16 sps:$4 sm:$0xff]  }
 0x1f5   :  { %v9200_v54 = vld [vmem:[%s12894_s2 + $0x1004] ss:$16 sps:$4 sm:$0xff]   ;;  %v9203_v55 = vld [vmem:[%s12894_s2 + $0x100c] ss:$16 sps:$4 sm:$0xff]   ;;  %v9198_v57 = vld [vmem:[%s12894_s2 + $0x1000] ss:$16 sps:$4 sm:$0xff]  }
 0x1f6   :  { %v1053_v56 = vcombine.high %v11460_v51, %v11460_v51  ;;  %v9201_v58 = vld [vmem:[%s12894_s2 + $0x1008] ss:$16 sps:$4 sm:$0xff]   ;;  %v9206_v59 = vld [vmem:[%s12894_s2 + $0x1024] ss:$16 sps:$4 sm:$0xff]   ;;  %v9209_v48 = vld [vmem:[%s12894_s2 + $0x102c] ss:$16 sps:$4 sm:$0xff]  }
 0x1f7   :  { %5771 = vmatpush1.bf16.msra.mxu0 %v9180_v40  ;;  %6345 = vmatpush1.bf16.msra.mxu1 %v9183_v41  ;;  %v9204_v61 = vld [vmem:[%s12894_s2 + $0x1020] ss:$16 sps:$4 sm:$0xff]   ;;  %v9207_v62 = vld [vmem:[%s12894_s2 + $0x1028] ss:$16 sps:$4 sm:$0xff]   ;;  %v9212_v63 = vld [vmem:[%s12894_s2 + $0x1044] ss:$16 sps:$4 sm:$0xff]  }
 0x1f8   :  { %5772 = vmatprep.subr.bf16.mxu0 %v9188_v34  ;;  %6346 = vmatprep.subr.bf16.mxu1 %v9191_v43  ;;  %v11491_v60 = vrot.slane %v1053_v56, %v9973_v49  ;;  %v9215_v0 = vld [vmem:[%s12894_s2 + $0x104c] ss:$16 sps:$4 sm:$0xff]   ;;  %v9210_v1 = vld [vmem:[%s12894_s2 + $0x1040] ss:$16 sps:$4 sm:$0xff]   ;;  %v9213_v2 = vld [vmem:[%s12894_s2 + $0x1048] ss:$16 sps:$4 sm:$0xff]  }
 0x1f9   :  { %v9218_v3 = vld [vmem:[%s12894_s2 + $0x1064] ss:$16 sps:$4 sm:$0xff]   ;;  %v9221_v4 = vld [vmem:[%s12894_s2 + $0x106c] ss:$16 sps:$4 sm:$0xff]   ;;  %v9216_v5 = vld [vmem:[%s12894_s2 + $0x1060] ss:$16 sps:$4 sm:$0xff]  }
 0x1fa   :  { %v9219_v6 = vld [vmem:[%s12894_s2 + $0x1068] ss:$16 sps:$4 sm:$0xff]   ;;  %v9224_v7 = vld [vmem:[%s12894_s2 + $0x1084] ss:$16 sps:$4 sm:$0xff]   ;;  %v9227_v8 = vld [vmem:[%s12894_s2 + $0x108c] ss:$16 sps:$4 sm:$0xff]  }
 0x1fb   :  { %5773 = vmatpush1.bf16.msra.mxu0 %v9186_v45  ;;  %6347 = vmatpush1.bf16.msra.mxu1 %v9189_v46  ;;  %v9222_v9 = vld [vmem:[%s12894_s2 + $0x1080] ss:$16 sps:$4 sm:$0xff]   ;;  %v9225_v10 = vld [vmem:[%s12894_s2 + $0x1088] ss:$16 sps:$4 sm:$0xff]   ;;  %v9230_v11 = vld [vmem:[%s12894_s2 + $0x10a4] ss:$16 sps:$4 sm:$0xff]  }
 0x1fc   :  { %5774 = vmatprep.subr.bf16.mxu0 %v9194_v35  ;;  %6348 = vmatprep.subr.bf16.mxu1 %v9197_v50  ;;  %v9233_v12 = vld [vmem:[%s12894_s2 + $0x10ac] ss:$16 sps:$4 sm:$0xff]   ;;  %v9228_v52 = vld [vmem:[%s12894_s2 + $0x10a0] ss:$16 sps:$4 sm:$0xff]   ;;  %v9231_v15 = vld [vmem:[%s12894_s2 + $0x10a8] ss:$16 sps:$4 sm:$0xff]  }
 0x1fd   :  { %v9236_v16 = vld [vmem:[%s12894_s2 + $0x10c4] ss:$16 sps:$4 sm:$0xff]   ;;  %v9239_v17 = vld [vmem:[%s12894_s2 + $0x10cc] ss:$16 sps:$4 sm:$0xff]   ;;  %v9234_v18 = vld [vmem:[%s12894_s2 + $0x10c0] ss:$16 sps:$4 sm:$0xff]  }
 0x1fe   :  { %v9237_v19 = vld [vmem:[%s12894_s2 + $0x10c8] ss:$16 sps:$4 sm:$0xff]   ;;  %v9242_v20 = vld [vmem:[%s12894_s2 + $0x10e4] ss:$16 sps:$4 sm:$0xff]   ;;  %v9245_v22 = vld [vmem:[%s12894_s2 + $0x10ec] ss:$16 sps:$4 sm:$0xff]  }
 0x1ff   :  { %5775 = vmatpush1.bf16.msra.mxu0 %v9192_v53  ;;  %6349 = vmatpush1.bf16.msra.mxu1 %v9195_v38  ;;  %v9240_v23 = vld [vmem:[%s12894_s2 + $0x10e0] ss:$16 sps:$4 sm:$0xff]   ;;  %v9243_v24 = vld [vmem:[%s12894_s2 + $0x10e8] ss:$16 sps:$4 sm:$0xff]   ;;  %v9248_v13 = vld [vmem:[%s12894_s2 + $0x1104] ss:$16 sps:$4 sm:$0xff]  }
 0x200   :  { %5785 = vmatprep.subr.bf16.mxu0 %v9200_v54  ;;  %6359 = vmatprep.subr.bf16.mxu1 %v9203_v55  ;;  %v9251_v27 = vld [vmem:[%s12894_s2 + $0x110c] ss:$16 sps:$4 sm:$0xff]   ;;  %v9246_v28 = vld [vmem:[%s12894_s2 + $0x1100] ss:$16 sps:$4 sm:$0xff]   ;;  %v9249_v29 = vld [vmem:[%s12894_s2 + $0x1108] ss:$16 sps:$4 sm:$0xff]  }
 0x201   :  { %v9254_v14 = vld [vmem:[%s12894_s2 + $0x1124] ss:$16 sps:$4 sm:$0xff]   ;;  %v9257_v30 = vld [vmem:[%s12894_s2 + $0x112c] ss:$16 sps:$4 sm:$0xff]   ;;  %v9252_v31 = vld [vmem:[%s12894_s2 + $0x1120] ss:$16 sps:$4 sm:$0xff]  }
 0x202   :  { %5777 = vmatmul.mubr.bf16.vlgmr.msra.gmra.mrb[0].mxu0 %v1035_v47  ;;  %6351 = vmatmul.mubr.bf16.vlgmr.msra.gmra.mrb[0].mxu1 %v1035_v47  ;;  %v9255_v25 = vld [vmem:[%s12894_s2 + $0x1128] ss:$16 sps:$4 sm:$0xff]   ;;  %v9260_v32 = vld [vmem:[%s12894_s2 + $0x1144] ss:$16 sps:$4 sm:$0xff]   ;;  %v9263_v33 = vld [vmem:[%s12894_s2 + $0x114c] ss:$16 sps:$4 sm:$0xff]  }
 0x203   :  { %5786 = vmatpush1.bf16.msra.mxu0 %v9198_v57  ;;  %6360 = vmatpush1.bf16.msra.mxu1 %v9201_v58  ;;  %v9258_v26 = vld [vmem:[%s12894_s2 + $0x1140] ss:$16 sps:$4 sm:$0xff]   ;;  %v9261_v36 = vld [vmem:[%s12894_s2 + $0x1148] ss:$16 sps:$4 sm:$0xff]   ;;  %v9266_v37 = vld [vmem:[%s12894_s2 + $0x1164] ss:$16 sps:$4 sm:$0xff]  }
 0x204   :  { %5787 = vmatprep.subr.bf16.mxu0 %v9206_v59  ;;  %6361 = vmatprep.subr.bf16.mxu1 %v9209_v48  ;;  %v9269_v21 = vld [vmem:[%s12894_s2 + $0x116c] ss:$16 sps:$4 sm:$0xff]   ;;  %v9264_v39 = vld [vmem:[%s12894_s2 + $0x1160] ss:$16 sps:$4 sm:$0xff]   ;;  %v9267_v40 = vld [vmem:[%s12894_s2 + $0x1168] ss:$16 sps:$4 sm:$0xff]  }
 0x205   :  { %5817 = vmatprep.mubr.bf16.mxu0 %v11491_v60  ;;  %6391 = vmatprep.mubr.bf16.mxu1 %v11491_v60  ;;  %v9272_v41 = vld [vmem:[%s12894_s2 + $0x1184] ss:$16 sps:$4 sm:$0xff]   ;;  %v9275_v34 = vld [vmem:[%s12894_s2 + $0x118c] ss:$16 sps:$4 sm:$0xff]   ;;  %v9270_v43 = vld [vmem:[%s12894_s2 + $0x1180] ss:$16 sps:$4 sm:$0xff]  }
 0x206   :  { %v9273_v45 = vld [vmem:[%s12894_s2 + $0x1188] ss:$16 sps:$4 sm:$0xff]   ;;  %v9278_v46 = vld [vmem:[%s12894_s2 + $0x11a4] ss:$16 sps:$4 sm:$0xff]   ;;  %v9281_v35 = vld [vmem:[%s12894_s2 + $0x11ac] ss:$16 sps:$4 sm:$0xff]  }
 0x207   :  { %5788 = vmatpush1.bf16.msra.mxu0 %v9204_v61  ;;  %6362 = vmatpush1.bf16.msra.mxu1 %v9207_v62  ;;  %v9276_v50 = vld [vmem:[%s12894_s2 + $0x11a0] ss:$16 sps:$4 sm:$0xff]   ;;  %v9279_v53 = vld [vmem:[%s12894_s2 + $0x11a8] ss:$16 sps:$4 sm:$0xff]   ;;  %v9284_v38 = vld [vmem:[%s12894_s2 + $0x11c4] ss:$16 sps:$4 sm:$0xff]   ;;  %v11677_v62 = vrot.slane %v11460_v51, %v9973_v49 }
 0x208   :  { %5789 = vmatprep.subr.bf16.mxu0 %v9212_v63  ;;  %6363 = vmatprep.subr.bf16.mxu1 %v9215_v0  ;;  %v9287_v54 = vld [vmem:[%s12894_s2 + $0x11cc] ss:$16 sps:$4 sm:$0xff]   ;;  %v9282_v55 = vld [vmem:[%s12894_s2 + $0x11c0] ss:$16 sps:$4 sm:$0xff]   ;;  %v9285_v56 = vld [vmem:[%s12894_s2 + $0x11c8] ss:$16 sps:$4 sm:$0xff]  }
 0x209   :  { %v9290_v47 = vld [vmem:[%s12894_s2 + $0x11e4] ss:$16 sps:$4 sm:$0xff]   ;;  %v9293_v57 = vld [vmem:[%s12894_s2 + $0x11ec] ss:$16 sps:$4 sm:$0xff]   ;;  %v9288_v58 = vld [vmem:[%s12894_s2 + $0x11e0] ss:$16 sps:$4 sm:$0xff]  }
 0x20a   :  { %v9291_v59 = vld [vmem:[%s12894_s2 + $0x11e8] ss:$16 sps:$4 sm:$0xff]   ;;  %v9296_v48 = vld [vmem:[%s12894_s2 + $0x1204] ss:$16 sps:$4 sm:$0xff]   ;;  %v9299_v61 = vld [vmem:[%s12894_s2 + $0x120c] ss:$16 sps:$4 sm:$0xff]  }
 0x20b   :  { %5790 = vmatpush1.bf16.msra.mxu0 %v9210_v1  ;;  %6364 = vmatpush1.bf16.msra.mxu1 %v9213_v2  ;;  %v9294_v63 = vld [vmem:[%s12894_s2 + $0x1200] ss:$16 sps:$4 sm:$0xff]   ;;  %v9297_v0 = vld [vmem:[%s12894_s2 + $0x1208] ss:$16 sps:$4 sm:$0xff]   ;;  %v9302_v1 = vld [vmem:[%s12894_s2 + $0x1224] ss:$16 sps:$4 sm:$0xff]   ;;  %v1085_v2 = vcombine.high %v11491_v60, %v11491_v60 }
 0x20c   :  { %5791 = vmatprep.subr.bf16.mxu0 %v9218_v3  ;;  %6365 = vmatprep.subr.bf16.mxu1 %v9221_v4  ;;  %v9305_v51 = vld [vmem:[%s12894_s2 + $0x122c] ss:$16 sps:$4 sm:$0xff]   ;;  %v9300_v3 = vld [vmem:[%s12894_s2 + $0x1220] ss:$16 sps:$4 sm:$0xff]   ;;  %v9303_v4 = vld [vmem:[%s12894_s2 + $0x1228] ss:$16 sps:$4 sm:$0xff]  }
 0x20d   :  { %v9308_v60 = vld [vmem:[%s12894_s2 + $0x1244] ss:$16 sps:$4 sm:$0xff]   ;;  %vm9765_vm1 = vmmov 0   ;;  %vm6811_vm2 = vcmask 197632   ;;  %vm6930_vm3 = vcmask 1040384   ;;  %vm9766_vm4 = vmmov 1  }
 0x20e   :  { %vm12831_vm5 = vmpackc.low %vm6930_vm3, %vm9766_vm4  ;;  %vm6926_vm6 = vcmask 203776   ;;  %vm7103_vm7 = vcmask 1043456   ;;  %vm7099_vm8 = vcmask 162816   ;;  %vm7177_vm9 = vcmask 74752  }
 0x20f   :  { %5792 = vmatpush1.bf16.msra.mxu0 %v9216_v5  ;;  %6366 = vmatpush1.bf16.msra.mxu1 %v9219_v6  ;;  %v9311_v5 = vld [vmem:[%s12894_s2 + $0x124c] ss:$16 sps:$4 sm:$0xff]   ;;  %v9306_v6 = vld [vmem:[%s12894_s2 + $0x1240] ss:$16 sps:$4 sm:$0xff]  }
 0x210   :  { %5793 = vmatprep.subr.bf16.mxu0 %v9224_v7  ;;  %6367 = vmatprep.subr.bf16.mxu1 %v9227_v8  ;;  %v9309_v7 = vld [vmem:[%s12894_s2 + $0x1248] ss:$16 sps:$4 sm:$0xff]   ;;  %v9314_v8 = vld [vmem:[%s12894_s2 + $0x1264] ss:$16 sps:$4 sm:$0xff]  }
 0x213   :  { %5794 = vmatpush1.bf16.msra.mxu0 %v9222_v9  ;;  %6368 = vmatpush1.bf16.msra.mxu1 %v9225_v10  ;;  %v9317_v9 = vld [vmem:[%s12894_s2 + $0x126c] ss:$16 sps:$4 sm:$0xff]   ;;  %v9312_v10 = vld [vmem:[%s12894_s2 + $0x1260] ss:$16 sps:$4 sm:$0xff]  }
 0x214   :  { %5795 = vmatprep.subr.bf16.mxu0 %v9230_v11  ;;  %6369 = vmatprep.subr.bf16.mxu1 %v9233_v12  ;;  %v9315_v11 = vld [vmem:[%s12894_s2 + $0x1268] ss:$16 sps:$4 sm:$0xff]   ;;  %v9320_v12 = vld [vmem:[%s12894_s2 + $0x1284] ss:$16 sps:$4 sm:$0xff]  }
 0x217   :  { %5796 = vmatpush1.bf16.msra.mxu0 %v9228_v52  ;;  %6370 = vmatpush1.bf16.msra.mxu1 %v9231_v15  ;;  %v9323_v52 = vld [vmem:[%s12894_s2 + $0x128c] ss:$16 sps:$4 sm:$0xff]   ;;  %v9318_v15 = vld [vmem:[%s12894_s2 + $0x1280] ss:$16 sps:$4 sm:$0xff]  }
 0x218   :  { %5797 = vmatprep.subr.bf16.mxu0 %v9236_v16  ;;  %6371 = vmatprep.subr.bf16.mxu1 %v9239_v17  ;;  %v9321_v16 = vld [vmem:[%s12894_s2 + $0x1288] ss:$16 sps:$4 sm:$0xff]   ;;  %v9326_v17 = vld [vmem:[%s12894_s2 + $0x12a4] ss:$16 sps:$4 sm:$0xff]  }
 0x21b   :  { %5798 = vmatpush1.bf16.msra.mxu0 %v9234_v18  ;;  %6372 = vmatpush1.bf16.msra.mxu1 %v9237_v19  ;;  %v9329_v18 = vld [vmem:[%s12894_s2 + $0x12ac] ss:$16 sps:$4 sm:$0xff]   ;;  %v9324_v19 = vld [vmem:[%s12894_s2 + $0x12a0] ss:$16 sps:$4 sm:$0xff]  }
 0x21c   :  { %5799 = vmatprep.subr.bf16.mxu0 %v9242_v20  ;;  %6373 = vmatprep.subr.bf16.mxu1 %v9245_v22  ;;  %v9327_v20 = vld [vmem:[%s12894_s2 + $0x12a8] ss:$16 sps:$4 sm:$0xff]   ;;  %v9332_v22 = vld [vmem:[%s12894_s2 + $0x12c4] ss:$16 sps:$4 sm:$0xff]  }
 0x21f   :  { %5800 = vmatpush1.bf16.msra.mxu0 %v9240_v23  ;;  %6374 = vmatpush1.bf16.msra.mxu1 %v9243_v24  ;;  %v9335_v23 = vld [vmem:[%s12894_s2 + $0x12cc] ss:$16 sps:$4 sm:$0xff]   ;;  %v9330_v24 = vld [vmem:[%s12894_s2 + $0x12c0] ss:$16 sps:$4 sm:$0xff]  }
 0x220   :  { %5801 = vmatprep.subr.bf16.mxu0 %v9248_v13  ;;  %6375 = vmatprep.subr.bf16.mxu1 %v9251_v27  ;;  %v9333_v13 = vld [vmem:[%s12894_s2 + $0x12c8] ss:$16 sps:$4 sm:$0xff]   ;;  %v9338_v27 = vld [vmem:[%s12894_s2 + $0x12e4] ss:$16 sps:$4 sm:$0xff]  }
 0x223   :  { %5802 = vmatpush1.bf16.msra.mxu0 %v9246_v28  ;;  %6376 = vmatpush1.bf16.msra.mxu1 %v9249_v29  ;;  %v9341_v28 = vld [vmem:[%s12894_s2 + $0x12ec] ss:$16 sps:$4 sm:$0xff]   ;;  %v9336_v29 = vld [vmem:[%s12894_s2 + $0x12e0] ss:$16 sps:$4 sm:$0xff]  }
 0x224   :  { %5803 = vmatprep.subr.bf16.mxu0 %v9254_v14  ;;  %6377 = vmatprep.subr.bf16.mxu1 %v9257_v30  ;;  %v9339_v14 = vld [vmem:[%s12894_s2 + $0x12e8] ss:$16 sps:$4 sm:$0xff]   ;;  %v9344_v30 = vld [vmem:[%s12894_s2 + $0x1304] ss:$16 sps:$4 sm:$0xff]  }
 0x227   :  { %5804 = vmatpush1.bf16.msra.mxu0 %v9252_v31  ;;  %6378 = vmatpush1.bf16.msra.mxu1 %v9255_v25  ;;  %v9347_v31 = vld [vmem:[%s12894_s2 + $0x130c] ss:$16 sps:$4 sm:$0xff]   ;;  %v9342_v25 = vld [vmem:[%s12894_s2 + $0x1300] ss:$16 sps:$4 sm:$0xff]  }
 0x228   :  { %5805 = vmatprep.subr.bf16.mxu0 %v9260_v32  ;;  %6379 = vmatprep.subr.bf16.mxu1 %v9263_v33  ;;  %v9345_v32 = vld [vmem:[%s12894_s2 + $0x1308] ss:$16 sps:$4 sm:$0xff]   ;;  %v9350_v33 = vld [vmem:[%s12894_s2 + $0x1324] ss:$16 sps:$4 sm:$0xff]  }
 0x22b   :  { %5806 = vmatpush1.bf16.msra.mxu0 %v9258_v26  ;;  %6380 = vmatpush1.bf16.msra.mxu1 %v9261_v36  ;;  %v9353_v26 = vld [vmem:[%s12894_s2 + $0x132c] ss:$16 sps:$4 sm:$0xff]   ;;  %v9348_v36 = vld [vmem:[%s12894_s2 + $0x1320] ss:$16 sps:$4 sm:$0xff]  }
 0x22c   :  { %5807 = vmatprep.subr.bf16.mxu0 %v9266_v37  ;;  %6381 = vmatprep.subr.bf16.mxu1 %v9269_v21  ;;  %v9351_v37 = vld [vmem:[%s12894_s2 + $0x1328] ss:$16 sps:$4 sm:$0xff]   ;;  %v9356_v21 = vld [vmem:[%s12894_s2 + $0x1344] ss:$16 sps:$4 sm:$0xff]  }
 0x22f   :  { %5808 = vmatpush1.bf16.msra.mxu0 %v9264_v39  ;;  %6382 = vmatpush1.bf16.msra.mxu1 %v9267_v40  ;;  %v9359_v39 = vld [vmem:[%s12894_s2 + $0x134c] ss:$16 sps:$4 sm:$0xff]   ;;  %v9354_v40 = vld [vmem:[%s12894_s2 + $0x1340] ss:$16 sps:$4 sm:$0xff]  }
 0x230   :  { %5809 = vmatprep.subr.bf16.mxu0 %v9272_v41  ;;  %6383 = vmatprep.subr.bf16.mxu1 %v9275_v34  ;;  %v9357_v41 = vld [vmem:[%s12894_s2 + $0x1348] ss:$16 sps:$4 sm:$0xff]   ;;  %v9362_v34 = vld [vmem:[%s12894_s2 + $0x1364] ss:$16 sps:$4 sm:$0xff]  }
 0x233   :  { %5810 = vmatpush1.bf16.msra.mxu0 %v9270_v43  ;;  %6384 = vmatpush1.bf16.msra.mxu1 %v9273_v45  ;;  %v9365_v43 = vld [vmem:[%s12894_s2 + $0x136c] ss:$16 sps:$4 sm:$0xff]   ;;  %v9360_v45 = vld [vmem:[%s12894_s2 + $0x1360] ss:$16 sps:$4 sm:$0xff]  }
 0x234   :  { %5811 = vmatprep.subr.bf16.mxu0 %v9278_v46  ;;  %6385 = vmatprep.subr.bf16.mxu1 %v9281_v35  ;;  %v9363_v46 = vld [vmem:[%s12894_s2 + $0x1368] ss:$16 sps:$4 sm:$0xff]   ;;  %v9368_v35 = vld [vmem:[%s12894_s2 + $0x1384] ss:$16 sps:$4 sm:$0xff]  }
 0x237   :  { %5812 = vmatpush1.bf16.msra.mxu0 %v9276_v50  ;;  %6386 = vmatpush1.bf16.msra.mxu1 %v9279_v53  ;;  %v9371_v50 = vld [vmem:[%s12894_s2 + $0x138c] ss:$16 sps:$4 sm:$0xff]   ;;  %v9366_v53 = vld [vmem:[%s12894_s2 + $0x1380] ss:$16 sps:$4 sm:$0xff]  }
 0x238   :  { %5813 = vmatprep.subr.bf16.mxu0 %v9284_v38  ;;  %6387 = vmatprep.subr.bf16.mxu1 %v9287_v54  ;;  %v9369_v38 = vld [vmem:[%s12894_s2 + $0x1388] ss:$16 sps:$4 sm:$0xff]   ;;  %v9374_v54 = vld [vmem:[%s12894_s2 + $0x13a4] ss:$16 sps:$4 sm:$0xff]  }
 0x23b   :  { %5814 = vmatpush1.bf16.msra.mxu0 %v9282_v55  ;;  %6388 = vmatpush1.bf16.msra.mxu1 %v9285_v56  ;;  %v9377_v55 = vld [vmem:[%s12894_s2 + $0x13ac] ss:$16 sps:$4 sm:$0xff]   ;;  %v9372_v56 = vld [vmem:[%s12894_s2 + $0x13a0] ss:$16 sps:$4 sm:$0xff]  }
 0x23c   :  { %5815 = vmatprep.subr.bf16.mxu0 %v9290_v47  ;;  %6389 = vmatprep.subr.bf16.mxu1 %v9293_v57  ;;  %v9375_v47 = vld [vmem:[%s12894_s2 + $0x13a8] ss:$16 sps:$4 sm:$0xff]   ;;  %v9380_v57 = vld [vmem:[%s12894_s2 + $0x13c4] ss:$16 sps:$4 sm:$0xff]  }
 0x23f   :  { %5816 = vmatpush1.bf16.msra.mxu0 %v9288_v58  ;;  %6390 = vmatpush1.bf16.msra.mxu1 %v9291_v59  ;;  %v9383_v58 = vld [vmem:[%s12894_s2 + $0x13cc] ss:$16 sps:$4 sm:$0xff]   ;;  %v1038_v59 = vcombine.high %v11444_v44, %v11444_v44 }
 0x240   :  { %5826 = vmatprep.subr.bf16.mxu0 %v9296_v48  ;;  %6400 = vmatprep.subr.bf16.mxu1 %v9299_v61  ;;  %v9378_v48 = vld [vmem:[%s12894_s2 + $0x13c0] ss:$16 sps:$4 sm:$0xff]   ;;  %v9381_v61 = vld [vmem:[%s12894_s2 + $0x13c8] ss:$16 sps:$4 sm:$0xff]   ;;  %v9389_v44 = vld [vmem:[%s12894_s2 + $0x13ec] ss:$16 sps:$4 sm:$0xff]  }
 0x242   :  { %5818 = vmatmul.mubr.bf16.vlgmr.msra.gmra.mrb[0].mxu0 %v11677_v62  ;;  %6392 = vmatmul.mubr.bf16.vlgmr.msra.gmra.mrb[0].mxu1 %v11677_v62 }
 0x243   :  { %5827 = vmatpush1.bf16.msra.mxu0 %v9294_v63  ;;  %6401 = vmatpush1.bf16.msra.mxu1 %v9297_v0  ;;  %v9386_v63 = vld [vmem:[%s12894_s2 + $0x13e4] ss:$16 sps:$4 sm:$0xff]   ;;  %v11866_v0 = vrot.slane %v1038_v59, %v9973_v49  ;;  %v9465_v59 = vld [vmem:[%s12894_s2 + $0x1588] ss:$16 sps:$4 sm:$0xff]  }
 0x244   :  { %5828 = vmatprep.subr.bf16.mxu0 %v9302_v1  ;;  %6402 = vmatprep.subr.bf16.mxu1 %v9305_v51  ;;  %v9384_v1 = vld [vmem:[%s12894_s2 + $0x13e0] ss:$16 sps:$4 sm:$0xff]   ;;  %v9387_v51 = vld [vmem:[%s12894_s2 + $0x13e8] ss:$16 sps:$4 sm:$0xff]  }
 0x245   :  { %5858 = vmatprep.mubr.bf16.mxu0 %v1085_v2  ;;  %6432 = vmatprep.mubr.bf16.mxu1 %v1085_v2  ;;  %v9392_v2 = vld [vmem:[%s12894_s2 + $0x1404] ss:$16 sps:$4 sm:$0xff]  }
 0x247   :  { %5829 = vmatpush1.bf16.msra.mxu0 %v9300_v3  ;;  %6403 = vmatpush1.bf16.msra.mxu1 %v9303_v4  ;;  %v9395_v3 = vld [vmem:[%s12894_s2 + $0x140c] ss:$16 sps:$4 sm:$0xff]   ;;  %v1054_v4 = vcombine.high %v11866_v0, %v11866_v0 }
 0x248   :  { %5830 = vmatprep.subr.bf16.mxu0 %v9308_v60  ;;  %6404 = vmatprep.subr.bf16.mxu1 %v9311_v5  ;;  %v1083_v60 = vcombine.high %v11677_v62, %v11677_v62  ;;  %v9390_v5 = vld [vmem:[%s12894_s2 + $0x1400] ss:$16 sps:$4 sm:$0xff]   ;;  %v9401_v62 = vld [vmem:[%s12894_s2 + $0x142c] ss:$16 sps:$4 sm:$0xff]  }
 0x24b   :  { %5831 = vmatpush1.bf16.msra.mxu0 %v9306_v6  ;;  %6405 = vmatpush1.bf16.msra.mxu1 %v9309_v7  ;;  %v9393_v6 = vld [vmem:[%s12894_s2 + $0x1408] ss:$16 sps:$4 sm:$0xff]   ;;  %v9398_v7 = vld [vmem:[%s12894_s2 + $0x1424] ss:$16 sps:$4 sm:$0xff]  }
 0x24c   :  { %5832 = vmatprep.subr.bf16.mxu0 %v9314_v8  ;;  %6406 = vmatprep.subr.bf16.mxu1 %v9317_v9  ;;  %v11897_v8 = vrot.slane %v1054_v4, %v9973_v49  ;;  %v9396_v9 = vld [vmem:[%s12894_s2 + $0x1420] ss:$16 sps:$4 sm:$0xff]   ;;  %v9482_v4 = vld [vmem:[%s12894_s2 + $0x15e4] ss:$16 sps:$4 sm:$0xff]  }
 0x24f   :  { %5833 = vmatpush1.bf16.msra.mxu0 %v9312_v10  ;;  %6407 = vmatpush1.bf16.msra.mxu1 %v9315_v11  ;;  %v9399_v10 = vld [vmem:[%s12894_s2 + $0x1428] ss:$16 sps:$4 sm:$0xff]   ;;  %v9404_v11 = vld [vmem:[%s12894_s2 + $0x1444] ss:$16 sps:$4 sm:$0xff]  }
 0x250   :  { %5834 = vmatprep.subr.bf16.mxu0 %v9320_v12  ;;  %6408 = vmatprep.subr.bf16.mxu1 %v9323_v52  ;;  %v9407_v12 = vld [vmem:[%s12894_s2 + $0x144c] ss:$16 sps:$4 sm:$0xff]   ;;  %v9402_v52 = vld [vmem:[%s12894_s2 + $0x1440] ss:$16 sps:$4 sm:$0xff]  }
 0x253   :  { %5835 = vmatpush1.bf16.msra.mxu0 %v9318_v15  ;;  %6409 = vmatpush1.bf16.msra.mxu1 %v9321_v16  ;;  %v9405_v15 = vld [vmem:[%s12894_s2 + $0x1448] ss:$16 sps:$4 sm:$0xff]   ;;  %v9410_v16 = vld [vmem:[%s12894_s2 + $0x1464] ss:$16 sps:$4 sm:$0xff]  }
 0x254   :  { %5836 = vmatprep.subr.bf16.mxu0 %v9326_v17  ;;  %6410 = vmatprep.subr.bf16.mxu1 %v9329_v18  ;;  %v9413_v17 = vld [vmem:[%s12894_s2 + $0x146c] ss:$16 sps:$4 sm:$0xff]   ;;  %v9408_v18 = vld [vmem:[%s12894_s2 + $0x1460] ss:$16 sps:$4 sm:$0xff]  }
 0x257   :  { %5837 = vmatpush1.bf16.msra.mxu0 %v9324_v19  ;;  %6411 = vmatpush1.bf16.msra.mxu1 %v9327_v20  ;;  %v9411_v19 = vld [vmem:[%s12894_s2 + $0x1468] ss:$16 sps:$4 sm:$0xff]   ;;  %v9416_v20 = vld [vmem:[%s12894_s2 + $0x1484] ss:$16 sps:$4 sm:$0xff]  }
 0x258   :  { %5838 = vmatprep.subr.bf16.mxu0 %v9332_v22  ;;  %6412 = vmatprep.subr.bf16.mxu1 %v9335_v23  ;;  %v9419_v22 = vld [vmem:[%s12894_s2 + $0x148c] ss:$16 sps:$4 sm:$0xff]   ;;  %v9414_v23 = vld [vmem:[%s12894_s2 + $0x1480] ss:$16 sps:$4 sm:$0xff]  }
 0x25b   :  { %5839 = vmatpush1.bf16.msra.mxu0 %v9330_v24  ;;  %6413 = vmatpush1.bf16.msra.mxu1 %v9333_v13  ;;  %v9417_v24 = vld [vmem:[%s12894_s2 + $0x1488] ss:$16 sps:$4 sm:$0xff]   ;;  %v9422_v13 = vld [vmem:[%s12894_s2 + $0x14a4] ss:$16 sps:$4 sm:$0xff]  }
 0x25c   :  { %5840 = vmatprep.subr.bf16.mxu0 %v9338_v27  ;;  %6414 = vmatprep.subr.bf16.mxu1 %v9341_v28  ;;  %v9425_v27 = vld [vmem:[%s12894_s2 + $0x14ac] ss:$16 sps:$4 sm:$0xff]   ;;  %v9420_v28 = vld [vmem:[%s12894_s2 + $0x14a0] ss:$16 sps:$4 sm:$0xff]  }
 0x25f   :  { %5841 = vmatpush1.bf16.msra.mxu0 %v9336_v29  ;;  %6415 = vmatpush1.bf16.msra.mxu1 %v9339_v14  ;;  %v9423_v29 = vld [vmem:[%s12894_s2 + $0x14a8] ss:$16 sps:$4 sm:$0xff]   ;;  %v9428_v14 = vld [vmem:[%s12894_s2 + $0x14c4] ss:$16 sps:$4 sm:$0xff]  }
 0x260   :  { %5842 = vmatprep.subr.bf16.mxu0 %v9344_v30  ;;  %6416 = vmatprep.subr.bf16.mxu1 %v9347_v31  ;;  %v9431_v30 = vld [vmem:[%s12894_s2 + $0x14cc] ss:$16 sps:$4 sm:$0xff]   ;;  %v9426_v31 = vld [vmem:[%s12894_s2 + $0x14c0] ss:$16 sps:$4 sm:$0xff]  }
 0x263   :  { %5843 = vmatpush1.bf16.msra.mxu0 %v9342_v25  ;;  %6417 = vmatpush1.bf16.msra.mxu1 %v9345_v32  ;;  %v9429_v25 = vld [vmem:[%s12894_s2 + $0x14c8] ss:$16 sps:$4 sm:$0xff]   ;;  %v9434_v32 = vld [vmem:[%s12894_s2 + $0x14e4] ss:$16 sps:$4 sm:$0xff]  }
 0x264   :  { %5844 = vmatprep.subr.bf16.mxu0 %v9350_v33  ;;  %6418 = vmatprep.subr.bf16.mxu1 %v9353_v26  ;;  %v9437_v33 = vld [vmem:[%s12894_s2 + $0x14ec] ss:$16 sps:$4 sm:$0xff]   ;;  %v9432_v26 = vld [vmem:[%s12894_s2 + $0x14e0] ss:$16 sps:$4 sm:$0xff]  }
 0x267   :  { %5845 = vmatpush1.bf16.msra.mxu0 %v9348_v36  ;;  %6419 = vmatpush1.bf16.msra.mxu1 %v9351_v37  ;;  %v9435_v36 = vld [vmem:[%s12894_s2 + $0x14e8] ss:$16 sps:$4 sm:$0xff]   ;;  %v9440_v37 = vld [vmem:[%s12894_s2 + $0x1504] ss:$16 sps:$4 sm:$0xff]  }
 0x268   :  { %5846 = vmatprep.subr.bf16.mxu0 %v9356_v21  ;;  %6420 = vmatprep.subr.bf16.mxu1 %v9359_v39  ;;  %v9443_v21 = vld [vmem:[%s12894_s2 + $0x150c] ss:$16 sps:$4 sm:$0xff]   ;;  %v9438_v39 = vld [vmem:[%s12894_s2 + $0x1500] ss:$16 sps:$4 sm:$0xff]  }
 0x26b   :  { %5847 = vmatpush1.bf16.msra.mxu0 %v9354_v40  ;;  %6421 = vmatpush1.bf16.msra.mxu1 %v9357_v41  ;;  %v9441_v40 = vld [vmem:[%s12894_s2 + $0x1508] ss:$16 sps:$4 sm:$0xff]   ;;  %v9446_v41 = vld [vmem:[%s12894_s2 + $0x1524] ss:$16 sps:$4 sm:$0xff]  }
 0x26c   :  { %5848 = vmatprep.subr.bf16.mxu0 %v9362_v34  ;;  %6422 = vmatprep.subr.bf16.mxu1 %v9365_v43  ;;  %v9449_v34 = vld [vmem:[%s12894_s2 + $0x152c] ss:$16 sps:$4 sm:$0xff]   ;;  %v9444_v43 = vld [vmem:[%s12894_s2 + $0x1520] ss:$16 sps:$4 sm:$0xff]  }
 0x26f   :  { %5849 = vmatpush1.bf16.msra.mxu0 %v9360_v45  ;;  %6423 = vmatpush1.bf16.msra.mxu1 %v9363_v46  ;;  %v9447_v45 = vld [vmem:[%s12894_s2 + $0x1528] ss:$16 sps:$4 sm:$0xff]   ;;  %v9452_v46 = vld [vmem:[%s12894_s2 + $0x1544] ss:$16 sps:$4 sm:$0xff]  }
 0x270   :  { %5850 = vmatprep.subr.bf16.mxu0 %v9368_v35  ;;  %6424 = vmatprep.subr.bf16.mxu1 %v9371_v50  ;;  %v9455_v35 = vld [vmem:[%s12894_s2 + $0x154c] ss:$16 sps:$4 sm:$0xff]   ;;  %v9450_v50 = vld [vmem:[%s12894_s2 + $0x1540] ss:$16 sps:$4 sm:$0xff]  }
 0x273   :  { %5851 = vmatpush1.bf16.msra.mxu0 %v9366_v53  ;;  %6425 = vmatpush1.bf16.msra.mxu1 %v9369_v38  ;;  %v9453_v53 = vld [vmem:[%s12894_s2 + $0x1548] ss:$16 sps:$4 sm:$0xff]   ;;  %v9458_v38 = vld [vmem:[%s12894_s2 + $0x1564] ss:$16 sps:$4 sm:$0xff]  }
 0x274   :  { %5852 = vmatprep.subr.bf16.mxu0 %v9374_v54  ;;  %6426 = vmatprep.subr.bf16.mxu1 %v9377_v55  ;;  %v9461_v54 = vld [vmem:[%s12894_s2 + $0x156c] ss:$16 sps:$4 sm:$0xff]   ;;  %v9456_v55 = vld [vmem:[%s12894_s2 + $0x1560] ss:$16 sps:$4 sm:$0xff]  }
 0x277   :  { %5853 = vmatpush1.bf16.msra.mxu0 %v9372_v56  ;;  %6427 = vmatpush1.bf16.msra.mxu1 %v9375_v47  ;;  %v9459_v56 = vld [vmem:[%s12894_s2 + $0x1568] ss:$16 sps:$4 sm:$0xff]   ;;  %v9464_v47 = vld [vmem:[%s12894_s2 + $0x1584] ss:$16 sps:$4 sm:$0xff]  }
 0x278   :  { %5854 = vmatprep.subr.bf16.mxu0 %v9380_v57  ;;  %6428 = vmatprep.subr.bf16.mxu1 %v9383_v58  ;;  %v9467_v57 = vld [vmem:[%s12894_s2 + $0x158c] ss:$16 sps:$4 sm:$0xff]   ;;  %v9462_v58 = vld [vmem:[%s12894_s2 + $0x1580] ss:$16 sps:$4 sm:$0xff]  }
 0x27b   :  { %5855 = vmatpush1.bf16.msra.mxu0 %v9378_v48  ;;  %6429 = vmatpush1.bf16.msra.mxu1 %v9381_v61  ;;  %v9470_v48 = vld [vmem:[%s12894_s2 + $0x15a4] ss:$16 sps:$4 sm:$0xff]   ;;  %v9473_v61 = vld [vmem:[%s12894_s2 + $0x15ac] ss:$16 sps:$4 sm:$0xff]  }
 0x27c   :  { %5856 = vmatprep.subr.bf16.mxu0 %v9386_v63  ;;  %6430 = vmatprep.subr.bf16.mxu1 %v9389_v44  ;;  %v9468_v63 = vld [vmem:[%s12894_s2 + $0x15a0] ss:$16 sps:$4 sm:$0xff]   ;;  %v9471_v44 = vld [vmem:[%s12894_s2 + $0x15a8] ss:$16 sps:$4 sm:$0xff]  }
 0x27f   :  { %5857 = vmatpush1.bf16.msra.mxu0 %v9384_v1  ;;  %6431 = vmatpush1.bf16.msra.mxu1 %v9387_v51  ;;  %v9476_v1 = vld [vmem:[%s12894_s2 + $0x15c4] ss:$16 sps:$4 sm:$0xff]   ;;  %v9479_v51 = vld [vmem:[%s12894_s2 + $0x15cc] ss:$16 sps:$4 sm:$0xff]  }
 0x280   :  { %5867 = vmatprep.subr.bf16.mxu0 %v9392_v2  ;;  %6441 = vmatprep.subr.bf16.mxu1 %v9395_v3  ;;  %v9474_v2 = vld [vmem:[%s12894_s2 + $0x15c0] ss:$16 sps:$4 sm:$0xff]   ;;  %v9477_v3 = vld [vmem:[%s12894_s2 + $0x15c8] ss:$16 sps:$4 sm:$0xff]  }
 0x282   :  { %5859 = vmatmul.mubr.bf16.vlgmr.msra.gmra.mrb[0].mxu0 %v1083_v60  ;;  %6433 = vmatmul.mubr.bf16.vlgmr.msra.gmra.mrb[0].mxu1 %v1083_v60  ;;  %v9485_v60 = vld [vmem:[%s12894_s2 + $0x15ec] ss:$16 sps:$4 sm:$0xff]  }
 0x283   :  { %5868 = vmatpush1.bf16.msra.mxu0 %v9390_v5  ;;  %6442 = vmatpush1.bf16.msra.mxu1 %v9393_v6  ;;  %v9480_v5 = vld [vmem:[%s12894_s2 + $0x15e0] ss:$16 sps:$4 sm:$0xff]   ;;  %v9483_v6 = vld [vmem:[%s12894_s2 + $0x15e8] ss:$16 sps:$4 sm:$0xff]  }
 0x284   :  { %5869 = vmatprep.subr.bf16.mxu0 %v9398_v7  ;;  %6443 = vmatprep.subr.bf16.mxu1 %v9401_v62  ;;  %v9489_v7 = vld [vmem:[%s12894_s2 + $0x1604] ss:$16 sps:$4 sm:$0xff]   ;;  %v9492_v62 = vld [vmem:[%s12894_s2 + $0x160c] ss:$16 sps:$4 sm:$0xff]  }
 0x285   :  { %5899 = vmatprep.mubr.bf16.mxu0 %v11897_v8  ;;  %6473 = vmatprep.mubr.bf16.mxu1 %v11897_v8 }
 0x287   :  { %5870 = vmatpush1.bf16.msra.mxu0 %v9396_v9  ;;  %6444 = vmatpush1.bf16.msra.mxu1 %v9399_v10  ;;  %v12083_v9 = vrot.slane %v11866_v0, %v9973_v49  ;;  %v9487_v10 = vld [vmem:[%s12894_s2 + $0x1600] ss:$16 sps:$4 sm:$0xff]   ;;  %v9498_v0 = vld [vmem:[%s12894_s2 + $0x162c] ss:$16 sps:$4 sm:$0xff]  }
 0x288   :  { %5871 = vmatprep.subr.bf16.mxu0 %v9404_v11  ;;  %6445 = vmatprep.subr.bf16.mxu1 %v9407_v12  ;;  %v9490_v11 = vld [vmem:[%s12894_s2 + $0x1608] ss:$16 sps:$4 sm:$0xff]   ;;  %v9495_v12 = vld [vmem:[%s12894_s2 + $0x1624] ss:$16 sps:$4 sm:$0xff]  }
 0x28b   :  { %5872 = vmatpush1.bf16.msra.mxu0 %v9402_v52  ;;  %6446 = vmatpush1.bf16.msra.mxu1 %v9405_v15  ;;  %v1086_v52 = vcombine.high %v11897_v8, %v11897_v8  ;;  %v9493_v15 = vld [vmem:[%s12894_s2 + $0x1620] ss:$16 sps:$4 sm:$0xff]   ;;  %v9501_v8 = vld [vmem:[%s12894_s2 + $0x1644] ss:$16 sps:$4 sm:$0xff]  }
 0x28c   :  { %5873 = vmatprep.subr.bf16.mxu0 %v9410_v16  ;;  %6447 = vmatprep.subr.bf16.mxu1 %v9413_v17  ;;  %v9496_v16 = vld [vmem:[%s12894_s2 + $0x1628] ss:$16 sps:$4 sm:$0xff]   ;;  %v9504_v17 = vld [vmem:[%s12894_s2 + $0x164c] ss:$16 sps:$4 sm:$0xff]  }
 0x28f   :  { %5874 = vmatpush1.bf16.msra.mxu0 %v9408_v18  ;;  %6448 = vmatpush1.bf16.msra.mxu1 %v9411_v19  ;;  %v9499_v18 = vld [vmem:[%s12894_s2 + $0x1640] ss:$16 sps:$4 sm:$0xff]   ;;  %v9502_v19 = vld [vmem:[%s12894_s2 + $0x1648] ss:$16 sps:$4 sm:$0xff]  }
 0x290   :  { %5875 = vmatprep.subr.bf16.mxu0 %v9416_v20  ;;  %6449 = vmatprep.subr.bf16.mxu1 %v9419_v22  ;;  %v9507_v20 = vld [vmem:[%s12894_s2 + $0x1664] ss:$16 sps:$4 sm:$0xff]   ;;  %v9510_v22 = vld [vmem:[%s12894_s2 + $0x166c] ss:$16 sps:$4 sm:$0xff]  }
 0x293   :  { %5876 = vmatpush1.bf16.msra.mxu0 %v9414_v23  ;;  %6450 = vmatpush1.bf16.msra.mxu1 %v9417_v24  ;;  %v9505_v23 = vld [vmem:[%s12894_s2 + $0x1660] ss:$16 sps:$4 sm:$0xff]   ;;  %v9508_v24 = vld [vmem:[%s12894_s2 + $0x1668] ss:$16 sps:$4 sm:$0xff]  }
 0x294   :  { %5877 = vmatprep.subr.bf16.mxu0 %v9422_v13  ;;  %6451 = vmatprep.subr.bf16.mxu1 %v9425_v27  ;;  %v9513_v13 = vld [vmem:[%s12894_s2 + $0x1684] ss:$16 sps:$4 sm:$0xff]   ;;  %v9516_v27 = vld [vmem:[%s12894_s2 + $0x168c] ss:$16 sps:$4 sm:$0xff]  }
 0x297   :  { %5878 = vmatpush1.bf16.msra.mxu0 %v9420_v28  ;;  %6452 = vmatpush1.bf16.msra.mxu1 %v9423_v29  ;;  %v9511_v28 = vld [vmem:[%s12894_s2 + $0x1680] ss:$16 sps:$4 sm:$0xff]   ;;  %v9514_v29 = vld [vmem:[%s12894_s2 + $0x1688] ss:$16 sps:$4 sm:$0xff]  }
 0x298   :  { %5879 = vmatprep.subr.bf16.mxu0 %v9428_v14  ;;  %6453 = vmatprep.subr.bf16.mxu1 %v9431_v30  ;;  %v9519_v14 = vld [vmem:[%s12894_s2 + $0x16a4] ss:$16 sps:$4 sm:$0xff]   ;;  %v9522_v30 = vld [vmem:[%s12894_s2 + $0x16ac] ss:$16 sps:$4 sm:$0xff]  }
 0x29b   :  { %5880 = vmatpush1.bf16.msra.mxu0 %v9426_v31  ;;  %6454 = vmatpush1.bf16.msra.mxu1 %v9429_v25  ;;  %v9517_v31 = vld [vmem:[%s12894_s2 + $0x16a0] ss:$16 sps:$4 sm:$0xff]   ;;  %v9520_v25 = vld [vmem:[%s12894_s2 + $0x16a8] ss:$16 sps:$4 sm:$0xff]  }
 0x29c   :  { %5881 = vmatprep.subr.bf16.mxu0 %v9434_v32  ;;  %6455 = vmatprep.subr.bf16.mxu1 %v9437_v33  ;;  %v9525_v32 = vld [vmem:[%s12894_s2 + $0x16c4] ss:$16 sps:$4 sm:$0xff]   ;;  %v9528_v33 = vld [vmem:[%s12894_s2 + $0x16cc] ss:$16 sps:$4 sm:$0xff]  }
 0x29f   :  { %5882 = vmatpush1.bf16.msra.mxu0 %v9432_v26  ;;  %6456 = vmatpush1.bf16.msra.mxu1 %v9435_v36  ;;  %v9523_v26 = vld [vmem:[%s12894_s2 + $0x16c0] ss:$16 sps:$4 sm:$0xff]   ;;  %v9526_v36 = vld [vmem:[%s12894_s2 + $0x16c8] ss:$16 sps:$4 sm:$0xff]  }
 0x2a0   :  { %5883 = vmatprep.subr.bf16.mxu0 %v9440_v37  ;;  %6457 = vmatprep.subr.bf16.mxu1 %v9443_v21  ;;  %v9531_v37 = vld [vmem:[%s12894_s2 + $0x16e4] ss:$16 sps:$4 sm:$0xff]   ;;  %v9534_v21 = vld [vmem:[%s12894_s2 + $0x16ec] ss:$16 sps:$4 sm:$0xff]  }
 0x2a3   :  { %5884 = vmatpush1.bf16.msra.mxu0 %v9438_v39  ;;  %6458 = vmatpush1.bf16.msra.mxu1 %v9441_v40  ;;  %v9529_v39 = vld [vmem:[%s12894_s2 + $0x16e0] ss:$16 sps:$4 sm:$0xff]   ;;  %v9532_v40 = vld [vmem:[%s12894_s2 + $0x16e8] ss:$16 sps:$4 sm:$0xff]  }
 0x2a4   :  { %5885 = vmatprep.subr.bf16.mxu0 %v9446_v41  ;;  %6459 = vmatprep.subr.bf16.mxu1 %v9449_v34  ;;  %v9537_v41 = vld [vmem:[%s12894_s2 + $0x1704] ss:$16 sps:$4 sm:$0xff]   ;;  %v9540_v34 = vld [vmem:[%s12894_s2 + $0x170c] ss:$16 sps:$4 sm:$0xff]  }
 0x2a7   :  { %5886 = vmatpush1.bf16.msra.mxu0 %v9444_v43  ;;  %6460 = vmatpush1.bf16.msra.mxu1 %v9447_v45  ;;  %v9535_v43 = vld [vmem:[%s12894_s2 + $0x1700] ss:$16 sps:$4 sm:$0xff]   ;;  %v9538_v45 = vld [vmem:[%s12894_s2 + $0x1708] ss:$16 sps:$4 sm:$0xff]  }
 0x2a8   :  { %5887 = vmatprep.subr.bf16.mxu0 %v9452_v46  ;;  %6461 = vmatprep.subr.bf16.mxu1 %v9455_v35  ;;  %v9543_v46 = vld [vmem:[%s12894_s2 + $0x1724] ss:$16 sps:$4 sm:$0xff]   ;;  %v9546_v35 = vld [vmem:[%s12894_s2 + $0x172c] ss:$16 sps:$4 sm:$0xff]  }
 0x2ab   :  { %5888 = vmatpush1.bf16.msra.mxu0 %v9450_v50  ;;  %6462 = vmatpush1.bf16.msra.mxu1 %v9453_v53  ;;  %v9541_v50 = vld [vmem:[%s12894_s2 + $0x1720] ss:$16 sps:$4 sm:$0xff]   ;;  %v9544_v53 = vld [vmem:[%s12894_s2 + $0x1728] ss:$16 sps:$4 sm:$0xff]  }
 0x2ac   :  { %5889 = vmatprep.subr.bf16.mxu0 %v9458_v38  ;;  %6463 = vmatprep.subr.bf16.mxu1 %v9461_v54  ;;  %v9549_v38 = vld [vmem:[%s12894_s2 + $0x1744] ss:$16 sps:$4 sm:$0xff]   ;;  %v9552_v54 = vld [vmem:[%s12894_s2 + $0x174c] ss:$16 sps:$4 sm:$0xff]  }
 0x2af   :  { %5890 = vmatpush1.bf16.msra.mxu0 %v9456_v55  ;;  %6464 = vmatpush1.bf16.msra.mxu1 %v9459_v56  ;;  %v9547_v55 = vld [vmem:[%s12894_s2 + $0x1740] ss:$16 sps:$4 sm:$0xff]   ;;  %v9550_v56 = vld [vmem:[%s12894_s2 + $0x1748] ss:$16 sps:$4 sm:$0xff]  }
 0x2b0   :  { %5891 = vmatprep.subr.bf16.mxu0 %v9464_v47  ;;  %6465 = vmatprep.subr.bf16.mxu1 %v9467_v57  ;;  %v9555_v47 = vld [vmem:[%s12894_s2 + $0x1764] ss:$16 sps:$4 sm:$0xff]   ;;  %v9558_v57 = vld [vmem:[%s12894_s2 + $0x176c] ss:$16 sps:$4 sm:$0xff]  }
 0x2b3   :  { %5892 = vmatpush1.bf16.msra.mxu0 %v9462_v58  ;;  %6466 = vmatpush1.bf16.msra.mxu1 %v9465_v59  ;;  %v9553_v58 = vld [vmem:[%s12894_s2 + $0x1760] ss:$16 sps:$4 sm:$0xff]   ;;  %v9556_v59 = vld [vmem:[%s12894_s2 + $0x1768] ss:$16 sps:$4 sm:$0xff]  }
 0x2b4   :  { %5893 = vmatprep.subr.bf16.mxu0 %v9470_v48  ;;  %6467 = vmatprep.subr.bf16.mxu1 %v9473_v61  ;;  %v9561_v48 = vld [vmem:[%s12894_s2 + $0x1784] ss:$16 sps:$4 sm:$0xff]   ;;  %v9564_v61 = vld [vmem:[%s12894_s2 + $0x178c] ss:$16 sps:$4 sm:$0xff]  }
 0x2b7   :  { %5894 = vmatpush1.bf16.msra.mxu0 %v9468_v63  ;;  %6468 = vmatpush1.bf16.msra.mxu1 %v9471_v44  ;;  %v9559_v63 = vld [vmem:[%s12894_s2 + $0x1780] ss:$16 sps:$4 sm:$0xff]   ;;  %v9562_v44 = vld [vmem:[%s12894_s2 + $0x1788] ss:$16 sps:$4 sm:$0xff]  }
 0x2b8   :  { %5895 = vmatprep.subr.bf16.mxu0 %v9476_v1  ;;  %6469 = vmatprep.subr.bf16.mxu1 %v9479_v51  ;;  %v9567_v1 = vld [vmem:[%s12894_s2 + $0x17a4] ss:$16 sps:$4 sm:$0xff]   ;;  %v9570_v51 = vld [vmem:[%s12894_s2 + $0x17ac] ss:$16 sps:$4 sm:$0xff]  }
 0x2bb   :  { %5896 = vmatpush1.bf16.msra.mxu0 %v9474_v2  ;;  %6470 = vmatpush1.bf16.msra.mxu1 %v9477_v3  ;;  %v9565_v2 = vld [vmem:[%s12894_s2 + $0x17a0] ss:$16 sps:$4 sm:$0xff]   ;;  %v9568_v3 = vld [vmem:[%s12894_s2 + $0x17a8] ss:$16 sps:$4 sm:$0xff]  }
 0x2bc   :  { %5897 = vmatprep.subr.bf16.mxu0 %v9482_v4  ;;  %6471 = vmatprep.subr.bf16.mxu1 %v9485_v60  ;;  %v9573_v4 = vld [vmem:[%s12894_s2 + $0x17c4] ss:$16 sps:$4 sm:$0xff]   ;;  %v9576_v60 = vld [vmem:[%s12894_s2 + $0x17cc] ss:$16 sps:$4 sm:$0xff]  }
 0x2bf   :  { %5898 = vmatpush1.bf16.msra.mxu0 %v9480_v5  ;;  %6472 = vmatpush1.bf16.msra.mxu1 %v9483_v6  ;;  %v9571_v5 = vld [vmem:[%s12894_s2 + $0x17c0] ss:$16 sps:$4 sm:$0xff]   ;;  %v9574_v6 = vld [vmem:[%s12894_s2 + $0x17c8] ss:$16 sps:$4 sm:$0xff]  }
 0x2c0   :  { %5908 = vmatprep.subr.bf16.mxu0 %v9489_v7  ;;  %6482 = vmatprep.subr.bf16.mxu1 %v9492_v62  ;;  %v9579_v7 = vld [vmem:[%s12894_s2 + $0x17e4] ss:$16 sps:$4 sm:$0xff]   ;;  %v9582_v62 = vld [vmem:[%s12894_s2 + $0x17ec] ss:$16 sps:$4 sm:$0xff]  }
 0x2c2   :  { %5900 = vmatmul.mubr.bf16.vlgmr.msra.gmra.mrb[0].mxu0 %v12083_v9  ;;  %6474 = vmatmul.mubr.bf16.vlgmr.msra.gmra.mrb[0].mxu1 %v12083_v9 }
 0x2c3   :  { %5909 = vmatpush1.bf16.msra.mxu0 %v9487_v10  ;;  %6483 = vmatpush1.bf16.msra.mxu1 %v9490_v11  ;;  %v12272_v10 = vld.sshfl [vmem:[%s12892_s0 + $0x18] sm:$0x13 pattern:$0x75316420]  ;;  %v9577_v11 = vld [vmem:[%s12894_s2 + $0x17e0] ss:$16 sps:$4 sm:$0xff]  }
 0x2c4   :  { %5910 = vmatprep.subr.bf16.mxu0 %v9495_v12  ;;  %6484 = vmatprep.subr.bf16.mxu1 %v9498_v0  ;;  %v9580_v12 = vld [vmem:[%s12894_s2 + $0x17e8] ss:$16 sps:$4 sm:$0xff]   ;;  %v9585_v0 = vld [vmem:[%s12894_s2 + $0x1804] ss:$16 sps:$4 sm:$0xff]  }
 0x2c5   :  { %5940 = vmatprep.mubr.bf16.mxu0 %v1086_v52  ;;  %6514 = vmatprep.mubr.bf16.mxu1 %v1086_v52  ;;  %v9588_v52 = vld [vmem:[%s12894_s2 + $0x180c] ss:$16 sps:$4 sm:$0xff]  }
 0x2c7   :  { %5911 = vmatpush1.bf16.msra.mxu0 %v9493_v15  ;;  %6485 = vmatpush1.bf16.msra.mxu1 %v9496_v16  ;;  %v1094_v15 = vcombine.high %v12272_v10, %v12272_v10  ;;  %v1084_v16 = vcombine.high %v12083_v9, %v12083_v9  ;;  %v9594_v9 = vld [vmem:[%s12894_s2 + $0x182c] ss:$16 sps:$4 sm:$0xff]  }
 0x2c8   :  { %5912 = vmatprep.subr.bf16.mxu0 %v9501_v8  ;;  %6486 = vmatprep.subr.bf16.mxu1 %v9504_v17  ;;  %v9583_v8 = vld [vmem:[%s12894_s2 + $0x1800] ss:$16 sps:$4 sm:$0xff]   ;;  %v9586_v17 = vld [vmem:[%s12894_s2 + $0x1808] ss:$16 sps:$4 sm:$0xff]  }
 0x2cb   :  { %5913 = vmatpush1.bf16.msra.mxu0 %v9499_v18  ;;  %6487 = vmatpush1.bf16.msra.mxu1 %v9502_v19  ;;  %v9591_v18 = vld [vmem:[%s12894_s2 + $0x1824] ss:$16 sps:$4 sm:$0xff]   ;;  %v1108_v19 = vrot.slane %v1094_v15, %v9973_v49 }
 0x2cc   :  { %5914 = vmatprep.subr.bf16.mxu0 %v9507_v20  ;;  %6488 = vmatprep.subr.bf16.mxu1 %v9510_v22  ;;  %v9589_v20 = vld [vmem:[%s12894_s2 + $0x1820] ss:$16 sps:$4 sm:$0xff]   ;;  %v9592_v22 = vld [vmem:[%s12894_s2 + $0x1828] ss:$16 sps:$4 sm:$0xff]   ;;  %v9675_v15 = vld [vmem:[%s12894_s2 + $0x19e4] ss:$16 sps:$4 sm:$0xff]  }
 0x2cf   :  { %5915 = vmatpush1.bf16.msra.mxu0 %v9505_v23  ;;  %6489 = vmatpush1.bf16.msra.mxu1 %v9508_v24  ;;  %v9597_v23 = vld [vmem:[%s12894_s2 + $0x1844] ss:$16 sps:$4 sm:$0xff]   ;;  %v9600_v24 = vld [vmem:[%s12894_s2 + $0x184c] ss:$16 sps:$4 sm:$0xff]  }
 0x2d0   :  { %5916 = vmatprep.subr.bf16.mxu0 %v9513_v13  ;;  %6490 = vmatprep.subr.bf16.mxu1 %v9516_v27  ;;  %v9595_v13 = vld [vmem:[%s12894_s2 + $0x1840] ss:$16 sps:$4 sm:$0xff]   ;;  %v9598_v27 = vld [vmem:[%s12894_s2 + $0x1848] ss:$16 sps:$4 sm:$0xff]  }
 0x2d3   :  { %5917 = vmatpush1.bf16.msra.mxu0 %v9511_v28  ;;  %6491 = vmatpush1.bf16.msra.mxu1 %v9514_v29  ;;  %v9603_v28 = vld [vmem:[%s12894_s2 + $0x1864] ss:$16 sps:$4 sm:$0xff]   ;;  %v9606_v29 = vld [vmem:[%s12894_s2 + $0x186c] ss:$16 sps:$4 sm:$0xff]  }
 0x2d4   :  { %5918 = vmatprep.subr.bf16.mxu0 %v9519_v14  ;;  %6492 = vmatprep.subr.bf16.mxu1 %v9522_v30  ;;  %v9601_v14 = vld [vmem:[%s12894_s2 + $0x1860] ss:$16 sps:$4 sm:$0xff]   ;;  %v9604_v30 = vld [vmem:[%s12894_s2 + $0x1868] ss:$16 sps:$4 sm:$0xff]  }
 0x2d7   :  { %5919 = vmatpush1.bf16.msra.mxu0 %v9517_v31  ;;  %6493 = vmatpush1.bf16.msra.mxu1 %v9520_v25  ;;  %v9609_v31 = vld [vmem:[%s12894_s2 + $0x1884] ss:$16 sps:$4 sm:$0xff]   ;;  %v9612_v25 = vld [vmem:[%s12894_s2 + $0x188c] ss:$16 sps:$4 sm:$0xff]  }
 0x2d8   :  { %5920 = vmatprep.subr.bf16.mxu0 %v9525_v32  ;;  %6494 = vmatprep.subr.bf16.mxu1 %v9528_v33  ;;  %v9607_v32 = vld [vmem:[%s12894_s2 + $0x1880] ss:$16 sps:$4 sm:$0xff]   ;;  %v9610_v33 = vld [vmem:[%s12894_s2 + $0x1888] ss:$16 sps:$4 sm:$0xff]  }
 0x2db   :  { %5921 = vmatpush1.bf16.msra.mxu0 %v9523_v26  ;;  %6495 = vmatpush1.bf16.msra.mxu1 %v9526_v36  ;;  %v9615_v26 = vld [vmem:[%s12894_s2 + $0x18a4] ss:$16 sps:$4 sm:$0xff]   ;;  %v9618_v36 = vld [vmem:[%s12894_s2 + $0x18ac] ss:$16 sps:$4 sm:$0xff]  }
 0x2dc   :  { %5922 = vmatprep.subr.bf16.mxu0 %v9531_v37  ;;  %6496 = vmatprep.subr.bf16.mxu1 %v9534_v21  ;;  %v9613_v37 = vld [vmem:[%s12894_s2 + $0x18a0] ss:$16 sps:$4 sm:$0xff]   ;;  %v9616_v21 = vld [vmem:[%s12894_s2 + $0x18a8] ss:$16 sps:$4 sm:$0xff]  }
 0x2df   :  { %5923 = vmatpush1.bf16.msra.mxu0 %v9529_v39  ;;  %6497 = vmatpush1.bf16.msra.mxu1 %v9532_v40  ;;  %v9621_v39 = vld [vmem:[%s12894_s2 + $0x18c4] ss:$16 sps:$4 sm:$0xff]   ;;  %v9624_v40 = vld [vmem:[%s12894_s2 + $0x18cc] ss:$16 sps:$4 sm:$0xff]  }
 0x2e0   :  { %5924 = vmatprep.subr.bf16.mxu0 %v9537_v41  ;;  %6498 = vmatprep.subr.bf16.mxu1 %v9540_v34  ;;  %v9619_v41 = vld [vmem:[%s12894_s2 + $0x18c0] ss:$16 sps:$4 sm:$0xff]   ;;  %v9622_v34 = vld [vmem:[%s12894_s2 + $0x18c8] ss:$16 sps:$4 sm:$0xff]  }
 0x2e3   :  { %5925 = vmatpush1.bf16.msra.mxu0 %v9535_v43  ;;  %6499 = vmatpush1.bf16.msra.mxu1 %v9538_v45  ;;  %v9627_v43 = vld [vmem:[%s12894_s2 + $0x18e4] ss:$16 sps:$4 sm:$0xff]   ;;  %v9630_v45 = vld [vmem:[%s12894_s2 + $0x18ec] ss:$16 sps:$4 sm:$0xff]  }
 0x2e4   :  { %5926 = vmatprep.subr.bf16.mxu0 %v9543_v46  ;;  %6500 = vmatprep.subr.bf16.mxu1 %v9546_v35  ;;  %v9625_v46 = vld [vmem:[%s12894_s2 + $0x18e0] ss:$16 sps:$4 sm:$0xff]   ;;  %v9628_v35 = vld [vmem:[%s12894_s2 + $0x18e8] ss:$16 sps:$4 sm:$0xff]  }
 0x2e7   :  { %5927 = vmatpush1.bf16.msra.mxu0 %v9541_v50  ;;  %6501 = vmatpush1.bf16.msra.mxu1 %v9544_v53  ;;  %v9633_v50 = vld [vmem:[%s12894_s2 + $0x1904] ss:$16 sps:$4 sm:$0xff]   ;;  %v9636_v53 = vld [vmem:[%s12894_s2 + $0x190c] ss:$16 sps:$4 sm:$0xff]  }
 0x2e8   :  { %5928 = vmatprep.subr.bf16.mxu0 %v9549_v38  ;;  %6502 = vmatprep.subr.bf16.mxu1 %v9552_v54  ;;  %v9631_v38 = vld [vmem:[%s12894_s2 + $0x1900] ss:$16 sps:$4 sm:$0xff]   ;;  %v9634_v54 = vld [vmem:[%s12894_s2 + $0x1908] ss:$16 sps:$4 sm:$0xff]  }
 0x2eb   :  { %5929 = vmatpush1.bf16.msra.mxu0 %v9547_v55  ;;  %6503 = vmatpush1.bf16.msra.mxu1 %v9550_v56  ;;  %v9639_v55 = vld [vmem:[%s12894_s2 + $0x1924] ss:$16 sps:$4 sm:$0xff]   ;;  %v9642_v56 = vld [vmem:[%s12894_s2 + $0x192c] ss:$16 sps:$4 sm:$0xff]  }
 0x2ec   :  { %5930 = vmatprep.subr.bf16.mxu0 %v9555_v47  ;;  %6504 = vmatprep.subr.bf16.mxu1 %v9558_v57  ;;  %v9637_v47 = vld [vmem:[%s12894_s2 + $0x1920] ss:$16 sps:$4 sm:$0xff]   ;;  %v9640_v57 = vld [vmem:[%s12894_s2 + $0x1928] ss:$16 sps:$4 sm:$0xff]  }
 0x2ef   :  { %5931 = vmatpush1.bf16.msra.mxu0 %v9553_v58  ;;  %6505 = vmatpush1.bf16.msra.mxu1 %v9556_v59  ;;  %v9645_v58 = vld [vmem:[%s12894_s2 + $0x1944] ss:$16 sps:$4 sm:$0xff]   ;;  %v9648_v59 = vld [vmem:[%s12894_s2 + $0x194c] ss:$16 sps:$4 sm:$0xff]  }
 0x2f0   :  { %5932 = vmatprep.subr.bf16.mxu0 %v9561_v48  ;;  %6506 = vmatprep.subr.bf16.mxu1 %v9564_v61  ;;  %v9643_v48 = vld [vmem:[%s12894_s2 + $0x1940] ss:$16 sps:$4 sm:$0xff]   ;;  %v9646_v61 = vld [vmem:[%s12894_s2 + $0x1948] ss:$16 sps:$4 sm:$0xff]  }
 0x2f3   :  { %5933 = vmatpush1.bf16.msra.mxu0 %v9559_v63  ;;  %6507 = vmatpush1.bf16.msra.mxu1 %v9562_v44  ;;  %v9651_v63 = vld [vmem:[%s12894_s2 + $0x1964] ss:$16 sps:$4 sm:$0xff]   ;;  %v9654_v44 = vld [vmem:[%s12894_s2 + $0x196c] ss:$16 sps:$4 sm:$0xff]  }
 0x2f4   :  { %5934 = vmatprep.subr.bf16.mxu0 %v9567_v1  ;;  %6508 = vmatprep.subr.bf16.mxu1 %v9570_v51  ;;  %v9649_v1 = vld [vmem:[%s12894_s2 + $0x1960] ss:$16 sps:$4 sm:$0xff]   ;;  %v9652_v51 = vld [vmem:[%s12894_s2 + $0x1968] ss:$16 sps:$4 sm:$0xff]  }
 0x2f7   :  { %5935 = vmatpush1.bf16.msra.mxu0 %v9565_v2  ;;  %6509 = vmatpush1.bf16.msra.mxu1 %v9568_v3  ;;  %v9657_v2 = vld [vmem:[%s12894_s2 + $0x1984] ss:$16 sps:$4 sm:$0xff]   ;;  %v9660_v3 = vld [vmem:[%s12894_s2 + $0x198c] ss:$16 sps:$4 sm:$0xff]  }
 0x2f8   :  { %5936 = vmatprep.subr.bf16.mxu0 %v9573_v4  ;;  %6510 = vmatprep.subr.bf16.mxu1 %v9576_v60  ;;  %v9655_v4 = vld [vmem:[%s12894_s2 + $0x1980] ss:$16 sps:$4 sm:$0xff]   ;;  %v9658_v60 = vld [vmem:[%s12894_s2 + $0x1988] ss:$16 sps:$4 sm:$0xff]  }
 0x2fb   :  { %5937 = vmatpush1.bf16.msra.mxu0 %v9571_v5  ;;  %6511 = vmatpush1.bf16.msra.mxu1 %v9574_v6  ;;  %v9663_v5 = vld [vmem:[%s12894_s2 + $0x19a4] ss:$16 sps:$4 sm:$0xff]   ;;  %v9666_v6 = vld [vmem:[%s12894_s2 + $0x19ac] ss:$16 sps:$4 sm:$0xff]  }
 0x2fc   :  { %5938 = vmatprep.subr.bf16.mxu0 %v9579_v7  ;;  %6512 = vmatprep.subr.bf16.mxu1 %v9582_v62  ;;  %v9661_v7 = vld [vmem:[%s12894_s2 + $0x19a0] ss:$16 sps:$4 sm:$0xff]   ;;  %v9664_v62 = vld [vmem:[%s12894_s2 + $0x19a8] ss:$16 sps:$4 sm:$0xff]  }
 0x2ff   :  { %5939 = vmatpush1.bf16.msra.mxu0 %v9577_v11  ;;  %6513 = vmatpush1.bf16.msra.mxu1 %v9580_v12  ;;  %v9669_v11 = vld [vmem:[%s12894_s2 + $0x19c4] ss:$16 sps:$4 sm:$0xff]   ;;  %v9672_v12 = vld [vmem:[%s12894_s2 + $0x19cc] ss:$16 sps:$4 sm:$0xff]  }
 0x300   :  { %5949 = vmatprep.subr.bf16.mxu0 %v9585_v0  ;;  %6523 = vmatprep.subr.bf16.mxu1 %v9588_v52  ;;  %v9667_v0 = vld [vmem:[%s12894_s2 + $0x19c0] ss:$16 sps:$4 sm:$0xff]   ;;  %v9670_v52 = vld [vmem:[%s12894_s2 + $0x19c8] ss:$16 sps:$4 sm:$0xff]  }
 0x302   :  { %5941 = vmatmul.mubr.bf16.vlgmr.msra.gmra.mrb[0].mxu0 %v1084_v16  ;;  %6515 = vmatmul.mubr.bf16.vlgmr.msra.gmra.mrb[0].mxu1 %v1084_v16  ;;  %v9678_v16 = vld [vmem:[%s12894_s2 + $0x19ec] ss:$16 sps:$4 sm:$0xff]  }
 0x303   :  { %5950 = vmatpush1.bf16.msra.mxu0 %v9583_v8  ;;  %6524 = vmatpush1.bf16.msra.mxu1 %v9586_v17  ;;  %v9673_v8 = vld [vmem:[%s12894_s2 + $0x19e0] ss:$16 sps:$4 sm:$0xff]   ;;  %v9676_v17 = vld [vmem:[%s12894_s2 + $0x19e8] ss:$16 sps:$4 sm:$0xff]  }
 0x304   :  { %5951 = vmatprep.subr.bf16.mxu0 %v9591_v18  ;;  %6525 = vmatprep.subr.bf16.mxu1 %v9594_v9  ;;  %v9681_v18 = vld [vmem:[%s12894_s2 + $0x1a04] ss:$16 sps:$4 sm:$0xff]   ;;  %v9684_v9 = vld [vmem:[%s12894_s2 + $0x1a0c] ss:$16 sps:$4 sm:$0xff]  }
 0x305   :  { %5981 = vmatprep.mubr.bf16.mxu0 %v1108_v19  ;;  %6555 = vmatprep.mubr.bf16.mxu1 %v1108_v19  ;;  %v12485_v19 = vrot.slane %v12272_v10, %v9973_v49  ;;  %v9690_v49 = vld [vmem:[%s12894_s2 + $0x1a2c] ss:$16 sps:$4 sm:$0xff]   ;;  %v9685_v10 = vld [vmem:[%s12894_s2 + $0x1a20] ss:$16 sps:$4 sm:$0xff]  }
 0x307   :  { %5952 = vmatpush1.bf16.msra.mxu0 %v9589_v20  ;;  %6526 = vmatpush1.bf16.msra.mxu1 %v9592_v22  ;;  %v9679_v20 = vld [vmem:[%s12894_s2 + $0x1a00] ss:$16 sps:$4 sm:$0xff]   ;;  %v9682_v22 = vld [vmem:[%s12894_s2 + $0x1a08] ss:$16 sps:$4 sm:$0xff]  }
 0x308   :  { %5953 = vmatprep.subr.bf16.mxu0 %v9597_v23  ;;  %6527 = vmatprep.subr.bf16.mxu1 %v9600_v24  ;;  %v9687_v23 = vld [vmem:[%s12894_s2 + $0x1a24] ss:$16 sps:$4 sm:$0xff]   ;;  %v9688_v24 = vld [vmem:[%s12894_s2 + $0x1a28] ss:$16 sps:$4 sm:$0xff]  }
 0x30b   :  { %5954 = vmatpush1.bf16.msra.mxu0 %v9595_v13  ;;  %6528 = vmatpush1.bf16.msra.mxu1 %v9598_v27  ;;  %v9693_v13 = vld [vmem:[%s12894_s2 + $0x1a44] ss:$16 sps:$4 sm:$0xff]   ;;  %v9696_v27 = vld [vmem:[%s12894_s2 + $0x1a4c] ss:$16 sps:$4 sm:$0xff]  }
 0x30c   :  { %5955 = vmatprep.subr.bf16.mxu0 %v9603_v28  ;;  %6529 = vmatprep.subr.bf16.mxu1 %v9606_v29  ;;  %v9762_v28 = vmov 0   ;;  %v9691_v29 = vld [vmem:[%s12894_s2 + $0x1a40] ss:$16 sps:$4 sm:$0xff]  }
 0x30f   :  { %5956 = vmatpush1.bf16.msra.mxu0 %v9601_v14  ;;  %6530 = vmatpush1.bf16.msra.mxu1 %v9604_v30  ;;  %v9694_v14 = vld [vmem:[%s12894_s2 + $0x1a48] ss:$16 sps:$4 sm:$0xff]   ;;  %v9699_v30 = vld [vmem:[%s12894_s2 + $0x1a64] ss:$16 sps:$4 sm:$0xff]  }
 0x310   :  { %5957 = vmatprep.subr.bf16.mxu0 %v9609_v31  ;;  %6531 = vmatprep.subr.bf16.mxu1 %v9612_v25  ;;  %v9702_v31 = vld [vmem:[%s12894_s2 + $0x1a6c] ss:$16 sps:$4 sm:$0xff]   ;;  %v9697_v25 = vld [vmem:[%s12894_s2 + $0x1a60] ss:$16 sps:$4 sm:$0xff]  }
 0x313   :  { %5958 = vmatpush1.bf16.msra.mxu0 %v9607_v32  ;;  %6532 = vmatpush1.bf16.msra.mxu1 %v9610_v33  ;;  %v9700_v32 = vld [vmem:[%s12894_s2 + $0x1a68] ss:$16 sps:$4 sm:$0xff]   ;;  %v9705_v33 = vld [vmem:[%s12894_s2 + $0x1a84] ss:$16 sps:$4 sm:$0xff]  }
 0x314   :  { %5959 = vmatprep.subr.bf16.mxu0 %v9615_v26  ;;  %6533 = vmatprep.subr.bf16.mxu1 %v9618_v36  ;;  %v9708_v26 = vld [vmem:[%s12894_s2 + $0x1a8c] ss:$16 sps:$4 sm:$0xff]   ;;  %v9703_v36 = vld [vmem:[%s12894_s2 + $0x1a80] ss:$16 sps:$4 sm:$0xff]  }
 0x317   :  { %5960 = vmatpush1.bf16.msra.mxu0 %v9613_v37  ;;  %6534 = vmatpush1.bf16.msra.mxu1 %v9616_v21  ;;  %v9706_v37 = vld [vmem:[%s12894_s2 + $0x1a88] ss:$16 sps:$4 sm:$0xff]   ;;  %v9711_v21 = vld [vmem:[%s12894_s2 + $0x1aa4] ss:$16 sps:$4 sm:$0xff]  }
 0x318   :  { %5961 = vmatprep.subr.bf16.mxu0 %v9621_v39  ;;  %6535 = vmatprep.subr.bf16.mxu1 %v9624_v40  ;;  %v9714_v39 = vld [vmem:[%s12894_s2 + $0x1aac] ss:$16 sps:$4 sm:$0xff]   ;;  %v9709_v40 = vld [vmem:[%s12894_s2 + $0x1aa0] ss:$16 sps:$4 sm:$0xff]  }
 0x31b   :  { %5962 = vmatpush1.bf16.msra.mxu0 %v9619_v41  ;;  %6536 = vmatpush1.bf16.msra.mxu1 %v9622_v34  ;;  %v9712_v41 = vld [vmem:[%s12894_s2 + $0x1aa8] ss:$16 sps:$4 sm:$0xff]   ;;  %v9717_v34 = vld [vmem:[%s12894_s2 + $0x1ac4] ss:$16 sps:$4 sm:$0xff]  }
 0x31c   :  { %5963 = vmatprep.subr.bf16.mxu0 %v9627_v43  ;;  %6537 = vmatprep.subr.bf16.mxu1 %v9630_v45  ;;  %v9720_v43 = vld [vmem:[%s12894_s2 + $0x1acc] ss:$16 sps:$4 sm:$0xff]   ;;  %v9715_v45 = vld [vmem:[%s12894_s2 + $0x1ac0] ss:$16 sps:$4 sm:$0xff]  }
 0x31f   :  { %5964 = vmatpush1.bf16.msra.mxu0 %v9625_v46  ;;  %6538 = vmatpush1.bf16.msra.mxu1 %v9628_v35  ;;  %v9718_v46 = vld [vmem:[%s12894_s2 + $0x1ac8] ss:$16 sps:$4 sm:$0xff]   ;;  %v9723_v35 = vld [vmem:[%s12894_s2 + $0x1ae4] ss:$16 sps:$4 sm:$0xff]  }
 0x320   :  { %5965 = vmatprep.subr.bf16.mxu0 %v9633_v50  ;;  %6539 = vmatprep.subr.bf16.mxu1 %v9636_v53  ;;  %v9726_v50 = vld [vmem:[%s12894_s2 + $0x1aec] ss:$16 sps:$4 sm:$0xff]   ;;  %v6625_v53 = vld [vmem:[%s12896_s4 + $0x80] sm:$0xff] }
 0x323   :  { %5966 = vmatpush1.bf16.msra.mxu0 %v9631_v38  ;;  %6540 = vmatpush1.bf16.msra.mxu1 %v9634_v54  ;;  %v6626_v38 = vld [vmem:[%s12896_s4 + $0x88] sm:$0xff]  ;;  %v9721_v54 = vld [vmem:[%s12894_s2 + $0x1ae0] ss:$16 sps:$4 sm:$0xff]  }
 0x324   :  { %5967 = vmatprep.subr.bf16.mxu0 %v9639_v55  ;;  %6541 = vmatprep.subr.bf16.mxu1 %v9642_v56  ;;  %v9724_v55 = vld [vmem:[%s12894_s2 + $0x1ae8] ss:$16 sps:$4 sm:$0xff]   ;;  %v6641_v56 = vld [vmem:[%s12896_s4 + $0x100] sm:$0xff] }
 0x327   :  { %5968 = vmatpush1.bf16.msra.mxu0 %v9637_v47  ;;  %6542 = vmatpush1.bf16.msra.mxu1 %v9640_v57  ;;  %v6642_v47 = vld [vmem:[%s12896_s4 + $0x108] sm:$0xff]  ;;  %v8213_v57 = vpack.c.bf16 %v6626_v38, %v6625_v53  ;;  %v6655_v38 = vld [vmem:[%s12896_s4 + $0x170] sm:$0xff] }
 0x328   :  { %5969 = vmatprep.subr.bf16.mxu0 %v9645_v58  ;;  %6543 = vmatprep.subr.bf16.mxu1 %v9648_v59  ;;  %v6609_v58 = vld [vmem:[%s12896_s4] sm:$0xff]  ;;  %v6610_v59 = vld [vmem:[%s12896_s4 + $0x8] sm:$0xff] }
 0x32b   :  { %5970 = vmatpush1.bf16.msra.mxu0 %v9643_v48  ;;  %6544 = vmatpush1.bf16.msra.mxu1 %v9646_v61  ;;  %v6627_v48 = vld [vmem:[%s12896_s4 + $0x90] sm:$0xff]  ;;  %v6628_v61 = vld [vmem:[%s12896_s4 + $0x98] sm:$0xff] }
 0x32c   :  { %5971 = vmatprep.subr.bf16.mxu0 %v9651_v63  ;;  %6545 = vmatprep.subr.bf16.mxu1 %v9654_v44  ;;  %v1109_v63 = vcombine.high %v12485_v19, %v12485_v19  ;;  %v8246_v44 = vpack.c.bf16 %v6642_v47, %v6641_v56  ;;  %v6621_v56 = vld [vmem:[%s12896_s4 + $0x60] sm:$0xff]  ;;  %v6622_v47 = vld [vmem:[%s12896_s4 + $0x68] sm:$0xff] }
 0x32f   :  { %5972 = vmatpush1.bf16.msra.mxu0 %v9649_v1  ;;  %6546 = vmatpush1.bf16.msra.mxu1 %v9652_v51  ;;  %v6643_v1 = vld [vmem:[%s12896_s4 + $0x110] sm:$0xff]  ;;  %v8215_v51 = vpack.c.bf16 %v6610_v59, %v6609_v58  ;;  %v6657_v58 = vld [vmem:[%s12896_s4 + $0x180] sm:$0xff]  ;;  %v6658_v59 = vld [vmem:[%s12896_s4 + $0x188] sm:$0xff] }
 0x330   :  { %5973 = vmatprep.subr.bf16.mxu0 %v9657_v2  ;;  %6547 = vmatprep.subr.bf16.mxu1 %v9660_v3  ;;  %v9763_v2 = vmov 0.0|0.0   ;;  %v6644_v3 = vld [vmem:[%s12896_s4 + $0x118] sm:$0xff] }
 0x333   :  { %5974 = vmatpush1.bf16.msra.mxu0 %v9655_v4  ;;  %6548 = vmatpush1.bf16.msra.mxu1 %v9658_v60  ;;  %v8217_v4 = vpack.c.bf16 %v6628_v61, %v6627_v48  ;;  %v6611_v60 = vld [vmem:[%s12896_s4 + $0x10] sm:$0xff]  ;;  %v8270_v48 = vpack.c.bf16 %v6658_v59, %v6657_v58  ;;  %v8070_v58 = vld [vmem:[%s12897_s5] ss:$0 sm:$0xff] }
 0x334   :  { %5975 = vmatprep.subr.bf16.mxu0 %v9663_v5  ;;  %6549 = vmatprep.subr.bf16.mxu1 %v9666_v6  ;;  %v6612_v5 = vld [vmem:[%s12896_s4 + $0x18] sm:$0xff]  ;;  %v6629_v6 = vld [vmem:[%s12896_s4 + $0xa0] sm:$0xff]  ;;  %v6639_v61 = vld [vmem:[%s12896_s4 + $0xf0] sm:$0xff] }
 0x337   :  { %5976 = vmatpush1.bf16.msra.mxu0 %v9661_v7  ;;  %6550 = vmatpush1.bf16.msra.mxu1 %v9664_v62  ;;  %v6630_v7 = vld [vmem:[%s12896_s4 + $0xa8] sm:$0xff]  ;;  %v8249_v62 = vpack.c.bf16 %v6644_v3, %v6643_v1  ;;  %v6623_v1 = vld [vmem:[%s12896_s4 + $0x70] sm:$0xff] }
 0x338   :  { %5977 = vmatprep.subr.bf16.mxu0 %v9669_v11  ;;  %6551 = vmatprep.subr.bf16.mxu1 %v9672_v12  ;;  %v6645_v11 = vld [vmem:[%s12896_s4 + $0x120] sm:$0xff]  ;;  %v8219_v12 = vpack.c.bf16 %v6612_v5, %v6611_v60  ;;  %v6659_v60 = vld [vmem:[%s12896_s4 + $0x190] sm:$0xff]  ;;  %v918_v5 = vsub.s32 0, %v9955_v42 }
 0x33b   :  { %5978 = vmatpush1.bf16.msra.mxu0 %v9667_v0  ;;  %6552 = vmatpush1.bf16.msra.mxu1 %v9670_v52  ;;  %v6646_v0 = vld [vmem:[%s12896_s4 + $0x128] sm:$0xff]  ;;  %v8221_v52 = vpack.c.bf16 %v6630_v7, %v6629_v6  ;;  %v926_v6 = vsub.s32 2, %v9955_v42  ;;  %v914_v7 = vld [vmem:[%s12895_s3] sm:$0xf] }
 0x33c   :  { %5979 = vmatprep.subr.bf16.mxu0 %v9675_v15  ;;  %6553 = vmatprep.subr.bf16.mxu1 %v9678_v16  ;;  %v6613_v15 = vld [vmem:[%s12896_s4 + $0x20] sm:$0xff]  ;;  %v6614_v16 = vld [vmem:[%s12896_s4 + $0x28] sm:$0xff] }
 0x33f   :  { %5980 = vmatpush1.bf16.msra.mxu0 %v9673_v8  ;;  %6554 = vmatpush1.bf16.msra.mxu1 %v9676_v17  ;;  %v6631_v8 = vld [vmem:[%s12896_s4 + $0xb0] sm:$0xff]  ;;  %v6632_v17 = vld [vmem:[%s12896_s4 + $0xb8] sm:$0xff] }
 0x340   :  { %5990 = vmatprep.subr.bf16.mxu0 %v9681_v18  ;;  %6564 = vmatprep.subr.bf16.mxu1 %v9684_v9  ;;  %v8252_v18 = vpack.c.bf16 %v6646_v0, %v6645_v11  ;;  %v6647_v9 = vld [vmem:[%s12896_s4 + $0x130] sm:$0xff]  ;;  %v930_v11 = vsub.s32 3, %v9955_v42  ;;  %v927_v0 = vrot.slane %v914_v7, %v926_v6 }
 0x342   :  { %5982 = vmatmul.mubr.bf16.vlgmr.msra.gmra.mrb[0].mxu0 %v12485_v19  ;;  %6556 = vmatmul.mubr.bf16.vlgmr.msra.gmra.mrb[0].mxu1 %v12485_v19  ;;  %v8223_v19 = vpack.c.bf16 %v6614_v16, %v6613_v15  ;;  %v931_v15 = vrot.slane %v914_v7, %v930_v11 }
 0x343   :  { %5991 = vmatpush1.bf16.msra.mxu0 %v9679_v20  ;;  %6565 = vmatpush1.bf16.msra.mxu1 %v9682_v22  ;;  %v6648_v20 = vld [vmem:[%s12896_s4 + $0x138] sm:$0xff]  ;;  %v8225_v22 = vpack.c.bf16 %v6632_v17, %v6631_v8 }
 0x344   :  { %5992 = vmatprep.subr.bf16.mxu0 %v9687_v23  ;;  %6566 = vmatprep.subr.bf16.mxu1 %v9690_v49  ;;  %v6615_v23 = vld [vmem:[%s12896_s4 + $0x30] sm:$0xff]  ;;  %v6616_v49 = vld [vmem:[%s12896_s4 + $0x38] sm:$0xff] }
 0x345   :  { %6022 = vmatprep.mubr.bf16.mxu0 %v9762_v28  ;;  %6596 = vmatprep.mubr.bf16.mxu1 %v9762_v28  ;;  %v8227_v28 = vpack.c.bf16 %v6616_v49, %v6615_v23 }
 0x347   :  { %5993 = vmatpush1.bf16.msra.mxu0 %v9685_v10  ;;  %6567 = vmatpush1.bf16.msra.mxu1 %v9688_v24  ;;  %v6633_v10 = vld [vmem:[%s12896_s4 + $0xc0] sm:$0xff]  ;;  %v6634_v24 = vld [vmem:[%s12896_s4 + $0xc8] sm:$0xff] }
 0x348   :  { %5994 = vmatprep.subr.bf16.mxu0 %v9693_v13  ;;  %6568 = vmatprep.subr.bf16.mxu1 %v9696_v27  ;;  %v8255_v13 = vpack.c.bf16 %v6648_v20, %v6647_v9  ;;  %v6649_v27 = vld [vmem:[%s12896_s4 + $0x140] sm:$0xff] }
 0x34b   :  { %5995 = vmatpush1.bf16.msra.mxu0 %v9691_v29  ;;  %6569 = vmatpush1.bf16.msra.mxu1 %v9694_v14  ;;  %v6650_v29 = vld [vmem:[%s12896_s4 + $0x148] sm:$0xff]  ;;  %v8229_v14 = vpack.c.bf16 %v6634_v24, %v6633_v10 }
 0x34c   :  { %5996 = vmatprep.subr.bf16.mxu0 %v9699_v30  ;;  %6570 = vmatprep.subr.bf16.mxu1 %v9702_v31  ;;  %v6617_v30 = vld [vmem:[%s12896_s4 + $0x40] sm:$0xff]  ;;  %v6618_v31 = vld [vmem:[%s12896_s4 + $0x48] sm:$0xff] }
 0x34f   :  { %5997 = vmatpush1.bf16.msra.mxu0 %v9697_v25  ;;  %6571 = vmatpush1.bf16.msra.mxu1 %v9700_v32  ;;  %v6635_v25 = vld [vmem:[%s12896_s4 + $0xd0] sm:$0xff]  ;;  %v6636_v32 = vld [vmem:[%s12896_s4 + $0xd8] sm:$0xff] }
 0x350   :  { %5998 = vmatprep.subr.bf16.mxu0 %v9705_v33  ;;  %6572 = vmatprep.subr.bf16.mxu1 %v9708_v26  ;;  %v8258_v33 = vpack.c.bf16 %v6650_v29, %v6649_v27  ;;  %v6651_v26 = vld [vmem:[%s12896_s4 + $0x150] sm:$0xff]  ;;  %v6825_v29 = vld [vmem:[%s12898_s6] sm:$0xff] }
 0x353   :  { %5999 = vmatpush1.bf16.msra.mxu0 %v9703_v36  ;;  %6573 = vmatpush1.bf16.msra.mxu1 %v9706_v37  ;;  %v8231_v36 = vpack.c.bf16 %v6618_v31, %v6617_v30  ;;  %v6652_v37 = vld [vmem:[%s12896_s4 + $0x158] sm:$0xff]  ;;  %v6827_v30 = vld [vmem:[%s12898_s6 + $0x10] sm:$0xff] }
 0x354   :  { %6000 = vmatprep.subr.bf16.mxu0 %v9711_v21  ;;  %6574 = vmatprep.subr.bf16.mxu1 %v9714_v39  ;;  %v8233_v21 = vpack.c.bf16 %v6636_v32, %v6635_v25  ;;  %v6619_v39 = vld [vmem:[%s12896_s4 + $0x50] sm:$0xff]  ;;  %v6828_v25 = vld [vmem:[%s12898_s6 + $0x18] sm:$0xff] }
 0x355   :  { %v8276_v32 = vpack.c.bf16 %v6828_v25, %v6827_v30  ;;  %v8077_v25 = vld [vmem:[%s12902_s10] ss:$0 sm:$0xff]  ;;  %s9767_s10 = smov [#allocation2]  }
 0x357   :  { %6001 = vmatpush1.bf16.msra.mxu0 %v9709_v40  ;;  %6575 = vmatpush1.bf16.msra.mxu1 %v9712_v41  ;;  %v6620_v40 = vld [vmem:[%s12896_s4 + $0x58] sm:$0xff]  ;;  %v6637_v41 = vld [vmem:[%s12896_s4 + $0xe0] sm:$0xff] }
 0x358   :  { %6002 = vmatprep.subr.bf16.mxu0 %v9717_v34  ;;  %6576 = vmatprep.subr.bf16.mxu1 %v9720_v43  ;;  %v6638_v34 = vld [vmem:[%s12896_s4 + $0xe8] sm:$0xff]  ;;  %v8261_v43 = vpack.c.bf16 %v6652_v37, %v6651_v26  ;;  %v6831_v37 = vld [vmem:[%s12898_s6 + $0x30] sm:$0xff] }
 0x359   :  { %v6830_v26 = vld [vmem:[%s12898_s6 + $0x28] sm:$0xff] }
 0x35b   :  { %6003 = vmatpush1.bf16.msra.mxu0 %v9715_v45  ;;  %6577 = vmatpush1.bf16.msra.mxu1 %v9718_v46  ;;  %v8235_v45 = vpack.c.bf16 %v6620_v40, %v6619_v39  ;;  %v6653_v46 = vld [vmem:[%s12896_s4 + $0x160] sm:$0xff] }
 0x35c   :  { %6004 = vmatprep.subr.bf16.mxu0 %v9723_v35  ;;  %6578 = vmatprep.subr.bf16.mxu1 %v9726_v50  ;;  %v6654_v35 = vld [vmem:[%s12896_s4 + $0x168] sm:$0xff]  ;;  %v8237_v50 = vpack.c.bf16 %v6638_v34, %v6637_v41  ;;  %v6833_v40 = vld [vmem:[%s12898_s6 + $0x40] sm:$0xff] }
 0x35d   :  { %v8264_v53 = vpack.c.bf16 %v6654_v35, %v6653_v46  ;;  %v6834_v41 = vld [vmem:[%s12898_s6 + $0x48] sm:$0xff]  ;;  %v6837_v35 = vld [vmem:[%s12898_s6 + $0x60] sm:$0xff] }
 0x35e   :  { %v8285_v34 = vpack.c.bf16 %v6834_v41, %v6833_v40 }
 0x35f   :  { %6005 = vmatpush1.bf16.msra.mxu0 %v9721_v54  ;;  %6579 = vmatpush1.bf16.msra.mxu1 %v9724_v55  ;;  %v6656_v54 = vld [vmem:[%s12896_s4 + $0x178] sm:$0xff] }
 0x360   :  { %8245 = vmatprep.subr.bf16.mxu1 %v9763_v2  ;;  %8214 = vmatprep.subr.bf16.mxu0 %v8213_v57  ;;  %v8267_v55 = vpack.c.bf16 %v6656_v54, %v6655_v38  ;;  %v8239_v57 = vpack.c.bf16 %v6622_v47, %v6621_v56  ;;  %v6839_v38 = vld [vmem:[%s12898_s6 + $0x70] sm:$0xff]  ;;  %v6840_v54 = vld [vmem:[%s12898_s6 + $0x78] sm:$0xff]  ;;  %v6824_v56 = vld [vmem:[%s12893_s1] sm:$0x3] }
 0x362   :  { %6023 = vmatmul.mubr.bf16.vlgmr.msra.gmra.mrb[0].mxu0 %v1109_v63  ;;  %6597 = vmatmul.mubr.bf16.vlgmr.msra.gmra.mrb[0].mxu1 %v1109_v63  ;;  %v6640_v63 = vld [vmem:[%s12896_s4 + $0xf8] sm:$0xff] }
 0x363   :  { %8247 = vmatpush1.bf16.msra.mxu1 %v8246_v44  ;;  %8216 = vmatpush3.bf16.msra.mxu0 %v8215_v51  ;;  %v8241_v44 = vpack.c.bf16 %v6640_v63, %v6639_v61  ;;  %v6624_v51 = vld [vmem:[%s12896_s4 + $0x78] sm:$0xff] }
 0x364   :  { %8248 = vmatprep.subr.bf16.mxu1 %v9763_v2  ;;  %8218 = vmatprep.subr.bf16.mxu0 %v8217_v4  ;;  %v8243_v3 = vpack.c.bf16 %v6624_v51, %v6623_v1  ;;  %v9764_v4 = vmov 0.0  }
 0x367   :  { %8250 = vmatpush1.bf16.msra.mxu1 %v8249_v62  ;;  %8220 = vmatpush3.bf16.msra.mxu0 %v8219_v12  ;;  %v922_v62 = vsub.s32 1, %v9955_v42  ;;  %v919_v12 = vrot.slane %v914_v7, %v918_v5 }
 0x368   :  { %8251 = vmatprep.subr.bf16.mxu1 %v9763_v2  ;;  %8222 = vmatprep.subr.bf16.mxu0 %v8221_v52 }
 0x369   :  { %v923_v52 = vrot.slane %v914_v7, %v922_v62  ;;  %v6922_v7 = vld [vmem:[%s12901_s9] sm:$0xff]  ;;  %v6923_v62 = vld [vmem:[%s12901_s9 + $0x8] sm:$0xff] }
 0x36a   :  { %v8297_v11 = vpack.c.bf16 %v6923_v62, %v6922_v7 }
 0x36b   :  { %8253 = vmatpush1.bf16.msra.mxu1 %v8252_v18  ;;  %8224 = vmatpush3.bf16.msra.mxu0 %v8223_v19 }
 0x36c   :  { %8254 = vmatprep.subr.bf16.mxu1 %v9763_v2  ;;  %8226 = vmatprep.subr.bf16.mxu0 %v8225_v22 }
 0x36f   :  { %8256 = vmatpush1.bf16.msra.mxu1 %v8255_v13  ;;  %8228 = vmatpush3.bf16.msra.mxu0 %v8227_v28 }
 0x370   :  { %8257 = vmatprep.subr.bf16.mxu1 %v9763_v2  ;;  %8230 = vmatprep.subr.bf16.mxu0 %v8229_v14  ;;  %v6826_v14 = vld [vmem:[%s12898_s6 + $0x8] sm:$0xff] }
 0x371   :  { %v8273_v31 = vpack.c.bf16 %v6826_v14, %v6825_v29 }
 0x373   :  { %8259 = vmatpush1.bf16.msra.mxu1 %v8258_v33  ;;  %8232 = vmatpush3.bf16.msra.mxu0 %v8231_v36  ;;  %v6829_v33 = vld [vmem:[%s12898_s6 + $0x20] sm:$0xff] }
 0x374   :  { %8260 = vmatprep.subr.bf16.mxu1 %v9763_v2  ;;  %8234 = vmatprep.subr.bf16.mxu0 %v8233_v21  ;;  %v8279_v36 = vpack.c.bf16 %v6830_v26, %v6829_v33  ;;  %v6832_v21 = vld [vmem:[%s12898_s6 + $0x38] sm:$0xff] }
 0x375   :  { %v8282_v39 = vpack.c.bf16 %v6832_v21, %v6831_v37 }
 0x377   :  { %8262 = vmatpush1.bf16.msra.mxu1 %v8261_v43  ;;  %8236 = vmatpush3.bf16.msra.mxu0 %v8235_v45  ;;  %v6835_v43 = vld [vmem:[%s12898_s6 + $0x50] sm:$0xff]  ;;  %v6836_v45 = vld [vmem:[%s12898_s6 + $0x58] sm:$0xff] }
 0x378   :  { %8263 = vmatprep.subr.bf16.mxu1 %v9763_v2  ;;  %8238 = vmatprep.subr.bf16.mxu0 %v8237_v50  ;;  %v8288_v46 = vpack.c.bf16 %v6836_v45, %v6835_v43  ;;  %v6838_v50 = vld [vmem:[%s12898_s6 + $0x68] sm:$0xff] }
 0x37b   :  { %8265 = vmatpush1.bf16.msra.mxu1 %v8264_v53  ;;  %8240 = vmatpush3.bf16.msra.mxu0 %v8239_v57  ;;  %v8291_v53 = vpack.c.bf16 %v6838_v50, %v6837_v35 }
 0x37c   :  { %8266 = vmatprep.subr.bf16.mxu1 %v9763_v2  ;;  %8242 = vmatprep.subr.bf16.mxu0 %v8241_v44 }
 0x37f   :  { %8268 = vmatpush1.bf16.msra.mxu1 %v8267_v55  ;;  %8244 = vmatpush3.bf16.msra.mxu0 %v8243_v3  ;;  %v8294_v55 = vpack.c.bf16 %v6840_v54, %v6839_v38 }
 0x380   :  { %8269 = vmatprep.subr.bf16.mxu1 %v9763_v2  ;;  %8272 = vmatprep.subr.bf16.mxu0 %v9763_v2 }
 0x383   :  { %8271 = vmatpush1.bf16.msra.mxu1 %v8270_v48 }
 0x384   :  { %6777 = vmatprep.subr.mxu1 %v9764_v4 }
 0x387   :  { %6778 = vmatpush1.msra.mxu1 %v6659_v60 }
 0x388   :  { %8296 = vmatprep.subr.bf16.mxu1 %v9763_v2 }
 0x435   :  { %v6024_v16 = vpop.f32.mrb[0].mxu0  ;;  %v6598_v8 = vpop.f32.mrb[0].mxu1 }
 0x436   :  { %v8313_v17 = vadd.f32 %v6024_v16, %v919_v12  ;;  %v8315_v18 = vadd.f32 %v6598_v8, %v927_v0  ;;  %v6026_v9 = vpop.f32.mrb[1].mxu0  ;;  %v6600_v19 = vpop.f32.mrb[1].mxu1  ;;  %v6924_v12 = vld [vmem:[%s12901_s9 + $0x10] sm:$0xff]  ;;  %v6925_v0 = vld [vmem:[%s12901_s9 + $0x18] sm:$0x1] }
 0x437   :  { %v8314_v20 = vadd.f32 %v6026_v9, %v923_v52  ;;  %v8316_v22 = vadd.f32 %v6600_v19, %v931_v15  ;;  %v6028_v23 = vpop.f32.mrb[2].mxu0  ;;  %v6602_v49 = vpop.f32.mrb[2].mxu1  ;;  %v8300_v52 = vpack.c.bf16 %v6925_v0, %v6924_v12  ;;  %v6919_v9 = vld [vmem:[%s12900_s8 + $0x8] sm:$0xff] }
 0x438   :  { %v6029_v10 = vpop.f32.mrb[3].mxu0  ;;  %v6603_v24 = vpop.f32.mrb[3].mxu1  ;;  %v6605_v42 = vmax.f32 %v8313_v17, 0.0  ;;  %v6607_v28 = vmax.f32 %v8315_v18, 0.0  ;;  %v6918_v18 = vld [vmem:[%s12900_s8] sm:$0xff]  ;;  %v6920_v49 = vld [vmem:[%s12900_s8 + $0x10] sm:$0xff] }
 0x439   :  { %v6606_v13 = vmax.f32 %v8314_v20, 0.0  ;;  %v6608_v27 = vmax.f32 %v8316_v22, 0.0  ;;  %v8304_v22 = vpack.c.bf16 %v6919_v9, %v6918_v18  ;;  %v6921_v10 = vld [vmem:[%s12900_s8 + $0x18] sm:$0x1]  ;;  %v8072_v24 = vld [vmem:[%s12899_s7] ss:$0 sm:$0xff] }
 0x43b   :  { %6735 = vmatprep.mubr.f32.mxu0 %v6606_v13  ;;  %8071 = vmatprep.mubr.msk.f32.mxu1 %vm6667_vm0, %v6608_v27  ;;  %v8307_v13 = vpack.c.bf16 %v6921_v10, %v6920_v49 }
 0x43c   :  { %6736 = vmatmul.mubr.f32.vlgmr.msra.gmra.mrb[4].mxu0 %v6605_v42  ;;  %6806 = vmatmul.mubr.f32.vlgmr.msra.gmra.mrb[4].mxu1 %v6607_v28  ;;  %v7089_v42 = vld [vmem:[%s12903_s11] sm:$0xff]  ;;  %v7090_v28 = vld [vmem:[%s12903_s11 + $0x8] sm:$0xff] }
 0x43d   :  { %8179 = vmatprep.mubr.msk.f32.mxu0 %vm9765_vm1, %v9764_v4  ;;  %8190 = vmatprep.mubr.msk.f32.mxu1 %vm9765_vm1, %v9764_v4  ;;  %v8311_v29 = vpack.c.bf16 %v7090_v28, %v7089_v42 }
 0x43e   :  { %8274 = vmatpush3.bf16.msra.mxu0 %v8273_v31  ;;  %8298 = vmatpush3.bf16.msra.mxu1 %v8297_v11 }
 0x43f   :  { %8275 = vmatprep.subr.bf16.mxu0 %v9763_v2  ;;  %8299 = vmatprep.subr.bf16.mxu1 %v9763_v2 }
 0x442   :  { %8277 = vmatpush3.bf16.msra.mxu0 %v8276_v32  ;;  %8302 = vmatpush3.bf16.msk.msra.mxu1 %vm12831_vm5, %v8300_v52 }
 0x443   :  { %8278 = vmatprep.subr.bf16.mxu0 %v9763_v2  ;;  %8303 = vmatprep.subr.bf16.mxu1 %v9763_v2 }
 0x446   :  { %8280 = vmatpush3.bf16.msra.mxu0 %v8279_v36 }
 0x447   :  { %8281 = vmatprep.subr.bf16.mxu0 %v9763_v2 }
 0x44a   :  { %8283 = vmatpush3.bf16.msra.mxu0 %v8282_v39 }
 0x44b   :  { %8284 = vmatprep.subr.bf16.mxu0 %v9763_v2 }
 0x44e   :  { %8286 = vmatpush3.bf16.msra.mxu0 %v8285_v34 }
 0x44f   :  { %8287 = vmatprep.subr.bf16.mxu0 %v9763_v2 }
 0x452   :  { %8289 = vmatpush3.bf16.msra.mxu0 %v8288_v46 }
 0x453   :  { %8290 = vmatprep.subr.bf16.mxu0 %v9763_v2 }
 0x456   :  { %8292 = vmatpush3.bf16.msra.mxu0 %v8291_v53 }
 0x457   :  { %8293 = vmatprep.subr.bf16.mxu0 %v9763_v2 }
 0x45a   :  { %8295 = vmatpush3.bf16.msra.mxu0 %v8294_v55 }
 0x45d   :  { %8180 = vmatmul.mubr.f32.vlgmr.msra.gmra.mrb[6].mxu0 %v6824_v56 }
 0x50f   :  { %v8113_v47 = vpop.f32.mrb[4].mxu0  ;;  %v6807_v57 = vpop.f32.mrb[4].mxu1 }
 0x510   :  { %v8114_v59 = vpop.f32.mrb[5].mxu0  ;;  %v6809_v48 = vpop.f32.mrb[5].mxu1 }
 0x511   :  { %v8115_v61 = vadd.f32 %v8114_v59, %v8113_v47 }
 0x513   :  { %v6738_v63 = vadd.f32 %v8115_v61, %v8070_v58 }
 0x515   :  { %v6808_v44 = vadd.f32 %v6807_v57, %v6738_v63 }
 0x517   :  { %v6812_v1 = vsel %vm6811_vm2, %v6808_v44, -inf }
 0x518   :  { %6813 = vmax.xlane.f32.xlu0 %v6812_v1 }
 0x530   :  { %v6914_v16 = vpop.f32.mrb[6].mxu0 }
 0x531   :  { %v8181_v8 = vpop.f32.mrb[7].mxu0  ;;  %v6915_v27 = vadd.f32 %v8072_v24, %v6914_v16 }
 0x5a5   :  { %v6814_v51 = vpop.xlane.xlu0 %6813 }
 0x5a6   :  { %v6815_v3 = vsub.f32 %v6808_v44, %v6814_v51 }
 0x5a8   :  { %v6816_v60 = vmul.f32 1.442695, %v6815_v3 }
 0x5aa   :  { %9727 = vpow2.f32 %v6816_v60 }
 0x5b4   :  { %v9728_v5 = vpop.eup %9727 }
 0x5b5   :  { %v6818_v6 = vsel %vm6811_vm2, %v9728_v5, 0.0 }
 0x5b6   :  { %6819 = vadd.xlane.f32.xlu0 %v6818_v6 }
 0x643   :  { %v6820_v17 = vpop.xlane.xlu0 %6819 }
 0x644   :  { %9729 = vlog2.f32 %v6820_v17 }
 0x64e   :  { %v9730_v19 = vpop.eup %9729 }
 0x64f   :  { %v6822_v20 = vmul.f32 0.6931472, %v9730_v19 }
 0x651   :  { %v6823_v23 = vsub.f32 %v6815_v3, %v6822_v20 }
 0x653   :  { %8191 = vmatmul.mubr.msk.f32.vlgmr.msra.gmra.mrb[6].mxu1 %vm6926_vm6, %v6823_v23 }
 0x654   :  { %8305 = vmatpush3.bf16.msra.mxu1 %v8304_v22  ;;  %8201 = vmatprep.mubr.msk.f32.mxu1 %vm9765_vm1, %v9764_v4 }
 0x655   :  { %8306 = vmatprep.subr.bf16.mxu1 %v9763_v2 }
 0x658   :  { %8309 = vmatpush3.bf16.msk.msra.mxu1 %vm12831_vm5, %v8307_v13 }
 0x659   :  { %8310 = vmatprep.subr.bf16.mxu1 %v9763_v2  ;;  %v7091_v2 = vld [vmem:[%s12903_s11 + $0x10] sm:$0xf]  ;;  %s7197_s11 = sshll.u32 %s9767_s10, 4  ;;  %s7198_s11 = int_to_ptr.vmem [resolvable:$true] %s7197_s11 }
 0x65a   :  { %p9742_p1 = scmp.lt.s32.totalorder %s7198_s11, %s7198_s11 }
 0x65b   :  { %8202 = vmatmul.mubr.msk.f32.vlgmr.msra.gmra.mrb[8].mxu1 %vm6926_vm6, %v6915_v27 }
 0x65c   :  { %8210 = vmatprep.mubr.msk.f32.mxu1 %vm9765_vm1, %v9764_v4  ;;  %8312 = vmatpush3.bf16.msra.mxu1 %v8311_v29 }
 0x65d   :  { %8208 = vmatprep.subr.mxu1 %v9764_v4  ;;  %v8078_v4 = vld [vmem:[%s12904_s12] ss:$0 sm:$0xff]  ;;  %s9737_s12 = scalar_lea.vmem %s7198_s11, 32 }
 0x65e   :  { %p9738_p0 = scmp.ne.s32.totalorder %s7198_s11, %s9737_s12  ;;  %p9743_p2 = scmp.lt.s32.totalorder %s9737_s12, %s9737_s12 }
 0x660   :  { %8209 = vmatpush3.msk.msra.mxu1 %vm7103_vm7, %v7091_v2  ;;  %p9744_p3 = por %p9743_p2, %p9742_p1 }
 0x662   :  { %p9745_p4 = pnand %p9744_p3, %p9738_p0 }
 0x726   :  { %v7000_v14 = vpop.f32.mrb[6].mxu1 }
 0x727   :  { %v8192_v30 = vpop.f32.mrb[7].mxu1 }
 0x72e   :  { %v7076_v31 = vpop.f32.mrb[8].mxu1 }
 0x72f   :  { %v7077_v32 = vadd.f32 %v7076_v31, %v7000_v14  ;;  %v8203_v33 = vpop.f32.mrb[9].mxu1 }
 0x731   :  { %v7087_v26 = vadd.f32 %v8077_v25, %v7077_v32 }
 0x733   :  { %v7088_v36 = vmax.f32 %v7087_v26, 0.0 }
 0x735   :  { %8211 = vmatmul.mubr.msk.f32.vlgmr.msra.gmra.mrb[10].mxu1 %vm7099_vm8, %v7088_v36 }
 0x808   :  { %v7173_v37 = vpop.f32.mrb[10].mxu1 }
 0x809   :  { %v7174_v21 = vadd.f32 %v8078_v4, %v7173_v37  ;;  %v8212_v39 = vpop.f32.mrb[11].mxu1 }
 0x80b   :  { %v7178_v40 = vsel %vm7177_vm9, %v7174_v21, -inf }
 0x80c   :  { %7179 = vmax.xlane.f32.xlu1 %v7178_v40 }
 0x899   :  { %v7180_v41 = vpop.xlane.xlu1 %7179 }
 0x89a   :  { %v7181_v34 = vsub.f32 %v7174_v21, %v7180_v41 }
 0x89c   :  { %v7182_v43 = vmul.f32 1.442695, %v7181_v34 }
 0x89e   :  { %9731 = vpow2.f32 %v7182_v43 }
 0x8a8   :  { %v9732_v45 = vpop.eup %9731 }
 0x8a9   :  { %v7184_v46 = vsel %vm7177_vm9, %v9732_v45, 0.0 }
 0x8aa   :  { %7185 = vadd.xlane.f32.xlu1 %v7184_v46 }
 0x937   :  { %v7186_v35 = vpop.xlane.xlu1 %7185 }
 0x938   :  { %9733 = vlog2.f32 %v7186_v35 }
 0x942   :  { %v9734_v50 = vpop.eup %9733 }
 0x943   :  { %v7188_v53 = vmul.f32 0.6931472, %v9734_v50 }
 0x945   :  { %v7189_v38 = vsub.f32 %v7181_v34, %v7188_v53 }
 0x947   :  { %7190 = vst.msk [vmem:[#allocation2] sm:$0x3] %vm7177_vm9, %v7189_v38 }
 0x948   :  { %9748 = shalt.err (!%p9745_p4)
}
 0x949   :  { %s9749_s21 = scalar_lea.hbm %s12905_s13, 32 }
 0x94a   :  { %p9750_p5 = scmp.ne.s32.totalorder %s12905_s13, %s9749_s21  ;;  %p9753_p6 = scmp.lt.u32.totalorder %s9749_s21, %s12905_s13 }
 0x94c   :  { %p9755_p7 = pnand %p9753_p6, %p9750_p5 }
 0x94e   :  { %9758 = shalt.err (!%p9755_p7)
}
 0x94f   :  { %7200 = dma.vmem_to_hbm [thread:$0]  %s7198_s11, 32, %s12905_s13, [#allocation3]  }
 0x950   :  { %9759 = dma.done.wait [#allocation3], 32  }
 0x951   :  { %9760 = vsyncadd [#allocation3], 4294967264 }
 0x952   :  { %7204 = vsyncpa [#allocation3], 1 }

</bundles_post_ra>
